<compile_context>
chip_gen: v5e
topology: v5e:2x2
jax: 0.10.0
libtpu: 0.0.40
codegen_flags: <defaults>
</compile_context>

<pallas_src>
import functools

import jax
import jax.numpy as jnp
from jax import lax
from jax.experimental import pallas as pl
from jax.experimental.pallas import tpu as pltpu

# ----- scaled-down AVES / wav2vec2-base hyperparameters -----
EMBED_DIM = 32
NUM_HEADS = 4
HEAD_DIM = EMBED_DIM // NUM_HEADS
NUM_LAYERS = 2
FF_DIM = 64
# (cin, cout, kernel, stride) ; bias=False, GroupNorm(C, C) after first conv
CONV_CFG = [(1, 32, 10, 5), (32, 32, 3, 2), (32, 32, 2, 2)]
POS_CONV_KERNEL = 4      # even kernel -> drop last output frame (num_remove=1)
POS_CONV_GROUPS = 4
LN_EPS = 1e-5
LANE = 128


def _round_up(x, m):
    return ((x + m - 1) // m) * m


def _nbytes(a):
    return int(a.size) * int(a.dtype.itemsize)


def _cparams():
    return pltpu.CompilerParams(
        dimension_semantics=("parallel",),
        vmem_limit_bytes=32 * 1024 * 1024,
    )


def _rep_spec(shape):
    """Full-array block replicated across the 1-D grid (weights / biases)."""
    n = len(shape)
    return pl.BlockSpec(shape, lambda b: (0,) * n)


# ---------------------------------------------------------------------------
# in-kernel elementwise helpers (exact-GELU via erf polynomial)
# ---------------------------------------------------------------------------
def _erf(x):
    # Abramowitz & Stegun 7.1.26 (exp / mul / add / select only).
    p = 0.3275911
    a1, a2, a3, a4, a5 = (0.254829592, -0.284496736, 1.421413741,
                          -1.453152027, 1.061405429)
    ax = jnp.abs(x)
    t = 1.0 / (1.0 + p * ax)
    poly = ((((a5 * t + a4) * t + a3) * t + a2) * t + a1) * t
    y = 1.0 - poly * jnp.exp(-ax * ax)
    return jnp.where(x >= 0, y, -y)


def _gelu(x):
    # PyTorch nn.GELU(approximate='none'):  0.5*x*(1+erf(x/sqrt(2)))
    return 0.5 * x * (1.0 + _erf(x * 0.7071067811865476))


def _layernorm(x, g, b, eps):
    mean = jnp.mean(x, axis=-1, keepdims=True)
    var = jnp.mean(jnp.square(x - mean), axis=-1, keepdims=True)
    return (x - mean) * lax.rsqrt(var + eps) * g + b


# ---------------------------------------------------------------------------
# feature-extractor conv block: one (Cout, K*Cin) @ (K*Cin, T) matmul,
# fused GroupNorm(C, C) (masked stats over valid columns) + GELU
# ---------------------------------------------------------------------------
def _conv_block_kernel(x_ref, w_ref, gb_ref, o_ref, *, t_valid, use_gn, eps):
    # x_ref: (1, K*Cin, Tp) bf16 windows; w_ref: (Cout, K*Cin) bf16.
    acc = jnp.dot(w_ref[...], x_ref[0],
                  preferred_element_type=jnp.float32)          # (Cout, Tp) f32
    if use_gn:
        # GroupNorm with num_groups == channels: per-channel norm over time.
        # Pad columns of the windows are zero => acc is zero there, so the sum
        # is exact; variance is masked to the valid columns.
        inv_n = 1.0 / t_valid
        mean = jnp.sum(acc, axis=-1, keepdims=True) * inv_n
        col = lax.broadcasted_iota(jnp.int32, acc.shape, 1)
        diff = jnp.where(col < t_valid, acc - mean, 0.0)
        var = jnp.sum(diff * diff, axis=-1, keepdims=True) * inv_n
        acc = diff * lax.rsqrt(var + eps) * gb_ref[:, 0:1] + gb_ref[:, 1:2]
    o_ref[0] = _gelu(acc).astype(o_ref.dtype)


def _conv_windows(x, t_valid, K, stride):
    """x: (B, Cin, Tp) with valid data in [:t_valid] -> (B, K*Cin, T_out)."""
    B, Cin, _ = x.shape
    t_out = (t_valid - K) // stride + 1
    cols = [lax.slice(x, (0, 0, k), (B, Cin, k + stride * (t_out - 1) + 1),
                      (1, 1, stride)) for k in range(K)]
    return jnp.concatenate(cols, axis=1), t_out


def pallas_conv_block(x, t_valid, w, gn_g, gn_b, *, stride, use_gn):
    """Valid conv (bias=False) with fused GroupNorm(optional)+GELU.

    Returns (y, t_out): y is (B, Cout, T_pad) bf16 with valid frames in
    [:t_out]; T_pad is a multiple of 128 so all stores are lane-dense."""
    B, Cin, _ = x.shape
    Cout, _, K = w.shape
    xw, t_out = _conv_windows(x, t_valid, K, stride)
    t_pad = _round_up(t_out, LANE)
    xw = jnp.pad(xw, ((0, 0), (0, 0), (0, t_pad - t_out))).astype(jnp.bfloat16)
    w2d = jnp.transpose(w, (0, 2, 1)).reshape(Cout, K * Cin).astype(jnp.bfloat16)
    gb = jnp.stack([gn_g, gn_b], axis=1).astype(jnp.float32)      # (Cout, 2)
    cost = pl.CostEstimate(
        flops=int(2 * B * Cout * K * Cin * t_pad),
        transcendentals=int(B * Cout * t_pad),
        bytes_accessed=_nbytes(xw) + _nbytes(w2d) + _nbytes(gb) + B * Cout * t_pad * 2)
    y = pl.pallas_call(
        functools.partial(_conv_block_kernel, t_valid=t_out, use_gn=use_gn,
                          eps=LN_EPS),
        grid=(B,),
        in_specs=[
            pl.BlockSpec((1, K * Cin, t_pad), lambda b: (b, 0, 0)),
            _rep_spec((Cout, K * Cin)),
            _rep_spec((Cout, 2)),
        ],
        out_specs=pl.BlockSpec((1, Cout, t_pad), lambda b: (b, 0, 0)),
        out_shape=jax.ShapeDtypeStruct((B, Cout, t_pad), jnp.bfloat16),
        compiler_params=_cparams(),
        cost_estimate=cost,
    )(xw, w2d, gb)
    return y, t_out


# ---------------------------------------------------------------------------
# fully-fused post-conv stack: feature projection + positional conv + GELU +
# residual + ALL post-norm transformer layers in ONE pallas_call
# ---------------------------------------------------------------------------
def _post_conv_stack_kernel(x_ref, fp_lnb_ref, fp_w_ref, misc_ref, pos_w_ref,
                            wqkv_ref, wo_ref, w1_ref, w2_ref, lvec_ref, o_ref,
                            *, num_layers, num_heads, head_dim, ff_dim, pos_k, eps):
    T = x_ref.shape[1]
    D = num_heads * head_dim
    pad = pos_k // 2
    scale = head_dim ** -0.5

    x = x_ref[0].astype(jnp.float32)                      # (T, C) f32
    # ---- feature projection: LayerNorm(C) -> Linear(C, D) (dropout = id) ----
    h = _layernorm(x, fp_lnb_ref[0], fp_lnb_ref[1], eps)
    h = jnp.dot(h.astype(jnp.bfloat16), fp_w_ref[...],
                preferred_element_type=jnp.float32) + misc_ref[0]      # (T, D)

    # ---- conv positional embedding: single K*D-deep matmul (taps stacked on
    #      lanes), zero halo built in VMEM, fused GELU + residual ----
    zpad = jnp.zeros((pad, D), jnp.float32)
    hp = jnp.concatenate([zpad, h, zpad], axis=0)          # (T + 2*pad, D)
    hw = jnp.concatenate([hp[k:k + T] for k in range(pos_k)], axis=1)  # (T, K*D)
    pos = jnp.dot(hw.astype(jnp.bfloat16), pos_w_ref[...],
                  preferred_element_type=jnp.float32) + misc_ref[1]
    xl = h + _gelu(pos)

    # ---- post-norm transformer layers (static loop, weights stacked on L) ----
    def split_heads(a):   # (T, D) -> (H, T, hd) with a leading head axis
        return jnp.stack(
            [a[:, hh * head_dim:(hh + 1) * head_dim] for hh in range(num_heads)],
            axis=0)

    for l in range(num_layers):
        lv = lvec_ref[l]                                   # (8, VW) f32 bias slab
        # fused QKV projection: one lane-dense (T, 3D) matmul
        qkv = jnp.dot(xl.astype(jnp.bfloat16), wqkv_ref[l],
                      preferred_element_type=jnp.float32) + lv[0, :3 * D]
        q = qkv[:, 0 * D:1 * D] * scale
        k = qkv[:, 1 * D:2 * D]
        v = qkv[:, 2 * D:3 * D]
        qh = split_heads(q).astype(jnp.bfloat16)           # (H, T, hd)
        kh = split_heads(k).astype(jnp.bfloat16)
        vh = split_heads(v).astype(jnp.bfloat16)
        # heads-batched attention on the MXU
        s = jnp.einsum('hqd,hkd->hqk', qh, kh,
                       preferred_element_type=jnp.float32)             # (H, T, T)
        m = jnp.max(s, axis=-1, keepdims=True)
        p = jnp.exp(s - m)
        p = p * pl.reciprocal(jnp.sum(p, axis=-1, keepdims=True), approx=True)
        ctx = jnp.einsum('hqk,hkd->hqd', p.astype(jnp.bfloat16), vh,
                         preferred_element_type=jnp.float32)           # (H, T, hd)
        ctx = jnp.concatenate([ctx[hh] for hh in range(num_heads)], axis=1)  # (T, D)
        # single full-depth output projection
        attn = jnp.dot(ctx.astype(jnp.bfloat16), wo_ref[l],
                       preferred_element_type=jnp.float32) + lv[1, :D]
        # residual adds fused into the LayerNorms; FFN with fused exact GELU
        x1 = _layernorm(xl + attn, lv[2, :D], lv[3, :D], eps)
        ff = _gelu(jnp.dot(x1.astype(jnp.bfloat16), w1_ref[l],
                           preferred_element_type=jnp.float32) + lv[4, :ff_dim])
        ff = jnp.dot(ff.astype(jnp.bfloat16), w2_ref[l],
                     preferred_element_type=jnp.float32) + lv[5, :D]
        xl = _layernorm(x1 + ff, lv[6, :D], lv[7, :D], eps)

    o_ref[0] = xl.astype(o_ref.dtype)


def pallas_post_conv_stack(feats, params):
    """feats: (B, T, C) bf16 features -> (B, T, D) f32 last-layer hidden states."""
    B, T, C = feats.shape
    D, H, hd, L, F, K = EMBED_DIM, NUM_HEADS, HEAD_DIM, NUM_LAYERS, FF_DIM, POS_CONV_KERNEL
    VW = max(3 * D, F)

    fp_lnb = jnp.stack([params["fp_ln_g"], params["fp_ln_b"]]).astype(jnp.float32)  # (2, C)
    fp_w = params["fp_w"].astype(jnp.bfloat16)                                      # (C, D)
    misc = jnp.stack([params["fp_b"], params["pos_conv_b"]]).astype(jnp.float32)    # (2, D)

    # grouped pos-conv -> block-diagonal dense weight, stacked over taps to
    # (K*D, D) so the conv is one full-depth matmul.  Fine at these dims.
    # TODO(synk): at production AVES scale keep the grouped structure (per-group
    # weights / grid over groups) instead of densifying, and fold the
    # weight_norm g*v/||v|| reparameterization in when loading real checkpoints.
    dg = D // POS_CONV_GROUPS
    w_dense = jnp.zeros((K, D, D), jnp.float32)
    for g in range(POS_CONV_GROUPS):
        wg = jnp.transpose(params["pos_conv_w"][g * dg:(g + 1) * dg], (2, 1, 0))
        w_dense = w_dense.at[:, g * dg:(g + 1) * dg, g * dg:(g + 1) * dg].set(wg)
    pos_w = w_dense.reshape(K * D, D).astype(jnp.bfloat16)

    def padv(v, w):
        return jnp.pad(v.astype(jnp.float32), (0, w - v.shape[0]))

    wqkv, wo, w1, w2, lvecs = [], [], [], [], []
    for lp in params["layers"]:
        wqkv.append(jnp.concatenate([lp["wq"], lp["wk"], lp["wv"]], axis=1))
        wo.append(lp["wo"])
        w1.append(lp["ff_w1"])
        w2.append(lp["ff_w2"])
        lvecs.append(jnp.stack([
            padv(jnp.concatenate([lp["bq"], lp["bk"], lp["bv"]]), VW),
            padv(lp["bo"], VW), padv(lp["ln1_g"], VW), padv(lp["ln1_b"], VW),
            padv(lp["ff_b1"], VW), padv(lp["ff_b2"], VW),
            padv(lp["ln2_g"], VW), padv(lp["ln2_b"], VW)]))
    wqkv = jnp.stack(wqkv).astype(jnp.bfloat16)     # (L, D, 3D)
    wo = jnp.stack(wo).astype(jnp.bfloat16)         # (L, D, D)
    w1 = jnp.stack(w1).astype(jnp.bfloat16)         # (L, D, F)
    w2 = jnp.stack(w2).astype(jnp.bfloat16)         # (L, F, D)
    lvecs = jnp.stack(lvecs).astype(jnp.float32)    # (L, 8, VW)

    args = (feats.astype(jnp.bfloat16), fp_lnb, fp_w, misc, pos_w,
            wqkv, wo, w1, w2, lvecs)
    in_specs = ([pl.BlockSpec((1, T, C), lambda b: (b, 0, 0))]
                + [_rep_spec(a.shape) for a in args[1:]])
    flops = 2 * B * T * (C * D + K * D * D
                         + L * (3 * D * D + 2 * T * D + D * D + 2 * D * F))
    cost = pl.CostEstimate(
        flops=int(flops),
        transcendentals=int(B * T * (D + L * (H * T + F))),
        bytes_accessed=sum(_nbytes(a) for a in args) + B * T * D * 4)
    return pl.pallas_call(
        functools.partial(_post_conv_stack_kernel, num_layers=L, num_heads=H,
                          head_dim=hd, ff_dim=F, pos_k=K, eps=LN_EPS),
        grid=(B,),
        in_specs=in_specs,
        out_specs=pl.BlockSpec((1, T, D), lambda b: (b, 0, 0)),
        out_shape=jax.ShapeDtypeStruct((B, T, D), jnp.float32),
        compiler_params=_cparams(),
        cost_estimate=cost,
    )(*args)


# ---------------------------------------------------------------------------
# model
# ---------------------------------------------------------------------------
def aves_forward(params, sig):
    """sig: (B, L) float32 waveform -> (B, T_frames, EMBED_DIM)."""
    x = sig[:, None, :]                                    # (B, 1, L)  NCT
    t_valid = sig.shape[1]
    # --- feature extractor (group_norm mode: GN+GELU after conv0, GELU after rest) ---
    for li, (cin, cout, k, s) in enumerate(CONV_CFG):
        use_gn = (li == 0)
        g = params["fe_gn_w"] if use_gn else jnp.ones((cout,), jnp.float32)
        b = params["fe_gn_b"] if use_gn else jnp.zeros((cout,), jnp.float32)
        x, t_valid = pallas_conv_block(x, t_valid, params["fe_conv"][li], g, b,
                                       stride=s, use_gn=use_gn)
    # single NCT -> NTC layout change on the valid frames
    feats = jnp.transpose(x[:, :, :t_valid], (0, 2, 1))    # (B, T, C) bf16
    # --- feature projection + pos-conv + ALL post-norm encoder layers, fused.
    #     Final encoder LayerNorm NOT applied (extract_features returns
    #     per-layer intermediates; post-norm config). ---
    return pallas_post_conv_stack(feats, params)


# ---------------------------------------------------------------------------
# deterministic synthetic parameters
# ---------------------------------------------------------------------------
def init_params(key):
    keys = iter(jax.random.split(key, 128))

    def nrm(shape, scale=0.05):
        return scale * jax.random.normal(next(keys), shape, dtype=jnp.float32)

    C_FEAT = CONV_CFG[-1][1]
    params = {
        "fe_conv": [nrm((cout, cin, k)) for (cin, cout, k, _) in CONV_CFG],
        "fe_gn_w": jnp.ones((CONV_CFG[0][1],), jnp.float32),
        "fe_gn_b": jnp.zeros((CONV_CFG[0][1],), jnp.float32),
        "fp_ln_g": jnp.ones((C_FEAT,), jnp.float32),
        "fp_ln_b": jnp.zeros((C_FEAT,), jnp.float32),
        "fp_w": nrm((C_FEAT, EMBED_DIM)),
        "fp_b": nrm((EMBED_DIM,)),
        "pos_conv_w": nrm((EMBED_DIM, EMBED_DIM // POS_CONV_GROUPS, POS_CONV_KERNEL)),
        "pos_conv_b": nrm((EMBED_DIM,)),
        "layers": [],
    }
    for _ in range(NUM_LAYERS):
        params["layers"].append({
            "wq": nrm((EMBED_DIM, EMBED_DIM)), "bq": nrm((EMBED_DIM,)),
            "wk": nrm((EMBED_DIM, EMBED_DIM)), "bk": nrm((EMBED_DIM,)),
            "wv": nrm((EMBED_DIM, EMBED_DIM)), "bv": nrm((EMBED_DIM,)),
            "wo": nrm((EMBED_DIM, EMBED_DIM)), "bo": nrm((EMBED_DIM,)),
            "ln1_g": jnp.ones((EMBED_DIM,), jnp.float32),
            "ln1_b": jnp.zeros((EMBED_DIM,), jnp.float32),
            "ff_w1": nrm((EMBED_DIM, FF_DIM)), "ff_b1": nrm((FF_DIM,)),
            "ff_w2": nrm((FF_DIM, EMBED_DIM)), "ff_b2": nrm((EMBED_DIM,)),
            "ln2_g": jnp.ones((EMBED_DIM,), jnp.float32),
            "ln2_b": jnp.zeros((EMBED_DIM,), jnp.float32),
        })
    return params


# TODO(synk): config/checkpoint download + torch.load in the original __init__
# is host I/O with no Pallas equivalent; synthetic deterministic params used.

if __name__ == "__main__":
    key = jax.random.PRNGKey(0)
    pkey, xkey = jax.random.split(key)
    params = init_params(pkey)

    B, L = 2, 800
    sig = jax.random.normal(xkey, (B, L), dtype=jnp.float32)

    # expected number of output frames from the conv feature extractor
    T = L
    for (_, _, k, s) in CONV_CFG:
        T = (T - k) // s + 1

    out = jax.jit(aves_forward)(params, sig)
    out = jax.block_until_ready(out)

    assert out.shape == (B, T, EMBED_DIM), out.shape
    assert bool(jnp.all(jnp.isfinite(out)))
    print("KERNEL_OK")
</pallas_src>

<mosaic_0001>
module attributes {stable_mosaic.version = 11 : i64} {
  func.func @_conv_block_kernel(%arg0: i32, %arg1: memref<1x10x256xbf16, #tpu.memory_space<vmem>>, %arg2: memref<32x10xbf16, #tpu.memory_space<vmem>>, %arg3: memref<32x2xf32, #tpu.memory_space<vmem>>, %arg4: memref<1x32x256xbf16, #tpu.memory_space<vmem>>) attributes {dimension_semantics = [#tpu.dimension_semantics<parallel>], iteration_bounds = array<i64: 2>, scalar_prefetch = 0 : i64, scratch_operands = 0 : i64, tpu.core_type = #tpu.core_type<tc>, window_params = [{transform_indices = @transform_0, window_bounds = array<i64: 1, 10, 256>}, {pipeline_mode = #tpu.pipeline_mode<synchronous>, transform_indices = @transform_1, window_bounds = array<i64: 32, 10>}, {pipeline_mode = #tpu.pipeline_mode<synchronous>, transform_indices = @transform_2, window_bounds = array<i64: 32, 2>}, {transform_indices = @transform_3, window_bounds = array<i64: 1, 32, 256>}]} {
    %c0 = arith.constant 0 : index
    %c0_0 = arith.constant 0 : index
    %0 = vector.load %arg2[%c0, %c0_0] : memref<32x10xbf16, #tpu.memory_space<vmem>>, vector<32x10xbf16>
    %c0_1 = arith.constant 0 : index
    %c0_2 = arith.constant 0 : index
    %c0_3 = arith.constant 0 : index
    %1 = vector.load %arg1[%c0_1, %c0_2, %c0_3] : memref<1x10x256xbf16, #tpu.memory_space<vmem>>, vector<1x10x256xbf16>
    %2 = vector.shape_cast %1 : vector<1x10x256xbf16> to vector<10x256xbf16>
    %cst = arith.constant dense<0.000000e+00> : vector<32x256xf32>
    %3 = tpu.matmul %0, %2, %cst {dimension_numbers = #tpu.dot_dimension_numbers<[1], [0], [0], [1], [0, 0, 1, 1], [], []>} : vector<32x10xbf16>, vector<10x256xbf16>, vector<32x256xf32> -> vector<32x256xf32>
    %cst_4 = arith.constant dense<0.000000e+00> : vector<32xf32>
    %4 = vector.multi_reduction <add>, %3, %cst_4 [1] : vector<32x256xf32> to vector<32xf32>
    %5 = vector.shape_cast %4 : vector<32xf32> to vector<32x1xf32>
    %cst_5 = arith.constant 0.00628930796 : f32
    %6 = vector.broadcast %cst_5 : f32 to vector<32x1xf32>
    %7 = arith.mulf %5, %6 : vector<32x1xf32>
    %8 = tpu.iota {dimensions = array<i32: 1>} : vector<32x256xi32>
    %c159_i32 = arith.constant 159 : i32
    %9 = vector.broadcast %c159_i32 : i32 to vector<32x256xi32>
    %10 = arith.cmpi slt, %8, %9 : vector<32x256xi32>
    %11 = vector.broadcast %7 : vector<32x1xf32> to vector<32x256xf32>
    %12 = arith.subf %3, %11 : vector<32x256xf32>
    %cst_6 = arith.constant 0.000000e+00 : f32
    %13 = vector.broadcast %cst_6 : f32 to vector<32x256xf32>
    %14 = arith.select %10, %12, %13 : vector<32x256xi1>, vector<32x256xf32>
    %15 = arith.mulf %14, %14 : vector<32x256xf32>
    %cst_7 = arith.constant dense<0.000000e+00> : vector<32xf32>
    %16 = vector.multi_reduction <add>, %15, %cst_7 [1] : vector<32x256xf32> to vector<32xf32>
    %17 = vector.shape_cast %16 : vector<32xf32> to vector<32x1xf32>
    %cst_8 = arith.constant 0.00628930796 : f32
    %18 = vector.broadcast %cst_8 : f32 to vector<32x1xf32>
    %19 = arith.mulf %17, %18 : vector<32x1xf32>
    %cst_9 = arith.constant 9.99999974E-6 : f32
    %20 = vector.broadcast %cst_9 : f32 to vector<32x1xf32>
    %21 = arith.addf %19, %20 : vector<32x1xf32>
    %22 = math.rsqrt %21 : vector<32x1xf32>
    %23 = vector.broadcast %22 : vector<32x1xf32> to vector<32x256xf32>
    %24 = arith.mulf %14, %23 : vector<32x256xf32>
    %c0_10 = arith.constant 0 : index
    %c0_11 = arith.constant 0 : index
    %25 = vector.load %arg3[%c0_10, %c0_11] : memref<32x2xf32, #tpu.memory_space<vmem>>, vector<32x1xf32>
    %26 = vector.broadcast %25 : vector<32x1xf32> to vector<32x256xf32>
    %27 = arith.mulf %24, %26 : vector<32x256xf32>
    %c0_12 = arith.constant 0 : index
    %c1 = arith.constant 1 : index
    %28 = vector.load %arg3[%c0_12, %c1] : memref<32x2xf32, #tpu.memory_space<vmem>>, vector<32x1xf32>
    %29 = vector.broadcast %28 : vector<32x1xf32> to vector<32x256xf32>
    %30 = arith.addf %27, %29 : vector<32x256xf32>
    %cst_13 = arith.constant 5.000000e-01 : f32
    %31 = vector.broadcast %cst_13 : f32 to vector<32x256xf32>
    %32 = arith.mulf %31, %30 : vector<32x256xf32>
    %cst_14 = arith.constant 0.707106769 : f32
    %33 = vector.broadcast %cst_14 : f32 to vector<32x256xf32>
    %34 = arith.mulf %30, %33 : vector<32x256xf32>
    %35 = math.absf %34 : vector<32x256xf32>
    %cst_15 = arith.constant 0.327591091 : f32
    %36 = vector.broadcast %cst_15 : f32 to vector<32x256xf32>
    %37 = arith.mulf %36, %35 : vector<32x256xf32>
    %cst_16 = arith.constant 1.000000e+00 : f32
    %38 = vector.broadcast %cst_16 : f32 to vector<32x256xf32>
    %39 = arith.addf %38, %37 : vector<32x256xf32>
    %cst_17 = arith.constant 1.000000e+00 : f32
    %40 = vector.broadcast %cst_17 : f32 to vector<32x256xf32>
    %41 = arith.divf %40, %39 : vector<32x256xf32>
    %cst_18 = arith.constant 1.06140542 : f32
    %42 = vector.broadcast %cst_18 : f32 to vector<32x256xf32>
    %43 = arith.mulf %42, %41 : vector<32x256xf32>
    %cst_19 = arith.constant -1.45315206 : f32
    %44 = vector.broadcast %cst_19 : f32 to vector<32x256xf32>
    %45 = arith.addf %43, %44 : vector<32x256xf32>
    %46 = arith.mulf %45, %41 : vector<32x256xf32>
    %cst_20 = arith.constant 1.42141378 : f32
    %47 = vector.broadcast %cst_20 : f32 to vector<32x256xf32>
    %48 = arith.addf %46, %47 : vector<32x256xf32>
    %49 = arith.mulf %48, %41 : vector<32x256xf32>
    %cst_21 = arith.constant -0.284496725 : f32
    %50 = vector.broadcast %cst_21 : f32 to vector<32x256xf32>
    %51 = arith.addf %49, %50 : vector<32x256xf32>
    %52 = arith.mulf %51, %41 : vector<32x256xf32>
    %cst_22 = arith.constant 0.254829586 : f32
    %53 = vector.broadcast %cst_22 : f32 to vector<32x256xf32>
    %54 = arith.addf %52, %53 : vector<32x256xf32>
    %55 = arith.mulf %54, %41 : vector<32x256xf32>
    %cst_23 = arith.constant 0.000000e+00 : f32
    %56 = vector.broadcast %cst_23 : f32 to vector<32x256xf32>
    %57 = arith.subf %56, %35 : vector<32x256xf32>
    %58 = arith.mulf %57, %35 : vector<32x256xf32>
    %59 = math.exp %58 : vector<32x256xf32>
    %60 = arith.mulf %55, %59 : vector<32x256xf32>
    %cst_24 = arith.constant 1.000000e+00 : f32
    %61 = vector.broadcast %cst_24 : f32 to vector<32x256xf32>
    %62 = arith.subf %61, %60 : vector<32x256xf32>
    %cst_25 = arith.constant 0.000000e+00 : f32
    %63 = vector.broadcast %cst_25 : f32 to vector<32x256xf32>
    %64 = arith.cmpf oge, %34, %63 : vector<32x256xf32>
    %cst_26 = arith.constant 0.000000e+00 : f32
    %65 = vector.broadcast %cst_26 : f32 to vector<32x256xf32>
    %66 = arith.subf %65, %62 : vector<32x256xf32>
    %67 = arith.select %64, %62, %66 : vector<32x256xi1>, vector<32x256xf32>
    %cst_27 = arith.constant 1.000000e+00 : f32
    %68 = vector.broadcast %cst_27 : f32 to vector<32x256xf32>
    %69 = arith.addf %68, %67 : vector<32x256xf32>
    %70 = arith.mulf %32, %69 : vector<32x256xf32>
    %71 = arith.truncf %70 : vector<32x256xf32> to vector<32x256xbf16>
    %c0_28 = arith.constant 0 : index
    %c0_29 = arith.constant 0 : index
    %c0_30 = arith.constant 0 : index
    %72 = vector.load %arg4[%c0_28, %c0_29, %c0_30] : memref<1x32x256xbf16, #tpu.memory_space<vmem>>, vector<1x32x256xbf16>
    %73 = vector.shape_cast %72 : vector<1x32x256xbf16> to vector<32x256xbf16>
    %74 = vector.shape_cast %71 : vector<32x256xbf16> to vector<1x32x256xbf16>
    tpu.vector_store %arg4[%c0_28, %c0_29, %c0_30], %74 {strides = array<i32>} : memref<1x32x256xbf16, #tpu.memory_space<vmem>>, vector<1x32x256xbf16>,
    return
  }
  func.func @transform_0(%arg0: i32) -> (i32, i32, i32) {
    %c0_i32 = arith.constant 0 : i32
    %c0_i32_0 = arith.constant 0 : i32
    %c0_i32_1 = arith.constant 0 : i32
    return %arg0, %c0_i32, %c0_i32_0 : i32, i32, i32
  }
  func.func @transform_1(%arg0: i32) -> (i32, i32) {
    %c0_i32 = arith.constant 0 : i32
    %c0_i32_0 = arith.constant 0 : i32
    %c0_i32_1 = arith.constant 0 : i32
    return %c0_i32, %c0_i32_0 : i32, i32
  }
  func.func @transform_2(%arg0: i32) -> (i32, i32) {
    %c0_i32 = arith.constant 0 : i32
    %c0_i32_0 = arith.constant 0 : i32
    %c0_i32_1 = arith.constant 0 : i32
    return %c0_i32, %c0_i32_0 : i32, i32
  }
  func.func @transform_3(%arg0: i32) -> (i32, i32, i32) {
    %c0_i32 = arith.constant 0 : i32
    %c0_i32_0 = arith.constant 0 : i32
    %c0_i32_1 = arith.constant 0 : i32
    return %arg0, %c0_i32, %c0_i32_0 : i32, i32, i32
  }
}

module attributes {stable_mosaic.version = 11 : i64} {
  func.func @_conv_block_kernel(%arg0: i32, %arg1: memref<1x96x128xbf16, #tpu.memory_space<vmem>>, %arg2: memref<32x96xbf16, #tpu.memory_space<vmem>>, %arg3: memref<32x2xf32, #tpu.memory_space<vmem>>, %arg4: memref<1x32x128xbf16, #tpu.memory_space<vmem>>) attributes {dimension_semantics = [#tpu.dimension_semantics<parallel>], iteration_bounds = array<i64: 2>, scalar_prefetch = 0 : i64, scratch_operands = 0 : i64, tpu.core_type = #tpu.core_type<tc>, window_params = [{transform_indices = @transform_0, window_bounds = array<i64: 1, 96, 128>}, {pipeline_mode = #tpu.pipeline_mode<synchronous>, transform_indices = @transform_1, window_bounds = array<i64: 32, 96>}, {pipeline_mode = #tpu.pipeline_mode<synchronous>, transform_indices = @transform_2, window_bounds = array<i64: 32, 2>}, {transform_indices = @transform_3, window_bounds = array<i64: 1, 32, 128>}]} {
    %c0 = arith.constant 0 : index
    %c0_0 = arith.constant 0 : index
    %0 = vector.load %arg2[%c0, %c0_0] : memref<32x96xbf16, #tpu.memory_space<vmem>>, vector<32x96xbf16>
    %c0_1 = arith.constant 0 : index
    %c0_2 = arith.constant 0 : index
    %c0_3 = arith.constant 0 : index
    %1 = vector.load %arg1[%c0_1, %c0_2, %c0_3] : memref<1x96x128xbf16, #tpu.memory_space<vmem>>, vector<1x96x128xbf16>
    %2 = vector.shape_cast %1 : vector<1x96x128xbf16> to vector<96x128xbf16>
    %cst = arith.constant dense<0.000000e+00> : vector<32x128xf32>
    %3 = tpu.matmul %0, %2, %cst {dimension_numbers = #tpu.dot_dimension_numbers<[1], [0], [0], [1], [0, 0, 1, 1], [], []>} : vector<32x96xbf16>, vector<96x128xbf16>, vector<32x128xf32> -> vector<32x128xf32>
    %cst_4 = arith.constant 5.000000e-01 : f32
    %4 = vector.broadcast %cst_4 : f32 to vector<32x128xf32>
    %5 = arith.mulf %4, %3 : vector<32x128xf32>
    %cst_5 = arith.constant 0.707106769 : f32
    %6 = vector.broadcast %cst_5 : f32 to vector<32x128xf32>
    %7 = arith.mulf %3, %6 : vector<32x128xf32>
    %8 = math.absf %7 : vector<32x128xf32>
    %cst_6 = arith.constant 0.327591091 : f32
    %9 = vector.broadcast %cst_6 : f32 to vector<32x128xf32>
    %10 = arith.mulf %9, %8 : vector<32x128xf32>
    %cst_7 = arith.constant 1.000000e+00 : f32
    %11 = vector.broadcast %cst_7 : f32 to vector<32x128xf32>
    %12 = arith.addf %11, %10 : vector<32x128xf32>
    %cst_8 = arith.constant 1.000000e+00 : f32
    %13 = vector.broadcast %cst_8 : f32 to vector<32x128xf32>
    %14 = arith.divf %13, %12 : vector<32x128xf32>
    %cst_9 = arith.constant 1.06140542 : f32
    %15 = vector.broadcast %cst_9 : f32 to vector<32x128xf32>
    %16 = arith.mulf %15, %14 : vector<32x128xf32>
    %cst_10 = arith.constant -1.45315206 : f32
    %17 = vector.broadcast %cst_10 : f32 to vector<32x128xf32>
    %18 = arith.addf %16, %17 : vector<32x128xf32>
    %19 = arith.mulf %18, %14 : vector<32x128xf32>
    %cst_11 = arith.constant 1.42141378 : f32
    %20 = vector.broadcast %cst_11 : f32 to vector<32x128xf32>
    %21 = arith.addf %19, %20 : vector<32x128xf32>
    %22 = arith.mulf %21, %14 : vector<32x128xf32>
    %cst_12 = arith.constant -0.284496725 : f32
    %23 = vector.broadcast %cst_12 : f32 to vector<32x128xf32>
    %24 = arith.addf %22, %23 : vector<32x128xf32>
    %25 = arith.mulf %24, %14 : vector<32x128xf32>
    %cst_13 = arith.constant 0.254829586 : f32
    %26 = vector.broadcast %cst_13 : f32 to vector<32x128xf32>
    %27 = arith.addf %25, %26 : vector<32x128xf32>
    %28 = arith.mulf %27, %14 : vector<32x128xf32>
    %cst_14 = arith.constant 0.000000e+00 : f32
    %29 = vector.broadcast %cst_14 : f32 to vector<32x128xf32>
    %30 = arith.subf %29, %8 : vector<32x128xf32>
    %31 = arith.mulf %30, %8 : vector<32x128xf32>
    %32 = math.exp %31 : vector<32x128xf32>
    %33 = arith.mulf %28, %32 : vector<32x128xf32>
    %cst_15 = arith.constant 1.000000e+00 : f32
    %34 = vector.broadcast %cst_15 : f32 to vector<32x128xf32>
    %35 = arith.subf %34, %33 : vector<32x128xf32>
    %cst_16 = arith.constant 0.000000e+00 : f32
    %36 = vector.broadcast %cst_16 : f32 to vector<32x128xf32>
    %37 = arith.cmpf oge, %7, %36 : vector<32x128xf32>
    %cst_17 = arith.constant 0.000000e+00 : f32
    %38 = vector.broadcast %cst_17 : f32 to vector<32x128xf32>
    %39 = arith.subf %38, %35 : vector<32x128xf32>
    %40 = arith.select %37, %35, %39 : vector<32x128xi1>, vector<32x128xf32>
    %cst_18 = arith.constant 1.000000e+00 : f32
    %41 = vector.broadcast %cst_18 : f32 to vector<32x128xf32>
    %42 = arith.addf %41, %40 : vector<32x128xf32>
    %43 = arith.mulf %5, %42 : vector<32x128xf32>
    %44 = arith.truncf %43 : vector<32x128xf32> to vector<32x128xbf16>
    %c0_19 = arith.constant 0 : index
    %c0_20 = arith.constant 0 : index
    %c0_21 = arith.constant 0 : index
    %45 = vector.load %arg4[%c0_19, %c0_20, %c0_21] : memref<1x32x128xbf16, #tpu.memory_space<vmem>>, vector<1x32x128xbf16>
    %46 = vector.shape_cast %45 : vector<1x32x128xbf16> to vector<32x128xbf16>
    %47 = vector.shape_cast %44 : vector<32x128xbf16> to vector<1x32x128xbf16>
    tpu.vector_store %arg4[%c0_19, %c0_20, %c0_21], %47 {strides = array<i32>} : memref<1x32x128xbf16, #tpu.memory_space<vmem>>, vector<1x32x128xbf16>,
    return
  }
  func.func @transform_0(%arg0: i32) -> (i32, i32, i32) {
    %c0_i32 = arith.constant 0 : i32
    %c0_i32_0 = arith.constant 0 : i32
    %c0_i32_1 = arith.constant 0 : i32
    return %arg0, %c0_i32, %c0_i32_0 : i32, i32, i32
  }
  func.func @transform_1(%arg0: i32) -> (i32, i32) {
    %c0_i32 = arith.constant 0 : i32
    %c0_i32_0 = arith.constant 0 : i32
    %c0_i32_1 = arith.constant 0 : i32
    return %c0_i32, %c0_i32_0 : i32, i32
  }
  func.func @transform_2(%arg0: i32) -> (i32, i32) {
    %c0_i32 = arith.constant 0 : i32
    %c0_i32_0 = arith.constant 0 : i32
    %c0_i32_1 = arith.constant 0 : i32
    return %c0_i32, %c0_i32_0 : i32, i32
  }
  func.func @transform_3(%arg0: i32) -> (i32, i32, i32) {
    %c0_i32 = arith.constant 0 : i32
    %c0_i32_0 = arith.constant 0 : i32
    %c0_i32_1 = arith.constant 0 : i32
    return %arg0, %c0_i32, %c0_i32_0 : i32, i32, i32
  }
}

module attributes {stable_mosaic.version = 11 : i64} {
  func.func @_conv_block_kernel(%arg0: i32, %arg1: memref<1x64x128xbf16, #tpu.memory_space<vmem>>, %arg2: memref<32x64xbf16, #tpu.memory_space<vmem>>, %arg3: memref<32x2xf32, #tpu.memory_space<vmem>>, %arg4: memref<1x32x128xbf16, #tpu.memory_space<vmem>>) attributes {dimension_semantics = [#tpu.dimension_semantics<parallel>], iteration_bounds = array<i64: 2>, scalar_prefetch = 0 : i64, scratch_operands = 0 : i64, tpu.core_type = #tpu.core_type<tc>, window_params = [{transform_indices = @transform_0, window_bounds = array<i64: 1, 64, 128>}, {pipeline_mode = #tpu.pipeline_mode<synchronous>, transform_indices = @transform_1, window_bounds = array<i64: 32, 64>}, {pipeline_mode = #tpu.pipeline_mode<synchronous>, transform_indices = @transform_2, window_bounds = array<i64: 32, 2>}, {transform_indices = @transform_3, window_bounds = array<i64: 1, 32, 128>}]} {
    %c0 = arith.constant 0 : index
    %c0_0 = arith.constant 0 : index
    %0 = vector.load %arg2[%c0, %c0_0] : memref<32x64xbf16, #tpu.memory_space<vmem>>, vector<32x64xbf16>
    %c0_1 = arith.constant 0 : index
    %c0_2 = arith.constant 0 : index
    %c0_3 = arith.constant 0 : index
    %1 = vector.load %arg1[%c0_1, %c0_2, %c0_3] : memref<1x64x128xbf16, #tpu.memory_space<vmem>>, vector<1x64x128xbf16>
    %2 = vector.shape_cast %1 : vector<1x64x128xbf16> to vector<64x128xbf16>
    %cst = arith.constant dense<0.000000e+00> : vector<32x128xf32>
    %3 = tpu.matmul %0, %2, %cst {dimension_numbers = #tpu.dot_dimension_numbers<[1], [0], [0], [1], [0, 0, 1, 1], [], []>} : vector<32x64xbf16>, vector<64x128xbf16>, vector<32x128xf32> -> vector<32x128xf32>
    %cst_4 = arith.constant 5.000000e-01 : f32
    %4 = vector.broadcast %cst_4 : f32 to vector<32x128xf32>
    %5 = arith.mulf %4, %3 : vector<32x128xf32>
    %cst_5 = arith.constant 0.707106769 : f32
    %6 = vector.broadcast %cst_5 : f32 to vector<32x128xf32>
    %7 = arith.mulf %3, %6 : vector<32x128xf32>
    %8 = math.absf %7 : vector<32x128xf32>
    %cst_6 = arith.constant 0.327591091 : f32
    %9 = vector.broadcast %cst_6 : f32 to vector<32x128xf32>
    %10 = arith.mulf %9, %8 : vector<32x128xf32>
    %cst_7 = arith.constant 1.000000e+00 : f32
    %11 = vector.broadcast %cst_7 : f32 to vector<32x128xf32>
    %12 = arith.addf %11, %10 : vector<32x128xf32>
    %cst_8 = arith.constant 1.000000e+00 : f32
    %13 = vector.broadcast %cst_8 : f32 to vector<32x128xf32>
    %14 = arith.divf %13, %12 : vector<32x128xf32>
    %cst_9 = arith.constant 1.06140542 : f32
    %15 = vector.broadcast %cst_9 : f32 to vector<32x128xf32>
    %16 = arith.mulf %15, %14 : vector<32x128xf32>
    %cst_10 = arith.constant -1.45315206 : f32
    %17 = vector.broadcast %cst_10 : f32 to vector<32x128xf32>
    %18 = arith.addf %16, %17 : vector<32x128xf32>
    %19 = arith.mulf %18, %14 : vector<32x128xf32>
    %cst_11 = arith.constant 1.42141378 : f32
    %20 = vector.broadcast %cst_11 : f32 to vector<32x128xf32>
    %21 = arith.addf %19, %20 : vector<32x128xf32>
    %22 = arith.mulf %21, %14 : vector<32x128xf32>
    %cst_12 = arith.constant -0.284496725 : f32
    %23 = vector.broadcast %cst_12 : f32 to vector<32x128xf32>
    %24 = arith.addf %22, %23 : vector<32x128xf32>
    %25 = arith.mulf %24, %14 : vector<32x128xf32>
    %cst_13 = arith.constant 0.254829586 : f32
    %26 = vector.broadcast %cst_13 : f32 to vector<32x128xf32>
    %27 = arith.addf %25, %26 : vector<32x128xf32>
    %28 = arith.mulf %27, %14 : vector<32x128xf32>
    %cst_14 = arith.constant 0.000000e+00 : f32
    %29 = vector.broadcast %cst_14 : f32 to vector<32x128xf32>
    %30 = arith.subf %29, %8 : vector<32x128xf32>
    %31 = arith.mulf %30, %8 : vector<32x128xf32>
    %32 = math.exp %31 : vector<32x128xf32>
    %33 = arith.mulf %28, %32 : vector<32x128xf32>
    %cst_15 = arith.constant 1.000000e+00 : f32
    %34 = vector.broadcast %cst_15 : f32 to vector<32x128xf32>
    %35 = arith.subf %34, %33 : vector<32x128xf32>
    %cst_16 = arith.constant 0.000000e+00 : f32
    %36 = vector.broadcast %cst_16 : f32 to vector<32x128xf32>
    %37 = arith.cmpf oge, %7, %36 : vector<32x128xf32>
    %cst_17 = arith.constant 0.000000e+00 : f32
    %38 = vector.broadcast %cst_17 : f32 to vector<32x128xf32>
    %39 = arith.subf %38, %35 : vector<32x128xf32>
    %40 = arith.select %37, %35, %39 : vector<32x128xi1>, vector<32x128xf32>
    %cst_18 = arith.constant 1.000000e+00 : f32
    %41 = vector.broadcast %cst_18 : f32 to vector<32x128xf32>
    %42 = arith.addf %41, %40 : vector<32x128xf32>
    %43 = arith.mulf %5, %42 : vector<32x128xf32>
    %44 = arith.truncf %43 : vector<32x128xf32> to vector<32x128xbf16>
    %c0_19 = arith.constant 0 : index
    %c0_20 = arith.constant 0 : index
    %c0_21 = arith.constant 0 : index
    %45 = vector.load %arg4[%c0_19, %c0_20, %c0_21] : memref<1x32x128xbf16, #tpu.memory_space<vmem>>, vector<1x32x128xbf16>
    %46 = vector.shape_cast %45 : vector<1x32x128xbf16> to vector<32x128xbf16>
    %47 = vector.shape_cast %44 : vector<32x128xbf16> to vector<1x32x128xbf16>
    tpu.vector_store %arg4[%c0_19, %c0_20, %c0_21], %47 {strides = array<i32>} : memref<1x32x128xbf16, #tpu.memory_space<vmem>>, vector<1x32x128xbf16>,
    return
  }
  func.func @transform_0(%arg0: i32) -> (i32, i32, i32) {
    %c0_i32 = arith.constant 0 : i32
    %c0_i32_0 = arith.constant 0 : i32
    %c0_i32_1 = arith.constant 0 : i32
    return %arg0, %c0_i32, %c0_i32_0 : i32, i32, i32
  }
  func.func @transform_1(%arg0: i32) -> (i32, i32) {
    %c0_i32 = arith.constant 0 : i32
    %c0_i32_0 = arith.constant 0 : i32
    %c0_i32_1 = arith.constant 0 : i32
    return %c0_i32, %c0_i32_0 : i32, i32
  }
  func.func @transform_2(%arg0: i32) -> (i32, i32) {
    %c0_i32 = arith.constant 0 : i32
    %c0_i32_0 = arith.constant 0 : i32
    %c0_i32_1 = arith.constant 0 : i32
    return %c0_i32, %c0_i32_0 : i32, i32
  }
  func.func @transform_3(%arg0: i32) -> (i32, i32, i32) {
    %c0_i32 = arith.constant 0 : i32
    %c0_i32_0 = arith.constant 0 : i32
    %c0_i32_1 = arith.constant 0 : i32
    return %arg0, %c0_i32, %c0_i32_0 : i32, i32, i32
  }
}

module attributes {stable_mosaic.version = 11 : i64} {
  func.func @_post_conv_stack_kernel(%arg0: i32, %arg1: memref<1x39x32xbf16, #tpu.memory_space<vmem>>, %arg2: memref<2x32xf32, #tpu.memory_space<vmem>>, %arg3: memref<32x32xbf16, #tpu.memory_space<vmem>>, %arg4: memref<2x32xf32, #tpu.memory_space<vmem>>, %arg5: memref<128x32xbf16, #tpu.memory_space<vmem>>, %arg6: memref<2x32x96xbf16, #tpu.memory_space<vmem>>, %arg7: memref<2x32x32xbf16, #tpu.memory_space<vmem>>, %arg8: memref<2x32x64xbf16, #tpu.memory_space<vmem>>, %arg9: memref<2x64x32xbf16, #tpu.memory_space<vmem>>, %arg10: memref<2x8x96xf32, #tpu.memory_space<vmem>>, %arg11: memref<1x39x32xf32, #tpu.memory_space<vmem>>) attributes {dimension_semantics = [#tpu.dimension_semantics<parallel>], iteration_bounds = array<i64: 2>, scalar_prefetch = 0 : i64, scratch_operands = 0 : i64, tpu.core_type = #tpu.core_type<tc>, window_params = [{transform_indices = @transform_0, window_bounds = array<i64: 1, 39, 32>}, {pipeline_mode = #tpu.pipeline_mode<synchronous>, transform_indices = @transform_1, window_bounds = array<i64: 2, 32>}, {pipeline_mode = #tpu.pipeline_mode<synchronous>, transform_indices = @transform_2, window_bounds = array<i64: 32, 32>}, {pipeline_mode = #tpu.pipeline_mode<synchronous>, transform_indices = @transform_3, window_bounds = array<i64: 2, 32>}, {pipeline_mode = #tpu.pipeline_mode<synchronous>, transform_indices = @transform_4, window_bounds = array<i64: 128, 32>}, {pipeline_mode = #tpu.pipeline_mode<synchronous>, transform_indices = @transform_5, window_bounds = array<i64: 2, 32, 96>}, {pipeline_mode = #tpu.pipeline_mode<synchronous>, transform_indices = @transform_6, window_bounds = array<i64: 2, 32, 32>}, {pipeline_mode = #tpu.pipeline_mode<synchronous>, transform_indices = @transform_7, window_bounds = array<i64: 2, 32, 64>}, {pipeline_mode = #tpu.pipeline_mode<synchronous>, transform_indices = @transform_8, window_bounds = array<i64: 2, 64, 32>}, {pipeline_mode = #tpu.pipeline_mode<synchronous>, transform_indices = @transform_9, window_bounds = array<i64: 2, 8, 96>}, {transform_indices = @transform_10, window_bounds = array<i64: 1, 39, 32>}]} {
    %c0 = arith.constant 0 : index
    %c0_0 = arith.constant 0 : index
    %c0_1 = arith.constant 0 : index
    %0 = vector.load %arg1[%c0, %c0_0, %c0_1] : memref<1x39x32xbf16, #tpu.memory_space<vmem>>, vector<1x39x32xbf16>
    %1 = vector.shape_cast %0 : vector<1x39x32xbf16> to vector<39x32xbf16>
    %2 = arith.extf %1 : vector<39x32xbf16> to vector<39x32xf32>
    %c0_2 = arith.constant 0 : index
    %c0_3 = arith.constant 0 : index
    %3 = vector.load %arg2[%c0_2, %c0_3] : memref<2x32xf32, #tpu.memory_space<vmem>>, vector<1x32xf32>
    %4 = vector.shape_cast %3 : vector<1x32xf32> to vector<32xf32>
    %c1 = arith.constant 1 : index
    %c0_4 = arith.constant 0 : index
    %5 = vector.load %arg2[%c1, %c0_4] : memref<2x32xf32, #tpu.memory_space<vmem>>, vector<1x32xf32>
    %6 = vector.shape_cast %5 : vector<1x32xf32> to vector<32xf32>
    %cst = arith.constant dense<0.000000e+00> : vector<39xf32>
    %7 = vector.multi_reduction <add>, %2, %cst [1] : vector<39x32xf32> to vector<39xf32>
    %8 = vector.shape_cast %7 : vector<39xf32> to vector<39x1xf32>
    %cst_5 = arith.constant 3.200000e+01 : f32
    %9 = vector.broadcast %cst_5 : f32 to vector<39x1xf32>
    %10 = arith.divf %8, %9 : vector<39x1xf32>
    %11 = vector.broadcast %10 : vector<39x1xf32> to vector<39x32xf32>
    %12 = arith.subf %2, %11 : vector<39x32xf32>
    %13 = arith.mulf %12, %12 : vector<39x32xf32>
    %cst_6 = arith.constant dense<0.000000e+00> : vector<39xf32>
    %14 = vector.multi_reduction <add>, %13, %cst_6 [1] : vector<39x32xf32> to vector<39xf32>
    %15 = vector.shape_cast %14 : vector<39xf32> to vector<39x1xf32>
    %cst_7 = arith.constant 3.200000e+01 : f32
    %16 = vector.broadcast %cst_7 : f32 to vector<39x1xf32>
    %17 = arith.divf %15, %16 : vector<39x1xf32>
    %18 = vector.broadcast %10 : vector<39x1xf32> to vector<39x32xf32>
    %19 = arith.subf %2, %18 : vector<39x32xf32>
    %cst_8 = arith.constant 9.99999974E-6 : f32
    %20 = vector.broadcast %cst_8 : f32 to vector<39x1xf32>
    %21 = arith.addf %17, %20 : vector<39x1xf32>
    %22 = math.rsqrt %21 : vector<39x1xf32>
    %23 = vector.broadcast %22 : vector<39x1xf32> to vector<39x32xf32>
    %24 = arith.mulf %19, %23 : vector<39x32xf32>
    %25 = vector.shape_cast %4 : vector<32xf32> to vector<1x32xf32>
    %26 = vector.broadcast %25 : vector<1x32xf32> to vector<39x32xf32>
    %27 = arith.mulf %24, %26 : vector<39x32xf32>
    %28 = vector.shape_cast %6 : vector<32xf32> to vector<1x32xf32>
    %29 = vector.broadcast %28 : vector<1x32xf32> to vector<39x32xf32>
    %30 = arith.addf %27, %29 : vector<39x32xf32>
    %31 = arith.truncf %30 : vector<39x32xf32> to vector<39x32xbf16>
    %c0_9 = arith.constant 0 : index
    %c0_10 = arith.constant 0 : index
    %32 = vector.load %arg3[%c0_9, %c0_10] : memref<32x32xbf16, #tpu.memory_space<vmem>>, vector<32x32xbf16>
    %cst_11 = arith.constant dense<0.000000e+00> : vector<39x32xf32>
    %33 = tpu.matmul %31, %32, %cst_11 {dimension_numbers = #tpu.dot_dimension_numbers<[1], [0], [0], [1], [0, 0, 1, 1], [], []>} : vector<39x32xbf16>, vector<32x32xbf16>, vector<39x32xf32> -> vector<39x32xf32>
    %c0_12 = arith.constant 0 : index
    %c0_13 = arith.constant 0 : index
    %34 = vector.load %arg4[%c0_12, %c0_13] : memref<2x32xf32, #tpu.memory_space<vmem>>, vector<1x32xf32>
    %35 = vector.shape_cast %34 : vector<1x32xf32> to vector<32xf32>
    %36 = vector.shape_cast %35 : vector<32xf32> to vector<1x32xf32>
    %37 = vector.broadcast %36 : vector<1x32xf32> to vector<39x32xf32>
    %38 = arith.addf %33, %37 : vector<39x32xf32>
    %cst_14 = arith.constant 0.000000e+00 : f32
    %39 = vector.broadcast %cst_14 : f32 to vector<2x32xf32>
    %40 = tpu.concatenate %39, %38, %39 in 0 : vector<2x32xf32>, vector<39x32xf32>, vector<2x32xf32> -> vector<43x32xf32>
    %41 = vector.extract_strided_slice %40 {offsets = [0, 0], sizes = [39, 32], strides = [1, 1]} : vector<43x32xf32> to vector<39x32xf32>
    %42 = vector.extract_strided_slice %40 {offsets = [1, 0], sizes = [39, 32], strides = [1, 1]} : vector<43x32xf32> to vector<39x32xf32>
    %43 = vector.extract_strided_slice %40 {offsets = [2, 0], sizes = [39, 32], strides = [1, 1]} : vector<43x32xf32> to vector<39x32xf32>
    %44 = vector.extract_strided_slice %40 {offsets = [3, 0], sizes = [39, 32], strides = [1, 1]} : vector<43x32xf32> to vector<39x32xf32>
    %45 = tpu.concatenate %41, %42, %43, %44 in 1 : vector<39x32xf32>, vector<39x32xf32>, vector<39x32xf32>, vector<39x32xf32> -> vector<39x128xf32>
    %46 = arith.truncf %45 : vector<39x128xf32> to vector<39x128xbf16>
    %c0_15 = arith.constant 0 : index
    %c0_16 = arith.constant 0 : index
    %47 = vector.load %arg5[%c0_15, %c0_16] : memref<128x32xbf16, #tpu.memory_space<vmem>>, vector<128x32xbf16>
    %cst_17 = arith.constant dense<0.000000e+00> : vector<39x32xf32>
    %48 = tpu.matmul %46, %47, %cst_17 {dimension_numbers = #tpu.dot_dimension_numbers<[1], [0], [0], [1], [0, 0, 1, 1], [], []>} : vector<39x128xbf16>, vector<128x32xbf16>, vector<39x32xf32> -> vector<39x32xf32>
    %c1_18 = arith.constant 1 : index
    %c0_19 = arith.constant 0 : index
    %49 = vector.load %arg4[%c1_18, %c0_19] : memref<2x32xf32, #tpu.memory_space<vmem>>, vector<1x32xf32>
    %50 = vector.shape_cast %49 : vector<1x32xf32> to vector<32xf32>
    %51 = vector.shape_cast %50 : vector<32xf32> to vector<1x32xf32>
    %52 = vector.broadcast %51 : vector<1x32xf32> to vector<39x32xf32>
    %53 = arith.addf %48, %52 : vector<39x32xf32>
    %cst_20 = arith.constant 5.000000e-01 : f32
    %54 = vector.broadcast %cst_20 : f32 to vector<39x32xf32>
    %55 = arith.mulf %54, %53 : vector<39x32xf32>
    %cst_21 = arith.constant 0.707106769 : f32
    %56 = vector.broadcast %cst_21 : f32 to vector<39x32xf32>
    %57 = arith.mulf %53, %56 : vector<39x32xf32>
    %58 = math.absf %57 : vector<39x32xf32>
    %cst_22 = arith.constant 0.327591091 : f32
    %59 = vector.broadcast %cst_22 : f32 to vector<39x32xf32>
    %60 = arith.mulf %59, %58 : vector<39x32xf32>
    %cst_23 = arith.constant 1.000000e+00 : f32
    %61 = vector.broadcast %cst_23 : f32 to vector<39x32xf32>
    %62 = arith.addf %61, %60 : vector<39x32xf32>
    %cst_24 = arith.constant 1.000000e+00 : f32
    %63 = vector.broadcast %cst_24 : f32 to vector<39x32xf32>
    %64 = arith.divf %63, %62 : vector<39x32xf32>
    %cst_25 = arith.constant 1.06140542 : f32
    %65 = vector.broadcast %cst_25 : f32 to vector<39x32xf32>
    %66 = arith.mulf %65, %64 : vector<39x32xf32>
    %cst_26 = arith.constant -1.45315206 : f32
    %67 = vector.broadcast %cst_26 : f32 to vector<39x32xf32>
    %68 = arith.addf %66, %67 : vector<39x32xf32>
    %69 = arith.mulf %68, %64 : vector<39x32xf32>
    %cst_27 = arith.constant 1.42141378 : f32
    %70 = vector.broadcast %cst_27 : f32 to vector<39x32xf32>
    %71 = arith.addf %69, %70 : vector<39x32xf32>
    %72 = arith.mulf %71, %64 : vector<39x32xf32>
    %cst_28 = arith.constant -0.284496725 : f32
    %73 = vector.broadcast %cst_28 : f32 to vector<39x32xf32>
    %74 = arith.addf %72, %73 : vector<39x32xf32>
    %75 = arith.mulf %74, %64 : vector<39x32xf32>
    %cst_29 = arith.constant 0.254829586 : f32
    %76 = vector.broadcast %cst_29 : f32 to vector<39x32xf32>
    %77 = arith.addf %75, %76 : vector<39x32xf32>
    %78 = arith.mulf %77, %64 : vector<39x32xf32>
    %cst_30 = arith.constant 0.000000e+00 : f32
    %79 = vector.broadcast %cst_30 : f32 to vector<39x32xf32>
    %80 = arith.subf %79, %58 : vector<39x32xf32>
    %81 = arith.mulf %80, %58 : vector<39x32xf32>
    %82 = math.exp %81 : vector<39x32xf32>
    %83 = arith.mulf %78, %82 : vector<39x32xf32>
    %cst_31 = arith.constant 1.000000e+00 : f32
    %84 = vector.broadcast %cst_31 : f32 to vector<39x32xf32>
    %85 = arith.subf %84, %83 : vector<39x32xf32>
    %cst_32 = arith.constant 0.000000e+00 : f32
    %86 = vector.broadcast %cst_32 : f32 to vector<39x32xf32>
    %87 = arith.cmpf oge, %57, %86 : vector<39x32xf32>
    %cst_33 = arith.constant 0.000000e+00 : f32
    %88 = vector.broadcast %cst_33 : f32 to vector<39x32xf32>
    %89 = arith.subf %88, %85 : vector<39x32xf32>
    %90 = arith.select %87, %85, %89 : vector<39x32xi1>, vector<39x32xf32>
    %cst_34 = arith.constant 1.000000e+00 : f32
    %91 = vector.broadcast %cst_34 : f32 to vector<39x32xf32>
    %92 = arith.addf %91, %90 : vector<39x32xf32>
    %93 = arith.mulf %55, %92 : vector<39x32xf32>
    %94 = arith.addf %38, %93 : vector<39x32xf32>
    %c0_35 = arith.constant 0 : index
    %c0_36 = arith.constant 0 : index
    %c0_37 = arith.constant 0 : index
    %95 = vector.load %arg10[%c0_35, %c0_36, %c0_37] : memref<2x8x96xf32, #tpu.memory_space<vmem>>, vector<1x8x96xf32>
    %96 = vector.shape_cast %95 : vector<1x8x96xf32> to vector<8x96xf32>
    %97 = arith.truncf %94 : vector<39x32xf32> to vector<39x32xbf16>
    %c0_38 = arith.constant 0 : index
    %c0_39 = arith.constant 0 : index
    %c0_40 = arith.constant 0 : index
    %98 = vector.load %arg6[%c0_38, %c0_39, %c0_40] : memref<2x32x96xbf16, #tpu.memory_space<vmem>>, vector<1x32x96xbf16>
    %99 = vector.shape_cast %98 : vector<1x32x96xbf16> to vector<32x96xbf16>
    %cst_41 = arith.constant dense<0.000000e+00> : vector<39x96xf32>
    %100 = tpu.matmul %97, %99, %cst_41 {dimension_numbers = #tpu.dot_dimension_numbers<[1], [0], [0], [1], [0, 0, 1, 1], [], []>} : vector<39x32xbf16>, vector<32x96xbf16>, vector<39x96xf32> -> vector<39x96xf32>
    %101 = vector.extract_strided_slice %96 {offsets = [0, 0], sizes = [1, 96], strides = [1, 1]} : vector<8x96xf32> to vector<1x96xf32>
    %102 = vector.shape_cast %101 : vector<1x96xf32> to vector<96xf32>
    %103 = vector.shape_cast %102 : vector<96xf32> to vector<1x96xf32>
    %104 = vector.broadcast %103 : vector<1x96xf32> to vector<39x96xf32>
    %105 = arith.addf %100, %104 : vector<39x96xf32>
    %106 = vector.extract_strided_slice %105 {offsets = [0, 0], sizes = [39, 32], strides = [1, 1]} : vector<39x96xf32> to vector<39x32xf32>
    %cst_42 = arith.constant 0.353553385 : f32
    %107 = vector.broadcast %cst_42 : f32 to vector<39x32xf32>
    %108 = arith.mulf %106, %107 : vector<39x32xf32>
    %109 = vector.extract_strided_slice %105 {offsets = [0, 32], sizes = [39, 32], strides = [1, 1]} : vector<39x96xf32> to vector<39x32xf32>
    %110 = vector.extract_strided_slice %105 {offsets = [0, 64], sizes = [39, 32], strides = [1, 1]} : vector<39x96xf32> to vector<39x32xf32>
    %111 = vector.extract_strided_slice %108 {offsets = [0, 0], sizes = [39, 8], strides = [1, 1]} : vector<39x32xf32> to vector<39x8xf32>
    %112 = vector.extract_strided_slice %108 {offsets = [0, 8], sizes = [39, 8], strides = [1, 1]} : vector<39x32xf32> to vector<39x8xf32>
    %113 = vector.extract_strided_slice %108 {offsets = [0, 16], sizes = [39, 8], strides = [1, 1]} : vector<39x32xf32> to vector<39x8xf32>
    %114 = vector.extract_strided_slice %108 {offsets = [0, 24], sizes = [39, 8], strides = [1, 1]} : vector<39x32xf32> to vector<39x8xf32>
    %115 = vector.shape_cast %111 : vector<39x8xf32> to vector<1x39x8xf32>
    %116 = vector.shape_cast %112 : vector<39x8xf32> to vector<1x39x8xf32>
    %117 = vector.shape_cast %113 : vector<39x8xf32> to vector<1x39x8xf32>
    %118 = vector.shape_cast %114 : vector<39x8xf32> to vector<1x39x8xf32>
    %119 = tpu.concatenate %115, %116, %117, %118 in 0 : vector<1x39x8xf32>, vector<1x39x8xf32>, vector<1x39x8xf32>, vector<1x39x8xf32> -> vector<4x39x8xf32>
    %120 = arith.truncf %119 : vector<4x39x8xf32> to vector<4x39x8xbf16>
    %121 = vector.extract_strided_slice %109 {offsets = [0, 0], sizes = [39, 8], strides = [1, 1]} : vector<39x32xf32> to vector<39x8xf32>
    %122 = vector.extract_strided_slice %109 {offsets = [0, 8], sizes = [39, 8], strides = [1, 1]} : vector<39x32xf32> to vector<39x8xf32>
    %123 = vector.extract_strided_slice %109 {offsets = [0, 16], sizes = [39, 8], strides = [1, 1]} : vector<39x32xf32> to vector<39x8xf32>
    %124 = vector.extract_strided_slice %109 {offsets = [0, 24], sizes = [39, 8], strides = [1, 1]} : vector<39x32xf32> to vector<39x8xf32>
    %125 = vector.shape_cast %121 : vector<39x8xf32> to vector<1x39x8xf32>
    %126 = vector.shape_cast %122 : vector<39x8xf32> to vector<1x39x8xf32>
    %127 = vector.shape_cast %123 : vector<39x8xf32> to vector<1x39x8xf32>
    %128 = vector.shape_cast %124 : vector<39x8xf32> to vector<1x39x8xf32>
    %129 = tpu.concatenate %125, %126, %127, %128 in 0 : vector<1x39x8xf32>, vector<1x39x8xf32>, vector<1x39x8xf32>, vector<1x39x8xf32> -> vector<4x39x8xf32>
    %130 = arith.truncf %129 : vector<4x39x8xf32> to vector<4x39x8xbf16>
    %131 = vector.extract_strided_slice %110 {offsets = [0, 0], sizes = [39, 8], strides = [1, 1]} : vector<39x32xf32> to vector<39x8xf32>
    %132 = vector.extract_strided_slice %110 {offsets = [0, 8], sizes = [39, 8], strides = [1, 1]} : vector<39x32xf32> to vector<39x8xf32>
    %133 = vector.extract_strided_slice %110 {offsets = [0, 16], sizes = [39, 8], strides = [1, 1]} : vector<39x32xf32> to vector<39x8xf32>
    %134 = vector.extract_strided_slice %110 {offsets = [0, 24], sizes = [39, 8], strides = [1, 1]} : vector<39x32xf32> to vector<39x8xf32>
    %135 = vector.shape_cast %131 : vector<39x8xf32> to vector<1x39x8xf32>
    %136 = vector.shape_cast %132 : vector<39x8xf32> to vector<1x39x8xf32>
    %137 = vector.shape_cast %133 : vector<39x8xf32> to vector<1x39x8xf32>
    %138 = vector.shape_cast %134 : vector<39x8xf32> to vector<1x39x8xf32>
    %139 = tpu.concatenate %135, %136, %137, %138 in 0 : vector<1x39x8xf32>, vector<1x39x8xf32>, vector<1x39x8xf32>, vector<1x39x8xf32> -> vector<4x39x8xf32>
    %140 = arith.truncf %139 : vector<4x39x8xf32> to vector<4x39x8xbf16>
    "tpu.trace_start"() <{level = 10 : i32, message = "hqd,hkd->hqk"}> : () -> ()
    %cst_43 = arith.constant dense<0.000000e+00> : vector<4x39x39xf32>
    %141 = tpu.matmul %120, %130, %cst_43 {dimension_numbers = #tpu.dot_dimension_numbers<[2], [2], [1], [1], [0, 0, 0, 1, 1, 1], [0], [0]>} : vector<4x39x8xbf16>, vector<4x39x8xbf16>, vector<4x39x39xf32> -> vector<4x39x39xf32>
    "tpu.trace_stop"() : () -> ()
    %cst_44 = arith.constant dense<0xFF800000> : vector<4x39xf32>
    %142 = vector.multi_reduction <maximumf>, %141, %cst_44 [2] : vector<4x39x39xf32> to vector<4x39xf32>
    %143 = vector.shape_cast %142 : vector<4x39xf32> to vector<4x39x1xf32>
    %144 = vector.broadcast %143 : vector<4x39x1xf32> to vector<4x39x39xf32>
    %145 = arith.subf %141, %144 : vector<4x39x39xf32>
    %146 = math.exp %145 : vector<4x39x39xf32>
    %cst_45 = arith.constant dense<0.000000e+00> : vector<4x39xf32>
    %147 = vector.multi_reduction <add>, %146, %cst_45 [2] : vector<4x39x39xf32> to vector<4x39xf32>
    %148 = vector.shape_cast %147 : vector<4x39xf32> to vector<4x39x1xf32>
    %149 = tpu.reciprocal %148 {approx = true} : vector<4x39x1xf32> -> vector<4x39x1xf32>
    %150 = vector.broadcast %149 : vector<4x39x1xf32> to vector<4x39x39xf32>
    %151 = arith.mulf %146, %150 : vector<4x39x39xf32>
    %152 = arith.truncf %151 : vector<4x39x39xf32> to vector<4x39x39xbf16>
    "tpu.trace_start"() <{level = 10 : i32, message = "hqk,hkd->hqd"}> : () -> ()
    %cst_46 = arith.constant dense<0.000000e+00> : vector<4x39x8xf32>
    %153 = tpu.matmul %152, %140, %cst_46 {dimension_numbers = #tpu.dot_dimension_numbers<[2], [1], [1], [2], [0, 0, 0, 1, 1, 2], [0], [0]>} : vector<4x39x39xbf16>, vector<4x39x8xbf16>, vector<4x39x8xf32> -> vector<4x39x8xf32>
    "tpu.trace_stop"() : () -> ()
    %154 = vector.extract_strided_slice %153 {offsets = [0, 0, 0], sizes = [1, 39, 8], strides = [1, 1, 1]} : vector<4x39x8xf32> to vector<1x39x8xf32>
    %155 = vector.shape_cast %154 : vector<1x39x8xf32> to vector<39x8xf32>
    %156 = vector.extract_strided_slice %153 {offsets = [1, 0, 0], sizes = [1, 39, 8], strides = [1, 1, 1]} : vector<4x39x8xf32> to vector<1x39x8xf32>
    %157 = vector.shape_cast %156 : vector<1x39x8xf32> to vector<39x8xf32>
    %158 = vector.extract_strided_slice %153 {offsets = [2, 0, 0], sizes = [1, 39, 8], strides = [1, 1, 1]} : vector<4x39x8xf32> to vector<1x39x8xf32>
    %159 = vector.shape_cast %158 : vector<1x39x8xf32> to vector<39x8xf32>
    %160 = vector.extract_strided_slice %153 {offsets = [3, 0, 0], sizes = [1, 39, 8], strides = [1, 1, 1]} : vector<4x39x8xf32> to vector<1x39x8xf32>
    %161 = vector.shape_cast %160 : vector<1x39x8xf32> to vector<39x8xf32>
    %162 = tpu.concatenate %155, %157, %159, %161 in 1 : vector<39x8xf32>, vector<39x8xf32>, vector<39x8xf32>, vector<39x8xf32> -> vector<39x32xf32>
    %163 = arith.truncf %162 : vector<39x32xf32> to vector<39x32xbf16>
    %c0_47 = arith.constant 0 : index
    %c0_48 = arith.constant 0 : index
    %c0_49 = arith.constant 0 : index
    %164 = vector.load %arg7[%c0_47, %c0_48, %c0_49] : memref<2x32x32xbf16, #tpu.memory_space<vmem>>, vector<1x32x32xbf16>
    %165 = vector.shape_cast %164 : vector<1x32x32xbf16> to vector<32x32xbf16>
    %cst_50 = arith.constant dense<0.000000e+00> : vector<39x32xf32>
    %166 = tpu.matmul %163, %165, %cst_50 {dimension_numbers = #tpu.dot_dimension_numbers<[1], [0], [0], [1], [0, 0, 1, 1], [], []>} : vector<39x32xbf16>, vector<32x32xbf16>, vector<39x32xf32> -> vector<39x32xf32>
    %167 = vector.extract_strided_slice %96 {offsets = [1, 0], sizes = [1, 32], strides = [1, 1]} : vector<8x96xf32> to vector<1x32xf32>
    %168 = vector.shape_cast %167 : vector<1x32xf32> to vector<32xf32>
    %169 = vector.shape_cast %168 : vector<32xf32> to vector<1x32xf32>
    %170 = vector.broadcast %169 : vector<1x32xf32> to vector<39x32xf32>
    %171 = arith.addf %166, %170 : vector<39x32xf32>
    %172 = arith.addf %94, %171 : vector<39x32xf32>
    %173 = vector.extract_strided_slice %96 {offsets = [2, 0], sizes = [1, 32], strides = [1, 1]} : vector<8x96xf32> to vector<1x32xf32>
    %174 = vector.shape_cast %173 : vector<1x32xf32> to vector<32xf32>
    %175 = vector.extract_strided_slice %96 {offsets = [3, 0], sizes = [1, 32], strides = [1, 1]} : vector<8x96xf32> to vector<1x32xf32>
    %176 = vector.shape_cast %175 : vector<1x32xf32> to vector<32xf32>
    %cst_51 = arith.constant dense<0.000000e+00> : vector<39xf32>
    %177 = vector.multi_reduction <add>, %172, %cst_51 [1] : vector<39x32xf32> to vector<39xf32>
    %178 = vector.shape_cast %177 : vector<39xf32> to vector<39x1xf32>
    %cst_52 = arith.constant 3.200000e+01 : f32
    %179 = vector.broadcast %cst_52 : f32 to vector<39x1xf32>
    %180 = arith.divf %178, %179 : vector<39x1xf32>
    %181 = vector.broadcast %180 : vector<39x1xf32> to vector<39x32xf32>
    %182 = arith.subf %172, %181 : vector<39x32xf32>
    %183 = arith.mulf %182, %182 : vector<39x32xf32>
    %cst_53 = arith.constant dense<0.000000e+00> : vector<39xf32>
    %184 = vector.multi_reduction <add>, %183, %cst_53 [1] : vector<39x32xf32> to vector<39xf32>
    %185 = vector.shape_cast %184 : vector<39xf32> to vector<39x1xf32>
    %cst_54 = arith.constant 3.200000e+01 : f32
    %186 = vector.broadcast %cst_54 : f32 to vector<39x1xf32>
    %187 = arith.divf %185, %186 : vector<39x1xf32>
    %188 = vector.broadcast %180 : vector<39x1xf32> to vector<39x32xf32>
    %189 = arith.subf %172, %188 : vector<39x32xf32>
    %cst_55 = arith.constant 9.99999974E-6 : f32
    %190 = vector.broadcast %cst_55 : f32 to vector<39x1xf32>
    %191 = arith.addf %187, %190 : vector<39x1xf32>
    %192 = math.rsqrt %191 : vector<39x1xf32>
    %193 = vector.broadcast %192 : vector<39x1xf32> to vector<39x32xf32>
    %194 = arith.mulf %189, %193 : vector<39x32xf32>
    %195 = vector.shape_cast %174 : vector<32xf32> to vector<1x32xf32>
    %196 = vector.broadcast %195 : vector<1x32xf32> to vector<39x32xf32>
    %197 = arith.mulf %194, %196 : vector<39x32xf32>
    %198 = vector.shape_cast %176 : vector<32xf32> to vector<1x32xf32>
    %199 = vector.broadcast %198 : vector<1x32xf32> to vector<39x32xf32>
    %200 = arith.addf %197, %199 : vector<39x32xf32>
    %201 = arith.truncf %200 : vector<39x32xf32> to vector<39x32xbf16>
    %c0_56 = arith.constant 0 : index
    %c0_57 = arith.constant 0 : index
    %c0_58 = arith.constant 0 : index
    %202 = vector.load %arg8[%c0_56, %c0_57, %c0_58] : memref<2x32x64xbf16, #tpu.memory_space<vmem>>, vector<1x32x64xbf16>
    %203 = vector.shape_cast %202 : vector<1x32x64xbf16> to vector<32x64xbf16>
    %cst_59 = arith.constant dense<0.000000e+00> : vector<39x64xf32>
    %204 = tpu.matmul %201, %203, %cst_59 {dimension_numbers = #tpu.dot_dimension_numbers<[1], [0], [0], [1], [0, 0, 1, 1], [], []>} : vector<39x32xbf16>, vector<32x64xbf16>, vector<39x64xf32> -> vector<39x64xf32>
    %205 = vector.extract_strided_slice %96 {offsets = [4, 0], sizes = [1, 64], strides = [1, 1]} : vector<8x96xf32> to vector<1x64xf32>
    %206 = vector.shape_cast %205 : vector<1x64xf32> to vector<64xf32>
    %207 = vector.shape_cast %206 : vector<64xf32> to vector<1x64xf32>
    %208 = vector.broadcast %207 : vector<1x64xf32> to vector<39x64xf32>
    %209 = arith.addf %204, %208 : vector<39x64xf32>
    %cst_60 = arith.constant 5.000000e-01 : f32
    %210 = vector.broadcast %cst_60 : f32 to vector<39x64xf32>
    %211 = arith.mulf %210, %209 : vector<39x64xf32>
    %cst_61 = arith.constant 0.707106769 : f32
    %212 = vector.broadcast %cst_61 : f32 to vector<39x64xf32>
    %213 = arith.mulf %209, %212 : vector<39x64xf32>
    %214 = math.absf %213 : vector<39x64xf32>
    %cst_62 = arith.constant 0.327591091 : f32
    %215 = vector.broadcast %cst_62 : f32 to vector<39x64xf32>
    %216 = arith.mulf %215, %214 : vector<39x64xf32>
    %cst_63 = arith.constant 1.000000e+00 : f32
    %217 = vector.broadcast %cst_63 : f32 to vector<39x64xf32>
    %218 = arith.addf %217, %216 : vector<39x64xf32>
    %cst_64 = arith.constant 1.000000e+00 : f32
    %219 = vector.broadcast %cst_64 : f32 to vector<39x64xf32>
    %220 = arith.divf %219, %218 : vector<39x64xf32>
    %cst_65 = arith.constant 1.06140542 : f32
    %221 = vector.broadcast %cst_65 : f32 to vector<39x64xf32>
    %222 = arith.mulf %221, %220 : vector<39x64xf32>
    %cst_66 = arith.constant -1.45315206 : f32
    %223 = vector.broadcast %cst_66 : f32 to vector<39x64xf32>
    %224 = arith.addf %222, %223 : vector<39x64xf32>
    %225 = arith.mulf %224, %220 : vector<39x64xf32>
    %cst_67 = arith.constant 1.42141378 : f32
    %226 = vector.broadcast %cst_67 : f32 to vector<39x64xf32>
    %227 = arith.addf %225, %226 : vector<39x64xf32>
    %228 = arith.mulf %227, %220 : vector<39x64xf32>
    %cst_68 = arith.constant -0.284496725 : f32
    %229 = vector.broadcast %cst_68 : f32 to vector<39x64xf32>
    %230 = arith.addf %228, %229 : vector<39x64xf32>
    %231 = arith.mulf %230, %220 : vector<39x64xf32>
    %cst_69 = arith.constant 0.254829586 : f32
    %232 = vector.broadcast %cst_69 : f32 to vector<39x64xf32>
    %233 = arith.addf %231, %232 : vector<39x64xf32>
    %234 = arith.mulf %233, %220 : vector<39x64xf32>
    %cst_70 = arith.constant 0.000000e+00 : f32
    %235 = vector.broadcast %cst_70 : f32 to vector<39x64xf32>
    %236 = arith.subf %235, %214 : vector<39x64xf32>
    %237 = arith.mulf %236, %214 : vector<39x64xf32>
    %238 = math.exp %237 : vector<39x64xf32>
    %239 = arith.mulf %234, %238 : vector<39x64xf32>
    %cst_71 = arith.constant 1.000000e+00 : f32
    %240 = vector.broadcast %cst_71 : f32 to vector<39x64xf32>
    %241 = arith.subf %240, %239 : vector<39x64xf32>
    %cst_72 = arith.constant 0.000000e+00 : f32
    %242 = vector.broadcast %cst_72 : f32 to vector<39x64xf32>
    %243 = arith.cmpf oge, %213, %242 : vector<39x64xf32>
    %cst_73 = arith.constant 0.000000e+00 : f32
    %244 = vector.broadcast %cst_73 : f32 to vector<39x64xf32>
    %245 = arith.subf %244, %241 : vector<39x64xf32>
    %246 = arith.select %243, %241, %245 : vector<39x64xi1>, vector<39x64xf32>
    %cst_74 = arith.constant 1.000000e+00 : f32
    %247 = vector.broadcast %cst_74 : f32 to vector<39x64xf32>
    %248 = arith.addf %247, %246 : vector<39x64xf32>
    %249 = arith.mulf %211, %248 : vector<39x64xf32>
    %250 = arith.truncf %249 : vector<39x64xf32> to vector<39x64xbf16>
    %c0_75 = arith.constant 0 : index
    %c0_76 = arith.constant 0 : index
    %c0_77 = arith.constant 0 : index
    %251 = vector.load %arg9[%c0_75, %c0_76, %c0_77] : memref<2x64x32xbf16, #tpu.memory_space<vmem>>, vector<1x64x32xbf16>
    %252 = vector.shape_cast %251 : vector<1x64x32xbf16> to vector<64x32xbf16>
    %cst_78 = arith.constant dense<0.000000e+00> : vector<39x32xf32>
    %253 = tpu.matmul %250, %252, %cst_78 {dimension_numbers = #tpu.dot_dimension_numbers<[1], [0], [0], [1], [0, 0, 1, 1], [], []>} : vector<39x64xbf16>, vector<64x32xbf16>, vector<39x32xf32> -> vector<39x32xf32>
    %254 = vector.extract_strided_slice %96 {offsets = [5, 0], sizes = [1, 32], strides = [1, 1]} : vector<8x96xf32> to vector<1x32xf32>
    %255 = vector.shape_cast %254 : vector<1x32xf32> to vector<32xf32>
    %256 = vector.shape_cast %255 : vector<32xf32> to vector<1x32xf32>
    %257 = vector.broadcast %256 : vector<1x32xf32> to vector<39x32xf32>
    %258 = arith.addf %253, %257 : vector<39x32xf32>
    %259 = arith.addf %200, %258 : vector<39x32xf32>
    %260 = vector.extract_strided_slice %96 {offsets = [6, 0], sizes = [1, 32], strides = [1, 1]} : vector<8x96xf32> to vector<1x32xf32>
    %261 = vector.shape_cast %260 : vector<1x32xf32> to vector<32xf32>
    %262 = vector.extract_strided_slice %96 {offsets = [7, 0], sizes = [1, 32], strides = [1, 1]} : vector<8x96xf32> to vector<1x32xf32>
    %263 = vector.shape_cast %262 : vector<1x32xf32> to vector<32xf32>
    %cst_79 = arith.constant dense<0.000000e+00> : vector<39xf32>
    %264 = vector.multi_reduction <add>, %259, %cst_79 [1] : vector<39x32xf32> to vector<39xf32>
    %265 = vector.shape_cast %264 : vector<39xf32> to vector<39x1xf32>
    %cst_80 = arith.constant 3.200000e+01 : f32
    %266 = vector.broadcast %cst_80 : f32 to vector<39x1xf32>
    %267 = arith.divf %265, %266 : vector<39x1xf32>
    %268 = vector.broadcast %267 : vector<39x1xf32> to vector<39x32xf32>
    %269 = arith.subf %259, %268 : vector<39x32xf32>
    %270 = arith.mulf %269, %269 : vector<39x32xf32>
    %cst_81 = arith.constant dense<0.000000e+00> : vector<39xf32>
    %271 = vector.multi_reduction <add>, %270, %cst_81 [1] : vector<39x32xf32> to vector<39xf32>
    %272 = vector.shape_cast %271 : vector<39xf32> to vector<39x1xf32>
    %cst_82 = arith.constant 3.200000e+01 : f32
    %273 = vector.broadcast %cst_82 : f32 to vector<39x1xf32>
    %274 = arith.divf %272, %273 : vector<39x1xf32>
    %275 = vector.broadcast %267 : vector<39x1xf32> to vector<39x32xf32>
    %276 = arith.subf %259, %275 : vector<39x32xf32>
    %cst_83 = arith.constant 9.99999974E-6 : f32
    %277 = vector.broadcast %cst_83 : f32 to vector<39x1xf32>
    %278 = arith.addf %274, %277 : vector<39x1xf32>
    %279 = math.rsqrt %278 : vector<39x1xf32>
    %280 = vector.broadcast %279 : vector<39x1xf32> to vector<39x32xf32>
    %281 = arith.mulf %276, %280 : vector<39x32xf32>
    %282 = vector.shape_cast %261 : vector<32xf32> to vector<1x32xf32>
    %283 = vector.broadcast %282 : vector<1x32xf32> to vector<39x32xf32>
    %284 = arith.mulf %281, %283 : vector<39x32xf32>
    %285 = vector.shape_cast %263 : vector<32xf32> to vector<1x32xf32>
    %286 = vector.broadcast %285 : vector<1x32xf32> to vector<39x32xf32>
    %287 = arith.addf %284, %286 : vector<39x32xf32>
    %c1_84 = arith.constant 1 : index
    %c0_85 = arith.constant 0 : index
    %c0_86 = arith.constant 0 : index
    %288 = vector.load %arg10[%c1_84, %c0_85, %c0_86] : memref<2x8x96xf32, #tpu.memory_space<vmem>>, vector<1x8x96xf32>
    %289 = vector.shape_cast %288 : vector<1x8x96xf32> to vector<8x96xf32>
    %290 = arith.truncf %287 : vector<39x32xf32> to vector<39x32xbf16>
    %c1_87 = arith.constant 1 : index
    %c0_88 = arith.constant 0 : index
    %c0_89 = arith.constant 0 : index
    %291 = vector.load %arg6[%c1_87, %c0_88, %c0_89] : memref<2x32x96xbf16, #tpu.memory_space<vmem>>, vector<1x32x96xbf16>
    %292 = vector.shape_cast %291 : vector<1x32x96xbf16> to vector<32x96xbf16>
    %cst_90 = arith.constant dense<0.000000e+00> : vector<39x96xf32>
    %293 = tpu.matmul %290, %292, %cst_90 {dimension_numbers = #tpu.dot_dimension_numbers<[1], [0], [0], [1], [0, 0, 1, 1], [], []>} : vector<39x32xbf16>, vector<32x96xbf16>, vector<39x96xf32> -> vector<39x96xf32>
    %294 = vector.extract_strided_slice %289 {offsets = [0, 0], sizes = [1, 96], strides = [1, 1]} : vector<8x96xf32> to vector<1x96xf32>
    %295 = vector.shape_cast %294 : vector<1x96xf32> to vector<96xf32>
    %296 = vector.shape_cast %295 : vector<96xf32> to vector<1x96xf32>
    %297 = vector.broadcast %296 : vector<1x96xf32> to vector<39x96xf32>
    %298 = arith.addf %293, %297 : vector<39x96xf32>
    %299 = vector.extract_strided_slice %298 {offsets = [0, 0], sizes = [39, 32], strides = [1, 1]} : vector<39x96xf32> to vector<39x32xf32>
    %cst_91 = arith.constant 0.353553385 : f32
    %300 = vector.broadcast %cst_91 : f32 to vector<39x32xf32>
    %301 = arith.mulf %299, %300 : vector<39x32xf32>
    %302 = vector.extract_strided_slice %298 {offsets = [0, 32], sizes = [39, 32], strides = [1, 1]} : vector<39x96xf32> to vector<39x32xf32>
    %303 = vector.extract_strided_slice %298 {offsets = [0, 64], sizes = [39, 32], strides = [1, 1]} : vector<39x96xf32> to vector<39x32xf32>
    %304 = vector.extract_strided_slice %301 {offsets = [0, 0], sizes = [39, 8], strides = [1, 1]} : vector<39x32xf32> to vector<39x8xf32>
    %305 = vector.extract_strided_slice %301 {offsets = [0, 8], sizes = [39, 8], strides = [1, 1]} : vector<39x32xf32> to vector<39x8xf32>
    %306 = vector.extract_strided_slice %301 {offsets = [0, 16], sizes = [39, 8], strides = [1, 1]} : vector<39x32xf32> to vector<39x8xf32>
    %307 = vector.extract_strided_slice %301 {offsets = [0, 24], sizes = [39, 8], strides = [1, 1]} : vector<39x32xf32> to vector<39x8xf32>
    %308 = vector.shape_cast %304 : vector<39x8xf32> to vector<1x39x8xf32>
    %309 = vector.shape_cast %305 : vector<39x8xf32> to vector<1x39x8xf32>
    %310 = vector.shape_cast %306 : vector<39x8xf32> to vector<1x39x8xf32>
    %311 = vector.shape_cast %307 : vector<39x8xf32> to vector<1x39x8xf32>
    %312 = tpu.concatenate %308, %309, %310, %311 in 0 : vector<1x39x8xf32>, vector<1x39x8xf32>, vector<1x39x8xf32>, vector<1x39x8xf32> -> vector<4x39x8xf32>
    %313 = arith.truncf %312 : vector<4x39x8xf32> to vector<4x39x8xbf16>
    %314 = vector.extract_strided_slice %302 {offsets = [0, 0], sizes = [39, 8], strides = [1, 1]} : vector<39x32xf32> to vector<39x8xf32>
    %315 = vector.extract_strided_slice %302 {offsets = [0, 8], sizes = [39, 8], strides = [1, 1]} : vector<39x32xf32> to vector<39x8xf32>
    %316 = vector.extract_strided_slice %302 {offsets = [0, 16], sizes = [39, 8], strides = [1, 1]} : vector<39x32xf32> to vector<39x8xf32>
    %317 = vector.extract_strided_slice %302 {offsets = [0, 24], sizes = [39, 8], strides = [1, 1]} : vector<39x32xf32> to vector<39x8xf32>
    %318 = vector.shape_cast %314 : vector<39x8xf32> to vector<1x39x8xf32>
    %319 = vector.shape_cast %315 : vector<39x8xf32> to vector<1x39x8xf32>
    %320 = vector.shape_cast %316 : vector<39x8xf32> to vector<1x39x8xf32>
    %321 = vector.shape_cast %317 : vector<39x8xf32> to vector<1x39x8xf32>
    %322 = tpu.concatenate %318, %319, %320, %321 in 0 : vector<1x39x8xf32>, vector<1x39x8xf32>, vector<1x39x8xf32>, vector<1x39x8xf32> -> vector<4x39x8xf32>
    %323 = arith.truncf %322 : vector<4x39x8xf32> to vector<4x39x8xbf16>
    %324 = vector.extract_strided_slice %303 {offsets = [0, 0], sizes = [39, 8], strides = [1, 1]} : vector<39x32xf32> to vector<39x8xf32>
    %325 = vector.extract_strided_slice %303 {offsets = [0, 8], sizes = [39, 8], strides = [1, 1]} : vector<39x32xf32> to vector<39x8xf32>
    %326 = vector.extract_strided_slice %303 {offsets = [0, 16], sizes = [39, 8], strides = [1, 1]} : vector<39x32xf32> to vector<39x8xf32>
    %327 = vector.extract_strided_slice %303 {offsets = [0, 24], sizes = [39, 8], strides = [1, 1]} : vector<39x32xf32> to vector<39x8xf32>
    %328 = vector.shape_cast %324 : vector<39x8xf32> to vector<1x39x8xf32>
    %329 = vector.shape_cast %325 : vector<39x8xf32> to vector<1x39x8xf32>
    %330 = vector.shape_cast %326 : vector<39x8xf32> to vector<1x39x8xf32>
    %331 = vector.shape_cast %327 : vector<39x8xf32> to vector<1x39x8xf32>
    %332 = tpu.concatenate %328, %329, %330, %331 in 0 : vector<1x39x8xf32>, vector<1x39x8xf32>, vector<1x39x8xf32>, vector<1x39x8xf32> -> vector<4x39x8xf32>
    %333 = arith.truncf %332 : vector<4x39x8xf32> to vector<4x39x8xbf16>
    "tpu.trace_start"() <{level = 10 : i32, message = "hqd,hkd->hqk"}> : () -> ()
    %cst_92 = arith.constant dense<0.000000e+00> : vector<4x39x39xf32>
    %334 = tpu.matmul %313, %323, %cst_92 {dimension_numbers = #tpu.dot_dimension_numbers<[2], [2], [1], [1], [0, 0, 0, 1, 1, 1], [0], [0]>} : vector<4x39x8xbf16>, vector<4x39x8xbf16>, vector<4x39x39xf32> -> vector<4x39x39xf32>
    "tpu.trace_stop"() : () -> ()
    %cst_93 = arith.constant dense<0xFF800000> : vector<4x39xf32>
    %335 = vector.multi_reduction <maximumf>, %334, %cst_93 [2] : vector<4x39x39xf32> to vector<4x39xf32>
    %336 = vector.shape_cast %335 : vector<4x39xf32> to vector<4x39x1xf32>
    %337 = vector.broadcast %336 : vector<4x39x1xf32> to vector<4x39x39xf32>
    %338 = arith.subf %334, %337 : vector<4x39x39xf32>
    %339 = math.exp %338 : vector<4x39x39xf32>
    %cst_94 = arith.constant dense<0.000000e+00> : vector<4x39xf32>
    %340 = vector.multi_reduction <add>, %339, %cst_94 [2] : vector<4x39x39xf32> to vector<4x39xf32>
    %341 = vector.shape_cast %340 : vector<4x39xf32> to vector<4x39x1xf32>
    %342 = tpu.reciprocal %341 {approx = true} : vector<4x39x1xf32> -> vector<4x39x1xf32>
    %343 = vector.broadcast %342 : vector<4x39x1xf32> to vector<4x39x39xf32>
    %344 = arith.mulf %339, %343 : vector<4x39x39xf32>
    %345 = arith.truncf %344 : vector<4x39x39xf32> to vector<4x39x39xbf16>
    "tpu.trace_start"() <{level = 10 : i32, message = "hqk,hkd->hqd"}> : () -> ()
    %cst_95 = arith.constant dense<0.000000e+00> : vector<4x39x8xf32>
    %346 = tpu.matmul %345, %333, %cst_95 {dimension_numbers = #tpu.dot_dimension_numbers<[2], [1], [1], [2], [0, 0, 0, 1, 1, 2], [0], [0]>} : vector<4x39x39xbf16>, vector<4x39x8xbf16>, vector<4x39x8xf32> -> vector<4x39x8xf32>
    "tpu.trace_stop"() : () -> ()
    %347 = vector.extract_strided_slice %346 {offsets = [0, 0, 0], sizes = [1, 39, 8], strides = [1, 1, 1]} : vector<4x39x8xf32> to vector<1x39x8xf32>
    %348 = vector.shape_cast %347 : vector<1x39x8xf32> to vector<39x8xf32>
    %349 = vector.extract_strided_slice %346 {offsets = [1, 0, 0], sizes = [1, 39, 8], strides = [1, 1, 1]} : vector<4x39x8xf32> to vector<1x39x8xf32>
    %350 = vector.shape_cast %349 : vector<1x39x8xf32> to vector<39x8xf32>
    %351 = vector.extract_strided_slice %346 {offsets = [2, 0, 0], sizes = [1, 39, 8], strides = [1, 1, 1]} : vector<4x39x8xf32> to vector<1x39x8xf32>
    %352 = vector.shape_cast %351 : vector<1x39x8xf32> to vector<39x8xf32>
    %353 = vector.extract_strided_slice %346 {offsets = [3, 0, 0], sizes = [1, 39, 8], strides = [1, 1, 1]} : vector<4x39x8xf32> to vector<1x39x8xf32>
    %354 = vector.shape_cast %353 : vector<1x39x8xf32> to vector<39x8xf32>
    %355 = tpu.concatenate %348, %350, %352, %354 in 1 : vector<39x8xf32>, vector<39x8xf32>, vector<39x8xf32>, vector<39x8xf32> -> vector<39x32xf32>
    %356 = arith.truncf %355 : vector<39x32xf32> to vector<39x32xbf16>
    %c1_96 = arith.constant 1 : index
    %c0_97 = arith.constant 0 : index
    %c0_98 = arith.constant 0 : index
    %357 = vector.load %arg7[%c1_96, %c0_97, %c0_98] : memref<2x32x32xbf16, #tpu.memory_space<vmem>>, vector<1x32x32xbf16>
    %358 = vector.shape_cast %357 : vector<1x32x32xbf16> to vector<32x32xbf16>
    %cst_99 = arith.constant dense<0.000000e+00> : vector<39x32xf32>
    %359 = tpu.matmul %356, %358, %cst_99 {dimension_numbers = #tpu.dot_dimension_numbers<[1], [0], [0], [1], [0, 0, 1, 1], [], []>} : vector<39x32xbf16>, vector<32x32xbf16>, vector<39x32xf32> -> vector<39x32xf32>
    %360 = vector.extract_strided_slice %289 {offsets = [1, 0], sizes = [1, 32], strides = [1, 1]} : vector<8x96xf32> to vector<1x32xf32>
    %361 = vector.shape_cast %360 : vector<1x32xf32> to vector<32xf32>
    %362 = vector.shape_cast %361 : vector<32xf32> to vector<1x32xf32>
    %363 = vector.broadcast %362 : vector<1x32xf32> to vector<39x32xf32>
    %364 = arith.addf %359, %363 : vector<39x32xf32>
    %365 = arith.addf %287, %364 : vector<39x32xf32>
    %366 = vector.extract_strided_slice %289 {offsets = [2, 0], sizes = [1, 32], strides = [1, 1]} : vector<8x96xf32> to vector<1x32xf32>
    %367 = vector.shape_cast %366 : vector<1x32xf32> to vector<32xf32>
    %368 = vector.extract_strided_slice %289 {offsets = [3, 0], sizes = [1, 32], strides = [1, 1]} : vector<8x96xf32> to vector<1x32xf32>
    %369 = vector.shape_cast %368 : vector<1x32xf32> to vector<32xf32>
    %cst_100 = arith.constant dense<0.000000e+00> : vector<39xf32>
    %370 = vector.multi_reduction <add>, %365, %cst_100 [1] : vector<39x32xf32> to vector<39xf32>
    %371 = vector.shape_cast %370 : vector<39xf32> to vector<39x1xf32>
    %cst_101 = arith.constant 3.200000e+01 : f32
    %372 = vector.broadcast %cst_101 : f32 to vector<39x1xf32>
    %373 = arith.divf %371, %372 : vector<39x1xf32>
    %374 = vector.broadcast %373 : vector<39x1xf32> to vector<39x32xf32>
    %375 = arith.subf %365, %374 : vector<39x32xf32>
    %376 = arith.mulf %375, %375 : vector<39x32xf32>
    %cst_102 = arith.constant dense<0.000000e+00> : vector<39xf32>
    %377 = vector.multi_reduction <add>, %376, %cst_102 [1] : vector<39x32xf32> to vector<39xf32>
    %378 = vector.shape_cast %377 : vector<39xf32> to vector<39x1xf32>
    %cst_103 = arith.constant 3.200000e+01 : f32
    %379 = vector.broadcast %cst_103 : f32 to vector<39x1xf32>
    %380 = arith.divf %378, %379 : vector<39x1xf32>
    %381 = vector.broadcast %373 : vector<39x1xf32> to vector<39x32xf32>
    %382 = arith.subf %365, %381 : vector<39x32xf32>
    %cst_104 = arith.constant 9.99999974E-6 : f32
    %383 = vector.broadcast %cst_104 : f32 to vector<39x1xf32>
    %384 = arith.addf %380, %383 : vector<39x1xf32>
    %385 = math.rsqrt %384 : vector<39x1xf32>
    %386 = vector.broadcast %385 : vector<39x1xf32> to vector<39x32xf32>
    %387 = arith.mulf %382, %386 : vector<39x32xf32>
    %388 = vector.shape_cast %367 : vector<32xf32> to vector<1x32xf32>
    %389 = vector.broadcast %388 : vector<1x32xf32> to vector<39x32xf32>
    %390 = arith.mulf %387, %389 : vector<39x32xf32>
    %391 = vector.shape_cast %369 : vector<32xf32> to vector<1x32xf32>
    %392 = vector.broadcast %391 : vector<1x32xf32> to vector<39x32xf32>
    %393 = arith.addf %390, %392 : vector<39x32xf32>
    %394 = arith.truncf %393 : vector<39x32xf32> to vector<39x32xbf16>
    %c1_105 = arith.constant 1 : index
    %c0_106 = arith.constant 0 : index
    %c0_107 = arith.constant 0 : index
    %395 = vector.load %arg8[%c1_105, %c0_106, %c0_107] : memref<2x32x64xbf16, #tpu.memory_space<vmem>>, vector<1x32x64xbf16>
    %396 = vector.shape_cast %395 : vector<1x32x64xbf16> to vector<32x64xbf16>
    %cst_108 = arith.constant dense<0.000000e+00> : vector<39x64xf32>
    %397 = tpu.matmul %394, %396, %cst_108 {dimension_numbers = #tpu.dot_dimension_numbers<[1], [0], [0], [1], [0, 0, 1, 1], [], []>} : vector<39x32xbf16>, vector<32x64xbf16>, vector<39x64xf32> -> vector<39x64xf32>
    %398 = vector.extract_strided_slice %289 {offsets = [4, 0], sizes = [1, 64], strides = [1, 1]} : vector<8x96xf32> to vector<1x64xf32>
    %399 = vector.shape_cast %398 : vector<1x64xf32> to vector<64xf32>
    %400 = vector.shape_cast %399 : vector<64xf32> to vector<1x64xf32>
    %401 = vector.broadcast %400 : vector<1x64xf32> to vector<39x64xf32>
    %402 = arith.addf %397, %401 : vector<39x64xf32>
    %cst_109 = arith.constant 5.000000e-01 : f32
    %403 = vector.broadcast %cst_109 : f32 to vector<39x64xf32>
    %404 = arith.mulf %403, %402 : vector<39x64xf32>
    %cst_110 = arith.constant 0.707106769 : f32
    %405 = vector.broadcast %cst_110 : f32 to vector<39x64xf32>
    %406 = arith.mulf %402, %405 : vector<39x64xf32>
    %407 = math.absf %406 : vector<39x64xf32>
    %cst_111 = arith.constant 0.327591091 : f32
    %408 = vector.broadcast %cst_111 : f32 to vector<39x64xf32>
    %409 = arith.mulf %408, %407 : vector<39x64xf32>
    %cst_112 = arith.constant 1.000000e+00 : f32
    %410 = vector.broadcast %cst_112 : f32 to vector<39x64xf32>
    %411 = arith.addf %410, %409 : vector<39x64xf32>
    %cst_113 = arith.constant 1.000000e+00 : f32
    %412 = vector.broadcast %cst_113 : f32 to vector<39x64xf32>
    %413 = arith.divf %412, %411 : vector<39x64xf32>
    %cst_114 = arith.constant 1.06140542 : f32
    %414 = vector.broadcast %cst_114 : f32 to vector<39x64xf32>
    %415 = arith.mulf %414, %413 : vector<39x64xf32>
    %cst_115 = arith.constant -1.45315206 : f32
    %416 = vector.broadcast %cst_115 : f32 to vector<39x64xf32>
    %417 = arith.addf %415, %416 : vector<39x64xf32>
    %418 = arith.mulf %417, %413 : vector<39x64xf32>
    %cst_116 = arith.constant 1.42141378 : f32
    %419 = vector.broadcast %cst_116 : f32 to vector<39x64xf32>
    %420 = arith.addf %418, %419 : vector<39x64xf32>
    %421 = arith.mulf %420, %413 : vector<39x64xf32>
    %cst_117 = arith.constant -0.284496725 : f32
    %422 = vector.broadcast %cst_117 : f32 to vector<39x64xf32>
    %423 = arith.addf %421, %422 : vector<39x64xf32>
    %424 = arith.mulf %423, %413 : vector<39x64xf32>
    %cst_118 = arith.constant 0.254829586 : f32
    %425 = vector.broadcast %cst_118 : f32 to vector<39x64xf32>
    %426 = arith.addf %424, %425 : vector<39x64xf32>
    %427 = arith.mulf %426, %413 : vector<39x64xf32>
    %cst_119 = arith.constant 0.000000e+00 : f32
    %428 = vector.broadcast %cst_119 : f32 to vector<39x64xf32>
    %429 = arith.subf %428, %407 : vector<39x64xf32>
    %430 = arith.mulf %429, %407 : vector<39x64xf32>
    %431 = math.exp %430 : vector<39x64xf32>
    %432 = arith.mulf %427, %431 : vector<39x64xf32>
    %cst_120 = arith.constant 1.000000e+00 : f32
    %433 = vector.broadcast %cst_120 : f32 to vector<39x64xf32>
    %434 = arith.subf %433, %432 : vector<39x64xf32>
    %cst_121 = arith.constant 0.000000e+00 : f32
    %435 = vector.broadcast %cst_121 : f32 to vector<39x64xf32>
    %436 = arith.cmpf oge, %406, %435 : vector<39x64xf32>
    %cst_122 = arith.constant 0.000000e+00 : f32
    %437 = vector.broadcast %cst_122 : f32 to vector<39x64xf32>
    %438 = arith.subf %437, %434 : vector<39x64xf32>
    %439 = arith.select %436, %434, %438 : vector<39x64xi1>, vector<39x64xf32>
    %cst_123 = arith.constant 1.000000e+00 : f32
    %440 = vector.broadcast %cst_123 : f32 to vector<39x64xf32>
    %441 = arith.addf %440, %439 : vector<39x64xf32>
    %442 = arith.mulf %404, %441 : vector<39x64xf32>
    %443 = arith.truncf %442 : vector<39x64xf32> to vector<39x64xbf16>
    %c1_124 = arith.constant 1 : index
    %c0_125 = arith.constant 0 : index
    %c0_126 = arith.constant 0 : index
    %444 = vector.load %arg9[%c1_124, %c0_125, %c0_126] : memref<2x64x32xbf16, #tpu.memory_space<vmem>>, vector<1x64x32xbf16>
    %445 = vector.shape_cast %444 : vector<1x64x32xbf16> to vector<64x32xbf16>
    %cst_127 = arith.constant dense<0.000000e+00> : vector<39x32xf32>
    %446 = tpu.matmul %443, %445, %cst_127 {dimension_numbers = #tpu.dot_dimension_numbers<[1], [0], [0], [1], [0, 0, 1, 1], [], []>} : vector<39x64xbf16>, vector<64x32xbf16>, vector<39x32xf32> -> vector<39x32xf32>
    %447 = vector.extract_strided_slice %289 {offsets = [5, 0], sizes = [1, 32], strides = [1, 1]} : vector<8x96xf32> to vector<1x32xf32>
    %448 = vector.shape_cast %447 : vector<1x32xf32> to vector<32xf32>
    %449 = vector.shape_cast %448 : vector<32xf32> to vector<1x32xf32>
    %450 = vector.broadcast %449 : vector<1x32xf32> to vector<39x32xf32>
    %451 = arith.addf %446, %450 : vector<39x32xf32>
    %452 = arith.addf %393, %451 : vector<39x32xf32>
    %453 = vector.extract_strided_slice %289 {offsets = [6, 0], sizes = [1, 32], strides = [1, 1]} : vector<8x96xf32> to vector<1x32xf32>
    %454 = vector.shape_cast %453 : vector<1x32xf32> to vector<32xf32>
    %455 = vector.extract_strided_slice %289 {offsets = [7, 0], sizes = [1, 32], strides = [1, 1]} : vector<8x96xf32> to vector<1x32xf32>
    %456 = vector.shape_cast %455 : vector<1x32xf32> to vector<32xf32>
    %cst_128 = arith.constant dense<0.000000e+00> : vector<39xf32>
    %457 = vector.multi_reduction <add>, %452, %cst_128 [1] : vector<39x32xf32> to vector<39xf32>
    %458 = vector.shape_cast %457 : vector<39xf32> to vector<39x1xf32>
    %cst_129 = arith.constant 3.200000e+01 : f32
    %459 = vector.broadcast %cst_129 : f32 to vector<39x1xf32>
    %460 = arith.divf %458, %459 : vector<39x1xf32>
    %461 = vector.broadcast %460 : vector<39x1xf32> to vector<39x32xf32>
    %462 = arith.subf %452, %461 : vector<39x32xf32>
    %463 = arith.mulf %462, %462 : vector<39x32xf32>
    %cst_130 = arith.constant dense<0.000000e+00> : vector<39xf32>
    %464 = vector.multi_reduction <add>, %463, %cst_130 [1] : vector<39x32xf32> to vector<39xf32>
    %465 = vector.shape_cast %464 : vector<39xf32> to vector<39x1xf32>
    %cst_131 = arith.constant 3.200000e+01 : f32
    %466 = vector.broadcast %cst_131 : f32 to vector<39x1xf32>
    %467 = arith.divf %465, %466 : vector<39x1xf32>
    %468 = vector.broadcast %460 : vector<39x1xf32> to vector<39x32xf32>
    %469 = arith.subf %452, %468 : vector<39x32xf32>
    %cst_132 = arith.constant 9.99999974E-6 : f32
    %470 = vector.broadcast %cst_132 : f32 to vector<39x1xf32>
    %471 = arith.addf %467, %470 : vector<39x1xf32>
    %472 = math.rsqrt %471 : vector<39x1xf32>
    %473 = vector.broadcast %472 : vector<39x1xf32> to vector<39x32xf32>
    %474 = arith.mulf %469, %473 : vector<39x32xf32>
    %475 = vector.shape_cast %454 : vector<32xf32> to vector<1x32xf32>
    %476 = vector.broadcast %475 : vector<1x32xf32> to vector<39x32xf32>
    %477 = arith.mulf %474, %476 : vector<39x32xf32>
    %478 = vector.shape_cast %456 : vector<32xf32> to vector<1x32xf32>
    %479 = vector.broadcast %478 : vector<1x32xf32> to vector<39x32xf32>
    %480 = arith.addf %477, %479 : vector<39x32xf32>
    %c0_133 = arith.constant 0 : index
    %c0_134 = arith.constant 0 : index
    %c0_135 = arith.constant 0 : index
    %481 = vector.load %arg11[%c0_133, %c0_134, %c0_135] : memref<1x39x32xf32, #tpu.memory_space<vmem>>, vector<1x39x32xf32>
    %482 = vector.shape_cast %481 : vector<1x39x32xf32> to vector<39x32xf32>
    %483 = vector.shape_cast %480 : vector<39x32xf32> to vector<1x39x32xf32>
    tpu.vector_store %arg11[%c0_133, %c0_134, %c0_135], %483 {strides = array<i32>} : memref<1x39x32xf32, #tpu.memory_space<vmem>>, vector<1x39x32xf32>,
    return
  }
  func.func @transform_0(%arg0: i32) -> (i32, i32, i32) {
    %c0_i32 = arith.constant 0 : i32
    %c0_i32_0 = arith.constant 0 : i32
    %c0_i32_1 = arith.constant 0 : i32
    return %arg0, %c0_i32, %c0_i32_0 : i32, i32, i32
  }
  func.func @transform_1(%arg0: i32) -> (i32, i32) {
    %c0_i32 = arith.constant 0 : i32
    %c0_i32_0 = arith.constant 0 : i32
    %c0_i32_1 = arith.constant 0 : i32
    return %c0_i32, %c0_i32_0 : i32, i32
  }
  func.func @transform_2(%arg0: i32) -> (i32, i32) {
    %c0_i32 = arith.constant 0 : i32
    %c0_i32_0 = arith.constant 0 : i32
    %c0_i32_1 = arith.constant 0 : i32
    return %c0_i32, %c0_i32_0 : i32, i32
  }
  func.func @transform_3(%arg0: i32) -> (i32, i32) {
    %c0_i32 = arith.constant 0 : i32
    %c0_i32_0 = arith.constant 0 : i32
    %c0_i32_1 = arith.constant 0 : i32
    return %c0_i32, %c0_i32_0 : i32, i32
  }
  func.func @transform_4(%arg0: i32) -> (i32, i32) {
    %c0_i32 = arith.constant 0 : i32
    %c0_i32_0 = arith.constant 0 : i32
    %c0_i32_1 = arith.constant 0 : i32
    return %c0_i32, %c0_i32_0 : i32, i32
  }
  func.func @transform_5(%arg0: i32) -> (i32, i32, i32) {
    %c0_i32 = arith.constant 0 : i32
    %c0_i32_0 = arith.constant 0 : i32
    %c0_i32_1 = arith.constant 0 : i32
    %c0_i32_2 = arith.constant 0 : i32
    return %c0_i32, %c0_i32_0, %c0_i32_1 : i32, i32, i32
  }
  func.func @transform_6(%arg0: i32) -> (i32, i32, i32) {
    %c0_i32 = arith.constant 0 : i32
    %c0_i32_0 = arith.constant 0 : i32
    %c0_i32_1 = arith.constant 0 : i32
    %c0_i32_2 = arith.constant 0 : i32
    return %c0_i32, %c0_i32_0, %c0_i32_1 : i32, i32, i32
  }
  func.func @transform_7(%arg0: i32) -> (i32, i32, i32) {
    %c0_i32 = arith.constant 0 : i32
    %c0_i32_0 = arith.constant 0 : i32
    %c0_i32_1 = arith.constant 0 : i32
    %c0_i32_2 = arith.constant 0 : i32
    return %c0_i32, %c0_i32_0, %c0_i32_1 : i32, i32, i32
  }
  func.func @transform_8(%arg0: i32) -> (i32, i32, i32) {
    %c0_i32 = arith.constant 0 : i32
    %c0_i32_0 = arith.constant 0 : i32
    %c0_i32_1 = arith.constant 0 : i32
    %c0_i32_2 = arith.constant 0 : i32
    return %c0_i32, %c0_i32_0, %c0_i32_1 : i32, i32, i32
  }
  func.func @transform_9(%arg0: i32) -> (i32, i32, i32) {
    %c0_i32 = arith.constant 0 : i32
    %c0_i32_0 = arith.constant 0 : i32
    %c0_i32_1 = arith.constant 0 : i32
    %c0_i32_2 = arith.constant 0 : i32
    return %c0_i32, %c0_i32_0, %c0_i32_1 : i32, i32, i32
  }
  func.func @transform_10(%arg0: i32) -> (i32, i32, i32) {
    %c0_i32 = arith.constant 0 : i32
    %c0_i32_0 = arith.constant 0 : i32
    %c0_i32_1 = arith.constant 0 : i32
    return %arg0, %c0_i32, %c0_i32_0 : i32, i32, i32
  }
}

</mosaic_0001>

<bundles_post_ra>
// kernel: aves_forward.4
= control target key start
LH: loop header
LB: loop body
LE: loop exit
PB: predicated region body
PF: predicated region fallthrough
CT: control target
= control target key end

     0   :  { %s925_s12 = smov 0   ;;  %s1156_s0 = inlined_call_operand.vmem [shape: bf16[2,10,256], index: 0, kind: input, shape index: {}]   ;;  %s1157_s1 = inlined_call_operand.vmem [shape: bf16[32,10], index: 1, kind: input, shape index: {}]   ;;  %s1158_s2 = inlined_call_operand.vmem [shape: f32[32,2], index: 2, kind: input, shape index: {}]   ;;  %s1159_s3 = inlined_call_operand.vmem [shape: bf16[2,32,256], index: 3, kind: output, shape index: {}]  }
   0x1 LB: > { %s800_s13 = sadd.s32 4294967295, %s901_s12   ;;  %p804_p0 = scmp.ge.s32.totalorder %s901_s12, 1  ;;  %s901_s12 = sphi %s925_s12, %s13_s12  }
   0x2   : > { %p137_p1 = scmp.lt.s32.totalorder %s901_s12, 3 }
   0x4   : > { %p138_p2 = pnand %p804_p0, %p137_p1 }
   0x5   : > { %p161_p3 = scmp.lt.s32.totalorder (!%p138_p2), %s800_s13, 1 }
   0x6   : > { %141 = sbr.rel (%p138_p2) target bundleno = 551 (0x227), region = 32 }
   0xb   : > { %s1161_s13 = smov (!%p161_p3, %s800_s13), 1  ;;  %vm203_vm0 = vcmask 1044480   ;;  %v833_v7 = vld [vmem:[%s1157_s1] sm:$0xff]  ;;  %v834_v8 = vld [vmem:[%s1157_s1 + $0x8] sm:$0xff]  ;;  %vm196_vm1 = vcmask 80896   ;;  %v903_v11 = vmov 0   ;;  %v264_v27 = vlaneseq }
   0xc   : > { %s831_s14 = sshll.u32 %s1161_s13, 4  ;;  %v361_v10 = vld [vmem:[%s1158_s2] sm:$0xff]  ;;  %849 = vset.pattern.permute.xlu2 %v903_v11  ;;  %851 = vset.pattern.permute.xlu1 %v903_v11  ;;  %v363_v24 = vld [vmem:[%s1158_s2 + $0x10] sm:$0xff]  ;;  %v362_v25 = vld [vmem:[%s1158_s2 + $0x8] sm:$0xff]  ;;  %v904_v26 = vmov 1   ;;  %s832_s30 = sshll.u32 %s1161_s13, 5 }
   0xd   : > { %s165_s17 = scalar_lea.vmem %s1156_s0, %s831_s14  ;;  %367 = vperm.xlu2 %849, %v361_v10   ;;  %850 = vset.pattern.permute.xlu0 %v903_v11  ;;  %v265_v28 = vand.u32 127, %v264_v27  ;;  %v364_v54 = vld [vmem:[%s1158_s2 + $0x18] sm:$0xff]  ;;  %s1082_s6 = scalar_lea.vmem %s1159_s3, %s832_s30 }
   0xe   : > { %v819_v0 = vld [vmem:[%s165_s17] sm:$0xf]  ;;  %v836_v1 = vld [vmem:[%s165_s17 + $0x4] sm:$0x10]  ;;  %v835_v2 = vld [vmem:[%s165_s17 + $0x4] sm:$0xf] }
   0xf   : > { %v820_v3 = vor.u32 %v836_v1, %v819_v0  ;;  %v821_v4 = vld [vmem:[%s165_s17 + $0x8] sm:$0x10]  ;;  %v266_v29 = vadd.s32 128, %v265_v28 }
  0x10   : > { %v824_v5 = vor.u32 %v835_v2, %v821_v4 }
  0x11   : > { %v205_v6 = vsel %vm203_vm0, %v820_v3, 0  ;;  %vm268_vm2 = vcmp.lt.s32.totalorder %v266_v29, 159 }
  0x12   : > { %217 = vmatpush.bf16.msra.mxu0 %v205_v6  ;;  %837 = vmatpush.bf16.msra.mxu2 %v205_v6  ;;  %v208_v9 = vsel %vm203_vm0, %v824_v5, 0 }
  0x13   : > { %236 = vmatpush.bf16.msra.mxu1 %v208_v9  ;;  %838 = vmatpush.bf16.msra.mxu3 %v208_v9 }
  0x15   : > { %825 = vmatmul.msk.bf16.vlgmr.msra.gmra.mxu0 %vm196_vm1, %v833_v7  ;;  %826 = vmatmul.msk.bf16.vlgmr.msra.gmra.mxu2 %vm196_vm1, %v834_v8 }
  0x16   : > { %827 = vmatmul.msk.bf16.vlgmr.msra.gmra.mxu1 %vm196_vm1, %v833_v7  ;;  %828 = vmatmul.msk.bf16.vlgmr.msra.gmra.mxu3 %vm196_vm1, %v834_v8 }
  0x67   : > { %v368_v63 = vpop.permute.xlu2 %367 }
  0x92   : > { %v219_v12 = vpop.f32.mrf.mxu0 }
  0x93   : > { %v238_v13 = vpop.f32.mrf.mxu1 }
  0x94   : > { %v248_v14 = vadd.f32 %v238_v13, %v219_v12 }
  0x96   : > { %249 = vadd.xlane.f32.xlu0 %v248_v14 }
  0x98   : > { %v224_v15 = vpop.f32.mrf.mxu2 }
  0x99   : > { %v243_v16 = vpop.f32.mrf.mxu3 }
  0x9a   : > { %v221_v17 = vpop.f32.mrf.mxu0  ;;  %v254_v18 = vadd.f32 %v243_v16, %v224_v15 }
  0x9b   : > { %v240_v19 = vpop.f32.mrf.mxu1 }
  0x9c   : > { %v251_v20 = vadd.f32 %v240_v19, %v221_v17  ;;  %255 = vadd.xlane.f32.xlu1 %v254_v18 }
  0x9e   : > { %252 = vadd.xlane.f32.xlu0 %v251_v20 }
  0xa0   : > { %v226_v21 = vpop.f32.mrf.mxu2 }
  0xa1   : > { %v245_v22 = vpop.f32.mrf.mxu3 }
  0xa2   : > { %v257_v23 = vadd.f32 %v245_v22, %v226_v21 }
  0xa4   : > { %258 = vadd.xlane.f32.xlu1 %v257_v23 }
  0xbd   : > { %377 = vperm.xlu1 %851, %v363_v24  }
  0xc5   : > { %853 = vset.pattern.permute.xlu1 %v904_v26 }
  0xc6   : > { %398 = vperm.xlu1 %853, %v362_v25  }
 0x109   : > { %v250_v30 = vpop.xlane.xlu0 %249 }
 0x10a   : > { %v260_v31 = vmul.f32 0.006289308, %v250_v30 }
 0x10c   : > { %v954_v32 = vsub.f32 %v219_v12, %v260_v31  ;;  %v270_v33 = vsub.f32 %v238_v13, %v260_v31 }
 0x10e   : > { %v957_v34 = vsel %vm268_vm2, %v270_v33, 0.0  ;;  %v285_v35 = vmul.f32 %v954_v32, %v954_v32 }
 0x10f   : > { %v256_v36 = vpop.xlane.xlu1 %255  ;;  %v286_v37 = vmul.f32 %v957_v34, %v957_v34 }
 0x110   : > { %v262_v38 = vmul.f32 0.006289308, %v256_v36 }
 0x111   : > { %v293_v39 = vadd.f32 %v286_v37, %v285_v35  ;;  %v253_v55 = vpop.xlane.xlu0 %252 }
 0x112   : > { %v963_v40 = vsub.f32 %v224_v15, %v262_v38  ;;  %v274_v41 = vsub.f32 %v243_v16, %v262_v38  ;;  %v261_v56 = vmul.f32 0.006289308, %v253_v55 }
 0x113   : > { %294 = vadd.xlane.f32.xlu2 %v293_v39 }
 0x114   : > { %v966_v42 = vsel %vm268_vm2, %v274_v41, 0.0  ;;  %v289_v43 = vmul.f32 %v963_v40, %v963_v40  ;;  %v272_v57 = vsub.f32 %v240_v19, %v261_v56  ;;  %v984_v58 = vsub.f32 %v221_v17, %v261_v56 }
 0x115   : > { %v290_v44 = vmul.f32 %v966_v42, %v966_v42 }
 0x116   : > { %v987_v59 = vsel %vm268_vm2, %v272_v57, 0.0  ;;  %v287_v60 = vmul.f32 %v984_v58, %v984_v58 }
 0x117   : > { %v259_v45 = vpop.xlane.xlu1 %258  ;;  %v299_v46 = vadd.f32 %v290_v44, %v289_v43  ;;  %v288_v61 = vmul.f32 %v987_v59, %v987_v59 }
 0x118   : > { %v263_v47 = vmul.f32 0.006289308, %v259_v45 }
 0x119   : > { %300 = vadd.xlane.f32.xlu0 %v299_v46  ;;  %v296_v62 = vadd.f32 %v288_v61, %v287_v60 }
 0x11a   : > { %v972_v48 = vsub.f32 %v226_v21, %v263_v47  ;;  %v276_v49 = vsub.f32 %v245_v22, %v263_v47 }
 0x11c   : > { %v975_v50 = vsel %vm268_vm2, %v276_v49, 0.0  ;;  %v291_v51 = vmul.f32 %v972_v48, %v972_v48 }
 0x11d   : > { %v292_v52 = vmul.f32 %v975_v50, %v975_v50 }
 0x11f   : > { %v302_v53 = vadd.f32 %v292_v52, %v291_v51 }
 0x121   : > { %303 = vadd.xlane.f32.xlu1 %v302_v53 }
 0x12b   : > { %382 = vperm.xlu2 %849, %v364_v54  }
 0x12d   : > { %372 = vperm.xlu0 %850, %v362_v25  }
 0x12f   : > { %v993_v0 = vpop.permute.xlu1 %377 }
 0x133   : > { %852 = vset.pattern.permute.xlu2 %v904_v26 }
 0x134   : > { %394 = vperm.xlu2 %852, %v361_v10  }
 0x135   : > { %854 = vset.pattern.permute.xlu0 %v904_v26 }
 0x138   : > { %v995_v4 = vpop.permute.xlu1 %398 }
 0x13a   : > { %406 = vperm.xlu1 %853, %v364_v54  }
 0x15d   : > { %297 = vadd.xlane.f32.xlu2 %v296_v62 }
 0x175   : > { %402 = vperm.xlu2 %852, %v363_v24  }
 0x186   : > { %v295_v1 = vpop.xlane.xlu2 %294 }
 0x187   : > { %v305_v2 = vmul.f32 0.006289308, %v295_v1 }
 0x189   : > { %v309_v3 = vadd.f32 1e-05, %v305_v2 }
 0x18b   : > { %855 = vrsqrt.f32 %v309_v3  ;;  %vm319_vm4 = vweird.f32 %v309_v3 }
 0x18c   : > { %v301_v14 = vpop.xlane.xlu0 %300 }
 0x18d   : > { %v307_v16 = vmul.f32 0.006289308, %v301_v14 }
 0x18e   : > { %v383_v11 = vpop.permute.xlu2 %382 }
 0x18f   : > { %v999_v21 = vadd.f32 1e-05, %v307_v16 }
 0x191   : > { %v856_v5 = vpop.eup %855  ;;  %vm339_vm2 = vweird.f32 %v999_v21 }
 0x192   : > { %v314_v6 = vmul.f32 %v856_v5, %v309_v3  ;;  %vm320_vm3 = vweird.f32 %v856_v5 }
 0x193   : > { %vm321_vm5 = vmor %vm319_vm4, %vm320_vm3 }
 0x194   : > { %v315_v7 = vmul.f32 %v856_v5, %v314_v6  ;;  %v304_v8 = vpop.xlane.xlu1 %303 }
 0x195   : > { %v308_v9 = vmul.f32 0.006289308, %v304_v8 }
 0x196   : > { %v316_v10 = vmul.f32 0.5, %v315_v7  ;;  %v395_v25 = vpop.permute.xlu2 %394 }
 0x197   : > { %v312_v12 = vadd.f32 1e-05, %v308_v9 }
 0x198   : > { %v317_v13 = vsub.f32 1.5, %v316_v10 }
 0x199   : > { %857 = vrsqrt.f32 %v312_v12  ;;  %vm349_vm7 = vweird.f32 %v312_v12 }
 0x19a   : > { %v318_v15 = vmul.f32 %v856_v5, %v317_v13  ;;  %859 = vrsqrt.f32 %v999_v21 }
 0x19c   : > { %v322_v17 = vsel %vm321_vm5, %v856_v5, %v318_v15 }
 0x19d   : > { %v353_v18 = vmul.f32 %v322_v17, %v954_v32  ;;  %v354_v19 = vmul.f32 %v322_v17, %v957_v34 }
 0x19f   : > { %v858_v20 = vpop.eup %857  ;;  %v385_v22 = vmul.f32 %v368_v63, %v353_v18  ;;  %v386_v23 = vmul.f32 %v368_v63, %v354_v19 }
 0x1a0   : > { %v344_v24 = vmul.f32 %v858_v20, %v312_v12  ;;  %vm350_vm6 = vweird.f32 %v858_v20  ;;  %v1020_v38 = vpop.eup %859 }
 0x1a1   : > { %v1001_v26 = vadd.f32 %v395_v25, %v385_v22  ;;  %v1003_v27 = vadd.f32 %v395_v25, %v386_v23  ;;  %vm351_vm8 = vmor %vm349_vm7, %vm350_vm6  ;;  %v334_v44 = vmul.f32 %v1020_v38, %v999_v21  ;;  %vm340_vm1 = vweird.f32 %v1020_v38 }
 0x1a2   : > { %v345_v28 = vmul.f32 %v858_v20, %v344_v24 }
 0x1a3   : > { %v1007_v29 = vmul.f32 0.70710677, %v1001_v26  ;;  %v1010_v30 = vmul.f32 0.70710677, %v1003_v27  ;;  %v335_v47 = vmul.f32 %v1020_v38, %v334_v44 }
 0x1a4   : > { %v346_v31 = vmul.f32 0.5, %v345_v28 }
 0x1a5   : > { %v1013_v32 = vand.u32 2147483647, %v1007_v29  ;;  %v1016_v33 = vand.u32 2147483647, %v1010_v30  ;;  %v336_v61 = vmul.f32 0.5, %v335_v47 }
 0x1a6   : > { %v347_v34 = vsub.f32 1.5, %v346_v31 }
 0x1a7   : > { %v441_v35 = vmul.f32 0.3275911, %v1013_v32  ;;  %v442_v36 = vmul.f32 0.3275911, %v1016_v33  ;;  %v649_v63 = vsub.f32 0.0, %v1013_v32  ;;  %v650_v12 = vsub.f32 0.0, %v1016_v33 }
 0x1a8   : > { %v348_v37 = vmul.f32 %v858_v20, %v347_v34 }
 0x1a9   : > { %v449_v39 = vadd.f32 1.0, %v441_v35  ;;  %v450_v41 = vadd.f32 1.0, %v442_v36  ;;  %v657_v28 = vmul.f32 %v649_v63, %v1013_v32  ;;  %v658_v34 = vmul.f32 %v650_v12, %v1016_v33 }
 0x1aa   : > { %v352_v43 = vsel %vm351_vm8, %v858_v20, %v348_v37  ;;  %v337_v37 = vsub.f32 1.5, %v336_v61 }
 0x1ab   : > { %861 = vrcp.f32 %v449_v39  ;;  %v359_v45 = vmul.f32 %v352_v43, %v972_v48  ;;  %v360_v46 = vmul.f32 %v352_v43, %v975_v50  ;;  %v466_v50 = vand.u32 2147483647, %v449_v39 }
 0x1ac   : > { %863 = vrcp.f32 %v450_v41  ;;  %v407_v53 = vpop.permute.xlu1 %406  ;;  %v468_v1 = vand.u32 2147483648, %v449_v39  ;;  %v483_v6 = vand.u32 2147483648, %v450_v41  ;;  %v481_v9 = vand.u32 2147483647, %v450_v41 }
 0x1ad   : > { %v391_v49 = vmul.f32 %v383_v11, %v359_v45  ;;  %v392_v51 = vmul.f32 %v383_v11, %v360_v46  ;;  %vm462_vm11 = vweird.f32 %v449_v39  ;;  %vm477_vm13 = vweird.f32 %v450_v41 }
 0x1ae   : > { %v469_v14 = vor.u32 1.1754944e-38, %v468_v1  ;;  %vm467_vm14 = vcmp.eq.f32.partialorder %v466_v50, 8.507059e+37  ;;  %v484_v18 = vor.u32 1.1754944e-38, %v483_v6  ;;  %vm482_vm0 = vcmp.eq.f32.partialorder %v481_v9, 8.507059e+37 }
 0x1af   : > { %v1027_v56 = vadd.f32 %v407_v53, %v391_v49  ;;  %v1029_v57 = vadd.f32 %v407_v53, %v392_v51  ;;  %v667_v44 = vmul.f32 1.442695, %v658_v34 }
 0x1b1   : > { %v862_v52 = vpop.eup %861  ;;  %v1033_v48 = vmul.f32 0.70710677, %v1027_v56  ;;  %v1036_v3 = vmul.f32 0.70710677, %v1029_v57 }
 0x1b2   : > { %v864_v54 = vpop.eup %863  ;;  %v458_v55 = vmul.f32 %v862_v52, %v449_v39  ;;  %vm463_vm9 = vweird.f32 %v862_v52 }
 0x1b3   : > { %v473_v60 = vmul.f32 %v864_v54, %v450_v41  ;;  %v1039_v7 = vand.u32 2147483647, %v1033_v48  ;;  %vm478_vm10 = vweird.f32 %v864_v54  ;;  %v1042_v10 = vand.u32 2147483647, %v1036_v3  ;;  %vm464_vm12 = vmor %vm462_vm11, %vm463_vm9 }
 0x1b4   : > { %v459_v62 = vsub.f32 1.0, %v458_v55  ;;  %vm479_vm15 = vmor %vm477_vm13, %vm478_vm10  ;;  %v665_v41 = vmul.f32 1.442695, %v657_v28  ;;  %vm698_vm13 = vcmp.ge.f32.partialorder %v1010_v30, 0.0 }
 0x1b5   : > { %v474_v2 = vsub.f32 1.0, %v473_v60  ;;  %v447_v13 = vmul.f32 0.3275911, %v1039_v7  ;;  %v448_v16 = vmul.f32 0.3275911, %v1042_v10  ;;  %v655_v55 = vsub.f32 0.0, %v1039_v7  ;;  %vm341_vm11 = vmor %vm339_vm2, %vm340_vm1 }
 0x1b6   : > { %v460_v5 = vmul.f32 %v862_v52, %v459_v62  ;;  %v656_v12 = vsub.f32 0.0, %v1042_v10 }
 0x1b7   : > { %v475_v8 = vmul.f32 %v864_v54, %v474_v2  ;;  %v455_v19 = vadd.f32 1.0, %v447_v13  ;;  %v456_v23 = vadd.f32 1.0, %v448_v16 }
 0x1b8   : > { %v461_v11 = vadd.f32 %v862_v52, %v460_v5 }
 0x1b9   : > { %v476_v15 = vadd.f32 %v864_v54, %v475_v8  ;;  %865 = vrcp.f32 %v455_v19  ;;  %v556_v61 = vand.u32 2147483647, %v455_v19  ;;  %v558_v62 = vand.u32 2147483648, %v455_v19 }
 0x1ba   : > { %v465_v17 = vsel %vm464_vm12, %v862_v52, %v461_v11  ;;  %867 = vrcp.f32 %v456_v23  ;;  %v338_v52 = vmul.f32 %v1020_v38, %v337_v37  ;;  %v573_v2 = vand.u32 2147483648, %v456_v23 }
 0x1bb   : > { %v470_v20 = vsel %vm467_vm14, %v469_v14, %v465_v17  ;;  %v480_v22 = vsel %vm479_vm15, %v864_v54, %v476_v15  ;;  %869 = vpow2.f32 %v665_v41  ;;  %v571_v8 = vand.u32 2147483647, %v456_v23 }
 0x1bc   : > { %v485_v24 = vsel %vm482_vm0, %v484_v18, %v480_v22  ;;  %v577_v25 = vmul.f32 1.0614054, %v470_v20  ;;  %871 = vpow2.f32 %v667_v44  ;;  %vm552_vm5 = vweird.f32 %v455_v19 }
 0x1bd   : > { %v578_v31 = vmul.f32 1.0614054, %v485_v24  ;;  %v559_v15 = vor.u32 1.1754944e-38, %v558_v62  ;;  %vm567_vm7 = vweird.f32 %v456_v23  ;;  %vm557_vm8 = vcmp.eq.f32.partialorder %v556_v61, 8.507059e+37 }
 0x1be   : > { %v585_v35 = vadd.f32 -1.4531521, %v577_v25  ;;  %v574_v25 = vor.u32 1.1754944e-38, %v573_v2  ;;  %vm572_vm10 = vcmp.eq.f32.partialorder %v571_v8, 8.507059e+37  ;;  %v417_v41 = vmul.f32 0.5, %v1001_v26 }
 0x1bf   : > { %v586_v36 = vadd.f32 -1.4531521, %v578_v31  ;;  %v866_v45 = vpop.eup %865  ;;  %vm697_vm12 = vcmp.ge.f32.partialorder %v1007_v29, 0.0  ;;  %v418_v29 = vmul.f32 0.5, %v1003_v27  ;;  %vm703_vm14 = vcmp.ge.f32.partialorder %v1033_v48, 0.0 }
 0x1c0   : > { %v593_v39 = vmul.f32 %v585_v35, %v470_v20  ;;  %v868_v47 = vpop.eup %867  ;;  %v548_v51 = vmul.f32 %v866_v45, %v455_v19  ;;  %vm553_vm3 = vweird.f32 %v866_v45  ;;  %vm704_vm15 = vcmp.ge.f32.partialorder %v1036_v3, 0.0 }
 0x1c1   : > { %v594_v43 = vmul.f32 %v586_v36, %v485_v24  ;;  %v563_v33 = vmul.f32 %v868_v47, %v456_v23  ;;  %vm568_vm4 = vweird.f32 %v868_v47  ;;  %v870_v13 = vpop.eup %869  ;;  %vm554_vm6 = vmor %vm552_vm5, %vm553_vm3 }
 0x1c2   : > { %v601_v46 = vadd.f32 1.4214138, %v593_v39  ;;  %v549_v54 = vsub.f32 1.0, %v548_v51  ;;  %v872_v17 = vpop.eup %871  ;;  %vm569_vm9 = vmor %vm567_vm7, %vm568_vm4  ;;  %v342_v39 = vsel %vm341_vm11, %v1020_v38, %v338_v52 }
 0x1c3   : > { %v602_v49 = vadd.f32 1.4214138, %v594_v43  ;;  %v564_v63 = vsub.f32 1.0, %v563_v33  ;;  %v358_v33 = vmul.f32 %v342_v39, %v966_v42 }
 0x1c4   : > { %v609_v32 = vmul.f32 %v601_v46, %v470_v20  ;;  %v550_v1 = vmul.f32 %v866_v45, %v549_v54  ;;  %v663_v46 = vmul.f32 %v655_v55, %v1039_v7 }
 0x1c5   : > { %v610_v53 = vmul.f32 %v602_v49, %v485_v24  ;;  %v565_v6 = vmul.f32 %v868_v47, %v564_v63  ;;  %v390_v2 = vmul.f32 %v993_v0, %v358_v33 }
 0x1c6   : > { %v617_v60 = vadd.f32 -0.28449672, %v609_v32  ;;  %v551_v11 = vadd.f32 %v866_v45, %v550_v1  ;;  %v357_v32 = vmul.f32 %v342_v39, %v963_v40  ;;  %v677_v55 = vmul.f32 1.442695, %v663_v46 }
 0x1c7   : > { %v618_v50 = vadd.f32 -0.28449672, %v610_v53  ;;  %v566_v16 = vadd.f32 %v868_v47, %v565_v6 }
 0x1c8   : > { %v625_v5 = vmul.f32 %v617_v60, %v470_v20  ;;  %v555_v22 = vsel %vm554_vm6, %v866_v45, %v551_v11  ;;  %v389_v1 = vmul.f32 %v993_v0, %v357_v32 }
 0x1c9   : > { %v626_v9 = vmul.f32 %v618_v50, %v485_v24  ;;  %v1055_v31 = vsel %vm557_vm8, %v559_v15, %v555_v22  ;;  %v570_v34 = vsel %vm569_vm9, %v868_v47, %v566_v16  ;;  %v664_v47 = vmul.f32 %v656_v12, %v1042_v10 }
 0x1ca   : > { %v633_v14 = vadd.f32 0.2548296, %v625_v5  ;;  %v575_v35 = vsel %vm572_vm10, %v574_v25, %v570_v34  ;;  %v583_v23 = vmul.f32 1.0614054, %v1055_v31 }
 0x1cb   : > { %v634_v18 = vadd.f32 0.2548296, %v626_v9  ;;  %v584_v37 = vmul.f32 1.0614054, %v575_v35  ;;  %v679_v60 = vmul.f32 1.442695, %v664_v47 }
 0x1cc   : > { %v641_v28 = vmul.f32 %v633_v14, %v470_v20  ;;  %v591_v43 = vadd.f32 -1.4531521, %v583_v23 }
 0x1cd   : > { %v642_v19 = vmul.f32 %v634_v18, %v485_v24  ;;  %v592_v45 = vadd.f32 -1.4531521, %v584_v37 }
 0x1ce   : > { %v681_v36 = vmul.f32 %v870_v13, %v641_v28  ;;  %v599_v24 = vmul.f32 %v591_v43, %v1055_v31 }
 0x1cf   : > { %v682_v20 = vmul.f32 %v872_v17, %v642_v19  ;;  %v600_v26 = vmul.f32 %v592_v45, %v575_v35 }
 0x1d0   : > { %v689_v44 = vsub.f32 1.0, %v681_v36  ;;  %v298_v21 = vpop.xlane.xlu2 %297  ;;  %v607_v7 = vadd.f32 1.4214138, %v599_v24  ;;  %v423_v24 = vmul.f32 0.5, %v1027_v56 }
 0x1d1   : > { %v690_v49 = vsub.f32 1.0, %v682_v20  ;;  %v306_v51 = vmul.f32 0.006289308, %v298_v21  ;;  %v608_v54 = vadd.f32 1.4214138, %v600_v26 }
 0x1d2   : > { %v705_v38 = vsub.f32 0.0, %v689_v44  ;;  %v615_v40 = vmul.f32 %v607_v7, %v1055_v31 }
 0x1d3   : > { %v706_v52 = vsub.f32 0.0, %v690_v49  ;;  %v1071_v53 = vadd.f32 1e-05, %v306_v51  ;;  %v616_v63 = vmul.f32 %v608_v54, %v575_v35 }
 0x1d4   : > { %v713_v10 = vsel %vm697_vm12, %v689_v44, %v705_v38  ;;  %v623_v50 = vadd.f32 -0.28449672, %v615_v40  ;;  %v424_v38 = vmul.f32 0.5, %v1029_v57 }
 0x1d5   : > { %v714_v61 = vsel %vm698_vm13, %v690_v49, %v706_v52  ;;  %v721_v62 = vadd.f32 1.0, %v713_v10  ;;  %873 = vrsqrt.f32 %v1071_v53  ;;  %v624_v6 = vadd.f32 -0.28449672, %v616_v63 }
 0x1d6   : > { %v722_v42 = vadd.f32 1.0, %v714_v61  ;;  %875 = vpow2.f32 %v677_v55  ;;  %v631_v27 = vmul.f32 %v623_v50, %v1055_v31  ;;  %vm329_vm1 = vweird.f32 %v1071_v53  ;;  %v373_v55 = vpop.permute.xlu0 %372 }
 0x1d7   : > { %v729_v30 = vmul.f32 %v721_v62, %v417_v41  ;;  %877 = vpow2.f32 %v679_v60  ;;  %v632_v13 = vmul.f32 %v624_v6, %v575_v35 }
 0x1d8   : > { %v730_v5 = vmul.f32 %v722_v42, %v418_v29  ;;  %v403_v8 = vpop.permute.xlu2 %402  ;;  %v639_v14 = vadd.f32 0.2548296, %v631_v27 }
 0x1d9   : > { %v1085_v9 = vadd.f32 %v403_v8, %v389_v1  ;;  %v1087_v11 = vadd.f32 %v403_v8, %v390_v2  ;;  %v640_v16 = vadd.f32 0.2548296, %v632_v13 }
 0x1da   : > { %v737_v12 = vpack.c.bf16 %v730_v5, %v729_v30  ;;  %v647_v22 = vmul.f32 %v639_v14, %v1055_v31 }
 0x1db   : > { %v874_v0 = vpop.eup %873  ;;  %v1090_v15 = vmul.f32 0.70710677, %v1085_v9  ;;  %v1095_v18 = vmul.f32 0.70710677, %v1087_v11  ;;  %v648_v34 = vmul.f32 %v640_v16, %v575_v35 }
 0x1dc   : > { %741 = vst [vmem:[%s1082_s6] sm:$0xff] %v737_v12  ;;  %v324_v17 = vmul.f32 %v874_v0, %v1071_v53  ;;  %v876_v28 = vpop.eup %875  ;;  %vm330_vm0 = vweird.f32 %v874_v0 }
 0x1dd   : > { %v1099_v25 = vand.u32 2147483647, %v1090_v15  ;;  %v1102_v23 = vand.u32 2147483647, %v1095_v18  ;;  %v878_v36 = vpop.eup %877  ;;  %v687_v37 = vmul.f32 %v876_v28, %v647_v22  ;;  %vm331_vm2 = vmor %vm329_vm1, %vm330_vm0 }
 0x1de   : > { %v325_v19 = vmul.f32 %v874_v0, %v324_v17  ;;  %v688_v41 = vmul.f32 %v878_v36, %v648_v34 }
 0x1df   : > { %v445_v39 = vmul.f32 0.3275911, %v1099_v25  ;;  %v446_v43 = vmul.f32 0.3275911, %v1102_v23  ;;  %v695_v44 = vsub.f32 1.0, %v687_v37  ;;  %v654_v34 = vsub.f32 0.0, %v1102_v23 }
 0x1e0   : > { %v326_v20 = vmul.f32 0.5, %v325_v19  ;;  %v696_v31 = vsub.f32 1.0, %v688_v41 }
 0x1e1   : > { %v453_v45 = vadd.f32 1.0, %v445_v39  ;;  %v454_v46 = vadd.f32 1.0, %v446_v43  ;;  %v711_v47 = vsub.f32 0.0, %v695_v44 }
 0x1e2   : > { %v712_v35 = vsub.f32 0.0, %v696_v31  ;;  %v327_v21 = vsub.f32 1.5, %v326_v20 }
 0x1e3   : > { %879 = vrcp.f32 %v453_v45  ;;  %v719_v49 = vsel %vm703_vm14, %v695_v44, %v711_v47  ;;  %v526_v40 = vand.u32 2147483647, %v453_v45  ;;  %v528_v29 = vand.u32 2147483648, %v453_v45 }
 0x1e4   : > { %881 = vrcp.f32 %v454_v46  ;;  %v720_v51 = vsel %vm704_vm15, %v696_v31, %v712_v35  ;;  %v727_v32 = vadd.f32 1.0, %v719_v49  ;;  %v328_v52 = vmul.f32 %v874_v0, %v327_v21 }
 0x1e5   : > { %v728_v26 = vadd.f32 1.0, %v720_v51  ;;  %v543_v30 = vand.u32 2147483648, %v454_v46  ;;  %v541_v2 = vand.u32 2147483647, %v454_v46  ;;  %vm522_vm5 = vweird.f32 %v453_v45 }
 0x1e6   : > { %v735_v33 = vmul.f32 %v727_v32, %v423_v24  ;;  %v332_v3 = vsel %vm331_vm2, %v874_v0, %v328_v52  ;;  %v529_v8 = vor.u32 1.1754944e-38, %v528_v29  ;;  %vm537_vm7 = vweird.f32 %v454_v46 }
 0x1e7   : > { %v736_v7 = vmul.f32 %v728_v26, %v424_v38  ;;  %v355_v61 = vmul.f32 %v332_v3, %v984_v58  ;;  %v356_v57 = vmul.f32 %v332_v3, %v987_v59  ;;  %v653_v58 = vsub.f32 0.0, %v1099_v25 }
 0x1e8   : > { %vm527_vm8 = vcmp.eq.f32.partialorder %v526_v40, 8.507059e+37  ;;  %v544_v0 = vor.u32 1.1754944e-38, %v543_v30  ;;  %vm542_vm10 = vcmp.eq.f32.partialorder %v541_v2, 8.507059e+37  ;;  %v662_v31 = vmul.f32 %v654_v34, %v1102_v23 }
 0x1e9   : > { %v880_v48 = vpop.eup %879  ;;  %v740_v60 = vpack.c.bf16 %v736_v7, %v735_v33  ;;  %v387_v53 = vmul.f32 %v373_v55, %v355_v61  ;;  %v388_v50 = vmul.f32 %v373_v55, %v356_v57  ;;  %v661_v43 = vmul.f32 %v653_v58, %v1099_v25 }
 0x1ea   : > { %v882_v10 = vpop.eup %881  ;;  %v518_v54 = vmul.f32 %v880_v48, %v453_v45  ;;  %vm523_vm3 = vweird.f32 %v880_v48  ;;  %v675_v51 = vmul.f32 1.442695, %v662_v31 }
 0x1eb   : > { %v533_v56 = vmul.f32 %v882_v10, %v454_v46  ;;  %744 = vst [vmem:[%s1082_s6 + $0x18] sm:$0xff] %v740_v60  ;;  %vm538_vm4 = vweird.f32 %v882_v10  ;;  %v1115_v5 = vadd.f32 %v995_v4, %v387_v53  ;;  %v1119_v59 = vadd.f32 %v995_v4, %v388_v50  ;;  %vm524_vm6 = vmor %vm522_vm5, %vm523_vm3 }
 0x1ec   : > { %v519_v62 = vsub.f32 1.0, %v518_v54  ;;  %vm539_vm9 = vmor %vm537_vm7, %vm538_vm4  ;;  %v673_v49 = vmul.f32 1.442695, %v661_v43  ;;  %vm701_vm3 = vcmp.ge.f32.partialorder %v1090_v15, 0.0  ;;  %vm702_vm4 = vcmp.ge.f32.partialorder %v1095_v18, 0.0 }
 0x1ed   : > { %v534_v42 = vsub.f32 1.0, %v533_v56  ;;  %v1122_v12 = vmul.f32 0.70710677, %v1115_v5  ;;  %v1125_v14 = vmul.f32 0.70710677, %v1119_v59 }
 0x1ee   : > { %v520_v63 = vmul.f32 %v880_v48, %v519_v62 }
 0x1ef   : > { %v535_v1 = vmul.f32 %v882_v10, %v534_v42  ;;  %v1128_v4 = vand.u32 2147483647, %v1122_v12  ;;  %v1132_v19 = vand.u32 2147483647, %v1125_v14  ;;  %vm699_vm5 = vcmp.ge.f32.partialorder %v1122_v12, 0.0 }
 0x1f0   : > { %v521_v6 = vadd.f32 %v880_v48, %v520_v63 }
 0x1f1   : > { %v536_v27 = vadd.f32 %v882_v10, %v535_v1  ;;  %v443_v37 = vmul.f32 0.3275911, %v1128_v4  ;;  %v444_v41 = vmul.f32 0.3275911, %v1132_v19  ;;  %v651_v1 = vsub.f32 0.0, %v1128_v4 }
 0x1f2   : > { %v525_v13 = vsel %vm524_vm6, %v880_v48, %v521_v6  ;;  %vm700_vm6 = vcmp.ge.f32.partialorder %v1125_v14, 0.0 }
 0x1f3   : > { %v530_v16 = vsel %vm527_vm8, %v529_v8, %v525_v13  ;;  %v540_v17 = vsel %vm539_vm9, %v882_v10, %v536_v27  ;;  %v451_v44 = vadd.f32 1.0, %v443_v37  ;;  %v452_v46 = vadd.f32 1.0, %v444_v41 }
 0x1f4   : > { %v545_v22 = vsel %vm542_vm10, %v544_v0, %v540_v17  ;;  %v581_v28 = vmul.f32 1.0614054, %v530_v16  ;;  %v421_v41 = vmul.f32 0.5, %v1085_v9 }
 0x1f5   : > { %v582_v36 = vmul.f32 1.0614054, %v545_v22  ;;  %883 = vrcp.f32 %v451_v44  ;;  %v496_v55 = vand.u32 2147483647, %v451_v44  ;;  %v498_v60 = vand.u32 2147483648, %v451_v44 }
 0x1f6   : > { %v589_v39 = vadd.f32 -1.4531521, %v581_v28  ;;  %885 = vrcp.f32 %v452_v46  ;;  %v513_v57 = vand.u32 2147483648, %v452_v46  ;;  %v511_v53 = vand.u32 2147483647, %v452_v46 }
 0x1f7   : > { %v590_v20 = vadd.f32 -1.4531521, %v582_v36  ;;  %887 = vpow2.f32 %v673_v49  ;;  %vm492_vm13 = vweird.f32 %v451_v44  ;;  %v499_v6 = vor.u32 1.1754944e-38, %v498_v60 }
 0x1f8   : > { %v597_v45 = vmul.f32 %v589_v39, %v530_v16  ;;  %889 = vpow2.f32 %v675_v51  ;;  %vm507_vm15 = vweird.f32 %v452_v46  ;;  %vm497_vm0 = vcmp.eq.f32.partialorder %v496_v55, 8.507059e+37 }
 0x1f9   : > { %v598_v47 = vmul.f32 %v590_v20, %v545_v22  ;;  %v514_v13 = vor.u32 1.1754944e-38, %v513_v57  ;;  %vm512_vm2 = vcmp.eq.f32.partialorder %v511_v53, 8.507059e+37  ;;  %v652_v36 = vsub.f32 0.0, %v1132_v19 }
 0x1fa   : > { %v605_v35 = vadd.f32 1.4214138, %v597_v45 }
 0x1fb   : > { %v606_v21 = vadd.f32 1.4214138, %v598_v47  ;;  %v884_v26 = vpop.eup %883  ;;  %v422_v47 = vmul.f32 0.5, %v1087_v11  ;;  %v660_v15 = vmul.f32 %v652_v36, %v1132_v19 }
 0x1fc   : > { %v613_v24 = vmul.f32 %v605_v35, %v530_v16  ;;  %v886_v52 = vpop.eup %885  ;;  %v488_v48 = vmul.f32 %v884_v26, %v451_v44  ;;  %vm493_vm11 = vweird.f32 %v884_v26 }
 0x1fd   : > { %v614_v32 = vmul.f32 %v606_v21, %v545_v22  ;;  %v503_v23 = vmul.f32 %v886_v52, %v452_v46  ;;  %v888_v40 = vpop.eup %887  ;;  %vm508_vm12 = vweird.f32 %v886_v52  ;;  %vm494_vm14 = vmor %vm492_vm13, %vm493_vm11  ;;  %v659_v46 = vmul.f32 %v651_v1, %v1128_v4 }
 0x1fe   : > { %v621_v38 = vadd.f32 -0.28449672, %v613_v24  ;;  %v489_v54 = vsub.f32 1.0, %v488_v48  ;;  %v890_v63 = vpop.eup %889  ;;  %vm509_vm1 = vmor %vm507_vm15, %vm508_vm12 }
 0x1ff   : > { %v622_v33 = vadd.f32 -0.28449672, %v614_v32  ;;  %v504_v56 = vsub.f32 1.0, %v503_v23  ;;  %v669_v18 = vmul.f32 1.442695, %v659_v46 }
 0x200   : > { %v629_v25 = vmul.f32 %v621_v38, %v530_v16  ;;  %v490_v62 = vmul.f32 %v884_v26, %v489_v54 }
 0x201   : > { %v630_v7 = vmul.f32 %v622_v33, %v545_v22  ;;  %v505_v42 = vmul.f32 %v886_v52, %v504_v56  ;;  %v671_v33 = vmul.f32 1.442695, %v660_v15  ;;  %891 = vpow2.f32 %v669_v18 }
 0x202   : > { %v637_v10 = vadd.f32 0.2548296, %v629_v25  ;;  %v491_v50 = vadd.f32 %v884_v26, %v490_v62 }
 0x203   : > { %v638_v3 = vadd.f32 0.2548296, %v630_v7  ;;  %v506_v58 = vadd.f32 %v886_v52, %v505_v42  ;;  %893 = vpow2.f32 %v671_v33 }
 0x204   : > { %v645_v61 = vmul.f32 %v637_v10, %v530_v16  ;;  %v495_v27 = vsel %vm494_vm14, %v884_v26, %v491_v50 }
 0x205   : > { %v646_v29 = vmul.f32 %v638_v3, %v545_v22  ;;  %v500_v16 = vsel %vm497_vm0, %v499_v6, %v495_v27  ;;  %v510_v17 = vsel %vm509_vm1, %v886_v52, %v506_v58 }
 0x206   : > { %v685_v30 = vmul.f32 %v888_v40, %v645_v61  ;;  %v515_v28 = vsel %vm512_vm2, %v514_v13, %v510_v17  ;;  %v579_v34 = vmul.f32 1.0614054, %v500_v16 }
 0x207   : > { %v686_v2 = vmul.f32 %v890_v63, %v646_v29  ;;  %v580_v39 = vmul.f32 1.0614054, %v515_v28  ;;  %v892_v10 = vpop.eup %891  ;;  %v419_v29 = vmul.f32 0.5, %v1115_v5  ;;  %v420_v63 = vmul.f32 0.5, %v1119_v59 }
 0x208   : > { %v693_v8 = vsub.f32 1.0, %v685_v30  ;;  %v587_v43 = vadd.f32 -1.4531521, %v579_v34 }
 0x209   : > { %v694_v0 = vsub.f32 1.0, %v686_v2  ;;  %v588_v31 = vadd.f32 -1.4531521, %v580_v39  ;;  %v894_v3 = vpop.eup %893 }
 0x20a   : > { %v709_v22 = vsub.f32 0.0, %v693_v8  ;;  %v595_v21 = vmul.f32 %v587_v43, %v500_v16 }
 0x20b   : > { %v710_v37 = vsub.f32 0.0, %v694_v0  ;;  %v596_v24 = vmul.f32 %v588_v31, %v515_v28 }
 0x20c   : > { %v717_v20 = vsel %vm701_vm3, %v693_v8, %v709_v22  ;;  %v603_v9 = vadd.f32 1.4214138, %v595_v21 }
 0x20d   : > { %v718_v44 = vsel %vm702_vm4, %v694_v0, %v710_v37  ;;  %v725_v45 = vadd.f32 1.0, %v717_v20  ;;  %v604_v32 = vadd.f32 1.4214138, %v596_v24 }
 0x20e   : > { %v726_v35 = vadd.f32 1.0, %v718_v44  ;;  %v611_v26 = vmul.f32 %v603_v9, %v500_v16 }
 0x20f   : > { %v733_v49 = vmul.f32 %v725_v45, %v421_v41  ;;  %v612_v52 = vmul.f32 %v604_v32, %v515_v28 }
 0x210   : > { %v734_v51 = vmul.f32 %v726_v35, %v422_v47  ;;  %v619_v25 = vadd.f32 -0.28449672, %v611_v26 }
 0x211   : > { %v620_v48 = vadd.f32 -0.28449672, %v612_v52 }
 0x212   : > { %v739_v38 = vpack.c.bf16 %v734_v51, %v733_v49  ;;  %v627_v4 = vmul.f32 %v619_v25, %v500_v16 }
 0x213   : > { %v628_v11 = vmul.f32 %v620_v48, %v515_v28 }
 0x214   : > { %743 = vst [vmem:[%s1082_s6 + $0x10] sm:$0xff] %v739_v38  ;;  %v635_v7 = vadd.f32 0.2548296, %v627_v4 }
 0x215   : > { %v636_v23 = vadd.f32 0.2548296, %v628_v11 }
 0x216   : > { %v643_v19 = vmul.f32 %v635_v7, %v500_v16 }
 0x217   : > { %v644_v54 = vmul.f32 %v636_v23, %v515_v28 }
 0x218   : > { %v683_v55 = vmul.f32 %v892_v10, %v643_v19 }
 0x219   : > { %v684_v60 = vmul.f32 %v894_v3, %v644_v54 }
 0x21a   : > { %v691_v56 = vsub.f32 1.0, %v683_v55 }
 0x21b   : > { %v692_v61 = vsub.f32 1.0, %v684_v60 }
 0x21c   : > { %v707_v62 = vsub.f32 0.0, %v691_v56 }
 0x21d   : > { %v708_v57 = vsub.f32 0.0, %v692_v61 }
 0x21e   : > { %v715_v40 = vsel %vm699_vm5, %v691_v56, %v707_v62 }
 0x21f   : > { %v716_v42 = vsel %vm700_vm6, %v692_v61, %v708_v57  ;;  %v723_v53 = vadd.f32 1.0, %v715_v40 }
 0x220   : > { %v724_v30 = vadd.f32 1.0, %v716_v42 }
 0x221   : > { %v731_v50 = vmul.f32 %v723_v53, %v419_v29 }
 0x222   : > { %v732_v1 = vmul.f32 %v724_v30, %v420_v63 }
 0x224   : > { %v738_v2 = vpack.c.bf16 %v732_v1, %v731_v50 }
 0x226   : > { %742 = vst [vmem:[%s1082_s6 + $0x8] sm:$0xff] %v738_v2 }
 0x227 PF: > { %s13_s12 = sadd.s32 1, %s901_s12  }
 0x228   : > { %p10_p4 = scmp.ge.s32.totalorder %s13_s12, 4  }
 0x22a   :  { %12 = sbr.rel (!%p10_p4) target bundleno = 1 (0x1), region = 62 }

// kernel: aves_forward.5
= control target key start
LH: loop header
LB: loop body
LE: loop exit
PB: predicated region body
PF: predicated region fallthrough
CT: control target
= control target key end

     0   :  { %s606_s12 = smov 0   ;;  %s689_s0 = inlined_call_operand.vmem [shape: bf16[2,96,128], index: 0, kind: input, shape index: {}]   ;;  %s690_s1 = inlined_call_operand.vmem [shape: bf16[32,96], index: 1, kind: input, shape index: {}]   ;;  %s691_s2 = inlined_call_operand.vmem [shape: f32[32,2], index: 2, kind: input, shape index: {}]   ;;  %s692_s3 = inlined_call_operand.vmem [shape: bf16[2,32,128], index: 3, kind: output, shape index: {}]  }
   0x1 LB: > { %s483_s13 = sadd.s32 4294967295, %s584_s12   ;;  %p487_p0 = scmp.ge.s32.totalorder %s584_s12, 1  ;;  %s584_s12 = sphi %s606_s12, %s13_s12  }
   0x2   : > { %p137_p1 = scmp.lt.s32.totalorder %s584_s12, 3 }
   0x4   : > { %p138_p2 = pnand %p487_p0, %p137_p1 }
   0x5   : > { %p161_p3 = scmp.lt.s32.totalorder (!%p138_p2), %s483_s13, 1 }
   0x6   : > { %141 = sbr.rel (%p138_p2) target bundleno = 231 (0xe7), region = 32 }
   0xb   : > { %s694_s13 = smov (!%p161_p3, %s483_s13), 1  ;;  %v528_v6 = vld [vmem:[%s690_s1] sm:$0xff]  ;;  %v529_v7 = vld [vmem:[%s690_s1 + $0x8] sm:$0xff]  ;;  %vm234_vm0 = vcmask 785408  }
   0xc   : > { %s553_s2 = smul.u32 48, %s694_s13  ;;  %s527_s21 = sshll.u32 %s694_s13, 4 }
   0xd   : > { %s170_s24 = scalar_lea.vmem %s692_s3, %s527_s21 }
   0xe   : > { %s165_s16 = scalar_lea.vmem %s689_s0, %s553_s2 }
   0xf   : > { %v535_v0 = vld [vmem:[%s165_s16 + $0x28] sm:$0xff]  ;;  %v534_v1 = vld [vmem:[%s165_s16 + $0x20] sm:$0xff]  ;;  %v533_v2 = vld [vmem:[%s165_s16 + $0x18] sm:$0xff] }
  0x10   : > { %243 = vmatpush.bf16.msra.mxu0 %v535_v0  ;;  %547 = vmatpush.bf16.msra.mxu1 %v535_v0  ;;  %v532_v3 = vld [vmem:[%s165_s16 + $0x10] sm:$0xff]  ;;  %v531_v4 = vld [vmem:[%s165_s16 + $0x8] sm:$0xff]  ;;  %v530_v5 = vld [vmem:[%s165_s16] sm:$0xff] }
  0x14   : > { %244 = vmatpush.bf16.msra.mxu0 %v534_v1  ;;  %548 = vmatpush.bf16.msra.mxu1 %v534_v1 }
  0x18   : > { %245 = vmatpush.bf16.msra.mxu0 %v533_v2  ;;  %549 = vmatpush.bf16.msra.mxu1 %v533_v2 }
  0x1c   : > { %246 = vmatpush.bf16.msra.mxu0 %v532_v3  ;;  %550 = vmatpush.bf16.msra.mxu1 %v532_v3 }
  0x20   : > { %247 = vmatpush.bf16.msra.mxu0 %v531_v4  ;;  %551 = vmatpush.bf16.msra.mxu1 %v531_v4 }
  0x24   : > { %248 = vmatpush.bf16.msra.mxu0 %v530_v5  ;;  %552 = vmatpush.bf16.msra.mxu1 %v530_v5 }
  0x27   : > { %523 = vmatmul.msk.bf16.vlgmr.msra.gmra.mxu0 %vm234_vm0, %v528_v6  ;;  %524 = vmatmul.msk.bf16.vlgmr.msra.gmra.mxu1 %vm234_vm0, %v529_v7 }
  0xa4   : > { %v626_v8 = vpop.f32.mrf.mxu0  ;;  %v628_v9 = vpop.f32.mrf.mxu1 }
  0xa5   : > { %v631_v10 = vmul.f32 0.70710677, %v626_v8  ;;  %v634_v11 = vmul.f32 0.70710677, %v628_v9 }
  0xa7   : > { %v268_v12 = vand.u32 2147483647, %v631_v10  ;;  %v270_v13 = vand.u32 2147483647, %v634_v11 }
  0xa9   : > { %v272_v14 = vmul.f32 0.3275911, %v268_v12  ;;  %v274_v15 = vmul.f32 0.3275911, %v270_v13  ;;  %v376_v31 = vsub.f32 0.0, %v268_v12  ;;  %v378_v32 = vsub.f32 0.0, %v270_v13 }
  0xab   : > { %v276_v16 = vadd.f32 1.0, %v272_v14  ;;  %v278_v17 = vadd.f32 1.0, %v274_v15  ;;  %v380_v46 = vmul.f32 %v376_v31, %v268_v12  ;;  %v382_v50 = vmul.f32 %v378_v32, %v270_v13 }
  0xac   : > { %v638_v18 = vpop.f32.mrf.mxu0  ;;  %v640_v19 = vpop.f32.mrf.mxu1 }
  0xad   : > { %562 = vrcp.f32 %v276_v16  ;;  %v643_v20 = vmul.f32 0.70710677, %v638_v18  ;;  %v646_v21 = vmul.f32 0.70710677, %v640_v19  ;;  %v289_v34 = vand.u32 2147483647, %v276_v16 }
  0xae   : > { %564 = vrcp.f32 %v278_v17  ;;  %v291_v35 = vand.u32 2147483648, %v276_v16  ;;  %v321_v39 = vand.u32 2147483648, %v278_v17  ;;  %v319_v41 = vand.u32 2147483647, %v278_v17 }
  0xaf   : > { %v649_v22 = vand.u32 2147483647, %v643_v20  ;;  %v652_v24 = vand.u32 2147483647, %v646_v21  ;;  %vm285_vm3 = vweird.f32 %v276_v16  ;;  %vm315_vm5 = vweird.f32 %v278_v17 }
  0xb0   : > { %v292_v43 = vor.u32 1.1754944e-38, %v291_v35  ;;  %vm290_vm6 = vcmp.eq.f32.partialorder %v289_v34, 8.507059e+37  ;;  %v322_v47 = vor.u32 1.1754944e-38, %v321_v39  ;;  %vm320_vm8 = vcmp.eq.f32.partialorder %v319_v41, 8.507059e+37 }
  0xb1   : > { %v273_v27 = vmul.f32 0.3275911, %v649_v22  ;;  %v275_v29 = vmul.f32 0.3275911, %v652_v24  ;;  %v384_v58 = vmul.f32 1.442695, %v380_v46 }
  0xb2   : > { %v388_v61 = vmul.f32 1.442695, %v382_v50  ;;  %v377_v15 = vsub.f32 0.0, %v649_v22  ;;  %v379_v34 = vsub.f32 0.0, %v652_v24 }
  0xb3   : > { %v563_v23 = vpop.eup %562  ;;  %v656_v33 = vadd.f32 1.0, %v273_v27  ;;  %v658_v37 = vadd.f32 1.0, %v275_v29 }
  0xb4   : > { %v565_v25 = vpop.eup %564  ;;  %v281_v26 = vmul.f32 %v563_v23, %v276_v16  ;;  %vm286_vm1 = vweird.f32 %v563_v23 }
  0xb5   : > { %v311_v28 = vmul.f32 %v565_v25, %v278_v17  ;;  %566 = vrcp.f32 %v656_v33  ;;  %vm316_vm2 = vweird.f32 %v565_v25  ;;  %vm287_vm4 = vmor %vm285_vm3, %vm286_vm1  ;;  %v304_v0 = vand.u32 2147483647, %v656_v33 }
  0xb6   : > { %v282_v30 = vsub.f32 1.0, %v281_v26  ;;  %568 = vrcp.f32 %v658_v37  ;;  %vm317_vm7 = vmor %vm315_vm5, %vm316_vm2  ;;  %v306_v1 = vand.u32 2147483648, %v656_v33  ;;  %v336_v5 = vand.u32 2147483648, %v658_v37 }
  0xb7   : > { %v312_v36 = vsub.f32 1.0, %v311_v28  ;;  %v334_v12 = vand.u32 2147483647, %v658_v37  ;;  %vm300_vm11 = vweird.f32 %v656_v33  ;;  %vm330_vm13 = vweird.f32 %v658_v37 }
  0xb8   : > { %v283_v38 = vmul.f32 %v563_v23, %v282_v30  ;;  %v307_v17 = vor.u32 1.1754944e-38, %v306_v1  ;;  %vm305_vm14 = vcmp.eq.f32.partialorder %v304_v0, 8.507059e+37  ;;  %v337_v27 = vor.u32 1.1754944e-38, %v336_v5 }
  0xb9   : > { %v313_v40 = vmul.f32 %v565_v25, %v312_v36  ;;  %vm335_vm0 = vcmp.eq.f32.partialorder %v334_v12, 8.507059e+37  ;;  %570 = vpow2.f32 %v384_v58  ;;  %vm400_vm1 = vcmp.ge.f32.partialorder %v631_v10, 0.0 }
  0xba   : > { %v284_v42 = vadd.f32 %v563_v23, %v283_v38  ;;  %572 = vpow2.f32 %v388_v61  ;;  %vm402_vm2 = vcmp.ge.f32.partialorder %v634_v11, 0.0  ;;  %vm401_vm3 = vcmp.ge.f32.partialorder %v643_v20, 0.0 }
  0xbb   : > { %v314_v44 = vadd.f32 %v565_v25, %v313_v40  ;;  %v567_v51 = vpop.eup %566  ;;  %v381_v40 = vmul.f32 %v377_v15, %v649_v22  ;;  %v261_v10 = vmul.f32 0.5, %v638_v18  ;;  %v262_v11 = vmul.f32 0.5, %v628_v9 }
  0xbc   : > { %v288_v45 = vsel %vm287_vm4, %v563_v23, %v284_v42  ;;  %v569_v54 = vpop.eup %568  ;;  %v296_v56 = vmul.f32 %v567_v51, %v656_v33  ;;  %vm301_vm9 = vweird.f32 %v567_v51  ;;  %vm403_vm4 = vcmp.ge.f32.partialorder %v646_v21, 0.0 }
  0xbd   : > { %v293_v48 = vsel %vm290_vm6, %v292_v43, %v288_v45  ;;  %v318_v49 = vsel %vm317_vm7, %v565_v25, %v314_v44  ;;  %v326_v59 = vmul.f32 %v569_v54, %v658_v37  ;;  %vm331_vm10 = vweird.f32 %v569_v54  ;;  %vm302_vm12 = vmor %vm300_vm11, %vm301_vm9 }
  0xbe   : > { %v340_v52 = vmul.f32 1.0614054, %v293_v48  ;;  %v323_v53 = vsel %vm320_vm8, %v322_v47, %v318_v49  ;;  %v297_v62 = vsub.f32 1.0, %v296_v56  ;;  %vm332_vm15 = vmor %vm330_vm13, %vm331_vm10  ;;  %v383_v44 = vmul.f32 %v379_v34, %v652_v24 }
  0xbf   : > { %v342_v55 = vmul.f32 1.0614054, %v323_v53  ;;  %v327_v2 = vsub.f32 1.0, %v326_v59  ;;  %v571_v50 = vpop.eup %570 }
  0xc0   : > { %v344_v57 = vadd.f32 -1.4531521, %v340_v52  ;;  %v298_v4 = vmul.f32 %v567_v51, %v297_v62 }
  0xc1   : > { %v346_v60 = vadd.f32 -1.4531521, %v342_v55  ;;  %v328_v7 = vmul.f32 %v569_v54, %v327_v2 }
  0xc2   : > { %v348_v63 = vmul.f32 %v344_v57, %v293_v48  ;;  %v299_v14 = vadd.f32 %v567_v51, %v298_v4  ;;  %v390_v57 = vmul.f32 1.442695, %v383_v44 }
  0xc3   : > { %v350_v3 = vmul.f32 %v346_v60, %v323_v53  ;;  %v329_v23 = vadd.f32 %v569_v54, %v328_v7 }
  0xc4   : > { %v352_v6 = vadd.f32 1.4214138, %v348_v63  ;;  %v303_v26 = vsel %vm302_vm12, %v567_v51, %v299_v14  ;;  %v386_v51 = vmul.f32 1.442695, %v381_v40 }
  0xc5   : > { %v354_v13 = vadd.f32 1.4214138, %v350_v3  ;;  %v308_v29 = vsel %vm305_vm14, %v307_v17, %v303_v26  ;;  %v333_v30 = vsel %vm332_vm15, %v569_v54, %v329_v23  ;;  %v573_v54 = vpop.eup %572 }
  0xc6   : > { %v356_v16 = vmul.f32 %v352_v6, %v293_v48  ;;  %v341_v32 = vmul.f32 1.0614054, %v308_v29  ;;  %v338_v33 = vsel %vm335_vm0, %v337_v27, %v333_v30  ;;  %574 = vpow2.f32 %v386_v51 }
  0xc7   : > { %v358_v25 = vmul.f32 %v354_v13, %v323_v53  ;;  %v343_v36 = vmul.f32 1.0614054, %v338_v33  ;;  %576 = vpow2.f32 %v390_v57  ;;  %v260_v27 = vmul.f32 0.5, %v626_v8 }
  0xc8   : > { %v360_v28 = vadd.f32 -0.28449672, %v356_v16  ;;  %v345_v37 = vadd.f32 -1.4531521, %v341_v32  ;;  %v263_v30 = vmul.f32 0.5, %v640_v19 }
  0xc9   : > { %v362_v31 = vadd.f32 -0.28449672, %v358_v25  ;;  %v347_v41 = vadd.f32 -1.4531521, %v343_v36 }
  0xca   : > { %v364_v35 = vmul.f32 %v360_v28, %v293_v48  ;;  %v349_v43 = vmul.f32 %v345_v37, %v308_v29 }
  0xcb   : > { %v366_v38 = vmul.f32 %v362_v31, %v323_v53  ;;  %v351_v46 = vmul.f32 %v347_v41, %v338_v33 }
  0xcc   : > { %v368_v39 = vadd.f32 0.2548296, %v364_v35  ;;  %v353_v49 = vadd.f32 1.4214138, %v349_v43  ;;  %v575_v2 = vpop.eup %574 }
  0xcd   : > { %v370_v42 = vadd.f32 0.2548296, %v366_v38  ;;  %v355_v52 = vadd.f32 1.4214138, %v351_v46  ;;  %v577_v5 = vpop.eup %576 }
  0xce   : > { %v372_v45 = vmul.f32 %v368_v39, %v293_v48  ;;  %v357_v56 = vmul.f32 %v353_v49, %v308_v29 }
  0xcf   : > { %v374_v47 = vmul.f32 %v370_v42, %v323_v53  ;;  %v359_v59 = vmul.f32 %v355_v52, %v338_v33 }
  0xd0   : > { %v392_v55 = vmul.f32 %v571_v50, %v372_v45  ;;  %v361_v60 = vadd.f32 -0.28449672, %v357_v56 }
  0xd1   : > { %v394_v58 = vmul.f32 %v573_v54, %v374_v47  ;;  %v363_v22 = vadd.f32 -0.28449672, %v359_v59 }
  0xd2   : > { %v396_v61 = vsub.f32 1.0, %v392_v55  ;;  %v365_v62 = vmul.f32 %v361_v60, %v308_v29 }
  0xd3   : > { %v398_v24 = vsub.f32 1.0, %v394_v58  ;;  %v367_v48 = vmul.f32 %v363_v22, %v338_v33 }
  0xd4   : > { %v369_v63 = vadd.f32 0.2548296, %v365_v62  ;;  %v404_v0 = vsub.f32 0.0, %v396_v61 }
  0xd5   : > { %v371_v53 = vadd.f32 0.2548296, %v367_v48  ;;  %v406_v3 = vsub.f32 0.0, %v398_v24 }
  0xd6   : > { %v373_v1 = vmul.f32 %v369_v63, %v308_v29  ;;  %v408_v12 = vsel %vm400_vm1, %v396_v61, %v404_v0 }
  0xd7   : > { %v375_v4 = vmul.f32 %v371_v53, %v338_v33  ;;  %v410_v14 = vsel %vm402_vm2, %v398_v24, %v406_v3  ;;  %v412_v17 = vadd.f32 1.0, %v408_v12 }
  0xd8   : > { %v393_v6 = vmul.f32 %v575_v2, %v373_v1  ;;  %v414_v25 = vadd.f32 1.0, %v410_v14 }
  0xd9   : > { %v395_v7 = vmul.f32 %v577_v5, %v375_v4  ;;  %v416_v32 = vmul.f32 %v412_v17, %v260_v27 }
  0xda   : > { %v397_v13 = vsub.f32 1.0, %v393_v6  ;;  %v418_v20 = vmul.f32 %v414_v25, %v262_v11 }
  0xdb   : > { %v399_v15 = vsub.f32 1.0, %v395_v7 }
  0xdc   : > { %v405_v16 = vsub.f32 0.0, %v397_v13 }
  0xdd   : > { %v407_v23 = vsub.f32 0.0, %v399_v15 }
  0xde   : > { %v409_v26 = vsel %vm401_vm3, %v397_v13, %v405_v16 }
  0xdf   : > { %v413_v28 = vadd.f32 1.0, %v409_v26  ;;  %v411_v29 = vsel %vm403_vm4, %v399_v15, %v407_v23 }
  0xe0   : > { %v415_v31 = vadd.f32 1.0, %v411_v29 }
  0xe1   : > { %v417_v33 = vmul.f32 %v413_v28, %v261_v10 }
  0xe2   : > { %v419_v21 = vmul.f32 %v415_v31, %v263_v30 }
  0xe3   : > { %v539_v34 = vpack.c.bf16 %v417_v33, %v416_v32 }
  0xe4   : > { %v544_v8 = vpack.c.bf16 %v419_v21, %v418_v20 }
  0xe5   : > { %540 = vst [vmem:[%s170_s24] sm:$0xff] %v539_v34  }
  0xe6   : > { %546 = vst [vmem:[%s170_s24 + $0x8] sm:$0xff] %v544_v8  }
  0xe7 PF: > { %s13_s12 = sadd.s32 1, %s584_s12  }
  0xe8   : > { %p10_p4 = scmp.ge.s32.totalorder %s13_s12, 4  }
  0xea   :  { %12 = sbr.rel (!%p10_p4) target bundleno = 1 (0x1), region = 62 }

// kernel: aves_forward.6
= control target key start
LH: loop header
LB: loop body
LE: loop exit
PB: predicated region body
PF: predicated region fallthrough
CT: control target
= control target key end

     0   :  { %s579_s12 = smov 0   ;;  %s662_s0 = inlined_call_operand.vmem [shape: bf16[2,64,128], index: 0, kind: input, shape index: {}]   ;;  %s663_s1 = inlined_call_operand.vmem [shape: bf16[32,64], index: 1, kind: input, shape index: {}]   ;;  %s664_s2 = inlined_call_operand.vmem [shape: f32[32,2], index: 2, kind: input, shape index: {}]   ;;  %s665_s3 = inlined_call_operand.vmem [shape: bf16[2,32,128], index: 3, kind: output, shape index: {}]  }
   0x1 LB: > { %s467_s13 = sadd.s32 4294967295, %s557_s12   ;;  %p471_p0 = scmp.ge.s32.totalorder %s557_s12, 1  ;;  %s557_s12 = sphi %s579_s12, %s13_s12  }
   0x2   : > { %p137_p1 = scmp.lt.s32.totalorder %s557_s12, 3 }
   0x4   : > { %p138_p2 = pnand %p471_p0, %p137_p1 }
   0x5   : > { %p161_p3 = scmp.lt.s32.totalorder (!%p138_p2), %s467_s13, 1 }
   0x6   : > { %141 = sbr.rel (%p138_p2) target bundleno = 222 (0xde), region = 32 }
   0xb   : > { %s667_s13 = smov (!%p161_p3, %s467_s13), 1  ;;  %v506_v4 = vld [vmem:[%s663_s1] sm:$0xff]  ;;  %v507_v5 = vld [vmem:[%s663_s1 + $0x8] sm:$0xff]  ;;  %vm218_vm0 = vcmask 523264  }
   0xc   : > { %s504_s2 = sshll.u32 %s667_s13, 5  ;;  %s505_s21 = sshll.u32 %s667_s13, 4 }
   0xd   : > { %s165_s16 = scalar_lea.vmem %s662_s0, %s504_s2  ;;  %s170_s24 = scalar_lea.vmem %s665_s3, %s505_s21 }
   0xe   : > { %v511_v0 = vld [vmem:[%s165_s16 + $0x18] sm:$0xff]  ;;  %v510_v1 = vld [vmem:[%s165_s16 + $0x10] sm:$0xff]  ;;  %v509_v2 = vld [vmem:[%s165_s16 + $0x8] sm:$0xff] }
   0xf   : > { %229 = vmatpush.bf16.msra.mxu0 %v511_v0  ;;  %523 = vmatpush.bf16.msra.mxu1 %v511_v0  ;;  %v508_v3 = vld [vmem:[%s165_s16] sm:$0xff] }
  0x13   : > { %230 = vmatpush.bf16.msra.mxu0 %v510_v1  ;;  %524 = vmatpush.bf16.msra.mxu1 %v510_v1 }
  0x17   : > { %231 = vmatpush.bf16.msra.mxu0 %v509_v2  ;;  %525 = vmatpush.bf16.msra.mxu1 %v509_v2 }
  0x1b   : > { %232 = vmatpush.bf16.msra.mxu0 %v508_v3  ;;  %526 = vmatpush.bf16.msra.mxu1 %v508_v3 }
  0x1e   : > { %500 = vmatmul.msk.bf16.vlgmr.msra.gmra.mxu0 %vm218_vm0, %v506_v4  ;;  %501 = vmatmul.msk.bf16.vlgmr.msra.gmra.mxu1 %vm218_vm0, %v507_v5 }
  0x9b   : > { %v599_v6 = vpop.f32.mrf.mxu0  ;;  %v601_v7 = vpop.f32.mrf.mxu1 }
  0x9c   : > { %v604_v8 = vmul.f32 0.70710677, %v599_v6  ;;  %v607_v9 = vmul.f32 0.70710677, %v601_v7 }
  0x9e   : > { %v252_v10 = vand.u32 2147483647, %v604_v8  ;;  %v254_v11 = vand.u32 2147483647, %v607_v9 }
  0xa0   : > { %v256_v12 = vmul.f32 0.3275911, %v252_v10  ;;  %v258_v13 = vmul.f32 0.3275911, %v254_v11  ;;  %v360_v29 = vsub.f32 0.0, %v252_v10  ;;  %v362_v30 = vsub.f32 0.0, %v254_v11 }
  0xa2   : > { %v260_v14 = vadd.f32 1.0, %v256_v12  ;;  %v262_v15 = vadd.f32 1.0, %v258_v13  ;;  %v364_v44 = vmul.f32 %v360_v29, %v252_v10  ;;  %v366_v48 = vmul.f32 %v362_v30, %v254_v11 }
  0xa3   : > { %v611_v16 = vpop.f32.mrf.mxu0  ;;  %v613_v17 = vpop.f32.mrf.mxu1 }
  0xa4   : > { %535 = vrcp.f32 %v260_v14  ;;  %v616_v18 = vmul.f32 0.70710677, %v611_v16  ;;  %v619_v19 = vmul.f32 0.70710677, %v613_v17  ;;  %v273_v32 = vand.u32 2147483647, %v260_v14 }
  0xa5   : > { %537 = vrcp.f32 %v262_v15  ;;  %v275_v33 = vand.u32 2147483648, %v260_v14  ;;  %v305_v37 = vand.u32 2147483648, %v262_v15  ;;  %v303_v39 = vand.u32 2147483647, %v262_v15 }
  0xa6   : > { %v622_v20 = vand.u32 2147483647, %v616_v18  ;;  %v625_v22 = vand.u32 2147483647, %v619_v19  ;;  %vm269_vm3 = vweird.f32 %v260_v14  ;;  %vm299_vm5 = vweird.f32 %v262_v15 }
  0xa7   : > { %v276_v41 = vor.u32 1.1754944e-38, %v275_v33  ;;  %vm274_vm6 = vcmp.eq.f32.partialorder %v273_v32, 8.507059e+37  ;;  %v306_v45 = vor.u32 1.1754944e-38, %v305_v37  ;;  %vm304_vm8 = vcmp.eq.f32.partialorder %v303_v39, 8.507059e+37 }
  0xa8   : > { %v257_v25 = vmul.f32 0.3275911, %v622_v20  ;;  %v259_v27 = vmul.f32 0.3275911, %v625_v22  ;;  %v368_v56 = vmul.f32 1.442695, %v364_v44 }
  0xa9   : > { %v372_v59 = vmul.f32 1.442695, %v366_v48  ;;  %v361_v13 = vsub.f32 0.0, %v622_v20  ;;  %v363_v32 = vsub.f32 0.0, %v625_v22 }
  0xaa   : > { %v536_v21 = vpop.eup %535  ;;  %v629_v31 = vadd.f32 1.0, %v257_v25  ;;  %v631_v35 = vadd.f32 1.0, %v259_v27 }
  0xab   : > { %v538_v23 = vpop.eup %537  ;;  %v265_v24 = vmul.f32 %v536_v21, %v260_v14  ;;  %vm270_vm1 = vweird.f32 %v536_v21 }
  0xac   : > { %v295_v26 = vmul.f32 %v538_v23, %v262_v15  ;;  %539 = vrcp.f32 %v629_v31  ;;  %vm300_vm2 = vweird.f32 %v538_v23  ;;  %vm271_vm4 = vmor %vm269_vm3, %vm270_vm1  ;;  %v288_v62 = vand.u32 2147483647, %v629_v31 }
  0xad   : > { %v266_v28 = vsub.f32 1.0, %v265_v24  ;;  %541 = vrcp.f32 %v631_v35  ;;  %vm301_vm7 = vmor %vm299_vm5, %vm300_vm2  ;;  %v290_v63 = vand.u32 2147483648, %v629_v31  ;;  %v320_v3 = vand.u32 2147483648, %v631_v35 }
  0xae   : > { %v296_v34 = vsub.f32 1.0, %v295_v26  ;;  %v318_v10 = vand.u32 2147483647, %v631_v35  ;;  %vm284_vm11 = vweird.f32 %v629_v31  ;;  %vm314_vm13 = vweird.f32 %v631_v35 }
  0xaf   : > { %v267_v36 = vmul.f32 %v536_v21, %v266_v28  ;;  %v291_v15 = vor.u32 1.1754944e-38, %v290_v63  ;;  %vm289_vm14 = vcmp.eq.f32.partialorder %v288_v62, 8.507059e+37  ;;  %v321_v25 = vor.u32 1.1754944e-38, %v320_v3 }
  0xb0   : > { %v297_v38 = vmul.f32 %v538_v23, %v296_v34  ;;  %vm319_vm0 = vcmp.eq.f32.partialorder %v318_v10, 8.507059e+37  ;;  %543 = vpow2.f32 %v368_v56  ;;  %vm384_vm1 = vcmp.ge.f32.partialorder %v604_v8, 0.0 }
  0xb1   : > { %v268_v40 = vadd.f32 %v536_v21, %v267_v36  ;;  %545 = vpow2.f32 %v372_v59  ;;  %vm386_vm2 = vcmp.ge.f32.partialorder %v607_v9, 0.0  ;;  %vm385_vm3 = vcmp.ge.f32.partialorder %v616_v18, 0.0 }
  0xb2   : > { %v298_v42 = vadd.f32 %v538_v23, %v297_v38  ;;  %v540_v49 = vpop.eup %539  ;;  %v365_v38 = vmul.f32 %v361_v13, %v622_v20  ;;  %v245_v8 = vmul.f32 0.5, %v611_v16  ;;  %v246_v9 = vmul.f32 0.5, %v601_v7 }
  0xb3   : > { %v272_v43 = vsel %vm271_vm4, %v536_v21, %v268_v40  ;;  %v542_v52 = vpop.eup %541  ;;  %v280_v54 = vmul.f32 %v540_v49, %v629_v31  ;;  %vm285_vm9 = vweird.f32 %v540_v49  ;;  %vm387_vm4 = vcmp.ge.f32.partialorder %v619_v19, 0.0 }
  0xb4   : > { %v277_v46 = vsel %vm274_vm6, %v276_v41, %v272_v43  ;;  %v302_v47 = vsel %vm301_vm7, %v538_v23, %v298_v42  ;;  %v310_v57 = vmul.f32 %v542_v52, %v631_v35  ;;  %vm315_vm10 = vweird.f32 %v542_v52  ;;  %vm286_vm12 = vmor %vm284_vm11, %vm285_vm9 }
  0xb5   : > { %v324_v50 = vmul.f32 1.0614054, %v277_v46  ;;  %v307_v51 = vsel %vm304_vm8, %v306_v45, %v302_v47  ;;  %v281_v60 = vsub.f32 1.0, %v280_v54  ;;  %vm316_vm15 = vmor %vm314_vm13, %vm315_vm10  ;;  %v367_v42 = vmul.f32 %v363_v32, %v625_v22 }
  0xb6   : > { %v326_v53 = vmul.f32 1.0614054, %v307_v51  ;;  %v311_v0 = vsub.f32 1.0, %v310_v57  ;;  %v544_v48 = vpop.eup %543 }
  0xb7   : > { %v328_v55 = vadd.f32 -1.4531521, %v324_v50  ;;  %v282_v2 = vmul.f32 %v540_v49, %v281_v60 }
  0xb8   : > { %v330_v58 = vadd.f32 -1.4531521, %v326_v53  ;;  %v312_v5 = vmul.f32 %v542_v52, %v311_v0 }
  0xb9   : > { %v332_v61 = vmul.f32 %v328_v55, %v277_v46  ;;  %v283_v12 = vadd.f32 %v540_v49, %v282_v2  ;;  %v374_v55 = vmul.f32 1.442695, %v367_v42 }
  0xba   : > { %v334_v1 = vmul.f32 %v330_v58, %v307_v51  ;;  %v313_v21 = vadd.f32 %v542_v52, %v312_v5 }
  0xbb   : > { %v336_v4 = vadd.f32 1.4214138, %v332_v61  ;;  %v287_v24 = vsel %vm286_vm12, %v540_v49, %v283_v12  ;;  %v370_v49 = vmul.f32 1.442695, %v365_v38 }
  0xbc   : > { %v338_v11 = vadd.f32 1.4214138, %v334_v1  ;;  %v292_v27 = vsel %vm289_vm14, %v291_v15, %v287_v24  ;;  %v317_v28 = vsel %vm316_vm15, %v542_v52, %v313_v21  ;;  %v546_v52 = vpop.eup %545 }
  0xbd   : > { %v340_v14 = vmul.f32 %v336_v4, %v277_v46  ;;  %v325_v30 = vmul.f32 1.0614054, %v292_v27  ;;  %v322_v31 = vsel %vm319_vm0, %v321_v25, %v317_v28  ;;  %547 = vpow2.f32 %v370_v49 }
  0xbe   : > { %v342_v23 = vmul.f32 %v338_v11, %v307_v51  ;;  %v327_v34 = vmul.f32 1.0614054, %v322_v31  ;;  %549 = vpow2.f32 %v374_v55  ;;  %v244_v25 = vmul.f32 0.5, %v599_v6 }
  0xbf   : > { %v344_v26 = vadd.f32 -0.28449672, %v340_v14  ;;  %v329_v35 = vadd.f32 -1.4531521, %v325_v30  ;;  %v247_v28 = vmul.f32 0.5, %v613_v17 }
  0xc0   : > { %v346_v29 = vadd.f32 -0.28449672, %v342_v23  ;;  %v331_v39 = vadd.f32 -1.4531521, %v327_v34 }
  0xc1   : > { %v348_v33 = vmul.f32 %v344_v26, %v277_v46  ;;  %v333_v41 = vmul.f32 %v329_v35, %v292_v27 }
  0xc2   : > { %v350_v36 = vmul.f32 %v346_v29, %v307_v51  ;;  %v335_v44 = vmul.f32 %v331_v39, %v322_v31 }
  0xc3   : > { %v352_v37 = vadd.f32 0.2548296, %v348_v33  ;;  %v337_v47 = vadd.f32 1.4214138, %v333_v41  ;;  %v548_v0 = vpop.eup %547 }
  0xc4   : > { %v354_v40 = vadd.f32 0.2548296, %v350_v36  ;;  %v339_v50 = vadd.f32 1.4214138, %v335_v44  ;;  %v550_v3 = vpop.eup %549 }
  0xc5   : > { %v356_v43 = vmul.f32 %v352_v37, %v277_v46  ;;  %v341_v54 = vmul.f32 %v337_v47, %v292_v27 }
  0xc6   : > { %v358_v45 = vmul.f32 %v354_v40, %v307_v51  ;;  %v343_v57 = vmul.f32 %v339_v50, %v322_v31 }
  0xc7   : > { %v376_v53 = vmul.f32 %v544_v48, %v356_v43  ;;  %v345_v58 = vadd.f32 -0.28449672, %v341_v54 }
  0xc8   : > { %v378_v56 = vmul.f32 %v546_v52, %v358_v45  ;;  %v347_v20 = vadd.f32 -0.28449672, %v343_v57 }
  0xc9   : > { %v380_v59 = vsub.f32 1.0, %v376_v53  ;;  %v349_v60 = vmul.f32 %v345_v58, %v292_v27 }
  0xca   : > { %v382_v22 = vsub.f32 1.0, %v378_v56  ;;  %v351_v46 = vmul.f32 %v347_v20, %v322_v31 }
  0xcb   : > { %v353_v61 = vadd.f32 0.2548296, %v349_v60  ;;  %v388_v62 = vsub.f32 0.0, %v380_v59 }
  0xcc   : > { %v355_v51 = vadd.f32 0.2548296, %v351_v46  ;;  %v390_v1 = vsub.f32 0.0, %v382_v22 }
  0xcd   : > { %v357_v63 = vmul.f32 %v353_v61, %v292_v27  ;;  %v392_v10 = vsel %vm384_vm1, %v380_v59, %v388_v62 }
  0xce   : > { %v359_v2 = vmul.f32 %v355_v51, %v322_v31  ;;  %v394_v12 = vsel %vm386_vm2, %v382_v22, %v390_v1  ;;  %v396_v15 = vadd.f32 1.0, %v392_v10 }
  0xcf   : > { %v377_v4 = vmul.f32 %v548_v0, %v357_v63  ;;  %v398_v23 = vadd.f32 1.0, %v394_v12 }
  0xd0   : > { %v379_v5 = vmul.f32 %v550_v3, %v359_v2  ;;  %v400_v30 = vmul.f32 %v396_v15, %v244_v25 }
  0xd1   : > { %v381_v11 = vsub.f32 1.0, %v377_v4  ;;  %v402_v18 = vmul.f32 %v398_v23, %v246_v9 }
  0xd2   : > { %v383_v13 = vsub.f32 1.0, %v379_v5 }
  0xd3   : > { %v389_v14 = vsub.f32 0.0, %v381_v11 }
  0xd4   : > { %v391_v21 = vsub.f32 0.0, %v383_v13 }
  0xd5   : > { %v393_v24 = vsel %vm385_vm3, %v381_v11, %v389_v14 }
  0xd6   : > { %v397_v26 = vadd.f32 1.0, %v393_v24  ;;  %v395_v27 = vsel %vm387_vm4, %v383_v13, %v391_v21 }
  0xd7   : > { %v399_v29 = vadd.f32 1.0, %v395_v27 }
  0xd8   : > { %v401_v31 = vmul.f32 %v397_v26, %v245_v8 }
  0xd9   : > { %v403_v19 = vmul.f32 %v399_v29, %v247_v28 }
  0xda   : > { %v515_v32 = vpack.c.bf16 %v401_v31, %v400_v30 }
  0xdb   : > { %v520_v6 = vpack.c.bf16 %v403_v19, %v402_v18 }
  0xdc   : > { %516 = vst [vmem:[%s170_s24] sm:$0xff] %v515_v32  }
  0xdd   : > { %522 = vst [vmem:[%s170_s24 + $0x8] sm:$0xff] %v520_v6  }
  0xde PF: > { %s13_s12 = sadd.s32 1, %s557_s12  }
  0xdf   : > { %p10_p4 = scmp.ge.s32.totalorder %s13_s12, 4  }
  0xe1   :  { %12 = sbr.rel (!%p10_p4) target bundleno = 1 (0x1), region = 62 }

// kernel: aves_forward.7
= control target key start
LH: loop header
LB: loop body
LE: loop exit
PB: predicated region body
PF: predicated region fallthrough
CT: control target
= control target key end

     0   :  { %s5211_s13 = smov 0   ;;  %s6807_s0 = inlined_call_operand.vmem [shape: bf16[2,39,32], index: 0, kind: input, shape index: {}]   ;;  %s6808_s1 = inlined_call_operand.vmem [shape: f32[2,32], index: 1, kind: input, shape index: {}]   ;;  %s6809_s2 = inlined_call_operand.vmem [shape: bf16[32,32], index: 2, kind: input, shape index: {}]   ;;  %s6810_s3 = inlined_call_operand.vmem [shape: f32[2,32], index: 3, kind: input, shape index: {}]   ;;  %s6811_s4 = inlined_call_operand.vmem [shape: bf16[128,32], index: 4, kind: input, shape index: {}]   ;;  %s6812_s5 = inlined_call_operand.vmem [shape: bf16[2,32,96], index: 5, kind: input, shape index: {}]   ;;  %s6813_s6 = inlined_call_operand.vmem [shape: bf16[2,32,32], index: 6, kind: input, shape index: {}]   ;;  %s6814_s7 = inlined_call_operand.vmem [shape: bf16[2,32,64], index: 7, kind: input, shape index: {}]   ;;  %s6815_s8 = inlined_call_operand.vmem [shape: bf16[2,64,32], index: 8, kind: input, shape index: {}]   ;;  %s6816_s9 = inlined_call_operand.vmem [shape: f32[2,8,96], index: 9, kind: input, shape index: {}]   ;;  %s6817_s10 = inlined_call_operand.vmem [shape: f32[2,39,32], index: 10, kind: output, shape index: {}]  }
   0x1 LB: > { %s4360_s14 = sadd.s32 4294967295, %s5143_s13   ;;  %p4364_p0 = scmp.ge.s32.totalorder %s5143_s13, 1  ;;  %s5143_s13 = sphi %s5211_s13, %s20_s13  }
   0x2   : > { %p312_p1 = scmp.lt.s32.totalorder %s5143_s13, 3 }
   0x4   : > { %p313_p2 = pnand %p4364_p0, %p312_p1 }
   0x5   : > { %p350_p3 = scmp.lt.s32.totalorder (!%p313_p2), %s4360_s14, 1  ;;  %s5146_s29 = smov (!%p313_p2), 96  }
   0x6   : > { %316 = sbr.rel (%p313_p2) target bundleno = 5172 (0x1434), region = 60  ;;  %s5147_s30 = smov (!%p313_p2), 64  }
   0x7   : > { %s5148_s11 = smov (!%p313_p2), 32   ;;  %s5149_s22 = smov (!%p313_p2), 104  }
   0x8   : > { %s5150_s23 = smov (!%p313_p2), 112   ;;  %s5151_s24 = smov (!%p313_p2), 120  }
   0x9   : > { %s5153_s25 = smov (!%p313_p2), 16   ;;  %s5154_s26 = smov (!%p313_p2), 8  }
   0xa   : > { %s5155_s27 = smov (!%p313_p2), 24  }
   0xb   : > { %s6819_s14 = smov (!%p350_p3, %s4360_s14), 1  ;;  %vm373_vm0 = vcmask 261120   ;;  %vm386_vm1 = vcmask 260096   ;;  %v5145_v13 = vmov 32.0   ;;  %v4586_v45 = vld [vmem:[%s6809_s2 + $0x8] sm:$0xff]  ;;  %v4585_v51 = vld [vmem:[%s6809_s2] sm:$0xff] }
   0xc   : > { %s4628_s15 = smul.u32 20, %s6819_s14  ;;  %4863 = vrcp.f32 %v5145_v13  ;;  %540 = vmatpush.bf16.msra.mxu0 %v4586_v45  ;;  %4624 = vmatpush.bf16.msra.mxu3 %v4586_v45 }
   0xe   : > { %s354_s18 = scalar_lea.vmem %s6807_s0, %s4628_s15 }
   0xf   : > { %v4623_v0 = vld [vmem:[%s354_s18 + $0x8] sm:$0xff]   ;;  %v4616_v1 = vld [vmem:[%s354_s18] sm:$0xff]   ;;  %v365_v2 = vld [vmem:[%s354_s18 + $0x10] sm:$0xf] }
  0x10   : > { %v4621_v3 = vunpack.c.l.bf16 %v4623_v0  ;;  %v4617_v4 = vunpack.c.l.bf16 %v4616_v1  ;;  %v370_v5 = vunpack.c.l.bf16 %v365_v2  ;;  %v4622_v9 = vunpack.c.h.bf16 %v4623_v0  ;;  %541 = vmatpush.bf16.msra.mxu0 %v4585_v51  ;;  %4625 = vmatpush.bf16.msra.mxu3 %v4585_v51 }
  0x11   : > { %v4618_v10 = vunpack.c.h.bf16 %v4616_v1 }
  0x12   : > { %v380_v6 = vsel %vm373_vm0, %v4621_v3, 0.0  ;;  %v374_v7 = vsel %vm373_vm0, %v4617_v4, 0.0  ;;  %v387_v8 = vsel %vm386_vm1, %v370_v5, 0.0  ;;  %v383_v11 = vsel %vm373_vm0, %v4622_v9, 0.0  ;;  %v4864_v14 = vpop.eup %4863 }
  0x13   : > { %381 = vadd.xlane.f32.xlu1 %v380_v6  ;;  %375 = vadd.xlane.f32.xlu0 %v374_v7  ;;  %v377_v12 = vsel %vm373_vm0, %v4618_v10, 0.0  ;;  %v391_v15 = vmul.f32 32.0, %v4864_v14  ;;  %vm395_vm2 = vweird.f32 %v4864_v14 }
  0x14   : > { %388 = vadd.xlane.f32.xlu2 %v387_v8 }
  0x15   : > { %v392_v16 = vsub.f32 1.0, %v391_v15 }
  0x17   : > { %v393_v17 = vmul.f32 %v4864_v14, %v392_v16 }
  0x19   : > { %v394_v18 = vadd.f32 %v4864_v14, %v393_v17 }
  0x1b   : > { %384 = vadd.xlane.f32.xlu1 %v383_v11  ;;  %378 = vadd.xlane.f32.xlu0 %v377_v12  ;;  %v5230_v19 = vsel %vm395_vm2, %v4864_v14, %v394_v18 }
  0x86   : > { %v382_v20 = vpop.xlane.xlu1 %381  ;;  %v376_v21 = vpop.xlane.xlu0 %375 }
  0x87   : > { %v399_v22 = vmul.f32 %v5230_v19, %v382_v20  ;;  %v397_v23 = vmul.f32 %v5230_v19, %v376_v21  ;;  %v389_v28 = vpop.xlane.xlu2 %388  ;;  %v4859_v21 = vld [vmem:[%s6808_s1] ss:$0 sm:$0xff] }
  0x88   : > { %v401_v35 = vmul.f32 %v5230_v19, %v389_v28 }
  0x89   : > { %v5234_v24 = vsub.f32 %v4621_v3, %v399_v22  ;;  %v5236_v25 = vsub.f32 %v4617_v4, %v397_v23 }
  0x8a   : > { %v5251_v38 = vsub.f32 %v370_v5, %v401_v35 }
  0x8b   : > { %v409_v26 = vmul.f32 %v5234_v24, %v5234_v24  ;;  %v407_v27 = vmul.f32 %v5236_v25, %v5236_v25 }
  0x8c   : > { %v411_v43 = vmul.f32 %v5251_v38, %v5251_v38 }
  0x8d   : > { %v418_v29 = vsel %vm373_vm0, %v409_v26, 0.0  ;;  %v412_v30 = vsel %vm373_vm0, %v407_v27, 0.0 }
  0x8e   : > { %419 = vadd.xlane.f32.xlu1 %v418_v29  ;;  %v385_v31 = vpop.xlane.xlu1 %384  ;;  %413 = vadd.xlane.f32.xlu2 %v412_v30  ;;  %v379_v32 = vpop.xlane.xlu0 %378  ;;  %v424_v44 = vsel %vm386_vm1, %v411_v43, 0.0 }
  0x8f   : > { %v400_v33 = vmul.f32 %v5230_v19, %v385_v31  ;;  %v398_v34 = vmul.f32 %v5230_v19, %v379_v32 }
  0x91   : > { %v5247_v36 = vsub.f32 %v4622_v9, %v400_v33  ;;  %v5249_v37 = vsub.f32 %v4618_v10, %v398_v34 }
  0x93   : > { %v410_v39 = vmul.f32 %v5247_v36, %v5247_v36  ;;  %v408_v40 = vmul.f32 %v5249_v37, %v5249_v37 }
  0x95   : > { %v421_v41 = vsel %vm373_vm0, %v410_v39, 0.0  ;;  %v415_v42 = vsel %vm373_vm0, %v408_v40, 0.0 }
  0x96   : > { %422 = vadd.xlane.f32.xlu2 %v421_v41  ;;  %416 = vadd.xlane.f32.xlu0 %v415_v42 }
  0x9e   : > { %425 = vadd.xlane.f32.xlu0 %v424_v44 }
 0x101   : > { %v420_v46 = vpop.xlane.xlu1 %419  ;;  %v414_v47 = vpop.xlane.xlu2 %413 }
 0x102   : > { %v427_v48 = vmul.f32 %v414_v47, %v5230_v19  ;;  %v429_v49 = vmul.f32 %v420_v46, %v5230_v19 }
 0x104   : > { %v432_v50 = vadd.f32 1e-05, %v427_v48  ;;  %v5270_v52 = vadd.f32 1e-05, %v429_v49 }
 0x106   : > { %4865 = vrsqrt.f32 %v432_v50  ;;  %vm443_vm4 = vweird.f32 %v432_v50  ;;  %vm463_vm13 = vweird.f32 %v5270_v52 }
 0x107   : > { %4867 = vrsqrt.f32 %v5270_v52 }
 0x109   : > { %v423_v53 = vpop.xlane.xlu2 %422  ;;  %v417_v54 = vpop.xlane.xlu0 %416 }
 0x10a   : > { %v430_v55 = vmul.f32 %v423_v53, %v5230_v19  ;;  %v428_v56 = vmul.f32 %v417_v54, %v5230_v19 }
 0x10c   : > { %v435_v57 = vadd.f32 1e-05, %v430_v55  ;;  %v433_v58 = vadd.f32 1e-05, %v428_v56  ;;  %v4866_v59 = vpop.eup %4865 }
 0x10d   : > { %v438_v60 = vmul.f32 %v4866_v59, %v432_v50  ;;  %v5275_v63 = vpop.eup %4867  ;;  %vm444_vm3 = vweird.f32 %v4866_v59 }
 0x10e   : > { %4869 = vrsqrt.f32 %v435_v57  ;;  %v458_v6 = vmul.f32 %v5275_v63, %v5270_v52  ;;  %vm445_vm5 = vmor %vm443_vm4, %vm444_vm3  ;;  %vm453_vm7 = vweird.f32 %v433_v58  ;;  %vm473_vm11 = vweird.f32 %v435_v57 }
 0x10f   : > { %4871 = vrsqrt.f32 %v433_v58  ;;  %v439_v61 = vmul.f32 %v4866_v59, %v438_v60  ;;  %vm464_vm14 = vweird.f32 %v5275_v63  ;;  %vm562_vm4 = vcmask 1041408  }
 0x110   : > { %v459_v12 = vmul.f32 %v5275_v63, %v458_v6  ;;  %vm465_vm3 = vmor %vm463_vm13, %vm464_vm14 }
 0x111   : > { %v426_v62 = vpop.xlane.xlu0 %425  ;;  %v440_v0 = vmul.f32 0.5, %v439_v61 }
 0x112   : > { %v431_v1 = vmul.f32 %v426_v62, %v5230_v19  ;;  %v460_v22 = vmul.f32 0.5, %v459_v12 }
 0x113   : > { %v441_v3 = vsub.f32 1.5, %v440_v0 }
 0x114   : > { %v4870_v2 = vpop.eup %4869  ;;  %v436_v4 = vadd.f32 1e-05, %v431_v1  ;;  %v461_v32 = vsub.f32 1.5, %v460_v22 }
 0x115   : > { %v4872_v5 = vpop.eup %4871  ;;  %v468_v7 = vmul.f32 %v4870_v2, %v435_v57  ;;  %v442_v8 = vmul.f32 %v4866_v59, %v441_v3  ;;  %vm474_vm12 = vweird.f32 %v4870_v2  ;;  %v4861_v57 = vld [vmem:[%s6810_s3] ss:$0 sm:$0xff] }
 0x116   : > { %v448_v9 = vmul.f32 %v4872_v5, %v433_v58  ;;  %4873 = vrsqrt.f32 %v436_v4  ;;  %vm454_vm6 = vweird.f32 %v4872_v5  ;;  %vm483_vm9 = vweird.f32 %v436_v4  ;;  %vm475_vm2 = vmor %vm473_vm11, %vm474_vm12 }
 0x117   : > { %v469_v10 = vmul.f32 %v4870_v2, %v468_v7  ;;  %v446_v13 = vsel %vm445_vm5, %v4866_v59, %v442_v8  ;;  %vm455_vm8 = vmor %vm453_vm7, %vm454_vm6  ;;  %v462_v41 = vmul.f32 %v5275_v63, %v461_v32  ;;  %vm635_vm5 = vcmask 1044480  }
 0x118   : > { %v449_v11 = vmul.f32 %v4872_v5, %v448_v9  ;;  %v487_v20 = vmul.f32 %v446_v13, %v5236_v25  ;;  %v4860_v25 = vld [vmem:[%s6808_s1 + $0x1] ss:$0 sm:$0xff]  ;;  %vm608_vm6 = vcmask 1045504   ;;  %vm582_vm7 = vcmask 1046528  }
 0x119   : > { %v470_v16 = vmul.f32 0.5, %v469_v10  ;;  %v466_v46 = vsel %vm465_vm3, %v5275_v63, %v462_v41 }
 0x11a   : > { %v450_v14 = vmul.f32 0.5, %v449_v11  ;;  %v493_v31 = vmul.f32 %v4859_v21, %v487_v20  ;;  %v489_v50 = vmul.f32 %v466_v46, %v5234_v24 }
 0x11b   : > { %v471_v27 = vsub.f32 1.5, %v470_v16 }
 0x11c   : > { %v4874_v15 = vpop.eup %4873  ;;  %v451_v17 = vsub.f32 1.5, %v450_v14  ;;  %v499_v40 = vadd.f32 %v4860_v25, %v493_v31  ;;  %v495_v53 = vmul.f32 %v4859_v21, %v489_v50 }
 0x11d   : > { %v478_v18 = vmul.f32 %v4874_v15, %v436_v4  ;;  %vm484_vm10 = vweird.f32 %v4874_v15  ;;  %v472_v35 = vmul.f32 %v4870_v2, %v471_v27 }
 0x11e   : > { %v452_v23 = vmul.f32 %v4872_v5, %v451_v17  ;;  %vm485_vm15 = vmor %vm483_vm9, %vm484_vm10  ;;  %v501_v55 = vadd.f32 %v4860_v25, %v495_v53  ;;  %vm667_vm9 = vcmask 523264   ;;  %vm673_vm10 = vcmask 785408  }
 0x11f   : > { %v479_v26 = vmul.f32 %v4874_v15, %v478_v18  ;;  %v476_v44 = vsel %vm475_vm2, %v4870_v2, %v472_v35 }
 0x120   : > { %v456_v28 = vsel %vm455_vm8, %v4872_v5, %v452_v23  ;;  %v490_v48 = vmul.f32 %v476_v44, %v5247_v36  ;;  %vm579_vm8 = vcmask 1040384  }
 0x121   : > { %v480_v29 = vmul.f32 0.5, %v479_v26  ;;  %v488_v30 = vmul.f32 %v456_v28, %v5249_v37 }
 0x122   : > { %v496_v52 = vmul.f32 %v4859_v21, %v490_v48 }
 0x123   : > { %v481_v33 = vsub.f32 1.5, %v480_v29  ;;  %v494_v34 = vmul.f32 %v4859_v21, %v488_v30 }
 0x124   : > { %v502_v54 = vadd.f32 %v4860_v25, %v496_v52 }
 0x125   : > { %v482_v39 = vmul.f32 %v4874_v15, %v481_v33  ;;  %v500_v37 = vadd.f32 %v4860_v25, %v494_v34 }
 0x126   : > { %v505_v56 = vpack.c.bf16 %v502_v54, %v501_v55  ;;  %v4594_v54 = vld [vmem:[%s6811_s4 + $0x38] sm:$0xff]  ;;  %v4593_v55 = vld [vmem:[%s6811_s4 + $0x30] sm:$0xff] }
 0x127   : > { %v504_v42 = vpack.c.bf16 %v500_v37, %v499_v40  ;;  %v486_v43 = vsel %vm485_vm15, %v4874_v15, %v482_v39  ;;  %748 = vmatpush.bf16.msra.mxu1 %v4594_v54 }
 0x128   : > { %v491_v45 = vmul.f32 %v486_v43, %v5251_v38 }
 0x129   : > { %4375 = vmatmul.msk.bf16.vlgmr.msra.gmra.mxu0 %vm373_vm0, %v504_v42 }
 0x12a   : > { %v497_v47 = vmul.f32 %v4859_v21, %v491_v45 }
 0x12b   : > { %749 = vmatpush.bf16.msra.mxu1 %v4593_v55 }
 0x12c   : > { %v503_v49 = vadd.f32 %v4860_v25, %v497_v47 }
 0x12e   : > { %v506_v51 = vpack.c.bf16 %v503_v49, %v503_v49 }
 0x130   : > { %4377 = vmatmul.msk.bf16.vlgmr.msra.gmra.mxu3 %vm373_vm0, %v506_v51 }
 0x139   : > { %4376 = vmatmul.msk.bf16.gmra.mxu0 %vm373_vm0, %v505_v56  ;;  %v4592_v56 = vld [vmem:[%s6811_s4 + $0x28] sm:$0xff] }
 0x13a   : > { %750 = vmatpush.bf16.msra.mxu1 %v4592_v56 }
 0x1a6   : > { %v543_v38 = vpop.f32.mrf.mxu0 }
 0x1a7   : > { %v5304_v59 = vadd.f32 %v4861_v57, %v543_v38  ;;  %v4591_v38 = vld [vmem:[%s6811_s4 + $0x20] sm:$0xff] }
 0x1a8   : > { %751 = vmatpush.bf16.msra.mxu1 %v4591_v38 }
 0x1a9   : > { %v563_v61 = vrot.slane %v5304_v59, 6 }
 0x1ab   : > { %v5314_v1 = vsel %vm562_vm4, 0.0, %v563_v61 }
 0x1ac   : > { %v609_v6 = vrot.slane %v5314_v1, 2  ;;  %v636_v7 = vrot.slane %v5314_v1, 3  ;;  %v583_v10 = vrot.slane %v5314_v1, 1 }
 0x1ae   : > { %v545_v58 = vpop.f32.mrf.mxu0 }
 0x1af   : > { %v5302_v36 = vadd.f32 %v4861_v57, %v545_v58  ;;  %v4589_v58 = vld [vmem:[%s6811_s4 + $0x10] sm:$0xff] }
 0x1b1   : > { %v564_v24 = vrot.slane %v5302_v36, 6 }
 0x1b3   : > { %v553_v60 = vpop.f32.mrf.mxu3  ;;  %v5309_v62 = vsel %vm562_vm4, %v563_v61, %v564_v24 }
 0x1b4   : > { %v637_v3 = vrot.slane %v5309_v62, 3  ;;  %v610_v4 = vrot.slane %v5309_v62, 2  ;;  %v584_v5 = vrot.slane %v5309_v62, 1  ;;  %v5329_v14 = vadd.f32 %v4861_v57, %v553_v60  ;;  %v4587_v60 = vld [vmem:[%s6811_s4] sm:$0xff] }
 0x1b6   : > { %v548_v63 = vpop.f32.mrf.mxu0  ;;  %v638_v15 = vsel %vm635_vm5, %v636_v7, %v637_v3  ;;  %v611_v16 = vsel %vm608_vm6, %v609_v6, %v610_v4  ;;  %v585_v21 = vsel %vm582_vm7, %v583_v10, %v584_v5  ;;  %v570_v29 = vrot.slane %v5329_v14, 6 }
 0x1b7   : > { %v5311_v0 = vadd.f32 %v4861_v57, %v548_v63 }
 0x1b8   : > { %v580_v49 = vsel %vm579_vm8, %v570_v29, 0.0 }
 0x1b9   : > { %v566_v2 = vrot.slane %v5311_v0, 6  ;;  %v645_v50 = vrot.slane %v580_v49, 3  ;;  %v618_v51 = vrot.slane %v580_v49, 2 }
 0x1bb   : > { %v5323_v8 = vsel %vm562_vm4, %v564_v24, %v566_v2  ;;  %v555_v9 = vpop.f32.mrf.mxu3  ;;  %v4588_v24 = vld [vmem:[%s6811_s4 + $0x8] sm:$0xff] }
 0x1bc   : > { %v639_v11 = vrot.slane %v5323_v8, 3  ;;  %v612_v12 = vrot.slane %v5323_v8, 2  ;;  %v586_v13 = vrot.slane %v5323_v8, 1 }
 0x1be   : > { %v550_v17 = vpop.f32.mrf.mxu0  ;;  %v640_v18 = vsel %vm635_vm5, %v637_v3, %v639_v11  ;;  %v613_v20 = vsel %vm608_vm6, %v610_v4, %v612_v12  ;;  %v587_v22 = vsel %vm582_vm7, %v584_v5, %v586_v13 }
 0x1bf   : > { %v5337_v23 = vadd.f32 %v4861_v57, %v550_v17  ;;  %v4659_v26 = vpack.i.bf16 %v640_v18, %v638_v15  ;;  %v4654_v27 = vpack.i.bf16 %v613_v20, %v611_v16  ;;  %v4649_v28 = vpack.i.bf16 %v587_v22, %v585_v21  ;;  %v4590_v57 = vld [vmem:[%s6811_s4 + $0x18] sm:$0xff] }
 0x1c0   : > { %752 = vmatpush.bf16.msra.mxu1 %v4590_v57 }
 0x1c1   : > { %v568_v30 = vrot.slane %v5337_v23, 6  ;;  %4660 = vrot.lane.b32.xlu0 %v4659_v26, %s5146_s29  ;;  %4655 = vrot.lane.b32.xlu2 %v4654_v27, %s5147_s30 }
 0x1c2   : > { %4650 = vrot.lane.b32.xlu1 %v4649_v28, %s5148_s11 }
 0x1c3   : > { %v5345_v31 = vsel %vm562_vm4, %v566_v2, %v568_v30  ;;  %v5348_v25 = vsel %vm562_vm4, %v568_v30, %v570_v29 }
 0x1c4   : > { %v641_v32 = vrot.slane %v5345_v31, 3  ;;  %v643_v33 = vrot.slane %v5348_v25, 3  ;;  %v614_v34 = vrot.slane %v5345_v31, 2  ;;  %v616_v35 = vrot.slane %v5348_v25, 2  ;;  %753 = vmatpush.bf16.msra.mxu1 %v4589_v58 }
 0x1c5   : > { %v588_v39 = vrot.slane %v5345_v31, 1  ;;  %v590_v40 = vrot.slane %v5348_v25, 1 }
 0x1c6   : > { %v642_v37 = vsel %vm635_vm5, %v639_v11, %v641_v32  ;;  %v644_v41 = vsel %vm635_vm5, %v641_v32, %v643_v33  ;;  %v615_v42 = vsel %vm608_vm6, %v612_v12, %v614_v34  ;;  %v617_v43 = vsel %vm608_vm6, %v614_v34, %v616_v35 }
 0x1c7   : > { %v4674_v44 = vpack.i.bf16 %v644_v41, %v642_v37  ;;  %v4669_v45 = vpack.i.bf16 %v617_v43, %v615_v42  ;;  %v589_v46 = vsel %vm582_vm7, %v586_v13, %v588_v39  ;;  %v591_v47 = vsel %vm582_vm7, %v588_v39, %v590_v40 }
 0x1c8   : > { %v4664_v48 = vpack.i.bf16 %v591_v47, %v589_v46  ;;  %v646_v52 = vsel %vm635_vm5, %v643_v33, %v645_v50  ;;  %v619_v53 = vsel %vm608_vm6, %v616_v35, %v618_v51  ;;  %754 = vmatpush.bf16.msra.mxu1 %v4588_v24 }
 0x1c9   : > { %4675 = vrot.lane.b32.xlu0 %v4674_v44, %s5146_s29  ;;  %v4862_v44 = vld [vmem:[%s6810_s3 + $0x1] ss:$0 sm:$0xff] }
 0x1ca   : > { %4670 = vrot.lane.b32.xlu1 %v4669_v45, %s5147_s30  ;;  %4665 = vrot.lane.b32.xlu2 %v4664_v48, %s5148_s11 }
 0x1cc   : > { %755 = vmatpush.bf16.msra.mxu1 %v4587_v60 }
 0x1d1   : > { %655 = vrot.lane.b32.xlu0 %v646_v52, %s5146_s29 }
 0x1d2   : > { %628 = vrot.lane.b32.xlu1 %v619_v53, %s5147_s30  ;;  %600 = vrot.lane.b32.xlu2 %v590_v40, %s5148_s11 }
 0x21b   : > { %v4656_v61 = vpop.permute.xlu2 %4655 }
 0x21c   : > { %v4658_v5 = vunpack.i.h.bf16 %v4656_v61  ;;  %v4657_v6 = vunpack.i.l.bf16 %v4656_v61 }
 0x224   : > { %v4666_v18 = vpop.permute.xlu2 %4665 }
 0x225   : > { %v4668_v21 = vunpack.i.h.bf16 %v4666_v18  ;;  %v4667_v22 = vunpack.i.l.bf16 %v4666_v18 }
 0x227   : > { %v665_v30 = vsel %vm373_vm0, %v5345_v31, %v4668_v21 }
 0x22c   : > { %v601_v40 = vpop.permute.xlu2 %600 }
 0x22d   : > { %v666_v41 = vsel %vm373_vm0, %v5348_v25, %v601_v40 }
 0x233   : > { %v4661_v2 = vpop.permute.xlu0 %4660 }
 0x234   : > { %v4651_v63 = vpop.permute.xlu1 %4650  ;;  %v4663_v7 = vunpack.i.h.bf16 %v4661_v2  ;;  %v4662_v9 = vunpack.i.l.bf16 %v4661_v2 }
 0x235   : > { %v4653_v3 = vunpack.i.h.bf16 %v4651_v63  ;;  %v4652_v4 = vunpack.i.l.bf16 %v4651_v63 }
 0x237   : > { %v662_v10 = vsel %vm373_vm0, %v5314_v1, %v4652_v4  ;;  %v663_v11 = vsel %vm373_vm0, %v5309_v62, %v4653_v3  ;;  %v664_v62 = vsel %vm373_vm0, %v5323_v8, %v4667_v22 }
 0x238   : > { %v668_v12 = vsel %vm667_vm9, %v662_v10, %v4657_v6  ;;  %v669_v13 = vsel %vm667_vm9, %v663_v11, %v4658_v5 }
 0x239   : > { %v674_v15 = vsel %vm673_vm10, %v668_v12, %v4662_v9  ;;  %v675_v16 = vsel %vm673_vm10, %v669_v13, %v4663_v7 }
 0x23a   : > { %v679_v17 = vpack.c.bf16 %v675_v16, %v674_v15 }
 0x23b   : > { %v4676_v1 = vpop.permute.xlu0 %4675 }
 0x23c   : > { %756 = vmatmul.bf16.vlgmr.msra.gmra.mxu1 %v679_v17  ;;  %v4671_v20 = vpop.permute.xlu1 %4670  ;;  %v4678_v28 = vunpack.i.h.bf16 %v4676_v1  ;;  %v4677_v29 = vunpack.i.l.bf16 %v4676_v1 }
 0x23d   : > { %v4673_v26 = vunpack.i.h.bf16 %v4671_v20  ;;  %v4672_v27 = vunpack.i.l.bf16 %v4671_v20 }
 0x23f   : > { %v670_v32 = vsel %vm667_vm9, %v664_v62, %v4672_v27  ;;  %v671_v33 = vsel %vm667_vm9, %v665_v30, %v4673_v26  ;;  %v4596_v30 = vld [vmem:[%s6812_s5 + $0x8] sm:$0xff] }
 0x240   : > { %v676_v34 = vsel %vm673_vm10, %v670_v32, %v4677_v29  ;;  %v677_v35 = vsel %vm673_vm10, %v671_v33, %v4678_v28  ;;  %1012 = vmatpush.bf16.msrb.mxu1 %v4596_v30  ;;  %4626 = vmatpush.bf16.msra.mxu2 %v4596_v30 }
 0x241   : > { %v680_v39 = vpack.c.bf16 %v677_v35, %v676_v34 }
 0x243   : > { %v656_v42 = vpop.permute.xlu0 %655 }
 0x244   : > { %v629_v37 = vpop.permute.xlu1 %628 }
 0x245   : > { %v672_v8 = vsel %vm667_vm9, %v666_v41, %v629_v37 }
 0x246   : > { %v678_v31 = vsel %vm673_vm10, %v672_v8, %v656_v42 }
 0x247   : > { %v681_v43 = vpack.c.bf16 %v678_v31, %v678_v31 }
 0x24c   : > { %761 = vmatmul.bf16.gmra.mxu1 %v680_v39 }
 0x25c   : > { %766 = vmatmul.bf16.gmra.mxu1 %v681_v43 }
 0x2b9   : > { %v757_v45 = vpop.f32.mrf.mxu1 }
 0x2ba   : > { %v5417_v46 = vadd.f32 %v4862_v44, %v757_v45 }
 0x2bc   : > { %v5420_v47 = vmul.f32 0.70710677, %v5417_v46 }
 0x2be   : > { %v781_v48 = vand.u32 2147483647, %v5420_v47 }
 0x2c0   : > { %v786_v25 = vmul.f32 0.3275911, %v781_v48  ;;  %v916_v13 = vsub.f32 0.0, %v781_v48 }
 0x2c1   : > { %v759_v49 = vpop.f32.mrf.mxu1 }
 0x2c2   : > { %v791_v50 = vadd.f32 1.0, %v786_v25  ;;  %v5423_v51 = vadd.f32 %v4862_v44, %v759_v49  ;;  %v921_v22 = vmul.f32 %v916_v13, %v781_v48  ;;  %v4595_v25 = vld [vmem:[%s6812_s5] sm:$0xff] }
 0x2c3   : > { %1013 = vmatpush.bf16.msrb.mxu1 %v4595_v25  ;;  %4627 = vmatpush.bf16.msra.mxu2 %v4595_v25 }
 0x2c4   : > { %4875 = vrcp.f32 %v791_v50  ;;  %v5426_v52 = vmul.f32 0.70710677, %v5423_v51  ;;  %v807_v61 = vand.u32 2147483648, %v791_v50  ;;  %v805_v3 = vand.u32 2147483647, %v791_v50 }
 0x2c5   : > { %vm801_vm12 = vweird.f32 %v791_v50  ;;  %v926_v40 = vmul.f32 1.442695, %v921_v22 }
 0x2c6   : > { %v5429_v53 = vand.u32 2147483647, %v5426_v52  ;;  %v808_v7 = vor.u32 1.1754944e-38, %v807_v61  ;;  %vm806_vm14 = vcmp.eq.f32.partialorder %v805_v3, 8.507059e+37 }
 0x2c8   : > { %v787_v54 = vmul.f32 0.3275911, %v5429_v53  ;;  %v917_v42 = vsub.f32 0.0, %v5429_v53 }
 0x2c9   : > { %v762_v55 = vpop.f32.mrf.mxu1 }
 0x2ca   : > { %v4876_v56 = vpop.eup %4875  ;;  %v5432_v38 = vadd.f32 %v4862_v44, %v762_v55  ;;  %v792_v58 = vadd.f32 1.0, %v787_v54 }
 0x2cb   : > { %v797_v57 = vmul.f32 %v4876_v56, %v791_v50  ;;  %vm802_vm11 = vweird.f32 %v4876_v56 }
 0x2cc   : > { %v5435_v24 = vmul.f32 0.70710677, %v5432_v38  ;;  %4877 = vrcp.f32 %v792_v58  ;;  %vm803_vm13 = vmor %vm801_vm12, %vm802_vm11  ;;  %v822_v26 = vand.u32 2147483648, %v792_v58  ;;  %v820_v1 = vand.u32 2147483647, %v792_v58 }
 0x2cd   : > { %v798_v60 = vsub.f32 1.0, %v797_v57  ;;  %vm816_vm2 = vweird.f32 %v792_v58 }
 0x2ce   : > { %v5438_v63 = vand.u32 2147483647, %v5435_v24  ;;  %v823_v37 = vor.u32 1.1754944e-38, %v822_v26  ;;  %vm821_vm4 = vcmp.eq.f32.partialorder %v820_v1, 8.507059e+37 }
 0x2cf   : > { %v799_v2 = vmul.f32 %v4876_v56, %v798_v60 }
 0x2d0   : > { %v788_v4 = vmul.f32 0.3275911, %v5438_v63 }
 0x2d1   : > { %v800_v5 = vadd.f32 %v4876_v56, %v799_v2  ;;  %v764_v6 = vpop.f32.mrf.mxu1 }
 0x2d2   : > { %v5441_v9 = vadd.f32 1.0, %v788_v4  ;;  %v5443_v10 = vadd.f32 %v4862_v44, %v764_v6  ;;  %v4878_v11 = vpop.eup %4877  ;;  %v918_v6 = vsub.f32 0.0, %v5438_v63 }
 0x2d3   : > { %v804_v12 = vsel %vm803_vm13, %v4876_v56, %v800_v5  ;;  %v812_v16 = vmul.f32 %v4878_v11, %v792_v58  ;;  %vm817_vm15 = vweird.f32 %v4878_v11  ;;  %v922_v58 = vmul.f32 %v917_v42, %v5429_v53 }
 0x2d4   : > { %v5445_v15 = vsel %vm806_vm14, %v808_v7, %v804_v12  ;;  %4879 = vrcp.f32 %v5441_v9  ;;  %v5450_v20 = vmul.f32 0.70710677, %v5443_v10  ;;  %vm818_vm3 = vmor %vm816_vm2, %vm817_vm15  ;;  %v837_v50 = vand.u32 2147483648, %v5441_v9 }
 0x2d5   : > { %v871_v17 = vmul.f32 1.0614054, %v5445_v15  ;;  %v813_v18 = vsub.f32 1.0, %v812_v16  ;;  %v835_v56 = vand.u32 2147483647, %v5441_v9  ;;  %vm831_vm6 = vweird.f32 %v5441_v9 }
 0x2d6   : > { %v5453_v28 = vand.u32 2147483647, %v5450_v20  ;;  %v838_v5 = vor.u32 1.1754944e-38, %v837_v50  ;;  %v928_v16 = vmul.f32 1.442695, %v922_v58  ;;  %v923_v1 = vmul.f32 %v918_v6, %v5438_v63 }
 0x2d7   : > { %v876_v21 = vadd.f32 -1.4531521, %v871_v17  ;;  %v814_v27 = vmul.f32 %v4878_v11, %v813_v18  ;;  %vm836_vm8 = vcmp.eq.f32.partialorder %v835_v56, 8.507059e+37  ;;  %vm946_vm14 = vcmp.ge.f32.partialorder %v5420_v47, 0.0 }
 0x2d8   : > { %v789_v34 = vmul.f32 0.3275911, %v5453_v28  ;;  %v771_v47 = vmul.f32 0.5, %v5417_v46 }
 0x2d9   : > { %v881_v29 = vmul.f32 %v876_v21, %v5445_v15  ;;  %v767_v62 = vpop.f32.mrf.mxu1  ;;  %v815_v33 = vadd.f32 %v4878_v11, %v814_v27 }
 0x2da   : > { %v4880_v32 = vpop.eup %4879  ;;  %v5460_v35 = vadd.f32 %v4862_v44, %v767_v62  ;;  %v5464_v31 = vadd.f32 1.0, %v789_v34 }
 0x2db   : > { %v886_v39 = vadd.f32 1.4214138, %v881_v29  ;;  %v827_v41 = vmul.f32 %v4880_v32, %v5441_v9  ;;  %v819_v8 = vsel %vm818_vm3, %v4878_v11, %v815_v33  ;;  %vm832_vm5 = vweird.f32 %v4880_v32 }
 0x2dc   : > { %v5467_v45 = vsel %vm821_vm4, %v823_v37, %v819_v8  ;;  %v5470_v48 = vmul.f32 0.70710677, %v5460_v35  ;;  %4881 = vrcp.f32 %v5464_v31  ;;  %vm833_vm7 = vmor %vm831_vm6, %vm832_vm5  ;;  %v850_v33 = vand.u32 2147483647, %v5464_v31 }
 0x2dd   : > { %v891_v43 = vmul.f32 %v886_v39, %v5445_v15  ;;  %v828_v44 = vsub.f32 1.0, %v827_v41  ;;  %v872_v49 = vmul.f32 1.0614054, %v5467_v45  ;;  %4883 = vpow2.f32 %v926_v40 }
 0x2de   : > { %v5481_v60 = vand.u32 2147483647, %v5470_v48  ;;  %v930_v41 = vmul.f32 1.442695, %v923_v1  ;;  %vm846_vm11 = vweird.f32 %v5464_v31  ;;  %vm851_vm13 = vcmp.eq.f32.partialorder %v850_v33, 8.507059e+37 }
 0x2df   : > { %v896_v54 = vadd.f32 -0.28449672, %v891_v43  ;;  %v829_v55 = vmul.f32 %v4880_v32, %v828_v44  ;;  %v877_v57 = vadd.f32 -1.4531521, %v872_v49  ;;  %v919_v49 = vsub.f32 0.0, %v5453_v28 }
 0x2e0   : > { %v790_v7 = vmul.f32 0.3275911, %v5481_v60  ;;  %vm947_vm3 = vcmp.ge.f32.partialorder %v5426_v52, 0.0  ;;  %v920_v33 = vsub.f32 0.0, %v5481_v60  ;;  %vm948_vm6 = vcmp.ge.f32.partialorder %v5435_v24, 0.0 }
 0x2e1   : > { %v901_v61 = vmul.f32 %v896_v54, %v5445_v15  ;;  %v830_v2 = vadd.f32 %v4880_v32, %v829_v55  ;;  %v769_v3 = vpop.f32.mrf.mxu1  ;;  %v882_v4 = vmul.f32 %v877_v57, %v5467_v45 }
 0x2e2   : > { %v4882_v53 = vpop.eup %4881  ;;  %v5490_v18 = vadd.f32 1.0, %v790_v7 }
 0x2e3   : > { %v906_v11 = vadd.f32 0.2548296, %v901_v61  ;;  %v834_v12 = vsel %vm833_vm7, %v4880_v32, %v830_v2  ;;  %v887_v13 = vadd.f32 1.4214138, %v882_v4  ;;  %v842_v22 = vmul.f32 %v4882_v53, %v5464_v31  ;;  %v4884_v26 = vpop.eup %4883 }
 0x2e4   : > { %v5488_v17 = vsel %vm836_vm8, %v838_v5, %v834_v12  ;;  %4885 = vrcp.f32 %v5490_v18  ;;  %vm847_vm10 = vweird.f32 %v4882_v53  ;;  %v924_v5 = vmul.f32 %v919_v49, %v5453_v28 }
 0x2e5   : > { %v911_v9 = vmul.f32 %v906_v11, %v5445_v15  ;;  %v873_v21 = vmul.f32 1.0614054, %v5488_v17  ;;  %v892_v27 = vmul.f32 %v887_v13, %v5467_v45  ;;  %v843_v30 = vsub.f32 1.0, %v842_v22  ;;  %vm848_vm12 = vmor %vm846_vm11, %vm847_vm10 }
 0x2e6   : > { %4887 = vpow2.f32 %v928_v16  ;;  %v852_v15 = vand.u32 2147483648, %v5464_v31  ;;  %v865_v6 = vand.u32 2147483647, %v5490_v18  ;;  %v867_v7 = vand.u32 2147483648, %v5490_v18 }
 0x2e7   : > { %v936_v29 = vmul.f32 %v4884_v26, %v911_v9  ;;  %v878_v62 = vadd.f32 -1.4531521, %v873_v21  ;;  %v897_v32 = vadd.f32 -0.28449672, %v892_v27  ;;  %v844_v40 = vmul.f32 %v4882_v53, %v843_v30 }
 0x2e8   : > { %v853_v25 = vor.u32 1.1754944e-38, %v852_v15  ;;  %4889 = vpow2.f32 %v930_v41  ;;  %v772_v13 = vmul.f32 0.5, %v5423_v51  ;;  %vm861_vm2 = vweird.f32 %v5490_v18 }
 0x2e9   : > { %v941_v34 = vsub.f32 1.0, %v936_v29  ;;  %v883_v39 = vmul.f32 %v878_v62, %v5488_v17  ;;  %v902_v37 = vmul.f32 %v897_v32, %v5467_v45  ;;  %v845_v42 = vadd.f32 %v4882_v53, %v844_v40 }
 0x2ea   : > { %v4886_v43 = vpop.eup %4885  ;;  %v932_v27 = vmul.f32 1.442695, %v924_v5  ;;  %v868_v1 = vor.u32 1.1754944e-38, %v867_v7  ;;  %vm866_vm5 = vcmp.eq.f32.partialorder %v865_v6, 8.507059e+37  ;;  %v773_v5 = vmul.f32 0.5, %v5432_v38 }
 0x2eb   : > { %v951_v63 = vsub.f32 0.0, %v941_v34  ;;  %v888_v8 = vadd.f32 1.4214138, %v883_v39  ;;  %v907_v44 = vadd.f32 0.2548296, %v902_v37  ;;  %v849_v54 = vsel %vm848_vm12, %v4882_v53, %v845_v42 }
 0x2ec   : > { %v857_v55 = vmul.f32 %v4886_v43, %v5490_v18  ;;  %v4888_v56 = vpop.eup %4887  ;;  %v854_v58 = vsel %vm851_vm13, %v853_v25, %v849_v54  ;;  %vm862_vm15 = vweird.f32 %v4886_v43  ;;  %4891 = vpow2.f32 %v932_v27 }
 0x2ed   : > { %v893_v50 = vmul.f32 %v888_v8, %v5488_v17  ;;  %v912_v57 = vmul.f32 %v907_v44, %v5467_v45  ;;  %v956_v31 = vsel %vm946_vm14, %v941_v34, %v951_v63  ;;  %v874_v2 = vmul.f32 1.0614054, %v854_v58  ;;  %vm863_vm4 = vmor %vm861_vm2, %vm862_vm15 }
 0x2ee   : > { %v858_v3 = vsub.f32 1.0, %v857_v55  ;;  %v961_v45 = vadd.f32 1.0, %v956_v31  ;;  %v4890_v28 = vpop.eup %4889  ;;  %v925_v63 = vmul.f32 %v920_v33, %v5481_v60  ;;  %vm949_vm7 = vcmp.ge.f32.partialorder %v5450_v20, 0.0 }
 0x2ef   : > { %v898_v61 = vadd.f32 -0.28449672, %v893_v50  ;;  %v937_v4 = vmul.f32 %v4888_v56, %v912_v57  ;;  %v879_v12 = vadd.f32 -1.4531521, %v874_v2  ;;  %vm950_vm8 = vcmp.ge.f32.partialorder %v5470_v48, 0.0 }
 0x2f0   : > { %v859_v53 = vmul.f32 %v4886_v43, %v858_v3  ;;  %v966_v30 = vmul.f32 %v961_v45, %v771_v47  ;;  %v934_v54 = vmul.f32 1.442695, %v925_v63  ;;  %vm1206_vm10 = vcmask 64512  }
 0x2f1   : > { %v903_v11 = vmul.f32 %v898_v61, %v5488_v17  ;;  %v942_v16 = vsub.f32 1.0, %v937_v4  ;;  %v884_v21 = vmul.f32 %v879_v12, %v854_v58  ;;  %v774_v12 = vmul.f32 0.5, %v5443_v10 }
 0x2f2   : > { %v860_v22 = vadd.f32 %v4886_v43, %v859_v53  ;;  %v4892_v60 = vpop.eup %4891  ;;  %4893 = vpow2.f32 %v934_v54  ;;  %vm1467_vm11 = vcmask 318464   ;;  %vm1739_vm12 = vcmask 1042432  }
 0x2f3   : > { %v908_v9 = vadd.f32 0.2548296, %v903_v11  ;;  %v952_v26 = vsub.f32 0.0, %v942_v16  ;;  %v889_v62 = vadd.f32 1.4214138, %v884_v21  ;;  %v775_v21 = vmul.f32 0.5, %v5460_v35 }
 0x2f4   : > { %v864_v46 = vsel %vm863_vm4, %v4886_v43, %v860_v22  ;;  %vm1740_vm13 = vcmask 1043456   ;;  %vm1480_vm14 = vcmask 317440   ;;  %vm2002_vm15 = vcmask 130048  }
 0x2f5   : > { %v913_v29 = vmul.f32 %v908_v9, %v5488_v17  ;;  %v957_v51 = vsel %vm947_vm3, %v942_v16, %v952_v26  ;;  %v869_v32 = vsel %vm866_vm5, %v868_v1, %v864_v46  ;;  %v894_v18 = vmul.f32 %v889_v62, %v854_v58 }
 0x2f6   : > { %v962_v15 = vadd.f32 1.0, %v957_v51  ;;  %v875_v39 = vmul.f32 1.0614054, %v869_v32  ;;  %v5520_v17 = vadd.f32 %v966_v30, %v5304_v59  ;;  %vm2008_vm2 = vcmask 195584  }
 0x2f7   : > { %v938_v34 = vmul.f32 %v4890_v28, %v913_v29  ;;  %v899_v37 = vadd.f32 -0.28449672, %v894_v18 }
 0x2f8   : > { %v967_v40 = vmul.f32 %v962_v15, %v772_v13  ;;  %v880_v41 = vadd.f32 -1.4531521, %v875_v39  ;;  %v4894_v7 = vpop.eup %4893 }
 0x2f9   : > { %v943_v52 = vsub.f32 1.0, %v938_v34  ;;  %v904_v42 = vmul.f32 %v899_v37, %v854_v58 }
 0x2fa   : > { %v5523_v8 = vadd.f32 %v967_v40, %v5302_v36  ;;  %v885_v43 = vmul.f32 %v880_v41, %v869_v32 }
 0x2fb   : > { %v953_v44 = vsub.f32 0.0, %v943_v52  ;;  %v909_v25 = vadd.f32 0.2548296, %v904_v42 }
 0x2fc   : > { %v890_v49 = vadd.f32 1.4214138, %v885_v43  ;;  %v977_v50 = vpack.c.bf16 %v5523_v8, %v5520_v17 }
 0x2fd   : > { %v914_v55 = vmul.f32 %v909_v25, %v854_v58  ;;  %v958_v59 = vsel %vm948_vm6, %v943_v52, %v953_v44 }
 0x2fe   : > { %v895_v56 = vmul.f32 %v890_v49, %v869_v32  ;;  %4418 = vmatmul.msk.bf16.vlgmr.msrb.gmra.mxu1 %vm373_vm0, %v977_v50  ;;  %v963_v2 = vadd.f32 1.0, %v958_v59 }
 0x2ff   : > { %v939_v57 = vmul.f32 %v4892_v60, %v914_v55 }
 0x300   : > { %v900_v36 = vadd.f32 -0.28449672, %v895_v56  ;;  %v968_v11 = vmul.f32 %v963_v2, %v773_v5 }
 0x301   : > { %v944_v31 = vsub.f32 1.0, %v939_v57 }
 0x302   : > { %v905_v61 = vmul.f32 %v900_v36, %v869_v32  ;;  %v5533_v13 = vadd.f32 %v968_v11, %v5311_v0 }
 0x303   : > { %v954_v3 = vsub.f32 0.0, %v944_v31 }
 0x304   : > { %v910_v4 = vadd.f32 0.2548296, %v905_v61 }
 0x305   : > { %v959_v58 = vsel %vm949_vm7, %v944_v31, %v954_v3 }
 0x306   : > { %v915_v6 = vmul.f32 %v910_v4, %v869_v32  ;;  %v964_v24 = vadd.f32 1.0, %v959_v58 }
 0x308   : > { %v940_v53 = vmul.f32 %v4894_v7, %v915_v6  ;;  %v969_v47 = vmul.f32 %v964_v24, %v774_v12 }
 0x30a   : > { %v945_v45 = vsub.f32 1.0, %v940_v53  ;;  %v5536_v16 = vadd.f32 %v969_v47, %v5337_v23  ;;  %v976_v23 = vld [vmem:[%s6816_s9] sm:$0xff] }
 0x30b   : > { %v984_v48 = vperm.slane %v976_v23, 0 }
 0x30c   : > { %v955_v9 = vsub.f32 0.0, %v945_v45  ;;  %v978_v38 = vpack.c.bf16 %v5536_v16, %v5533_v13 }
 0x30e   : > { %v960_v20 = vsel %vm950_vm8, %v945_v45, %v955_v9  ;;  %4419 = vmatmul.msk.bf16.vlgmr.msra.gmra.mxu2 %vm373_vm0, %v978_v38 }
 0x30f   : > { %v965_v10 = vadd.f32 1.0, %v960_v20 }
 0x311   : > { %v970_v22 = vmul.f32 %v965_v10, %v775_v21 }
 0x313   : > { %v5544_v28 = vadd.f32 %v970_v22, %v5329_v14 }
 0x315   : > { %v979_v0 = vpack.c.bf16 %v5544_v28, %v5544_v28 }
 0x31e   : > { %4420 = vmatmul.msk.bf16.gmra.mxu2 %vm373_vm0, %v979_v0 }
 0x37b   : > { %v1015_v26 = vpop.f32.mrf.mxu1 }
 0x37c   : > { %v1016_v27 = vadd.f32 %v1015_v26, %v984_v48 }
 0x37e   : > { %v1029_v1 = vmul.f32 0.35355338, %v1016_v27  ;;  %v1154_v3 = vpack.c.bf16 %v1016_v27, %v1016_v27 }
 0x380   : > { %v1084_v46 = vpack.c.bf16 %v1029_v1, %v1029_v1  ;;  %v1192_v58 = vunpack.c.l.b16 %v1154_v3 }
 0x382   : > { %v5554_v51 = vunpack.c.l.b16 %v1084_v46 }
 0x383   : > { %v1017_v29 = vpop.f32.mrf.mxu1 }
 0x384   : > { %v1018_v62 = vadd.f32 %v1017_v29, %v984_v48 }
 0x386   : > { %v1030_v35 = vmul.f32 0.35355338, %v1018_v62  ;;  %v1155_v61 = vpack.c.bf16 %v1018_v62, %v1018_v62  ;;  %v4704_v7 = vpack.i.bf16 %v1018_v62, %v1016_v27 }
 0x388   : > { %v5552_v30 = vpack.i.bf16 %v1030_v35, %v1029_v1  ;;  %v1085_v14 = vpack.c.bf16 %v1030_v35, %v1030_v35  ;;  %v1193_v5 = vunpack.c.l.b16 %v1155_v61 }
 0x38a   : > { %v5556_v32 = vunpack.c.l.b16 %v1085_v14  ;;  %v5585_v6 = vpack.c.b16 %v1193_v5, %v1192_v58 }
 0x38c   : > { %v1184_v33 = vpack.c.b16 %v5556_v32, %v5554_v51 }
 0x391   : > { %v1020_v15 = vpop.f32.mrf.mxu2 }
 0x392   : > { %v1021_v34 = vadd.f32 %v1020_v15, %v984_v48 }
 0x394   : > { %v1031_v39 = vmul.f32 0.35355338, %v1021_v34  ;;  %v1156_v57 = vpack.c.bf16 %v1021_v34, %v1021_v34 }
 0x396   : > { %v1086_v37 = vpack.c.bf16 %v1031_v39, %v1031_v39  ;;  %v1194_v2 = vunpack.c.l.b16 %v1156_v57 }
 0x398   : > { %v5562_v43 = vunpack.c.l.b16 %v1086_v37 }
 0x399   : > { %v1022_v18 = vpop.f32.mrf.mxu2 }
 0x39a   : > { %v1023_v40 = vadd.f32 %v1022_v18, %v984_v48 }
 0x39c   : > { %v1032_v52 = vmul.f32 0.35355338, %v1023_v40  ;;  %v1157_v60 = vpack.c.bf16 %v1023_v40, %v1023_v40  ;;  %v4694_v36 = vpack.i.bf16 %v1016_v27, %v1023_v40  ;;  %v4699_v11 = vpack.i.bf16 %v1023_v40, %v1021_v34 }
 0x39e   : > { %v5560_v41 = vpack.i.bf16 %v1032_v52, %v1031_v39  ;;  %v1087_v63 = vpack.c.bf16 %v1032_v52, %v1032_v52  ;;  %v1195_v31 = vunpack.c.l.b16 %v1157_v60 }
 0x3a0   : > { %v5564_v44 = vunpack.c.l.b16 %v1087_v63  ;;  %v5581_v4 = vpack.c.b16 %v1195_v31, %v1194_v2 }
 0x3a1   : > { %v1025_v42 = vpop.f32.mrf.mxu2 }
 0x3a2   : > { %v5566_v25 = vadd.f32 %v1025_v42, %v984_v48  ;;  %v1185_v49 = vpack.c.b16 %v5564_v44, %v5562_v43 }
 0x3a4   : > { %v4684_v50 = vpack.i.bf16 %v1021_v34, %v5566_v25  ;;  %v1158_v54 = vpack.c.bf16 %v5566_v25, %v5566_v25  ;;  %v1033_v51 = vmul.f32 0.35355338, %v5566_v25 }
 0x3a6   : > { %4685 = vrot.lane.b32.xlu0 %v4684_v50, %s5149_s22  ;;  %4680 = vrot.lane.b32.xlu1 %v4684_v50, %s5150_s23  ;;  %v1196_v55 = vunpack.c.l.b16 %v1158_v54  ;;  %v1088_v32 = vpack.c.bf16 %v1033_v51, %v1033_v51 }
 0x3a8   : > { %v5575_v56 = vpack.c.b16 %v1196_v55, %v1196_v55 }
 0x3a9   : > { %v1027_v59 = vpop.f32.mrf.mxu2 }
 0x3aa   : > { %1204 = vrot.lane.b32.xlu2 %v5575_v56, %s5146_s29 }
 0x3ae   : > { %4695 = vrot.lane.b32.xlu0 %v4694_v36, %s5149_s22  ;;  %4690 = vrot.lane.b32.xlu1 %v4694_v36, %s5150_s23 }
 0x3b2   : > { %1202 = vrot.lane.b32.xlu2 %v5581_v4, %s5146_s29 }
 0x3b6   : > { %1126 = vrot.lane.b32.xlu0 %v1018_v62, %s5150_s23  ;;  %1200 = vrot.lane.b32.xlu1 %v5585_v6, %s5146_s29 }
 0x3ba   : > { %1117 = vrot.lane.b32.xlu2 %v5566_v25, %s5151_s24 }
 0x3be   : > { %4705 = vrot.lane.b32.xlu0 %v4704_v7, %s5151_s24  ;;  %4700 = vrot.lane.b32.xlu1 %v4699_v11, %s5151_s24 }
 0x3c2   : > { %1141 = vrot.lane.b32.xlu2 %v1018_v62, %s5149_s22 }
 0x404   : > { %v1205_v12 = vpop.permute.xlu2 %1204 }
 0x405   : > { %v1223_v24 = vsel %vm1206_vm10, %v1205_v12, 0 }
 0x406   : > { %1230 = vmatpush.bf16.xpose.msrb.mxu3 %v1223_v24 }
 0x40c   : > { %v1203_v53 = vpop.permute.xlu2 %1202 }
 0x40d   : > { %v1220_v47 = vsel %vm1206_vm10, %v1203_v53, 0 }
 0x40e   : > { %1231 = vmatpush.bf16.xpose.msrb.mxu3 %v1220_v47 }
 0x414   : > { %v1118_v21 = vpop.permute.xlu2 %1117 }
 0x415   : > { %v1163_v27 = vpack.c.bf16 %v1118_v21, %v1118_v21 }
 0x417   : > { %v1270_v18 = vunpack.c.l.b16 %v1163_v27 }
 0x418   : > { %v4686_v45 = vpop.permute.xlu0 %4685  ;;  %v4681_v9 = vpop.permute.xlu1 %4680 }
 0x419   : > { %v4687_v38 = vunpack.i.l.bf16 %v4686_v45  ;;  %v4682_v20 = vunpack.i.l.bf16 %v4681_v9  ;;  %v4688_v22 = vunpack.i.h.bf16 %v4686_v45  ;;  %v4683_v23 = vunpack.i.h.bf16 %v4681_v9 }
 0x41a   : > { %v5605_v55 = vpack.c.b16 %v1270_v18, %v1270_v18 }
 0x41b   : > { %v1173_v10 = vpack.c.bf16 %v4687_v38, %v4687_v38  ;;  %v1168_v0 = vpack.c.bf16 %v4682_v20, %v4682_v20  ;;  %v1171_v29 = vpack.c.bf16 %v4688_v22, %v4688_v22  ;;  %v1166_v14 = vpack.c.bf16 %v4683_v23, %v4683_v23 }
 0x41c   : > { %v1142_v60 = vpop.permute.xlu2 %1141 }
 0x41d   : > { %v1416_v48 = vunpack.c.l.b16 %v1173_v10  ;;  %v1343_v26 = vunpack.c.l.b16 %v1168_v0  ;;  %v1414_v52 = vunpack.c.l.b16 %v1171_v29  ;;  %v1341_v63 = vunpack.c.l.b16 %v1166_v14 }
 0x41e   : > { %v1170_v58 = vpack.c.bf16 %v1142_v60, %v1142_v60 }
 0x41f   : > { %v5597_v1 = vpack.c.b16 %v1416_v48, %v1416_v48  ;;  %v5599_v46 = vpack.c.b16 %v1343_v26, %v1343_v26 }
 0x420   : > { %v4696_v62 = vpop.permute.xlu0 %4695  ;;  %v4691_v35 = vpop.permute.xlu1 %4690  ;;  %v1413_v24 = vunpack.c.l.b16 %v1170_v58 }
 0x421   : > { %v4697_v15 = vunpack.i.l.bf16 %v4696_v62  ;;  %v4692_v34 = vunpack.i.l.bf16 %v4691_v35  ;;  %1424 = vrot.lane.b32.xlu1 %v5597_v1, %s5146_s29  ;;  %1351 = vrot.lane.b32.xlu2 %v5599_v46, %s5146_s29  ;;  %v4698_v37 = vunpack.i.h.bf16 %v4696_v62  ;;  %v4693_v50 = vunpack.i.h.bf16 %v4691_v35 }
 0x423   : > { %v1172_v39 = vpack.c.bf16 %v4697_v15, %v4697_v15  ;;  %v1167_v40 = vpack.c.bf16 %v4692_v34, %v4692_v34  ;;  %v1169_v36 = vpack.c.bf16 %v4698_v37, %v4698_v37  ;;  %v1164_v2 = vpack.c.bf16 %v4693_v50, %v4693_v50 }
 0x425   : > { %v1415_v42 = vunpack.c.l.b16 %v1172_v39  ;;  %v1342_v54 = vunpack.c.l.b16 %v1167_v40  ;;  %v1412_v11 = vunpack.c.l.b16 %v1169_v36  ;;  %v1339_v12 = vunpack.c.l.b16 %v1164_v2 }
 0x427   : > { %v1418_v59 = vpack.c.b16 %v1415_v42, %v1414_v52  ;;  %v1345_v57 = vpack.c.b16 %v1342_v54, %v1341_v63  ;;  %v1417_v9 = vpack.c.b16 %v1413_v24, %v1412_v11 }
 0x428   : > { %v1127_v31 = vpop.permute.xlu0 %1126  ;;  %v1201_v61 = vpop.permute.xlu1 %1200 }
 0x429   : > { %v1165_v3 = vpack.c.bf16 %v1127_v31, %v1127_v31  ;;  %1349 = vrot.lane.b32.xlu0 %v1345_v57, %s5146_s29  ;;  %1278 = vrot.lane.b32.xlu1 %v5605_v55, %s5146_s29  ;;  %v1217_v5 = vsel %vm1206_vm10, %v1201_v61, 0 }
 0x42a   : > { %1422 = vrot.lane.b32.xlu2 %v1418_v59, %s5146_s29  ;;  %1232 = vmatpush.bf16.xpose.msrb.mxu3 %v1217_v5 }
 0x42b   : > { %v1340_v7 = vunpack.c.l.b16 %v1165_v3 }
 0x42d   : > { %v1344_v53 = vpack.c.b16 %v1340_v7, %v1339_v12 }
 0x430   : > { %v4706_v47 = vpop.permute.xlu0 %4705  ;;  %v4701_v45 = vpop.permute.xlu1 %4700 }
 0x431   : > { %v4708_v38 = vunpack.i.h.bf16 %v4706_v47  ;;  %v4707_v20 = vunpack.i.l.bf16 %v4706_v47  ;;  %v4703_v10 = vunpack.i.h.bf16 %v4701_v45  ;;  %v4702_v21 = vunpack.i.l.bf16 %v4701_v45  ;;  %1347 = vrot.lane.b32.xlu0 %v1344_v53, %s5146_s29  ;;  %4710 = vrot.lane.b32.xlu1 %v5552_v30, %s5150_s23 }
 0x432   : > { %1420 = vrot.lane.b32.xlu2 %v1417_v9, %s5146_s29  ;;  %4421 = vmatmul.msk.bf16.vlgmr.msrb.gmra.mxu3 %vm1206_vm10, %v1184_v33 }
 0x433   : > { %v1160_v22 = vpack.c.bf16 %v4708_v38, %v4708_v38  ;;  %v1159_v0 = vpack.c.bf16 %v4707_v20, %v4707_v20  ;;  %v1162_v23 = vpack.c.bf16 %v4703_v10, %v4703_v10  ;;  %v1161_v48 = vpack.c.bf16 %v4702_v21, %v4702_v21 }
 0x435   : > { %v1267_v26 = vunpack.c.l.b16 %v1160_v22  ;;  %v1266_v27 = vunpack.c.l.b16 %v1159_v0  ;;  %v1269_v29 = vunpack.c.l.b16 %v1162_v23  ;;  %v1268_v62 = vunpack.c.l.b16 %v1161_v48 }
 0x437   : > { %v1272_v35 = vpack.c.b16 %v1269_v29, %v1268_v62  ;;  %v1271_v14 = vpack.c.b16 %v1267_v26, %v1266_v27 }
 0x439   : > { %4715 = vrot.lane.b32.xlu0 %v5552_v30, %s5149_s22  ;;  %1274 = vrot.lane.b32.xlu1 %v1271_v14, %s5146_s29 }
 0x43a   : > { %1276 = vrot.lane.b32.xlu2 %v1272_v35, %s5146_s29 }
 0x441   : > { %4720 = vrot.lane.b32.xlu0 %v5552_v30, %s5151_s24  ;;  %4730 = vrot.lane.b32.xlu1 %v5560_v41, %s5149_s22  ;;  %v1183_v30 = vunpack.c.l.b16 %v1088_v32 }
 0x442   : > { %4725 = vrot.lane.b32.xlu2 %v5560_v41, %s5150_s23  ;;  %4422 = vmatmul.msk.bf16.gmra.mxu3 %vm1206_vm10, %v1185_v49 }
 0x443   : > { %v1186_v33 = vpack.c.b16 %v1183_v30, %v1183_v30 }
 0x449   : > { %4735 = vrot.lane.b32.xlu0 %v5560_v41, %s5151_s24  ;;  %1077 = vrot.lane.b32.xlu1 %v1033_v51, %s5149_s22 }
 0x44a   : > { %1062 = vrot.lane.b32.xlu2 %v1033_v51, %s5150_s23 }
 0x451   : > { %1047 = vrot.lane.b32.xlu0 %v1033_v51, %s5151_s24  ;;  %1896 = vrot.lane.b32.xlu1 %v1418_v59, %s5147_s30 }
 0x452   : > { %1838 = vrot.lane.b32.xlu2 %v1344_v53, %s5147_s30  ;;  %4423 = vmatmul.msk.bf16.gmra.mxu3 %vm1206_vm10, %v1186_v33  ;;  %v5152_v33 = vmov 65535  }
 0x459   : > { %1840 = vrot.lane.b32.xlu0 %v1345_v57, %s5147_s30  ;;  %1784 = vrot.lane.b32.xlu1 %v1272_v35, %s5147_s30 }
 0x45a   : > { %1894 = vrot.lane.b32.xlu2 %v1417_v9, %s5147_s30 }
 0x461   : > { %1782 = vrot.lane.b32.xlu0 %v1271_v14, %s5147_s30  ;;  %1898 = vrot.lane.b32.xlu1 %v5597_v1, %s5147_s30 }
 0x462   : > { %1842 = vrot.lane.b32.xlu2 %v5599_v46, %s5147_s30 }
 0x469   : > { %1786 = vrot.lane.b32.xlu1 %v5605_v55, %s5147_s30 }
 0x47b   : > { %v1352_v41 = vpop.permute.xlu2 %1351 }
 0x47c   : > { %v1369_v43 = vsel %vm1206_vm10, %v1352_v41, 0  ;;  %v1741_v41 = vsel %vm1739_vm12, 4294967295, %v5152_v33 }
 0x47d   : > { %1376 = vmatpush.bf16.xpose.msrb.mxu2 %v1369_v43 }
 0x484   : > { %v1423_v44 = vpop.permute.xlu2 %1422 }
 0x485   : > { %v1439_v52 = vsel %vm1206_vm10, %v1423_v44, 0 }
 0x48c   : > { %v1421_v25 = vpop.permute.xlu2 %1420 }
 0x48d   : > { %v1436_v59 = vsel %vm1206_vm10, %v1421_v25, 0 }
 0x493   : > { %v1425_v49 = vpop.permute.xlu1 %1424 }
 0x494   : > { %v1442_v15 = vsel %vm1206_vm10, %v1425_v49, 0  ;;  %v1277_v34 = vpop.permute.xlu2 %1276 }
 0x495   : > { %1449 = vmatpush.bf16.xpose.msra.mxu3 %v1442_v15  ;;  %v1293_v55 = vsel %vm1206_vm10, %v1277_v34, 0  ;;  %v5674_v34 = vsel %vm1740_vm13, %v1741_v41, 0 }
 0x49b   : > { %v1350_v18 = vpop.permute.xlu0 %1349  ;;  %v1279_v39 = vpop.permute.xlu1 %1278 }
 0x49c   : > { %v4726_v1 = vpop.permute.xlu2 %4725  ;;  %v1296_v40 = vsel %vm1206_vm10, %v1279_v39, 0  ;;  %v1366_v46 = vsel %vm1206_vm10, %v1350_v18, 0 }
 0x49d   : > { %1303 = vmatpush.bf16.xpose.msrb.mxu0 %v1296_v40  ;;  %1377 = vmatpush.bf16.xpose.msrb.mxu2 %v1366_v46  ;;  %v4728_v24 = vunpack.i.h.bf16 %v4726_v1  ;;  %v4727_v53 = vunpack.i.l.bf16 %v4726_v1 }
 0x49e   : > { %1450 = vmatpush.bf16.xpose.msra.mxu3 %v1439_v52 }
 0x49f   : > { %v1097_v20 = vpack.c.bf16 %v4728_v24, %v4728_v24  ;;  %v1096_v10 = vpack.c.bf16 %v4727_v53, %v4727_v53 }
 0x4a1   : > { %v1329_v27 = vunpack.c.l.b16 %v1097_v20  ;;  %v1328_v35 = vunpack.c.l.b16 %v1096_v10 }
 0x4a3   : > { %v1348_v37 = vpop.permute.xlu0 %1347  ;;  %v4711_v63 = vpop.permute.xlu1 %4710  ;;  %v1332_v18 = vpack.c.b16 %v1329_v27, %v1328_v35 }
 0x4a4   : > { %v5658_v42 = vpop.permute.xlu2 %1062  ;;  %v4713_v50 = vunpack.i.h.bf16 %v4711_v63  ;;  %v4712_v54 = vunpack.i.l.bf16 %v4711_v63  ;;  %v1363_v60 = vsel %vm1206_vm10, %v1348_v37, 0 }
 0x4a5   : > { %1304 = vmatpush.bf16.xpose.msrb.mxu0 %v1293_v55  ;;  %1378 = vmatpush.bf16.xpose.msrb.mxu2 %v1363_v60  ;;  %v1098_v60 = vpack.c.bf16 %v5658_v42, %v5658_v42 }
 0x4a6   : > { %v1095_v57 = vpack.c.bf16 %v4713_v50, %v4713_v50  ;;  %v1094_v36 = vpack.c.bf16 %v4712_v54, %v4712_v54  ;;  %1451 = vmatpush.bf16.xpose.msra.mxu3 %v1436_v59 }
 0x4a8   : > { %v1327_v31 = vunpack.c.l.b16 %v1095_v57  ;;  %v1326_v61 = vunpack.c.l.b16 %v1094_v36 }
 0x4aa   : > { %v1331_v2 = vpack.c.b16 %v1327_v31, %v1326_v61 }
 0x4ab   : > { %v4716_v3 = vpop.permute.xlu0 %4715  ;;  %v1275_v5 = vpop.permute.xlu1 %1274 }
 0x4ac   : > { %v5663_v58 = vpop.permute.xlu2 %1838  ;;  %v4718_v7 = vunpack.i.h.bf16 %v4716_v3  ;;  %v4717_v11 = vunpack.i.l.bf16 %v4716_v3  ;;  %4427 = vmatmul.msk.bf16.vlgmr.msrb.gmra.mxu2 %vm1206_vm10, %v1331_v2  ;;  %v1290_v12 = vsel %vm1206_vm10, %v1275_v5, 0  ;;  %v1330_v3 = vunpack.c.l.b16 %v1098_v60 }
 0x4ad   : > { %1305 = vmatpush.bf16.xpose.msrb.mxu0 %v1290_v12 }
 0x4ae   : > { %v1100_v47 = vpack.c.bf16 %v4718_v7, %v4718_v7  ;;  %v1099_v45 = vpack.c.bf16 %v4717_v11, %v4717_v11  ;;  %v1333_v12 = vpack.c.b16 %v1330_v3, %v1330_v3 }
 0x4b0   : > { %v1400_v9 = vunpack.c.l.b16 %v1100_v47  ;;  %v1399_v38 = vunpack.c.l.b16 %v1099_v45 }
 0x4b2   : > { %v1404_v21 = vpack.c.b16 %v1400_v9, %v1399_v38 }
 0x4b3   : > { %v4721_v22 = vpop.permute.xlu0 %4720  ;;  %v4731_v0 = vpop.permute.xlu1 %4730 }
 0x4b4   : > { %v5667_v23 = vpop.permute.xlu2 %1894  ;;  %v4723_v48 = vunpack.i.h.bf16 %v4721_v22  ;;  %v4722_v26 = vunpack.i.l.bf16 %v4721_v22  ;;  %4430 = vmatmul.msk.bf16.vlgmr.msra.gmra.mxu3 %vm1206_vm10, %v1404_v21  ;;  %v4733_v29 = vunpack.i.h.bf16 %v4731_v0  ;;  %v4732_v32 = vunpack.i.l.bf16 %v4731_v0 }
 0x4b5   : > { %v5670_v62 = vpop.f32.mrf.mxu3 }
 0x4b6   : > { %v1090_v14 = vpack.c.bf16 %v4723_v48, %v4723_v48  ;;  %v1089_v51 = vpack.c.bf16 %v4722_v26, %v4722_v26  ;;  %v1468_v30 = vsel %vm1467_vm11, %v5670_v62, -inf  ;;  %v1102_v25 = vpack.c.bf16 %v4733_v29, %v4733_v29 }
 0x4b7   : > { %1469 = vmax.xlane.f32.xlu2 %v1468_v30  ;;  %v1101_v15 = vpack.c.bf16 %v4732_v32, %v4732_v32 }
 0x4b8   : > { %v1254_v43 = vunpack.c.l.b16 %v1090_v14  ;;  %v1253_v44 = vunpack.c.l.b16 %v1089_v51  ;;  %v1402_v46 = vunpack.c.l.b16 %v1102_v25 }
 0x4b9   : > { %v1401_v63 = vunpack.c.l.b16 %v1101_v15 }
 0x4ba   : > { %v1258_v49 = vpack.c.b16 %v1254_v43, %v1253_v44 }
 0x4bb   : > { %v4736_v39 = vpop.permute.xlu0 %4735  ;;  %v1078_v1 = vpop.permute.xlu1 %1077  ;;  %v1405_v36 = vpack.c.b16 %v1402_v46, %v1401_v63 }
 0x4bc   : > { %v1843_v40 = vpop.permute.xlu2 %1842  ;;  %4424 = vmatmul.msk.bf16.vlgmr.msrb.gmra.mxu0 %vm1206_vm10, %v1258_v49  ;;  %4428 = vmatmul.msk.bf16.gmra.mxu2 %vm1206_vm10, %v1332_v18  ;;  %v4738_v50 = vunpack.i.h.bf16 %v4736_v39  ;;  %v4737_v54 = vunpack.i.l.bf16 %v4736_v39  ;;  %v1103_v24 = vpack.c.bf16 %v1078_v1, %v1078_v1 }
 0x4bd   : > { %v1856_v52 = vand.u32 %v1843_v40, %v5674_v34  ;;  %v5679_v37 = vpop.f32.mrf.mxu3 }
 0x4be   : > { %v1471_v55 = vsel %vm1467_vm11, %v5679_v37, -inf  ;;  %v1092_v59 = vpack.c.bf16 %v4738_v50, %v4738_v50  ;;  %v1091_v57 = vpack.c.bf16 %v4737_v54, %v4737_v54  ;;  %v1403_v9 = vunpack.c.l.b16 %v1103_v24 }
 0x4bf   : > { %1863 = vmatpush.bf16.msra.mxu2 %v1856_v52  ;;  %1472 = vmax.xlane.f32.xlu1 %v1471_v55 }
 0x4c0   : > { %v1256_v5 = vunpack.c.l.b16 %v1092_v59  ;;  %v1255_v7 = vunpack.c.l.b16 %v1091_v57  ;;  %v1406_v20 = vpack.c.b16 %v1403_v9, %v1403_v9 }
 0x4c2   : > { %v1259_v53 = vpack.c.b16 %v1256_v5, %v1255_v7 }
 0x4c3   : > { %v1048_v31 = vpop.permute.xlu0 %1047  ;;  %v1897_v61 = vpop.permute.xlu1 %1896 }
 0x4c4   : > { %4431 = vmatmul.msk.bf16.gmra.mxu3 %vm1206_vm10, %v1405_v36  ;;  %v1093_v10 = vpack.c.bf16 %v1048_v31, %v1048_v31 }
 0x4c5   : > { %v5686_v2 = vpop.f32.mrf.mxu3 }
 0x4c6   : > { %v1474_v11 = vsel %vm1467_vm11, %v5686_v2, -inf  ;;  %v1257_v48 = vunpack.c.l.b16 %v1093_v10 }
 0x4c7   : > { %1475 = vmax.xlane.f32.xlu0 %v1474_v11 }
 0x4c8   : > { %v1260_v26 = vpack.c.b16 %v1257_v48, %v1257_v48 }
 0x4cb   : > { %v1841_v42 = vpop.permute.xlu0 %1840  ;;  %v1785_v47 = vpop.permute.xlu1 %1784 }
 0x4cc   : > { %4425 = vmatmul.msk.bf16.gmra.mxu0 %vm1206_vm10, %v1259_v53  ;;  %4429 = vmatmul.msk.bf16.gmra.mxu2 %vm1206_vm10, %v1333_v12 }
 0x4cd   : > { %v5692_v45 = vpop.f32.mrf.mxu3  ;;  %1864 = vmatpush.bf16.msra.mxu2 %v1841_v42 }
 0x4ce   : > { %v1477_v38 = vsel %vm1467_vm11, %v5692_v45, -inf }
 0x4cf   : > { %1478 = vmax.xlane.f32.xlu2 %v1477_v38 }
 0x4d1   : > { %1865 = vmatpush.bf16.msra.mxu2 %v5663_v58 }
 0x4d3   : > { %v1899_v21 = vpop.permute.xlu1 %1898  ;;  %v1783_v58 = vpop.permute.xlu0 %1782 }
 0x4d4   : > { %v1912_v22 = vand.u32 %v1899_v21, %v5674_v34  ;;  %4432 = vmatmul.msk.bf16.gmra.mxu3 %vm1206_vm10, %v1406_v20 }
 0x4d5   : > { %v5699_v0 = vpop.f32.mrf.mxu3 }
 0x4d6   : > { %1919 = vmatpush.bf16.msrb.mxu3 %v1912_v22 }
 0x4da   : > { %1920 = vmatpush.bf16.msrb.mxu3 %v1897_v61 }
 0x4db   : > { %v1787_v27 = vpop.permute.xlu1 %1786 }
 0x4dc   : > { %v1800_v29 = vand.u32 %v1787_v27, %v5674_v34  ;;  %4426 = vmatmul.msk.bf16.gmra.mxu0 %vm1206_vm10, %v1260_v26 }
 0x4dd   : > { %v1246_v35 = vpop.f32.mrf.mxu3 }
 0x4de   : > { %1807 = vmatpush.bf16.msra.mxu0 %v1800_v29  ;;  %1921 = vmatpush.bf16.msrb.mxu3 %v5667_v23 }
 0x4e2   : > { %1808 = vmatpush.bf16.msra.mxu0 %v1785_v47 }
 0x4e6   : > { %1809 = vmatpush.bf16.msra.mxu0 %v1783_v58 }
 0x52a   : > { %v1470_v24 = vpop.xlane.xlu2 %1469 }
 0x52f   : > { %v5704_v14 = vpop.f32.mrf.mxu2 }
 0x530   : > { %v1499_v51 = vsel %vm1467_vm11, %v5704_v14, -inf }
 0x531   : > { %1500 = vmax.xlane.f32.xlu2 %v1499_v51 }
 0x532   : > { %v1473_v47 = vpop.xlane.xlu1 %1472 }
 0x533   : > { %v1530_v21 = vsub.f32 %v5679_v37, %v1473_v47 }
 0x535   : > { %v1551_v29 = vmul.f32 1.442695, %v1530_v21 }
 0x537   : > { %v5708_v32 = vpop.f32.mrf.mxu2  ;;  %v1453_v30 = vpop.f32.mrf.mxu3 }
 0x538   : > { %v1514_v33 = vsel %vm1467_vm11, %v1453_v30, -inf  ;;  %v1502_v15 = vsel %vm1467_vm11, %v5708_v32, -inf }
 0x539   : > { %v1307_v41 = vpop.f32.mrf.mxu0  ;;  %1515 = vmax.xlane.f32.xlu0 %v1514_v33 }
 0x53a   : > { %v1484_v43 = vsel %vm1467_vm11, %v1307_v41, -inf  ;;  %v5758_v53 = vpop.xlane.xlu0 %1475 }
 0x53b   : > { %1485 = vmax.xlane.f32.xlu1 %v1484_v43 }
 0x53f   : > { %v5712_v23 = vpop.f32.mrf.mxu2  ;;  %v5714_v44 = vpop.f32.mrf.mxu3 }
 0x540   : > { %v1517_v25 = vsel %vm1467_vm11, %v5714_v44, -inf  ;;  %v1505_v40 = vsel %vm1467_vm11, %v5712_v23, -inf }
 0x541   : > { %v5718_v49 = vpop.f32.mrf.mxu0  ;;  %1518 = vmax.xlane.f32.xlu2 %v1517_v25  ;;  %v1529_v25 = vsub.f32 %v5670_v62, %v1470_v24 }
 0x542   : > { %v1487_v18 = vsel %vm1467_vm11, %v5718_v49, -inf  ;;  %v5760_v42 = vpop.xlane.xlu2 %1478 }
 0x543   : > { %1503 = vmax.xlane.f32.xlu1 %v1502_v15  ;;  %1488 = vmax.xlane.f32.xlu0 %v1487_v18 }
 0x547   : > { %v5724_v39 = vpop.f32.mrf.mxu2  ;;  %v5726_v1 = vpop.f32.mrf.mxu3 }
 0x548   : > { %v1520_v63 = vsel %vm1467_vm11, %v5726_v1, -inf  ;;  %v1508_v59 = vsel %vm1467_vm11, %v5724_v39, -inf }
 0x549   : > { %v5730_v46 = vpop.f32.mrf.mxu0  ;;  %1506 = vmax.xlane.f32.xlu2 %v1505_v40  ;;  %v1549_v40 = vmul.f32 1.442695, %v1529_v25 }
 0x54a   : > { %v1490_v52 = vsel %vm1467_vm11, %v5730_v46, -inf }
 0x54b   : > { %1491 = vmax.xlane.f32.xlu1 %v1490_v52  ;;  %1521 = vmax.xlane.f32.xlu0 %v1520_v63 }
 0x54f   : > { %v5736_v50 = vpop.f32.mrf.mxu2  ;;  %v5738_v54 = vpop.f32.mrf.mxu3 }
 0x550   : > { %v1523_v55 = vsel %vm1467_vm11, %v5738_v54, -inf  ;;  %v1511_v3 = vsel %vm1480_vm14, %v5736_v50, -inf }
 0x551   : > { %v5742_v60 = vpop.f32.mrf.mxu0  ;;  %1524 = vmax.xlane.f32.xlu2 %v1523_v55 }
 0x552   : > { %v1493_v57 = vsel %vm1467_vm11, %v5742_v60, -inf }
 0x553   : > { %1509 = vmax.xlane.f32.xlu1 %v1508_v59  ;;  %1494 = vmax.xlane.f32.xlu0 %v1493_v57 }
 0x557   : > { %v1392_v36 = vpop.f32.mrf.mxu2  ;;  %v5748_v31 = vpop.f32.mrf.mxu3 }
 0x558   : > { %v1526_v12 = vsel %vm1480_vm14, %v5748_v31, -inf }
 0x559   : > { %v5750_v61 = vpop.f32.mrf.mxu0 }
 0x55a   : > { %v1496_v5 = vsel %vm1480_vm14, %v5750_v61, -inf }
 0x55b   : > { %1512 = vmax.xlane.f32.xlu1 %v1511_v3  ;;  %1497 = vmax.xlane.f32.xlu0 %v1496_v5 }
 0x55f   : > { %v1465_v7 = vpop.f32.mrf.mxu3 }
 0x561   : > { %v1319_v11 = vpop.f32.mrf.mxu0 }
 0x563   : > { %1527 = vmax.xlane.f32.xlu0 %v1526_v12 }
 0x5a4   : > { %v1501_v9 = vpop.xlane.xlu2 %1500 }
 0x5a5   : > { %v1539_v26 = vsub.f32 %v5704_v14, %v1501_v9 }
 0x5a7   : > { %v1569_v58 = vmul.f32 1.442695, %v1539_v26 }
 0x5ac   : > { %v1516_v38 = vpop.xlane.xlu0 %1515 }
 0x5ad   : > { %v1544_v20 = vsub.f32 %v1453_v30, %v1516_v38 }
 0x5ae   : > { %v1486_v10 = vpop.xlane.xlu1 %1485 }
 0x5af   : > { %v1579_v22 = vmul.f32 1.442695, %v1544_v20  ;;  %v1534_v48 = vsub.f32 %v1307_v41, %v1486_v10 }
 0x5b1   : > { %4895 = vpow2.f32 %v1579_v22  ;;  %v1559_v27 = vmul.f32 1.442695, %v1534_v48 }
 0x5b3   : > { %4897 = vpow2.f32 %v1559_v27 }
 0x5b4   : > { %v1519_v35 = vpop.xlane.xlu2 %1518  ;;  %4899 = vpow2.f32 %v1551_v29 }
 0x5b5   : > { %4901 = vpow2.f32 %v1569_v58  ;;  %v1545_v55 = vsub.f32 %v5714_v44, %v1519_v35 }
 0x5b6   : > { %v1504_v51 = vpop.xlane.xlu1 %1503  ;;  %v1489_v33 = vpop.xlane.xlu0 %1488 }
 0x5b7   : > { %v5764_v43 = vpop.eup %4895  ;;  %v1540_v30 = vsub.f32 %v5708_v32, %v1504_v51  ;;  %v1535_v15 = vsub.f32 %v5718_v49, %v1489_v33  ;;  %v1581_v3 = vmul.f32 1.442695, %v1545_v55 }
 0x5b8   : > { %v1634_v37 = vsel %vm1467_vm11, %v5764_v43, 0.0 }
 0x5b9   : > { %v5770_v41 = vpop.eup %4897  ;;  %v1571_v14 = vmul.f32 1.442695, %v1540_v30  ;;  %1635 = vadd.xlane.f32.xlu1 %v1634_v37  ;;  %v1561_v62 = vmul.f32 1.442695, %v1535_v15 }
 0x5ba   : > { %v1604_v18 = vsel %vm1467_vm11, %v5770_v41, 0.0  ;;  %v5775_v32 = vpop.eup %4899 }
 0x5bb   : > { %4903 = vpow2.f32 %v1571_v14  ;;  %1605 = vadd.xlane.f32.xlu0 %v1604_v18  ;;  %v5777_v63 = vpop.eup %4901  ;;  %v1592_v59 = vsel %vm1467_vm11, %v5775_v32, 0.0 }
 0x5bc   : > { %v1507_v52 = vpop.xlane.xlu2 %1506  ;;  %4905 = vpow2.f32 %v1549_v40  ;;  %v1619_v36 = vsel %vm1467_vm11, %v5777_v63, 0.0 }
 0x5bd   : > { %4907 = vpow2.f32 %v1561_v62  ;;  %v1541_v24 = vsub.f32 %v5712_v23, %v1507_v52 }
 0x5be   : > { %4909 = vpow2.f32 %v1581_v3  ;;  %v1492_v26 = vpop.xlane.xlu1 %1491 }
 0x5bf   : > { %v1573_v38 = vmul.f32 1.442695, %v1541_v24  ;;  %v1536_v29 = vsub.f32 %v5730_v46, %v1492_v26  ;;  %v1531_v46 = vsub.f32 %v5686_v2, %v5758_v53 }
 0x5c1   : > { %v5782_v49 = vpop.eup %4903  ;;  %1593 = vadd.xlane.f32.xlu1 %v1592_v59  ;;  %v1563_v51 = vmul.f32 1.442695, %v1536_v29  ;;  %v1553_v14 = vmul.f32 1.442695, %v1531_v46 }
 0x5c2   : > { %v1622_v57 = vsel %vm1467_vm11, %v5782_v49, 0.0  ;;  %v5789_v44 = vpop.eup %4905 }
 0x5c3   : > { %1623 = vadd.xlane.f32.xlu2 %v1622_v57  ;;  %1620 = vadd.xlane.f32.xlu0 %v1619_v36  ;;  %v5791_v11 = vpop.eup %4907  ;;  %v1589_v47 = vsel %vm1467_vm11, %v5789_v44, 0.0  ;;  %v1532_v57 = vsub.f32 %v5692_v45, %v5760_v42 }
 0x5c4   : > { %v1525_v5 = vpop.xlane.xlu2 %1524  ;;  %v1607_v9 = vsel %vm1467_vm11, %v5791_v11, 0.0  ;;  %v5798_v20 = vpop.eup %4909 }
 0x5c5   : > { %v1547_v7 = vsub.f32 %v5738_v54, %v1525_v5  ;;  %v1522_v54 = vpop.xlane.xlu0 %1521  ;;  %v1637_v22 = vsel %vm1467_vm11, %v5798_v20, 0.0 }
 0x5c6   : > { %v1546_v23 = vsub.f32 %v5726_v1, %v1522_v54 }
 0x5c7   : > { %v1585_v12 = vmul.f32 1.442695, %v1547_v7 }
 0x5c8   : > { %v1583_v48 = vmul.f32 1.442695, %v1546_v23 }
 0x5c9   : > { %4911 = vpow2.f32 %v1585_v12 }
 0x5ca   : > { %4913 = vpow2.f32 %v1573_v38 }
 0x5cb   : > { %1590 = vadd.xlane.f32.xlu2 %v1589_v47  ;;  %1608 = vadd.xlane.f32.xlu0 %v1607_v9  ;;  %4915 = vpow2.f32 %v1583_v48 }
 0x5cc   : > { %4917 = vpow2.f32 %v1563_v51 }
 0x5cd   : > { %v1495_v35 = vpop.xlane.xlu0 %1494  ;;  %4919 = vpow2.f32 %v1553_v14 }
 0x5cf   : > { %v5800_v10 = vpop.eup %4911 }
 0x5d0   : > { %v1643_v21 = vsel %vm1467_vm11, %v5800_v10, 0.0  ;;  %v5807_v27 = vpop.eup %4913 }
 0x5d1   : > { %1644 = vadd.xlane.f32.xlu1 %v1643_v21  ;;  %v1625_v58 = vsel %vm1467_vm11, %v5807_v27, 0.0  ;;  %v5812_v33 = vpop.eup %4915 }
 0x5d2   : > { %v1640_v1 = vsel %vm1467_vm11, %v5812_v33, 0.0  ;;  %v5818_v25 = vpop.eup %4917 }
 0x5d3   : > { %1638 = vadd.xlane.f32.xlu0 %v1637_v22  ;;  %v1610_v37 = vsel %vm1467_vm11, %v5818_v25, 0.0  ;;  %v5829_v52 = vpop.eup %4919 }
 0x5d4   : > { %v1595_v53 = vsel %vm1467_vm11, %v5829_v52, 0.0 }
 0x5d5   : > { %v1498_v30 = vpop.xlane.xlu0 %1497 }
 0x5d6   : > { %v1538_v2 = vsub.f32 %v5750_v61, %v1498_v30 }
 0x5d8   : > { %v1567_v62 = vmul.f32 1.442695, %v1538_v2 }
 0x5db   : > { %1626 = vadd.xlane.f32.xlu0 %v1625_v58 }
 0x5dd   : > { %v1528_v15 = vpop.xlane.xlu0 %1527 }
 0x5de   : > { %v1548_v18 = vsub.f32 %v5748_v31, %v1528_v15  ;;  %v1510_v31 = vpop.xlane.xlu1 %1509 }
 0x5df   : > { %v1542_v36 = vsub.f32 %v5724_v39, %v1510_v31 }
 0x5e0   : > { %v1587_v40 = vmul.f32 1.442695, %v1548_v18 }
 0x5e1   : > { %v1575_v3 = vmul.f32 1.442695, %v1542_v36 }
 0x5e2   : > { %4921 = vpow2.f32 %v1587_v40 }
 0x5e3   : > { %1726 = vrot.lane.b32.xlu2 %v5575_v56, %s5147_s30  ;;  %1641 = vadd.xlane.f32.xlu0 %v1640_v1  ;;  %v1481_v56 = vsel %vm1480_vm14, %v5699_v0, -inf  ;;  %4923 = vpow2.f32 %v1567_v62 }
 0x5e6   : > { %v1513_v38 = vpop.xlane.xlu1 %1512 }
 0x5e7   : > { %v1543_v30 = vsub.f32 %v5736_v50, %v1513_v38 }
 0x5e8   : > { %v5835_v59 = vpop.eup %4921 }
 0x5e9   : > { %v1646_v61 = vsel %vm1480_vm14, %v5835_v59, 0.0  ;;  %v5842_v5 = vpop.eup %4923 }
 0x5ea   : > { %1724 = vrot.lane.b32.xlu1 %v5581_v4, %s5147_s30  ;;  %v1537_v4 = vsub.f32 %v5742_v60, %v1495_v35  ;;  %v1555_v60 = vmul.f32 1.442695, %v1532_v57  ;;  %v1616_v12 = vsel %vm1480_vm14, %v5842_v5, 0.0 }
 0x5eb   : > { %1611 = vadd.xlane.f32.xlu0 %v1610_v37 }
 0x5ec   : > { %v1565_v55 = vmul.f32 1.442695, %v1537_v4 }
 0x5ee   : > { %4925 = vpow2.f32 %v1565_v55 }
 0x5ef   : > { %4927 = vpow2.f32 %v1555_v60 }
 0x5f0   : > { %4929 = vpow2.f32 %v1575_v3 }
 0x5f3   : > { %1482 = vmax.xlane.f32.xlu0 %v1481_v56 }
 0x5f4   : > { %v5844_v7 = vpop.eup %4925 }
 0x5f5   : > { %v1613_v45 = vsel %vm1467_vm11, %v5844_v7, 0.0  ;;  %v5850_v39 = vpop.eup %4927 }
 0x5f6   : > { %v5852_v42 = vpop.eup %4929  ;;  %v1598_v47 = vsel %vm1467_vm11, %v5850_v39, 0.0 }
 0x5f7   : > { %v1628_v24 = vsel %vm1467_vm11, %v5852_v42, 0.0 }
 0x5fb   : > { %1596 = vadd.xlane.f32.xlu0 %v1595_v53 }
 0x603   : > { %1647 = vadd.xlane.f32.xlu0 %v1646_v61 }
 0x60b   : > { %1617 = vadd.xlane.f32.xlu0 %v1616_v12 }
 0x60c   : > { %1614 = vadd.xlane.f32.xlu2 %v1613_v45 }
 0x614   : > { %1629 = vadd.xlane.f32.xlu2 %v1628_v24  ;;  %1599 = vadd.xlane.f32.xlu1 %v1598_v47 }
 0x62c   : > { %1722 = vrot.lane.b32.xlu2 %v5585_v6, %s5147_s30  ;;  %v1636_v23 = vpop.xlane.xlu1 %1635 }
 0x62e   : > { %v1606_v9 = vpop.xlane.xlu0 %1605 }
 0x634   : > { %v1594_v15 = vpop.xlane.xlu1 %1593 }
 0x636   : > { %v1624_v54 = vpop.xlane.xlu2 %1623  ;;  %v1621_v21 = vpop.xlane.xlu0 %1620 }
 0x637   : > { %4931 = vrcp.f32 %v1624_v54 }
 0x638   : > { %4933 = vrcp.f32 %v1621_v21 }
 0x639   : > { %4935 = vrcp.f32 %v1606_v9 }
 0x63d   : > { %v4932_v22 = vpop.eup %4931 }
 0x63e   : > { %v4934_v48 = vpop.eup %4933  ;;  %v1680_v26 = vmul.f32 %v4932_v22, %v5782_v49  ;;  %v5861_v29 = vpop.xlane.xlu2 %1590  ;;  %v1577_v49 = vmul.f32 1.442695, %v1543_v30 }
 0x63f   : > { %v1609_v35 = vpop.xlane.xlu0 %1608  ;;  %v1679_v58 = vmul.f32 %v4934_v48, %v5777_v63  ;;  %v4936_v51 = vpop.eup %4935 }
 0x640   : > { %v1700_v1 = vpack.c.bf16 %v1680_v26, %v1680_v26  ;;  %4937 = vrcp.f32 %v1609_v35  ;;  %v1674_v37 = vmul.f32 %v4936_v51, %v5770_v41 }
 0x641   : > { %4939 = vrcp.f32 %v1636_v23  ;;  %v1699_v6 = vpack.c.bf16 %v1679_v58, %v1679_v58 }
 0x642   : > { %v1831_v46 = vunpack.c.l.b16 %v1700_v1  ;;  %v1694_v53 = vpack.c.bf16 %v1674_v37, %v1674_v37 }
 0x643   : > { %v1830_v14 = vunpack.c.l.b16 %v1699_v6 }
 0x644   : > { %v1774_v55 = vunpack.c.l.b16 %v1694_v53  ;;  %v1645_v60 = vpop.xlane.xlu1 %1644 }
 0x645   : > { %v1835_v18 = vpack.c.b16 %v1831_v46, %v1830_v14 }
 0x646   : > { %v4938_v56 = vpop.eup %4937  ;;  %v1727_v40 = vpop.permute.xlu2 %1726 }
 0x647   : > { %v1639_v2 = vpop.xlane.xlu0 %1638  ;;  %v4940_v4 = vpop.eup %4939  ;;  %v1675_v63 = vmul.f32 %v4938_v56, %v5791_v11  ;;  %v1744_v62 = vand.u32 %v5674_v34, %v1727_v40  ;;  %4439 = vmatmul.msk.bf16.vlgmr.msra.gmra.mxu2 %vm1467_vm11, %v1835_v18 }
 0x648   : > { %4941 = vrcp.f32 %v1639_v2  ;;  %v1684_v41 = vmul.f32 %v4940_v4, %v5764_v43 }
 0x649   : > { %v1695_v50 = vpack.c.bf16 %v1675_v63, %v1675_v63  ;;  %1751 = vmatpush.bf16.msra.mxu1 %v1744_v62  ;;  %4943 = vpow2.f32 %v1577_v49 }
 0x64a   : > { %v1704_v61 = vpack.c.bf16 %v1684_v41, %v1684_v41  ;;  %4945 = vrcp.f32 %v1645_v60 }
 0x64b   : > { %v1775_v31 = vunpack.c.l.b16 %v1695_v50 }
 0x64c   : > { %v1886_v24 = vunpack.c.l.b16 %v1704_v61 }
 0x64d   : > { %v1779_v36 = vpack.c.b16 %v1775_v31, %v1774_v55 }
 0x64e   : > { %v4942_v57 = vpop.eup %4941 }
 0x64f   : > { %v1685_v3 = vmul.f32 %v4942_v57, %v5798_v20  ;;  %v1627_v12 = vpop.xlane.xlu0 %1626  ;;  %4436 = vmatmul.msk.bf16.vlgmr.msra.gmra.mxu0 %vm1467_vm11, %v1779_v36  ;;  %v5872_v45 = vpop.eup %4943 }
 0x650   : > { %v1631_v43 = vsel %vm1480_vm14, %v5872_v45, 0.0  ;;  %v4946_v54 = vpop.eup %4945 }
 0x651   : > { %v1705_v11 = vpack.c.bf16 %v1685_v3, %v1685_v3  ;;  %v1687_v20 = vmul.f32 %v4946_v54, %v5800_v10 }
 0x653   : > { %v1887_v47 = vunpack.c.l.b16 %v1705_v11  ;;  %v1707_v26 = vpack.c.bf16 %v1687_v20, %v1687_v20 }
 0x655   : > { %v1891_v9 = vpack.c.b16 %v1887_v47, %v1886_v24  ;;  %1632 = vadd.xlane.f32.xlu2 %v1631_v43  ;;  %v1889_v51 = vunpack.c.l.b16 %v1707_v26 }
 0x657   : > { %4442 = vmatmul.msk.bf16.vlgmr.msrb.gmra.mxu3 %vm1467_vm11, %v1891_v9  ;;  %v1642_v38 = vpop.xlane.xlu0 %1641 }
 0x658   : > { %4947 = vrcp.f32 %v1642_v38 }
 0x65c   : > { %v1725_v21 = vpop.permute.xlu1 %1724 }
 0x65d   : > { %1752 = vmatpush.bf16.msra.mxu1 %v1725_v21 }
 0x65e   : > { %v4948_v23 = vpop.eup %4947 }
 0x65f   : > { %v1612_v22 = vpop.xlane.xlu0 %1611  ;;  %v1686_v48 = vmul.f32 %v4948_v23, %v5812_v33 }
 0x661   : > { %v1706_v35 = vpack.c.bf16 %v1686_v48, %v1686_v48 }
 0x663   : > { %v1888_v58 = vunpack.c.l.b16 %v1706_v35 }
 0x665   : > { %v1892_v1 = vpack.c.b16 %v1889_v51, %v1888_v58 }
 0x667   : > { %4443 = vmatmul.msk.bf16.gmra.mxu3 %vm1467_vm11, %v1892_v1  ;;  %v1483_v6 = vpop.xlane.xlu0 %1482 }
 0x668   : > { %v1533_v30 = vsub.f32 %v5699_v0, %v1483_v6 }
 0x66a   : > { %v1557_v46 = vmul.f32 1.442695, %v1533_v30 }
 0x66c   : > { %4949 = vpow2.f32 %v1557_v46 }
 0x66f   : > { %v1597_v37 = vpop.xlane.xlu0 %1596 }
 0x672   : > { %v5881_v10 = vpop.eup %4949 }
 0x673   : > { %v1601_v14 = vsel %vm1480_vm14, %v5881_v10, 0.0 }
 0x674   : > { %1602 = vadd.xlane.f32.xlu0 %v1601_v14 }
 0x677   : > { %v1648_v33 = vpop.xlane.xlu0 %1647 }
 0x678   : > { %4951 = vrcp.f32 %v1648_v33 }
 0x679   : > { %4953 = vrcp.f32 %v1612_v22 }
 0x67a   : > { %4955 = vrcp.f32 %v5861_v29 }
 0x67b   : > { %4957 = vrcp.f32 %v1594_v15 }
 0x67e   : > { %v4952_v18 = vpop.eup %4951 }
 0x67f   : > { %v1688_v56 = vmul.f32 %v4952_v18, %v5835_v59  ;;  %v1615_v49 = vpop.xlane.xlu2 %1614  ;;  %v4954_v0 = vpop.eup %4953 }
 0x680   : > { %4959 = vrcp.f32 %v1615_v49  ;;  %v4956_v2 = vpop.eup %4955  ;;  %v1676_v53 = vmul.f32 %v4954_v0, %v5818_v25  ;;  %v1618_v41 = vpop.xlane.xlu0 %1617 }
 0x681   : > { %v1708_v40 = vpack.c.bf16 %v1688_v56, %v1688_v56  ;;  %4961 = vrcp.f32 %v1627_v12  ;;  %v4958_v63 = vpop.eup %4957  ;;  %v1669_v50 = vmul.f32 %v4956_v2, %v5789_v44 }
 0x682   : > { %v1670_v29 = vmul.f32 %v4958_v63, %v5775_v32  ;;  %v1696_v31 = vpack.c.bf16 %v1676_v53, %v1676_v53  ;;  %4963 = vrcp.f32 %v1618_v41 }
 0x683   : > { %v1890_v4 = vunpack.c.l.b16 %v1708_v40  ;;  %v1689_v36 = vpack.c.bf16 %v1669_v50, %v1669_v50 }
 0x684   : > { %v1690_v60 = vpack.c.bf16 %v1670_v29, %v1670_v29  ;;  %v1776_v3 = vunpack.c.l.b16 %v1696_v31 }
 0x685   : > { %v1893_v62 = vpack.c.b16 %v1890_v4, %v1890_v4  ;;  %v1714_v11 = vunpack.c.l.b16 %v1689_v36 }
 0x686   : > { %v4960_v55 = vpop.eup %4959  ;;  %v1715_v9 = vunpack.c.l.b16 %v1690_v60 }
 0x687   : > { %4444 = vmatmul.msk.bf16.gmra.mxu3 %vm1467_vm11, %v1893_v62  ;;  %v1630_v59 = vpop.xlane.xlu2 %1629  ;;  %v1677_v15 = vmul.f32 %v4960_v55, %v5844_v7  ;;  %v4962_v57 = vpop.eup %4961 }
 0x688   : > { %v1600_v61 = vpop.xlane.xlu1 %1599  ;;  %4965 = vrcp.f32 %v1630_v59  ;;  %v1681_v44 = vmul.f32 %v4962_v57, %v5807_v27  ;;  %v4964_v47 = vpop.eup %4963  ;;  %v1719_v54 = vpack.c.b16 %v1715_v9, %v1714_v11  ;;  %v4597_v9 = vld [vmem:[%s6813_s6] sm:$0xff] }
 0x689   : > { %v1697_v25 = vpack.c.bf16 %v1677_v15, %v1677_v15  ;;  %4967 = vrcp.f32 %v1600_v61  ;;  %v1678_v20 = vmul.f32 %v4964_v47, %v5842_v5 }
 0x68a   : > { %4969 = vrcp.f32 %v1597_v37  ;;  %v1701_v38 = vpack.c.bf16 %v1681_v44, %v1681_v44 }
 0x68b   : > { %v1777_v12 = vunpack.c.l.b16 %v1697_v25  ;;  %v1698_v26 = vpack.c.bf16 %v1678_v20, %v1678_v20 }
 0x68c   : > { %v1832_v22 = vunpack.c.l.b16 %v1701_v38 }
 0x68d   : > { %v1780_v24 = vpack.c.b16 %v1777_v12, %v1776_v3 }
 0x68e   : > { %v4966_v32 = vpop.eup %4965 }
 0x68f   : > { %v1723_v7 = vpop.permute.xlu2 %1722  ;;  %4437 = vmatmul.msk.bf16.gmra.mxu0 %vm1467_vm11, %v1780_v24  ;;  %v1682_v43 = vmul.f32 %v4966_v32, %v5852_v42  ;;  %v4968_v21 = vpop.eup %4967  ;;  %v1778_v42 = vunpack.c.l.b16 %v1698_v26  ;;  %v4598_v32 = vld [vmem:[%s6813_s6 + $0x8] sm:$0xff] }
 0x690   : > { %1753 = vmatpush.bf16.msra.mxu1 %v1723_v7  ;;  %v4970_v27 = vpop.eup %4969  ;;  %v1672_v35 = vmul.f32 %v4968_v21, %v5850_v39 }
 0x691   : > { %v1702_v23 = vpack.c.bf16 %v1682_v43, %v1682_v43  ;;  %v1671_v51 = vmul.f32 %v4970_v27, %v5829_v52  ;;  %v1781_v30 = vpack.c.b16 %v1778_v42, %v1778_v42 }
 0x692   : > { %v1692_v1 = vpack.c.bf16 %v1672_v35, %v1672_v35 }
 0x693   : > { %4433 = vmatmul.msk.bf16.vlgmr.msra.gmra.mxu1 %vm1467_vm11, %v1719_v54  ;;  %v1833_v48 = vunpack.c.l.b16 %v1702_v23  ;;  %v1691_v6 = vpack.c.bf16 %v1671_v51, %v1671_v51 }
 0x694   : > { %v1717_v5 = vunpack.c.l.b16 %v1692_v1  ;;  %2049 = vmatpush.bf16.msrb.mxu1 %v4598_v32 }
 0x695   : > { %v1836_v58 = vpack.c.b16 %v1833_v48, %v1832_v22  ;;  %v1716_v46 = vunpack.c.l.b16 %v1691_v6 }
 0x697   : > { %4440 = vmatmul.msk.bf16.gmra.mxu2 %vm1467_vm11, %v1836_v58  ;;  %v1720_v37 = vpack.c.b16 %v1717_v5, %v1716_v46 }
 0x698   : > { %2050 = vmatpush.bf16.msrb.mxu1 %v4597_v9 }
 0x69f   : > { %4438 = vmatmul.msk.bf16.gmra.mxu0 %vm1467_vm11, %v1781_v30 }
 0x6a3   : > { %4434 = vmatmul.msk.bf16.gmra.mxu1 %vm1467_vm11, %v1720_v37 }
 0x6c8   : > { %v1633_v14 = vpop.xlane.xlu2 %1632 }
 0x6c9   : > { %4971 = vrcp.f32 %v1633_v14 }
 0x6ca   : > { %v1867_v33 = vpop.f32.mrf.mxu2 }
 0x6cc   : > { %v1811_v39 = vpop.f32.mrf.mxu0 }
 0x6cf   : > { %v4972_v18 = vpop.eup %4971 }
 0x6d0   : > { %v1683_v52 = vmul.f32 %v4972_v18, %v5872_v45 }
 0x6d2   : > { %v1869_v56 = vpop.f32.mrf.mxu2  ;;  %v1703_v49 = vpack.c.bf16 %v1683_v52, %v1683_v52 }
 0x6d3   : > { %v4744_v0 = vpack.i.bf16 %v1869_v56, %v1867_v33 }
 0x6d4   : > { %v1813_v40 = vpop.f32.mrf.mxu0  ;;  %v1834_v2 = vunpack.c.l.b16 %v1703_v49 }
 0x6d5   : > { %v4739_v4 = vpack.i.bf16 %v1813_v40, %v1811_v39  ;;  %4745 = vrot.lane.b32.xlu1 %v4744_v0, %s5153_s25 }
 0x6d6   : > { %v1837_v53 = vpack.c.b16 %v1834_v2, %v1834_v2 }
 0x6d7   : > { %4740 = vrot.lane.b32.xlu0 %v4739_v4, %s5154_s26 }
 0x6d8   : > { %4441 = vmatmul.msk.bf16.gmra.mxu2 %vm1467_vm11, %v1837_v53 }
 0x6da   : > { %v1923_v63 = vpop.f32.mrf.mxu3 }
 0x6e2   : > { %v1925_v62 = vpop.f32.mrf.mxu3 }
 0x6e3   : > { %v4749_v50 = vpack.i.bf16 %v1925_v62, %v1923_v63 }
 0x6e5   : > { %4750 = vrot.lane.b32.xlu2 %v4749_v50, %s5155_s27 }
 0x6e7   : > { %v1603_v45 = vpop.xlane.xlu0 %1602 }
 0x6e8   : > { %4973 = vrcp.f32 %v1603_v45 }
 0x6ea   : > { %v1928_v41 = vpop.f32.mrf.mxu3 }
 0x6ee   : > { %v4974_v55 = vpop.eup %4973 }
 0x6ef   : > { %v1673_v29 = vmul.f32 %v4974_v55, %v5881_v10 }
 0x6f1   : > { %v1693_v59 = vpack.c.bf16 %v1673_v29, %v1673_v29 }
 0x6f2   : > { %v1930_v15 = vpop.f32.mrf.mxu3 }
 0x6f3   : > { %v4764_v31 = vpack.i.bf16 %v1930_v15, %v1928_v41  ;;  %v1718_v57 = vunpack.c.l.b16 %v1693_v59  ;;  %v5938_v15 = vld [vmem:[%s6816_s9] sm:$0xff] }
 0x6f5   : > { %4765 = vrot.lane.b32.xlu2 %v4764_v31, %s5155_s27  ;;  %v1721_v36 = vpack.c.b16 %v1718_v57, %v1718_v57  ;;  %v2021_v31 = vperm.slane %v5938_v15, 1 }
 0x6f7   : > { %4435 = vmatmul.msk.bf16.gmra.mxu1 %vm1467_vm11, %v1721_v36 }
 0x70a   : > { %v1933_v61 = vpop.f32.mrf.mxu3 }
 0x70b   : > { %1990 = vrot.lane.b32.xlu2 %v1933_v61, %s5155_s27 }
 0x70c   : > { %v1816_v25 = vpop.f32.mrf.mxu0 }
 0x710   : > { %v1755_v7 = vpop.f32.mrf.mxu1 }
 0x712   : > { %v1935_v60 = vpop.f32.mrf.mxu3 }
 0x714   : > { %v1818_v3 = vpop.f32.mrf.mxu0 }
 0x715   : > { %v4754_v12 = vpack.i.bf16 %v1818_v3, %v1816_v25 }
 0x717   : > { %4755 = vrot.lane.b32.xlu0 %v4754_v12, %s5154_s26 }
 0x718   : > { %v1757_v23 = vpop.f32.mrf.mxu1 }
 0x71a   : > { %v1872_v44 = vpop.f32.mrf.mxu2 }
 0x71c   : > { %v1821_v10 = vpop.f32.mrf.mxu0 }
 0x71d   : > { %1950 = vrot.lane.b32.xlu1 %v1821_v10, %s5154_s26 }
 0x720   : > { %v1760_v46 = vpop.f32.mrf.mxu1 }
 0x722   : > { %v1874_v11 = vpop.f32.mrf.mxu2 }
 0x723   : > { %v4759_v24 = vpack.i.bf16 %v1874_v11, %v1872_v44 }
 0x724   : > { %v1823_v47 = vpop.f32.mrf.mxu0 }
 0x725   : > { %4760 = vrot.lane.b32.xlu0 %v4759_v24, %s5153_s25 }
 0x728   : > { %v1762_v14 = vpop.f32.mrf.mxu1 }
 0x73f   : > { %v4751_v38 = vpop.permute.xlu2 %4750 }
 0x740   : > { %v4753_v48 = vunpack.i.h.bf16 %v4751_v38  ;;  %v4752_v26 = vunpack.i.l.bf16 %v4751_v38 }
 0x747   : > { %v4746_v43 = vpop.permute.xlu1 %4745 }
 0x748   : > { %v4748_v27 = vunpack.i.h.bf16 %v4746_v43  ;;  %v4747_v22 = vunpack.i.l.bf16 %v4746_v43 }
 0x749   : > { %v4741_v54 = vpop.permute.xlu0 %4740 }
 0x74a   : > { %v4743_v20 = vunpack.i.h.bf16 %v4741_v54  ;;  %v4742_v21 = vunpack.i.l.bf16 %v4741_v54 }
 0x74c   : > { %v1998_v35 = vsel %vm1206_vm10, %v1757_v23, %v4743_v20  ;;  %v1997_v58 = vsel %vm1206_vm10, %v1755_v7, %v4742_v21 }
 0x74d   : > { %v2004_v51 = vsel %vm2002_vm15, %v1998_v35, %v4748_v27  ;;  %v2003_v42 = vsel %vm2002_vm15, %v1997_v58, %v4747_v22 }
 0x74e   : > { %v2009_v1 = vsel %vm2008_vm2, %v2003_v42, %v4752_v26  ;;  %v2010_v6 = vsel %vm2008_vm2, %v2004_v51, %v4753_v48 }
 0x74f   : > { %v2014_v30 = vpack.c.bf16 %v2010_v6, %v2009_v1  ;;  %v4766_v49 = vpop.permute.xlu2 %4765 }
 0x750   : > { %v4768_v4 = vunpack.i.h.bf16 %v4766_v49  ;;  %v4767_v53 = vunpack.i.l.bf16 %v4766_v49 }
 0x751   : > { %4453 = vmatmul.msk.bf16.vlgmr.msrb.gmra.mxu1 %vm373_vm0, %v2014_v30 }
 0x75b   : > { %v1877_v5 = vpop.f32.mrf.mxu2 }
 0x75c   : > { %1970 = vrot.lane.b32.xlu0 %v1877_v5, %s5153_s25 }
 0x763   : > { %v1879_v37 = vpop.f32.mrf.mxu2 }
 0x765   : > { %v1991_v25 = vpop.permute.xlu2 %1990 }
 0x774   : > { %v1765_v33 = vpop.f32.mrf.mxu1 }
 0x77c   : > { %v1767_v39 = vpop.f32.mrf.mxu1 }
 0x789   : > { %v4756_v18 = vpop.permute.xlu0 %4755 }
 0x78a   : > { %v4758_v52 = vunpack.i.h.bf16 %v4756_v18  ;;  %v4757_v56 = vunpack.i.l.bf16 %v4756_v18 }
 0x78c   : > { %v2000_v63 = vsel %vm1206_vm10, %v1762_v14, %v4758_v52  ;;  %v1999_v62 = vsel %vm1206_vm10, %v1760_v46, %v4757_v56 }
 0x78f   : > { %v1951_v59 = vpop.permute.xlu1 %1950 }
 0x790   : > { %v2001_v57 = vsel %vm1206_vm10, %v1765_v33, %v1951_v59 }
 0x797   : > { %v4761_v0 = vpop.permute.xlu0 %4760 }
 0x798   : > { %v4763_v40 = vunpack.i.h.bf16 %v4761_v0  ;;  %v4762_v2 = vunpack.i.l.bf16 %v4761_v0  ;;  %v4600_v0 = vld [vmem:[%s6814_s7 + $0x8] sm:$0xff] }
 0x799   : > { %2228 = vmatpush.bf16.msrb.mxu0 %v4600_v0 }
 0x79a   : > { %v2005_v50 = vsel %vm2002_vm15, %v1999_v62, %v4762_v2  ;;  %v2006_v45 = vsel %vm2002_vm15, %v2000_v63, %v4763_v40 }
 0x79b   : > { %v2011_v41 = vsel %vm2008_vm2, %v2005_v50, %v4767_v53  ;;  %v2012_v55 = vsel %vm2008_vm2, %v2006_v45, %v4768_v4  ;;  %v4599_v53 = vld [vmem:[%s6814_s7] sm:$0xff] }
 0x79c   : > { %v2015_v29 = vpack.c.bf16 %v2012_v55, %v2011_v41 }
 0x79d   : > { %2229 = vmatpush.bf16.msrb.mxu0 %v4599_v53 }
 0x79e   : > { %4454 = vmatmul.msk.bf16.gmra.mxu1 %vm373_vm0, %v2015_v29 }
 0x7ce   : > { %v2052_v36 = vpop.f32.mrf.mxu1  ;;  %v1971_v61 = vpop.permute.xlu0 %1970 }
 0x7cf   : > { %v2053_v60 = vadd.f32 %v2052_v36, %v2021_v31  ;;  %v2007_v3 = vsel %vm2002_vm15, %v2001_v57, %v1971_v61 }
 0x7d0   : > { %v2013_v12 = vsel %vm2008_vm2, %v2007_v3, %v1991_v25 }
 0x7d1   : > { %v2066_v44 = vadd.f32 %v2053_v60, %v5520_v17  ;;  %v2016_v10 = vpack.c.bf16 %v2013_v12, %v2013_v12 }
 0x7d3   : > { %v2071_v11 = vsel %vm373_vm0, %v2066_v44, 0.0  ;;  %4455 = vmatmul.msk.bf16.gmra.mxu1 %vm373_vm0, %v2016_v10 }
 0x7d4   : > { %2072 = vadd.xlane.f32.xlu1 %v2071_v11 }
 0x7d6   : > { %v2054_v24 = vpop.f32.mrf.mxu1 }
 0x7d7   : > { %v2055_v47 = vadd.f32 %v2054_v24, %v2021_v31 }
 0x7d9   : > { %v2067_v32 = vadd.f32 %v2055_v47, %v5523_v8  ;;  %v5990_v47 = vperm.slane %v5938_v15, 2 }
 0x7db   : > { %v2074_v9 = vsel %vm373_vm0, %v2067_v32, 0.0 }
 0x7dc   : > { %2075 = vadd.xlane.f32.xlu0 %v2074_v9 }
 0x81b   : > { %v2057_v7 = vpop.f32.mrf.mxu1 }
 0x81c   : > { %v2058_v43 = vadd.f32 %v2057_v7, %v2021_v31 }
 0x81e   : > { %v2068_v38 = vadd.f32 %v2058_v43, %v5533_v13  ;;  %v2187_v43 = vperm.slane %v5938_v15, 3 }
 0x820   : > { %v2077_v54 = vsel %vm373_vm0, %v2068_v38, 0.0 }
 0x821   : > { %2078 = vadd.xlane.f32.xlu2 %v2077_v54 }
 0x823   : > { %v2059_v17 = vpop.f32.mrf.mxu1 }
 0x824   : > { %v2060_v20 = vadd.f32 %v2059_v17, %v2021_v31 }
 0x826   : > { %v2069_v21 = vadd.f32 %v2060_v20, %v5536_v16 }
 0x828   : > { %v2080_v23 = vsel %vm373_vm0, %v2069_v21, 0.0 }
 0x829   : > { %2081 = vadd.xlane.f32.xlu1 %v2080_v23 }
 0x847   : > { %v2073_v27 = vpop.xlane.xlu1 %2072 }
 0x848   : > { %v2086_v8 = vmul.f32 %v2073_v27, %v5230_v19 }
 0x84a   : > { %v5954_v22 = vsub.f32 %v2066_v44, %v2086_v8 }
 0x84c   : > { %v2096_v48 = vmul.f32 %v5954_v22, %v5954_v22 }
 0x84e   : > { %v2101_v13 = vsel %vm373_vm0, %v2096_v48, 0.0 }
 0x84f   : > { %v2076_v26 = vpop.xlane.xlu0 %2075  ;;  %2102 = vadd.xlane.f32.xlu0 %v2101_v13 }
 0x850   : > { %v2087_v35 = vmul.f32 %v2076_v26, %v5230_v19  ;;  %v2062_v58 = vpop.f32.mrf.mxu1 }
 0x851   : > { %v2063_v51 = vadd.f32 %v2062_v58, %v2021_v31 }
 0x852   : > { %v2092_v16 = vsub.f32 %v2067_v32, %v2087_v35 }
 0x853   : > { %v2070_v42 = vadd.f32 %v2063_v51, %v5544_v28 }
 0x854   : > { %v2097_v1 = vmul.f32 %v2092_v16, %v2092_v16 }
 0x855   : > { %v2083_v6 = vsel %vm386_vm1, %v2070_v42, 0.0 }
 0x856   : > { %v2104_v30 = vsel %vm373_vm0, %v2097_v1, 0.0  ;;  %2084 = vadd.xlane.f32.xlu1 %v2083_v6 }
 0x857   : > { %2105 = vadd.xlane.f32.xlu2 %v2104_v30 }
 0x858   : > { %v2064_v5 = vpop.f32.mrf.mxu1 }
 0x894   : > { %v2079_v46 = vpop.xlane.xlu2 %2078 }
 0x895   : > { %v2088_v37 = vmul.f32 %v2079_v46, %v5230_v19 }
 0x897   : > { %v5964_v14 = vsub.f32 %v2068_v38, %v2088_v37 }
 0x899   : > { %v2098_v33 = vmul.f32 %v5964_v14, %v5964_v14 }
 0x89b   : > { %v2107_v39 = vsel %vm373_vm0, %v2098_v33, 0.0 }
 0x89c   : > { %v2082_v18 = vpop.xlane.xlu1 %2081  ;;  %2108 = vadd.xlane.f32.xlu0 %v2107_v39 }
 0x89d   : > { %v2089_v28 = vmul.f32 %v2082_v18, %v5230_v19 }
 0x89f   : > { %v5970_v52 = vsub.f32 %v2069_v21, %v2089_v28 }
 0x8a1   : > { %v2099_v56 = vmul.f32 %v5970_v52, %v5970_v52 }
 0x8a3   : > { %v2110_v49 = vsel %vm373_vm0, %v2099_v56, 0.0 }
 0x8a4   : > { %2111 = vadd.xlane.f32.xlu2 %v2110_v49 }
 0x8c2   : > { %v2103_v40 = vpop.xlane.xlu0 %2102 }
 0x8c3   : > { %v2116_v2 = vmul.f32 %v2103_v40, %v5230_v19 }
 0x8c5   : > { %v2121_v4 = vadd.f32 1e-05, %v2116_v2 }
 0x8c7   : > { %4975 = vrsqrt.f32 %v2121_v4  ;;  %vm2132_vm4 = vweird.f32 %v2121_v4 }
 0x8c9   : > { %v2085_v63 = vpop.xlane.xlu1 %2084 }
 0x8ca   : > { %v2090_v62 = vmul.f32 %v2085_v63, %v5230_v19  ;;  %v2106_v50 = vpop.xlane.xlu2 %2105 }
 0x8cb   : > { %v2117_v45 = vmul.f32 %v2106_v50, %v5230_v19 }
 0x8cc   : > { %v5984_v41 = vsub.f32 %v2070_v42, %v2090_v62 }
 0x8cd   : > { %v4976_v55 = vpop.eup %4975  ;;  %v2122_v29 = vadd.f32 1e-05, %v2117_v45 }
 0x8ce   : > { %v2127_v59 = vmul.f32 %v4976_v55, %v2121_v4  ;;  %v2100_v31 = vmul.f32 %v5984_v41, %v5984_v41  ;;  %vm2133_vm3 = vweird.f32 %v4976_v55 }
 0x8cf   : > { %4977 = vrsqrt.f32 %v2122_v29  ;;  %vm2134_vm5 = vmor %vm2132_vm4, %vm2133_vm3  ;;  %vm2142_vm7 = vweird.f32 %v2122_v29 }
 0x8d0   : > { %v2128_v57 = vmul.f32 %v4976_v55, %v2127_v59  ;;  %v2113_v36 = vsel %vm386_vm1, %v2100_v31, 0.0 }
 0x8d1   : > { %2114 = vadd.xlane.f32.xlu1 %v2113_v36 }
 0x8d2   : > { %v2129_v61 = vmul.f32 0.5, %v2128_v57 }
 0x8d4   : > { %v2130_v25 = vsub.f32 1.5, %v2129_v61 }
 0x8d5   : > { %v4978_v60 = vpop.eup %4977 }
 0x8d6   : > { %v2131_v3 = vmul.f32 %v4976_v55, %v2130_v25  ;;  %v2137_v12 = vmul.f32 %v4978_v60, %v2122_v29  ;;  %vm2143_vm6 = vweird.f32 %v4978_v60  ;;  %v6025_v25 = vperm.slane %v5938_v15, 4 }
 0x8d7   : > { %vm2144_vm8 = vmor %vm2142_vm7, %vm2143_vm6 }
 0x8d8   : > { %v2138_v44 = vmul.f32 %v4978_v60, %v2137_v12  ;;  %v2135_v10 = vsel %vm2134_vm5, %v4976_v55, %v2131_v3 }
 0x8d9   : > { %v2176_v32 = vmul.f32 %v2135_v10, %v5954_v22 }
 0x8da   : > { %v2139_v11 = vmul.f32 0.5, %v2138_v44 }
 0x8db   : > { %v2182_v38 = vmul.f32 %v5990_v47, %v2176_v32 }
 0x8dc   : > { %v2140_v24 = vsub.f32 1.5, %v2139_v11 }
 0x8dd   : > { %v5996_v20 = vadd.f32 %v2187_v43, %v2182_v38 }
 0x8de   : > { %v2141_v9 = vmul.f32 %v4978_v60, %v2140_v24 }
 0x8e0   : > { %v2145_v7 = vsel %vm2144_vm8, %v4978_v60, %v2141_v9 }
 0x8e1   : > { %v2177_v54 = vmul.f32 %v2145_v7, %v2092_v16 }
 0x8e3   : > { %v2183_v17 = vmul.f32 %v5990_v47, %v2177_v54 }
 0x8e5   : > { %v5998_v21 = vadd.f32 %v2187_v43, %v2183_v17  ;;  %v4604_v17 = vld [vmem:[%s6815_s8 + $0x18] sm:$0xff] }
 0x8e6   : > { %2494 = vmatpush.bf16.msrb.mxu2 %v4604_v17 }
 0x8e7   : > { %v2193_v23 = vpack.c.bf16 %v5998_v21, %v5996_v20 }
 0x8e9   : > { %4464 = vmatmul.msk.bf16.vlgmr.msrb.gmra.mxu0 %vm373_vm0, %v2193_v23 }
 0x90f   : > { %v2109_v27 = vpop.xlane.xlu0 %2108 }
 0x910   : > { %v2118_v8 = vmul.f32 %v2109_v27, %v5230_v19 }
 0x912   : > { %v2123_v22 = vadd.f32 1e-05, %v2118_v8 }
 0x914   : > { %4979 = vrsqrt.f32 %v2123_v22  ;;  %vm2152_vm13 = vweird.f32 %v2123_v22 }
 0x917   : > { %v2112_v48 = vpop.xlane.xlu2 %2111 }
 0x918   : > { %v2119_v13 = vmul.f32 %v2112_v48, %v5230_v19  ;;  %v4603_v48 = vld [vmem:[%s6815_s8 + $0x10] sm:$0xff] }
 0x919   : > { %2495 = vmatpush.bf16.msrb.mxu2 %v4603_v48 }
 0x91a   : > { %v4980_v26 = vpop.eup %4979  ;;  %v2124_v35 = vadd.f32 1e-05, %v2119_v13 }
 0x91b   : > { %v2147_v58 = vmul.f32 %v4980_v26, %v2123_v22  ;;  %vm2153_vm12 = vweird.f32 %v4980_v26 }
 0x91c   : > { %4981 = vrsqrt.f32 %v2124_v35  ;;  %vm2154_vm3 = vmor %vm2152_vm13, %vm2153_vm12  ;;  %vm2162_vm5 = vweird.f32 %v2124_v35 }
 0x91d   : > { %v2148_v51 = vmul.f32 %v4980_v26, %v2147_v58 }
 0x91f   : > { %v2149_v16 = vmul.f32 0.5, %v2148_v51 }
 0x921   : > { %v2150_v42 = vsub.f32 1.5, %v2149_v16 }
 0x922   : > { %v4982_v1 = vpop.eup %4981 }
 0x923   : > { %v2151_v6 = vmul.f32 %v4980_v26, %v2150_v42  ;;  %v2157_v30 = vmul.f32 %v4982_v1, %v2124_v35  ;;  %vm2163_vm4 = vweird.f32 %v4982_v1 }
 0x924   : > { %vm2164_vm6 = vmor %vm2162_vm5, %vm2163_vm4 }
 0x925   : > { %v2158_v5 = vmul.f32 %v4982_v1, %v2157_v30  ;;  %v2155_v46 = vsel %vm2154_vm3, %v4980_v26, %v2151_v6 }
 0x926   : > { %v2178_v39 = vmul.f32 %v2155_v46, %v5964_v14 }
 0x927   : > { %v2159_v37 = vmul.f32 0.5, %v2158_v5 }
 0x928   : > { %v2184_v49 = vmul.f32 %v5990_v47, %v2178_v39 }
 0x929   : > { %v2160_v33 = vsub.f32 1.5, %v2159_v37 }
 0x92a   : > { %v6009_v40 = vadd.f32 %v2187_v43, %v2184_v49 }
 0x92b   : > { %v2161_v18 = vmul.f32 %v4982_v1, %v2160_v33 }
 0x92d   : > { %v2165_v28 = vsel %vm2164_vm6, %v4982_v1, %v2161_v18  ;;  %v4602_v1 = vld [vmem:[%s6815_s8 + $0x8] sm:$0xff]  ;;  %v4601_v18 = vld [vmem:[%s6815_s8] sm:$0xff] }
 0x92e   : > { %v2179_v56 = vmul.f32 %v2165_v28, %v5970_v52  ;;  %2496 = vmatpush.bf16.msrb.mxu2 %v4602_v1 }
 0x930   : > { %v2185_v0 = vmul.f32 %v5990_v47, %v2179_v56 }
 0x932   : > { %v6011_v2 = vadd.f32 %v2187_v43, %v2185_v0  ;;  %2497 = vmatpush.bf16.msrb.mxu2 %v4601_v18 }
 0x934   : > { %v2194_v4 = vpack.c.bf16 %v6011_v2, %v6009_v40 }
 0x936   : > { %4465 = vmatmul.msk.bf16.gmra.mxu0 %vm373_vm0, %v2194_v4 }
 0x944   : > { %v2115_v14 = vpop.xlane.xlu1 %2114 }
 0x945   : > { %v2120_v53 = vmul.f32 %v2115_v14, %v5230_v19 }
 0x947   : > { %v2125_v63 = vadd.f32 1e-05, %v2120_v53 }
 0x949   : > { %4983 = vrsqrt.f32 %v2125_v63  ;;  %vm2172_vm8 = vweird.f32 %v2125_v63 }
 0x94f   : > { %v4984_v62 = vpop.eup %4983 }
 0x950   : > { %v2167_v52 = vmul.f32 %v4984_v62, %v2125_v63  ;;  %vm2173_vm7 = vweird.f32 %v4984_v62 }
 0x951   : > { %vm2174_vm12 = vmor %vm2172_vm8, %vm2173_vm7 }
 0x952   : > { %v2168_v50 = vmul.f32 %v4984_v62, %v2167_v52 }
 0x954   : > { %v2169_v45 = vmul.f32 0.5, %v2168_v50 }
 0x956   : > { %v2170_v55 = vsub.f32 1.5, %v2169_v45 }
 0x958   : > { %v2171_v29 = vmul.f32 %v4984_v62, %v2170_v55 }
 0x95a   : > { %v2175_v59 = vsel %vm2174_vm12, %v4984_v62, %v2171_v29 }
 0x95b   : > { %v2180_v31 = vmul.f32 %v2175_v59, %v5984_v41 }
 0x95d   : > { %v2186_v57 = vmul.f32 %v5990_v47, %v2180_v31 }
 0x95f   : > { %v6019_v36 = vadd.f32 %v2187_v43, %v2186_v57 }
 0x961   : > { %v2195_v61 = vpack.c.bf16 %v6019_v36, %v6019_v36 }
 0x963   : > { %4466 = vmatmul.msk.bf16.gmra.mxu0 %vm373_vm0, %v2195_v61 }
 0x966   : > { %v2231_v60 = vpop.f32.mrf.mxu0 }
 0x967   : > { %v6028_v3 = vadd.f32 %v2231_v60, %v6025_v25 }
 0x969   : > { %v6031_v12 = vmul.f32 0.70710677, %v6028_v3  ;;  %v2245_v48 = vmul.f32 0.5, %v6028_v3 }
 0x96b   : > { %v2255_v41 = vand.u32 2147483647, %v6031_v12 }
 0x96d   : > { %v2260_v44 = vmul.f32 0.3275911, %v2255_v41  ;;  %v2390_v51 = vsub.f32 0.0, %v2255_v41 }
 0x96e   : > { %v2233_v10 = vpop.f32.mrf.mxu0 }
 0x96f   : > { %v2265_v11 = vadd.f32 1.0, %v2260_v44  ;;  %v6035_v24 = vadd.f32 %v2233_v10, %v6025_v25  ;;  %v2395_v46 = vmul.f32 %v2390_v51, %v2255_v41 }
 0x971   : > { %4985 = vrcp.f32 %v2265_v11  ;;  %v6038_v47 = vmul.f32 0.70710677, %v6035_v24  ;;  %v2281_v23 = vand.u32 2147483648, %v2265_v11  ;;  %v2279_v8 = vand.u32 2147483647, %v2265_v11 }
 0x972   : > { %vm2275_vm3 = vweird.f32 %v2265_v11  ;;  %v2400_v0 = vmul.f32 1.442695, %v2395_v46 }
 0x973   : > { %v2256_v32 = vand.u32 2147483647, %v6038_v47  ;;  %v2282_v13 = vor.u32 1.1754944e-38, %v2281_v23  ;;  %vm2280_vm5 = vcmp.eq.f32.partialorder %v2279_v8, 8.507059e+37 }
 0x975   : > { %v2261_v9 = vmul.f32 0.3275911, %v2256_v32  ;;  %v2391_v63 = vsub.f32 0.0, %v2256_v32 }
 0x977   : > { %v4986_v7 = vpop.eup %4985  ;;  %v2266_v38 = vadd.f32 1.0, %v2261_v9  ;;  %v2396_v55 = vmul.f32 %v2391_v63, %v2256_v32 }
 0x978   : > { %v2271_v43 = vmul.f32 %v4986_v7, %v2265_v11  ;;  %vm2276_vm13 = vweird.f32 %v4986_v7 }
 0x979   : > { %4987 = vrcp.f32 %v2266_v38  ;;  %vm2277_vm4 = vmor %vm2275_vm3, %vm2276_vm13  ;;  %v2296_v5 = vand.u32 2147483648, %v2266_v38  ;;  %v2294_v33 = vand.u32 2147483647, %v2266_v38  ;;  %vm2290_vm7 = vweird.f32 %v2266_v38 }
 0x97a   : > { %v2272_v54 = vsub.f32 1.0, %v2271_v43  ;;  %4989 = vpow2.f32 %v2400_v0  ;;  %v2402_v61 = vmul.f32 1.442695, %v2396_v55  ;;  %vm2420_vm13 = vcmp.ge.f32.partialorder %v6031_v12, 0.0 }
 0x97b   : > { %v2297_v49 = vor.u32 1.1754944e-38, %v2296_v5  ;;  %vm2295_vm12 = vcmp.eq.f32.partialorder %v2294_v33, 8.507059e+37  ;;  %vm2421_vm3 = vcmp.ge.f32.partialorder %v6038_v47, 0.0 }
 0x97c   : > { %v2273_v27 = vmul.f32 %v4986_v7, %v2272_v54  ;;  %4991 = vpow2.f32 %v2402_v61 }
 0x97e   : > { %v2274_v22 = vadd.f32 %v4986_v7, %v2273_v27 }
 0x97f   : > { %v4988_v26 = vpop.eup %4987 }
 0x980   : > { %v2278_v35 = vsel %vm2277_vm4, %v4986_v7, %v2274_v22  ;;  %v2286_v16 = vmul.f32 %v4988_v26, %v2266_v38  ;;  %vm2291_vm6 = vweird.f32 %v4988_v26  ;;  %v4990_v60 = vpop.eup %4989 }
 0x981   : > { %v2283_v58 = vsel %vm2280_vm5, %v2282_v13, %v2278_v35  ;;  %vm2292_vm8 = vmor %vm2290_vm7, %vm2291_vm6  ;;  %v2246_v13 = vmul.f32 0.5, %v6035_v24 }
 0x982   : > { %v2345_v42 = vmul.f32 1.0614054, %v2283_v58  ;;  %v2287_v6 = vsub.f32 1.0, %v2286_v16  ;;  %v4992_v54 = vpop.eup %4991 }
 0x984   : > { %v2350_v30 = vadd.f32 -1.4531521, %v2345_v42  ;;  %v2288_v37 = vmul.f32 %v4988_v26, %v2287_v6 }
 0x986   : > { %v2355_v39 = vmul.f32 %v2350_v30, %v2283_v58  ;;  %v2289_v28 = vadd.f32 %v4988_v26, %v2288_v37 }
 0x988   : > { %v2360_v56 = vadd.f32 1.4214138, %v2355_v39  ;;  %v2293_v4 = vsel %vm2292_vm8, %v4988_v26, %v2289_v28 }
 0x989   : > { %v2298_v53 = vsel %vm2295_vm12, %v2297_v49, %v2293_v4 }
 0x98a   : > { %v2365_v14 = vmul.f32 %v2360_v56, %v2283_v58  ;;  %v2346_v62 = vmul.f32 1.0614054, %v2298_v53 }
 0x98c   : > { %v2370_v52 = vadd.f32 -0.28449672, %v2365_v14  ;;  %v2351_v50 = vadd.f32 -1.4531521, %v2346_v62 }
 0x98e   : > { %v2375_v45 = vmul.f32 %v2370_v52, %v2283_v58  ;;  %v2356_v29 = vmul.f32 %v2351_v50, %v2298_v53 }
 0x990   : > { %v2380_v59 = vadd.f32 0.2548296, %v2375_v45  ;;  %v2361_v31 = vadd.f32 1.4214138, %v2356_v29 }
 0x992   : > { %v2385_v57 = vmul.f32 %v2380_v59, %v2283_v58  ;;  %v2366_v41 = vmul.f32 %v2361_v31, %v2298_v53 }
 0x994   : > { %v2410_v44 = vmul.f32 %v4990_v60, %v2385_v57  ;;  %v2371_v10 = vadd.f32 -0.28449672, %v2366_v41 }
 0x996   : > { %v2415_v11 = vsub.f32 1.0, %v2410_v44  ;;  %v2376_v9 = vmul.f32 %v2371_v10, %v2298_v53 }
 0x998   : > { %v2381_v7 = vadd.f32 0.2548296, %v2376_v9  ;;  %v2425_v43 = vsub.f32 0.0, %v2415_v11 }
 0x99a   : > { %v2386_v38 = vmul.f32 %v2381_v7, %v2298_v53  ;;  %v2430_v32 = vsel %vm2420_vm13, %v2415_v11, %v2425_v43 }
 0x99b   : > { %v2435_v8 = vadd.f32 1.0, %v2430_v32 }
 0x99c   : > { %v2411_v17 = vmul.f32 %v4992_v54, %v2386_v38 }
 0x99d   : > { %v2440_v35 = vmul.f32 %v2435_v8, %v2245_v48 }
 0x99e   : > { %v2416_v23 = vsub.f32 1.0, %v2411_v17 }
 0x9a0   : > { %v2426_v27 = vsub.f32 0.0, %v2416_v23 }
 0x9a2   : > { %v2431_v22 = vsel %vm2421_vm3, %v2416_v23, %v2426_v27 }
 0x9a3   : > { %v2436_v26 = vadd.f32 1.0, %v2431_v22 }
 0x9a5   : > { %v2441_v58 = vmul.f32 %v2436_v26, %v2246_v13 }
 0x9a7   : > { %v2445_v51 = vpack.c.bf16 %v2441_v58, %v2440_v35 }
 0x9a9   : > { %4483 = vmatmul.msk.bf16.vlgmr.msrb.gmra.mxu2 %vm667_vm9, %v2445_v51 }
 0x9b3   : > { %v2236_v16 = vpop.f32.mrf.mxu0 }
 0x9b4   : > { %v6059_v12 = vadd.f32 %v2236_v16, %v6025_v25 }
 0x9b6   : > { %v6062_v42 = vmul.f32 0.70710677, %v6059_v12 }
 0x9b8   : > { %v2257_v47 = vand.u32 2147483647, %v6062_v42 }
 0x9ba   : > { %v2262_v1 = vmul.f32 0.3275911, %v2257_v47  ;;  %v2392_v62 = vsub.f32 0.0, %v2257_v47 }
 0x9bb   : > { %v2238_v6 = vpop.f32.mrf.mxu0 }
 0x9bc   : > { %v2267_v3 = vadd.f32 1.0, %v2262_v1  ;;  %v6066_v24 = vadd.f32 %v2238_v6, %v6025_v25  ;;  %v2397_v59 = vmul.f32 %v2392_v62, %v2257_v47  ;;  %v2247_v62 = vmul.f32 0.5, %v6059_v12 }
 0x9be   : > { %4993 = vrcp.f32 %v2267_v3  ;;  %v6069_v30 = vmul.f32 0.70710677, %v6066_v24  ;;  %v2311_v28 = vand.u32 2147483648, %v2267_v3  ;;  %v2309_v49 = vand.u32 2147483647, %v2267_v3 }
 0x9bf   : > { %vm2305_vm5 = vweird.f32 %v2267_v3  ;;  %v2404_v10 = vmul.f32 1.442695, %v2397_v59 }
 0x9c0   : > { %v2258_v5 = vand.u32 2147483647, %v6069_v30  ;;  %v2312_v4 = vor.u32 1.1754944e-38, %v2311_v28  ;;  %vm2310_vm7 = vcmp.eq.f32.partialorder %v2309_v49, 8.507059e+37 }
 0x9c2   : > { %v2263_v46 = vmul.f32 0.3275911, %v2258_v5  ;;  %v2393_v43 = vsub.f32 0.0, %v2258_v5 }
 0x9c4   : > { %v4994_v37 = vpop.eup %4993  ;;  %v2268_v39 = vadd.f32 1.0, %v2263_v46  ;;  %v2398_v23 = vmul.f32 %v2393_v43, %v2258_v5 }
 0x9c5   : > { %v2301_v33 = vmul.f32 %v4994_v37, %v2267_v3  ;;  %vm2306_vm4 = vweird.f32 %v4994_v37 }
 0x9c6   : > { %4995 = vrcp.f32 %v2268_v39  ;;  %vm2307_vm6 = vmor %vm2305_vm5, %vm2306_vm4  ;;  %v2326_v29 = vand.u32 2147483648, %v2268_v39  ;;  %v2324_v57 = vand.u32 2147483647, %v2268_v39  ;;  %vm2320_vm12 = vweird.f32 %v2268_v39 }
 0x9c7   : > { %v2302_v18 = vsub.f32 1.0, %v2301_v33  ;;  %4997 = vpow2.f32 %v2404_v10  ;;  %v2406_v13 = vmul.f32 1.442695, %v2398_v23  ;;  %vm2422_vm4 = vcmp.ge.f32.partialorder %v6062_v42, 0.0 }
 0x9c8   : > { %v2327_v44 = vor.u32 1.1754944e-38, %v2326_v29  ;;  %vm2325_vm3 = vcmp.eq.f32.partialorder %v2324_v57, 8.507059e+37  ;;  %vm2423_vm5 = vcmp.ge.f32.partialorder %v6069_v30, 0.0 }
 0x9c9   : > { %v2303_v56 = vmul.f32 %v4994_v37, %v2302_v18  ;;  %4999 = vpow2.f32 %v2406_v13 }
 0x9cb   : > { %v2304_v0 = vadd.f32 %v4994_v37, %v2303_v56 }
 0x9cc   : > { %v4996_v14 = vpop.eup %4995 }
 0x9cd   : > { %v2308_v53 = vsel %vm2307_vm6, %v4994_v37, %v2304_v0  ;;  %v2316_v52 = vmul.f32 %v4996_v14, %v2268_v39  ;;  %vm2321_vm8 = vweird.f32 %v4996_v14  ;;  %v4998_v35 = vpop.eup %4997 }
 0x9ce   : > { %v2313_v63 = vsel %vm2310_vm7, %v2312_v4, %v2308_v53  ;;  %vm2322_vm13 = vmor %vm2320_vm12, %vm2321_vm8 }
 0x9cf   : > { %v2347_v50 = vmul.f32 1.0614054, %v2313_v63  ;;  %v2317_v45 = vsub.f32 1.0, %v2316_v52  ;;  %v5000_v56 = vpop.eup %4999  ;;  %v2248_v52 = vmul.f32 0.5, %v6066_v24 }
 0x9d1   : > { %v2352_v55 = vadd.f32 -1.4531521, %v2347_v50  ;;  %v2318_v31 = vmul.f32 %v4996_v14, %v2317_v45 }
 0x9d3   : > { %v2357_v61 = vmul.f32 %v2352_v55, %v2313_v63  ;;  %v2319_v60 = vadd.f32 %v4996_v14, %v2318_v31 }
 0x9d5   : > { %v2362_v41 = vadd.f32 1.4214138, %v2357_v61  ;;  %v2323_v11 = vsel %vm2322_vm13, %v4996_v14, %v2319_v60 }
 0x9d6   : > { %v2328_v7 = vsel %vm2325_vm3, %v2327_v44, %v2323_v11 }
 0x9d7   : > { %v2367_v9 = vmul.f32 %v2362_v41, %v2313_v63  ;;  %v2348_v38 = vmul.f32 1.0614054, %v2328_v7 }
 0x9d9   : > { %v2372_v54 = vadd.f32 -0.28449672, %v2367_v9  ;;  %v2353_v17 = vadd.f32 -1.4531521, %v2348_v38 }
 0x9db   : > { %v2377_v32 = vmul.f32 %v2372_v54, %v2313_v63  ;;  %v2358_v27 = vmul.f32 %v2353_v17, %v2328_v7 }
 0x9dd   : > { %v2382_v8 = vadd.f32 0.2548296, %v2377_v32  ;;  %v2363_v22 = vadd.f32 1.4214138, %v2358_v27 }
 0x9df   : > { %v2387_v48 = vmul.f32 %v2382_v8, %v2313_v63  ;;  %v2368_v58 = vmul.f32 %v2363_v22, %v2328_v7 }
 0x9e0   : > { %v2241_v26 = vpop.f32.mrf.mxu0 }
 0x9e1   : > { %v6073_v51 = vadd.f32 %v2241_v26, %v6025_v25  ;;  %v2412_v16 = vmul.f32 %v4998_v35, %v2387_v48  ;;  %v2373_v47 = vadd.f32 -0.28449672, %v2368_v58 }
 0x9e3   : > { %v2254_v1 = vmul.f32 0.70710677, %v6073_v51  ;;  %v2417_v6 = vsub.f32 1.0, %v2412_v16  ;;  %v2378_v3 = vmul.f32 %v2373_v47, %v2328_v7  ;;  %v2249_v26 = vmul.f32 0.5, %v6073_v51 }
 0x9e4   : > { %v2456_v47 = vperm.slane %v5938_v15, 5 }
 0x9e5   : > { %v2259_v46 = vand.u32 2147483647, %v2254_v1  ;;  %v2383_v5 = vadd.f32 0.2548296, %v2378_v3  ;;  %v2427_v39 = vsub.f32 0.0, %v2417_v6  ;;  %vm2424_vm13 = vcmp.ge.f32.partialorder %v2254_v1, 0.0 }
 0x9e7   : > { %v2264_v37 = vmul.f32 0.3275911, %v2259_v46  ;;  %v2388_v18 = vmul.f32 %v2383_v5, %v2328_v7  ;;  %v2432_v25 = vsel %vm2422_vm4, %v2417_v6, %v2427_v39  ;;  %v2394_v12 = vsub.f32 0.0, %v2259_v46 }
 0x9e8   : > { %v2243_v33 = vpop.f32.mrf.mxu0  ;;  %v2437_v14 = vadd.f32 1.0, %v2432_v25 }
 0x9e9   : > { %v2269_v28 = vadd.f32 1.0, %v2264_v37  ;;  %v2413_v49 = vmul.f32 %v5000_v56, %v2388_v18  ;;  %v2399_v11 = vmul.f32 %v2394_v12, %v2259_v46 }
 0x9ea   : > { %v2442_v55 = vmul.f32 %v2437_v14, %v2247_v62 }
 0x9eb   : > { %5001 = vrcp.f32 %v2269_v28  ;;  %v2418_v0 = vsub.f32 1.0, %v2413_v49  ;;  %v2341_v31 = vand.u32 2147483648, %v2269_v28  ;;  %v2339_v42 = vand.u32 2147483647, %v2269_v28 }
 0x9ec   : > { %vm2335_vm7 = vweird.f32 %v2269_v28  ;;  %v2408_v43 = vmul.f32 1.442695, %v2399_v11 }
 0x9ed   : > { %v2428_v4 = vsub.f32 0.0, %v2418_v0  ;;  %v2342_v30 = vor.u32 1.1754944e-38, %v2341_v31  ;;  %vm2340_vm12 = vcmp.eq.f32.partialorder %v2339_v42, 8.507059e+37 }
 0x9ee   : > { %5003 = vpow2.f32 %v2408_v43 }
 0x9ef   : > { %v2433_v63 = vsel %vm2423_vm5, %v2418_v0, %v2428_v4 }
 0x9f0   : > { %v2438_v50 = vadd.f32 1.0, %v2433_v63 }
 0x9f1   : > { %v5002_v53 = vpop.eup %5001 }
 0x9f2   : > { %v2331_v45 = vmul.f32 %v5002_v53, %v2269_v28  ;;  %v2443_v29 = vmul.f32 %v2438_v50, %v2248_v52  ;;  %vm2336_vm6 = vweird.f32 %v5002_v53 }
 0x9f3   : > { %vm2337_vm8 = vmor %vm2335_vm7, %vm2336_vm6 }
 0x9f4   : > { %v2332_v59 = vsub.f32 1.0, %v2331_v45  ;;  %v2446_v61 = vpack.c.bf16 %v2443_v29, %v2442_v55  ;;  %v5004_v27 = vpop.eup %5003 }
 0x9f6   : > { %v2333_v57 = vmul.f32 %v5002_v53, %v2332_v59  ;;  %4484 = vmatmul.msk.bf16.gmra.mxu2 %vm667_vm9, %v2446_v61 }
 0x9f8   : > { %v2334_v60 = vadd.f32 %v5002_v53, %v2333_v57 }
 0x9fa   : > { %v2338_v41 = vsel %vm2337_vm8, %v5002_v53, %v2334_v60 }
 0x9fb   : > { %v2343_v24 = vsel %vm2340_vm12, %v2342_v30, %v2338_v41 }
 0x9fc   : > { %v2349_v44 = vmul.f32 1.0614054, %v2343_v24 }
 0x9fe   : > { %v2354_v10 = vadd.f32 -1.4531521, %v2349_v44 }
 0xa00   : > { %v2359_v9 = vmul.f32 %v2354_v10, %v2343_v24 }
 0xa02   : > { %v2364_v7 = vadd.f32 1.4214138, %v2359_v9 }
 0xa04   : > { %v2369_v38 = vmul.f32 %v2364_v7, %v2343_v24 }
 0xa06   : > { %v2374_v54 = vadd.f32 -0.28449672, %v2369_v38  ;;  %v4606_v38 = vld [vmem:[%s6812_s5 + $0x18] sm:$0xff] }
 0xa07   : > { %2678 = vmatpush.bf16.msra.mxu3 %v4606_v38 }
 0xa08   : > { %v2379_v17 = vmul.f32 %v2374_v54, %v2343_v24 }
 0xa0a   : > { %v2384_v32 = vadd.f32 0.2548296, %v2379_v17 }
 0xa0c   : > { %v2389_v23 = vmul.f32 %v2384_v32, %v2343_v24 }
 0xa0e   : > { %v2414_v8 = vmul.f32 %v5004_v27, %v2389_v23  ;;  %v4605_v23 = vld [vmem:[%s6812_s5 + $0x10] sm:$0xff] }
 0xa0f   : > { %2679 = vmatpush.bf16.msra.mxu3 %v4605_v23 }
 0xa10   : > { %v2419_v22 = vsub.f32 1.0, %v2414_v8 }
 0xa12   : > { %v2429_v48 = vsub.f32 0.0, %v2419_v22 }
 0xa14   : > { %v2434_v13 = vsel %vm2424_vm13, %v2419_v22, %v2429_v48 }
 0xa15   : > { %v2439_v35 = vadd.f32 1.0, %v2434_v13 }
 0xa17   : > { %v2444_v58 = vmul.f32 %v2439_v35, %v2249_v26 }
 0xa19   : > { %v2447_v16 = vpack.c.bf16 %v2444_v58, %v2444_v58 }
 0xa1b   : > { %4485 = vmatmul.msk.bf16.gmra.mxu2 %vm667_vm9, %v2447_v16 }
 0xa2c   : > { %v2499_v6 = vpop.f32.mrf.mxu2 }
 0xa2d   : > { %v2500_v3 = vadd.f32 %v2499_v6, %v2456_v47 }
 0xa2f   : > { %v2513_v46 = vadd.f32 %v2500_v3, %v5996_v20 }
 0xa31   : > { %v2518_v5 = vsel %vm373_vm0, %v2513_v46, 0.0 }
 0xa32   : > { %2519 = vadd.xlane.f32.xlu0 %v2518_v5 }
 0xa34   : > { %v2501_v37 = vpop.f32.mrf.mxu2 }
 0xa35   : > { %v2502_v33 = vadd.f32 %v2501_v37, %v2456_v47 }
 0xa37   : > { %v2514_v1 = vadd.f32 %v2502_v33, %v5998_v21  ;;  %v6125_v33 = vperm.slane %v5938_v15, 6 }
 0xa39   : > { %v2521_v51 = vsel %vm373_vm0, %v2514_v1, 0.0 }
 0xa3a   : > { %2522 = vadd.xlane.f32.xlu2 %v2521_v51 }
 0xa79   : > { %v2504_v39 = vpop.f32.mrf.mxu2 }
 0xa7a   : > { %v2505_v18 = vadd.f32 %v2504_v39, %v2456_v47 }
 0xa7c   : > { %v2515_v28 = vadd.f32 %v2505_v18, %v6009_v40  ;;  %v2634_v18 = vperm.slane %v5938_v15, 7 }
 0xa7e   : > { %v2524_v56 = vsel %vm373_vm0, %v2515_v28, 0.0 }
 0xa7f   : > { %2525 = vadd.xlane.f32.xlu1 %v2524_v56 }
 0xa81   : > { %v2506_v49 = vpop.f32.mrf.mxu2 }
 0xa82   : > { %v2507_v25 = vadd.f32 %v2506_v49, %v2456_v47 }
 0xa84   : > { %v2516_v20 = vadd.f32 %v2507_v25, %v6011_v2 }
 0xa86   : > { %v2527_v0 = vsel %vm373_vm0, %v2516_v20, 0.0 }
 0xa87   : > { %2528 = vadd.xlane.f32.xlu0 %v2527_v0 }
 0xa9e   : > { %v2509_v4 = vpop.f32.mrf.mxu2 }
 0xa9f   : > { %v2510_v14 = vadd.f32 %v2509_v4, %v2456_v47 }
 0xaa1   : > { %v2517_v21 = vadd.f32 %v2510_v14, %v6019_v36 }
 0xaa3   : > { %v2530_v53 = vsel %vm386_vm1, %v2517_v21, 0.0 }
 0xaa4   : > { %2531 = vadd.xlane.f32.xlu2 %v2530_v53 }
 0xaa5   : > { %v2520_v63 = vpop.xlane.xlu0 %2519 }
 0xaa6   : > { %v2511_v62 = vpop.f32.mrf.mxu2  ;;  %v2533_v40 = vmul.f32 %v2520_v63, %v5230_v19 }
 0xaa8   : > { %v2538_v52 = vsub.f32 %v2513_v46, %v2533_v40 }
 0xaaa   : > { %v2543_v50 = vmul.f32 %v2538_v52, %v2538_v52 }
 0xaac   : > { %v2548_v45 = vsel %vm373_vm0, %v2543_v50, 0.0 }
 0xaad   : > { %2549 = vadd.xlane.f32.xlu1 %v2548_v45  ;;  %v2523_v2 = vpop.xlane.xlu2 %2522 }
 0xaae   : > { %v2534_v55 = vmul.f32 %v2523_v2, %v5230_v19 }
 0xab0   : > { %v2539_v29 = vsub.f32 %v2514_v1, %v2534_v55 }
 0xab2   : > { %v2544_v59 = vmul.f32 %v2539_v29, %v2539_v29 }
 0xab4   : > { %v2551_v31 = vsel %vm373_vm0, %v2544_v59, 0.0 }
 0xab5   : > { %2552 = vadd.xlane.f32.xlu0 %v2551_v31 }
 0xaf2   : > { %v2526_v36 = vpop.xlane.xlu1 %2525 }
 0xaf3   : > { %v2535_v57 = vmul.f32 %v2526_v36, %v5230_v19 }
 0xaf5   : > { %v6099_v42 = vsub.f32 %v2515_v28, %v2535_v57 }
 0xaf7   : > { %v2545_v61 = vmul.f32 %v6099_v42, %v6099_v42 }
 0xaf9   : > { %v2554_v60 = vsel %vm373_vm0, %v2545_v61, 0.0 }
 0xafa   : > { %v2529_v30 = vpop.xlane.xlu0 %2528  ;;  %2555 = vadd.xlane.f32.xlu2 %v2554_v60 }
 0xafb   : > { %v2536_v41 = vmul.f32 %v2529_v30, %v5230_v19 }
 0xafd   : > { %v6105_v12 = vsub.f32 %v2516_v20, %v2536_v41 }
 0xaff   : > { %v2546_v24 = vmul.f32 %v6105_v12, %v6105_v12 }
 0xb01   : > { %v2557_v44 = vsel %vm373_vm0, %v2546_v24, 0.0 }
 0xb02   : > { %2558 = vadd.xlane.f32.xlu1 %v2557_v44 }
 0xb17   : > { %v2532_v10 = vpop.xlane.xlu2 %2531 }
 0xb18   : > { %v2537_v11 = vmul.f32 %v2532_v10, %v5230_v19 }
 0xb1a   : > { %v6111_v9 = vsub.f32 %v2517_v21, %v2537_v11 }
 0xb1c   : > { %v2547_v7 = vmul.f32 %v6111_v9, %v6111_v9 }
 0xb1e   : > { %v2560_v43 = vsel %vm386_vm1, %v2547_v7, 0.0 }
 0xb1f   : > { %2561 = vadd.xlane.f32.xlu0 %v2560_v43 }
 0xb20   : > { %v2550_v54 = vpop.xlane.xlu1 %2549 }
 0xb21   : > { %v2563_v17 = vmul.f32 %v2550_v54, %v5230_v19 }
 0xb23   : > { %v2568_v32 = vadd.f32 1e-05, %v2563_v17 }
 0xb25   : > { %5005 = vrsqrt.f32 %v2568_v32  ;;  %vm2579_vm4 = vweird.f32 %v2568_v32 }
 0xb28   : > { %v2553_v27 = vpop.xlane.xlu0 %2552 }
 0xb29   : > { %v2564_v8 = vmul.f32 %v2553_v27, %v5230_v19 }
 0xb2b   : > { %v5006_v22 = vpop.eup %5005  ;;  %v2569_v48 = vadd.f32 1e-05, %v2564_v8 }
 0xb2c   : > { %v2574_v13 = vmul.f32 %v5006_v22, %v2568_v32  ;;  %vm2580_vm3 = vweird.f32 %v5006_v22 }
 0xb2d   : > { %5007 = vrsqrt.f32 %v2569_v48  ;;  %vm2581_vm5 = vmor %vm2579_vm4, %vm2580_vm3  ;;  %vm2589_vm7 = vweird.f32 %v2569_v48 }
 0xb2e   : > { %v2575_v26 = vmul.f32 %v5006_v22, %v2574_v13 }
 0xb30   : > { %v2576_v35 = vmul.f32 0.5, %v2575_v26 }
 0xb32   : > { %v2577_v58 = vsub.f32 1.5, %v2576_v35  ;;  %v4486_v35 = vld [vmem:[%s6816_s9 + $0x8] sm:$0xff] }
 0xb33   : > { %v5008_v16 = vpop.eup %5007 }
 0xb34   : > { %v2578_v47 = vmul.f32 %v5006_v22, %v2577_v58  ;;  %v2584_v6 = vmul.f32 %v5008_v16, %v2569_v48  ;;  %vm2590_vm6 = vweird.f32 %v5008_v16  ;;  %v2650_v58 = vperm.slane %v4486_v35, 0 }
 0xb35   : > { %vm2591_vm8 = vmor %vm2589_vm7, %vm2590_vm6 }
 0xb36   : > { %v2585_v3 = vmul.f32 %v5008_v16, %v2584_v6  ;;  %v2582_v46 = vsel %vm2581_vm5, %v5006_v22, %v2578_v47 }
 0xb37   : > { %v2623_v1 = vmul.f32 %v2582_v46, %v2538_v52 }
 0xb38   : > { %v2586_v5 = vmul.f32 0.5, %v2585_v3 }
 0xb39   : > { %v2629_v28 = vmul.f32 %v6125_v33, %v2623_v1 }
 0xb3a   : > { %v2587_v37 = vsub.f32 1.5, %v2586_v5 }
 0xb3b   : > { %v6130_v25 = vadd.f32 %v2634_v18, %v2629_v28 }
 0xb3c   : > { %v2588_v51 = vmul.f32 %v5008_v16, %v2587_v37 }
 0xb3e   : > { %v2592_v39 = vsel %vm2591_vm8, %v5008_v16, %v2588_v51 }
 0xb3f   : > { %v2624_v56 = vmul.f32 %v2592_v39, %v2539_v29 }
 0xb41   : > { %v2630_v49 = vmul.f32 %v6125_v33, %v2624_v56 }
 0xb43   : > { %v6132_v20 = vadd.f32 %v2634_v18, %v2630_v49 }
 0xb45   : > { %v2642_v0 = vpack.c.bf16 %v6132_v20, %v6130_v25 }
 0xb47   : > { %4499 = vmatmul.msk.bf16.vlgmr.msra.gmra.mxu3 %vm373_vm0, %v2642_v0 }
 0xb6d   : > { %v2556_v4 = vpop.xlane.xlu2 %2555 }
 0xb6e   : > { %v2565_v14 = vmul.f32 %v2556_v4, %v5230_v19 }
 0xb70   : > { %v2570_v21 = vadd.f32 1e-05, %v2565_v14 }
 0xb72   : > { %5009 = vrsqrt.f32 %v2570_v21  ;;  %vm2599_vm13 = vweird.f32 %v2570_v21 }
 0xb75   : > { %v2559_v15 = vpop.xlane.xlu1 %2558 }
 0xb76   : > { %v2566_v53 = vmul.f32 %v2559_v15, %v5230_v19 }
 0xb78   : > { %v5010_v63 = vpop.eup %5009  ;;  %v2571_v62 = vadd.f32 1e-05, %v2566_v53 }
 0xb79   : > { %v2594_v40 = vmul.f32 %v5010_v63, %v2570_v21  ;;  %vm2600_vm12 = vweird.f32 %v5010_v63 }
 0xb7a   : > { %5011 = vrsqrt.f32 %v2571_v62  ;;  %vm2601_vm3 = vmor %vm2599_vm13, %vm2600_vm12  ;;  %vm2609_vm5 = vweird.f32 %v2571_v62 }
 0xb7b   : > { %v2595_v52 = vmul.f32 %v5010_v63, %v2594_v40 }
 0xb7d   : > { %v2596_v50 = vmul.f32 0.5, %v2595_v52 }
 0xb7f   : > { %v2597_v45 = vsub.f32 1.5, %v2596_v50 }
 0xb80   : > { %v5012_v2 = vpop.eup %5011 }
 0xb81   : > { %v2598_v55 = vmul.f32 %v5010_v63, %v2597_v45  ;;  %v2604_v29 = vmul.f32 %v5012_v2, %v2571_v62  ;;  %vm2610_vm4 = vweird.f32 %v5012_v2 }
 0xb82   : > { %vm2611_vm6 = vmor %vm2609_vm5, %vm2610_vm4 }
 0xb83   : > { %v2605_v59 = vmul.f32 %v5012_v2, %v2604_v29  ;;  %v2602_v31 = vsel %vm2601_vm3, %v5010_v63, %v2598_v55 }
 0xb84   : > { %v2625_v61 = vmul.f32 %v2602_v31, %v6099_v42 }
 0xb85   : > { %v2606_v36 = vmul.f32 0.5, %v2605_v59 }
 0xb86   : > { %v2631_v24 = vmul.f32 %v6125_v33, %v2625_v61 }
 0xb87   : > { %v2607_v57 = vsub.f32 1.5, %v2606_v36 }
 0xb88   : > { %v6143_v11 = vadd.f32 %v2634_v18, %v2631_v24 }
 0xb89   : > { %v2608_v60 = vmul.f32 %v5012_v2, %v2607_v57 }
 0xb8b   : > { %v2612_v30 = vsel %vm2611_vm6, %v5012_v2, %v2608_v60 }
 0xb8c   : > { %v2626_v41 = vmul.f32 %v2612_v30, %v6105_v12 }
 0xb8e   : > { %v2632_v44 = vmul.f32 %v6125_v33, %v2626_v41 }
 0xb90   : > { %v6145_v7 = vadd.f32 %v2634_v18, %v2632_v44 }
 0xb92   : > { %v2562_v10 = vpop.xlane.xlu0 %2561  ;;  %v2643_v42 = vpack.c.bf16 %v6145_v7, %v6143_v11 }
 0xb93   : > { %v2567_v43 = vmul.f32 %v2562_v10, %v5230_v19 }
 0xb94   : > { %4500 = vmatmul.msk.bf16.gmra.mxu3 %vm373_vm0, %v2643_v42 }
 0xb95   : > { %v2572_v38 = vadd.f32 1e-05, %v2567_v43 }
 0xb97   : > { %5013 = vrsqrt.f32 %v2572_v38  ;;  %vm2619_vm8 = vweird.f32 %v2572_v38 }
 0xb9d   : > { %v5014_v54 = vpop.eup %5013 }
 0xb9e   : > { %v2614_v12 = vmul.f32 %v5014_v54, %v2572_v38  ;;  %vm2620_vm7 = vweird.f32 %v5014_v54 }
 0xb9f   : > { %vm2621_vm12 = vmor %vm2619_vm8, %vm2620_vm7 }
 0xba0   : > { %v2615_v17 = vmul.f32 %v5014_v54, %v2614_v12 }
 0xba2   : > { %v2616_v32 = vmul.f32 0.5, %v2615_v17 }
 0xba4   : > { %v2617_v23 = vsub.f32 1.5, %v2616_v32 }
 0xba6   : > { %v2618_v27 = vmul.f32 %v5014_v54, %v2617_v23 }
 0xba8   : > { %v2622_v8 = vsel %vm2621_vm12, %v5014_v54, %v2618_v27 }
 0xba9   : > { %v2627_v22 = vmul.f32 %v2622_v8, %v6111_v9 }
 0xbab   : > { %v2633_v48 = vmul.f32 %v6125_v33, %v2627_v22 }
 0xbad   : > { %v6153_v13 = vadd.f32 %v2634_v18, %v2633_v48 }
 0xbaf   : > { %v2644_v26 = vpack.c.bf16 %v6153_v13, %v6153_v13 }
 0xbb1   : > { %4501 = vmatmul.msk.bf16.gmra.mxu3 %vm373_vm0, %v2644_v26 }
 0xbca   : > { %v2681_v16 = vpop.f32.mrf.mxu3 }
 0xbcb   : > { %v6161_v47 = vadd.f32 %v2681_v16, %v2650_v58 }
 0xbcd   : > { %v6164_v9 = vmul.f32 0.35355338, %v6161_v47 }
 0xbcf   : > { %v2750_v5 = vpack.c.bf16 %v6164_v9, %v6164_v9 }
 0xbd1   : > { %v6175_v33 = vunpack.c.l.b16 %v2750_v5 }
 0xbd2   : > { %v2683_v6 = vpop.f32.mrf.mxu3 }
 0xbd3   : > { %v6166_v3 = vadd.f32 %v2683_v6, %v2650_v58 }
 0xbd5   : > { %v6169_v46 = vmul.f32 0.35355338, %v6166_v3 }
 0xbd7   : > { %v2751_v37 = vpack.c.bf16 %v6169_v46, %v6169_v46 }
 0xbd9   : > { %v6177_v1 = vunpack.c.l.b16 %v2751_v37 }
 0xbdb   : > { %v2850_v51 = vpack.c.b16 %v6177_v1, %v6175_v33 }
 0xc17   : > { %v2686_v39 = vpop.f32.mrf.mxu3 }
 0xc18   : > { %v2687_v18 = vadd.f32 %v2686_v39, %v2650_v58 }
 0xc1a   : > { %v2697_v28 = vmul.f32 0.35355338, %v2687_v18  ;;  %v2822_v0 = vpack.c.bf16 %v2687_v18, %v2687_v18 }
 0xc1c   : > { %v2752_v21 = vpack.c.bf16 %v2697_v28, %v2697_v28  ;;  %v2860_v62 = vunpack.c.l.b16 %v2822_v0 }
 0xc1e   : > { %v6185_v52 = vunpack.c.l.b16 %v2752_v21 }
 0xc1f   : > { %v2688_v56 = vpop.f32.mrf.mxu3 }
 0xc20   : > { %v2689_v49 = vadd.f32 %v2688_v56, %v2650_v58 }
 0xc22   : > { %v2698_v4 = vmul.f32 0.35355338, %v2689_v49  ;;  %v4779_v14 = vpack.i.bf16 %v6161_v47, %v2689_v49  ;;  %v2823_v15 = vpack.c.bf16 %v2689_v49, %v2689_v49 }
 0xc24   : > { %4780 = vrot.lane.b32.xlu0 %v4779_v14, %s5150_s23  ;;  %v6183_v53 = vpack.i.bf16 %v2698_v4, %v2697_v28  ;;  %v2753_v63 = vpack.c.bf16 %v2698_v4, %v2698_v4  ;;  %v2861_v40 = vunpack.c.l.b16 %v2823_v15 }
 0xc26   : > { %v6187_v50 = vunpack.c.l.b16 %v2753_v63  ;;  %v6189_v45 = vpack.c.b16 %v2861_v40, %v2860_v62 }
 0xc28   : > { %v2851_v2 = vpack.c.b16 %v6187_v50, %v6185_v52 }
 0xc2c   : > { %4785 = vrot.lane.b32.xlu0 %v4779_v14, %s5149_s22 }
 0xc34   : > { %v2691_v55 = vpop.f32.mrf.mxu3  ;;  %2807 = vrot.lane.b32.xlu0 %v6166_v3, %s5149_s22 }
 0xc35   : > { %v6194_v29 = vadd.f32 %v2691_v55, %v2650_v58 }
 0xc37   : > { %v4774_v59 = vpack.i.bf16 %v2687_v18, %v6194_v29 }
 0xc39   : > { %4775 = vrot.lane.b32.xlu1 %v4774_v59, %s5149_s22  ;;  %4770 = vrot.lane.b32.xlu2 %v4774_v59, %s5150_s23 }
 0xc3c   : > { %v2693_v31 = vpop.f32.mrf.mxu3 }
 0xc41   : > { %4790 = vrot.lane.b32.xlu2 %v4774_v59, %s5151_s24  ;;  %2792 = vrot.lane.b32.xlu1 %v6166_v3, %s5150_s23 }
 0xc49   : > { %2777 = vrot.lane.b32.xlu1 %v6166_v3, %s5151_s24  ;;  %4795 = vrot.lane.b32.xlu2 %v4779_v14, %s5151_s24 }
 0xc93   : > { %v4771_v36 = vpop.permute.xlu2 %4770 }
 0xc94   : > { %v4772_v57 = vunpack.i.l.bf16 %v4771_v36  ;;  %v4773_v61 = vunpack.i.h.bf16 %v4771_v36 }
 0xc96   : > { %v2834_v60 = vpack.c.bf16 %v4772_v57, %v4772_v57  ;;  %v4781_v41 = vpop.permute.xlu0 %4780  ;;  %v2832_v24 = vpack.c.bf16 %v4773_v61, %v4773_v61 }
 0xc97   : > { %v4782_v44 = vunpack.i.l.bf16 %v4781_v41  ;;  %v4783_v48 = vunpack.i.h.bf16 %v4781_v41 }
 0xc98   : > { %v3008_v30 = vunpack.c.l.b16 %v2834_v60  ;;  %v3006_v42 = vunpack.c.l.b16 %v2832_v24 }
 0xc99   : > { %v2833_v43 = vpack.c.bf16 %v4782_v44, %v4782_v44  ;;  %v2830_v18 = vpack.c.bf16 %v4783_v48, %v4783_v48 }
 0xc9a   : > { %v6207_v10 = vpack.c.b16 %v3008_v30, %v3008_v30 }
 0xc9b   : > { %v3007_v38 = vunpack.c.l.b16 %v2833_v43  ;;  %v4791_v32 = vpop.permute.xlu2 %4790  ;;  %v3004_v63 = vunpack.c.l.b16 %v2830_v18 }
 0xc9c   : > { %3016 = vrot.lane.b32.xlu0 %v6207_v10, %s5146_s29  ;;  %v4792_v26 = vunpack.i.l.bf16 %v4791_v32  ;;  %v4793_v31 = vunpack.i.h.bf16 %v4791_v32 }
 0xc9d   : > { %v6211_v54 = vpack.c.b16 %v3007_v38, %v3006_v42  ;;  %v4804_v38 = vpack.i.bf16 %v6169_v46, %v6164_v9  ;;  %v2821_v46 = vpack.c.bf16 %v6166_v3, %v6166_v3  ;;  %v6248_v3 = vmul.f32 0.35355338, %v6194_v29 }
 0xc9e   : > { %v4786_v12 = vpop.permute.xlu0 %4785  ;;  %v2829_v28 = vpack.c.bf16 %v4792_v26, %v4792_v26  ;;  %v2827_v41 = vpack.c.bf16 %v4793_v31, %v4793_v31  ;;  %v2820_v26 = vpack.c.bf16 %v6161_v47, %v6161_v47 }
 0xc9f   : > { %3014 = vrot.lane.b32.xlu1 %v6211_v54, %s5146_s29  ;;  %v4787_v17 = vunpack.i.l.bf16 %v4786_v12  ;;  %v4788_v6 = vunpack.i.h.bf16 %v4786_v12  ;;  %v2754_v33 = vpack.c.bf16 %v6248_v3, %v6248_v3 }
 0xca0   : > { %v2935_v62 = vunpack.c.l.b16 %v2829_v28  ;;  %v2933_v43 = vunpack.c.l.b16 %v2827_v41 }
 0xca1   : > { %v2838_v27 = vpack.c.bf16 %v4787_v17, %v4787_v17  ;;  %v2835_v21 = vpack.c.bf16 %v4788_v6, %v4788_v6  ;;  %v2849_v1 = vunpack.c.l.b16 %v2754_v33 }
 0xca2   : > { %v2938_v61 = vpack.c.b16 %v2935_v62, %v2935_v62 }
 0xca3   : > { %v3080_v5 = vunpack.c.l.b16 %v2838_v27  ;;  %v4796_v4 = vpop.permute.xlu2 %4795  ;;  %v3077_v36 = vunpack.c.l.b16 %v2835_v21 }
 0xca4   : > { %v4797_v40 = vunpack.i.l.bf16 %v4796_v4  ;;  %v4798_v42 = vunpack.i.h.bf16 %v4796_v4 }
 0xca6   : > { %v2808_v16 = vpop.permute.xlu0 %2807  ;;  %v2828_v60 = vpack.c.bf16 %v4797_v40, %v4797_v40  ;;  %v2825_v32 = vpack.c.bf16 %v4798_v42, %v4798_v42 }
 0xca7   : > { %v2836_v56 = vpack.c.bf16 %v2808_v16, %v2808_v16 }
 0xca8   : > { %v2934_v24 = vunpack.c.l.b16 %v2828_v60  ;;  %v2931_v27 = vunpack.c.l.b16 %v2825_v32 }
 0xca9   : > { %v3078_v55 = vunpack.c.l.b16 %v2836_v56 }
 0xcaa   : > { %v2937_v12 = vpack.c.b16 %v2934_v24, %v2933_v43 }
 0xcab   : > { %v4776_v23 = vpop.permute.xlu1 %4775  ;;  %v3082_v30 = vpack.c.b16 %v3078_v55, %v3077_v36 }
 0xcac   : > { %v4778_v8 = vunpack.i.h.bf16 %v4776_v23  ;;  %v4777_v22 = vunpack.i.l.bf16 %v4776_v23 }
 0xcae   : > { %v2837_v35 = vpack.c.bf16 %v4778_v8, %v4778_v8  ;;  %v2839_v58 = vpack.c.bf16 %v4777_v22, %v4777_v22  ;;  %v2824_v22 = vpack.c.bf16 %v6194_v29, %v6194_v29 }
 0xcb0   : > { %v3079_v37 = vunpack.c.l.b16 %v2837_v35  ;;  %v3081_v39 = vunpack.c.l.b16 %v2839_v58  ;;  %v2862_v9 = vunpack.c.l.b16 %v2824_v22  ;;  %v2859_v35 = vunpack.c.l.b16 %v2821_v46 }
 0xcb1   : > { %v2858_v58 = vunpack.c.l.b16 %v2820_v26 }
 0xcb2   : > { %v3083_v49 = vpack.c.b16 %v3080_v5, %v3079_v37  ;;  %v3084_v0 = vpack.c.b16 %v3081_v39, %v3081_v39  ;;  %v6235_v48 = vpack.c.b16 %v2862_v9, %v2862_v9 }
 0xcb3   : > { %v2793_v14 = vpop.permute.xlu1 %2792  ;;  %v6243_v16 = vpack.c.b16 %v2859_v35, %v2858_v58 }
 0xcb4   : > { %v2831_v15 = vpack.c.bf16 %v2793_v14, %v2793_v14  ;;  %3089 = vrot.lane.b32.xlu2 %v3084_v0, %s5146_s29  ;;  %3087 = vrot.lane.b32.xlu0 %v3083_v49, %s5146_s29 }
 0xcb6   : > { %v3005_v59 = vunpack.c.l.b16 %v2831_v15 }
 0xcb8   : > { %v3009_v57 = vpack.c.b16 %v3005_v59, %v3004_v63 }
 0xcba   : > { %3012 = vrot.lane.b32.xlu1 %v3009_v57, %s5146_s29 }
 0xcbb   : > { %v2778_v44 = vpop.permute.xlu1 %2777 }
 0xcbc   : > { %2943 = vrot.lane.b32.xlu2 %v2938_v61, %s5146_s29  ;;  %3085 = vrot.lane.b32.xlu0 %v3082_v30, %s5146_s29  ;;  %v2826_v17 = vpack.c.bf16 %v2778_v44, %v2778_v44 }
 0xcbe   : > { %v2932_v23 = vunpack.c.l.b16 %v2826_v17 }
 0xcc0   : > { %v2936_v8 = vpack.c.b16 %v2932_v23, %v2931_v27 }
 0xcc2   : > { %4805 = vrot.lane.b32.xlu1 %v4804_v38, %s5149_s22 }
 0xcc4   : > { %2941 = vrot.lane.b32.xlu0 %v2937_v12, %s5146_s29  ;;  %4800 = vrot.lane.b32.xlu2 %v4804_v38, %s5150_s23 }
 0xcca   : > { %4810 = vrot.lane.b32.xlu1 %v4804_v38, %s5151_s24 }
 0xccc   : > { %4815 = vrot.lane.b32.xlu0 %v6183_v53, %s5150_s23  ;;  %2939 = vrot.lane.b32.xlu2 %v2936_v8, %s5146_s29 }
 0xcd2   : > { %4825 = vrot.lane.b32.xlu1 %v6183_v53, %s5151_s24 }
 0xcd4   : > { %2870 = vrot.lane.b32.xlu0 %v6235_v48, %s5146_s29  ;;  %4820 = vrot.lane.b32.xlu2 %v6183_v53, %s5149_s22 }
 0xcda   : > { %2866 = vrot.lane.b32.xlu1 %v6243_v16, %s5146_s29 }
 0xcdc   : > { %2728 = vrot.lane.b32.xlu0 %v6248_v3, %s5150_s23  ;;  %2868 = vrot.lane.b32.xlu2 %v6189_v45, %s5146_s29  ;;  %s4629_s29 = smul.u32 40, %s6819_s14 }
 0xcde   : > { %s6777_s23 = scalar_lea.vmem %s6817_s10, %s4629_s29 }
 0xce2   : > { %2713 = vrot.lane.b32.xlu1 %v6248_v3, %s5151_s24 }
 0xce4   : > { %3499 = vrot.lane.b32.xlu0 %v6211_v54, %s5147_s30  ;;  %2743 = vrot.lane.b32.xlu2 %v6248_v3, %s5149_s22 }
 0xcea   : > { %3555 = vrot.lane.b32.xlu1 %v3083_v49, %s5147_s30 }
 0xcec   : > { %3497 = vrot.lane.b32.xlu0 %v3009_v57, %s5147_s30  ;;  %3441 = vrot.lane.b32.xlu2 %v2936_v8, %s5147_s30 }
 0xcf2   : > { %3553 = vrot.lane.b32.xlu1 %v3082_v30, %s5147_s30 }
 0xcf4   : > { %3443 = vrot.lane.b32.xlu0 %v2937_v12, %s5147_s30  ;;  %3445 = vrot.lane.b32.xlu2 %v2938_v61, %s5147_s30 }
 0xcfa   : > { %3557 = vrot.lane.b32.xlu1 %v3084_v0, %s5147_s30 }
 0xcfc   : > { %3501 = vrot.lane.b32.xlu0 %v6207_v10, %s5147_s30 }
 0xd0e   : > { %v3090_v47 = vpop.permute.xlu2 %3089  ;;  %v3017_v53 = vpop.permute.xlu0 %3016 }
 0xd0f   : > { %v3107_v29 = vsel %vm1206_vm10, %v3090_v47, 0  ;;  %v3034_v54 = vsel %vm1206_vm10, %v3017_v53, 0 }
 0xd10   : > { %3041 = vmatpush.bf16.xpose.msra.mxu2 %v3034_v54  ;;  %3114 = vmatpush.bf16.xpose.msrb.mxu3 %v3107_v29 }
 0xd11   : > { %v3015_v6 = vpop.permute.xlu1 %3014 }
 0xd12   : > { %v3031_v37 = vsel %vm1206_vm10, %v3015_v6, 0 }
 0xd16   : > { %v2944_v5 = vpop.permute.xlu2 %2943 }
 0xd17   : > { %v2961_v39 = vsel %vm1206_vm10, %v2944_v5, 0 }
 0xd18   : > { %2968 = vmatpush.bf16.xpose.msra.mxu0 %v2961_v39  ;;  %3042 = vmatpush.bf16.xpose.msra.mxu2 %v3031_v37 }
 0xd1e   : > { %v4801_v18 = vpop.permute.xlu2 %4800 }
 0xd1f   : > { %v4803_v10 = vunpack.i.h.bf16 %v4801_v18  ;;  %v4802_v49 = vunpack.i.l.bf16 %v4801_v18 }
 0xd21   : > { %v2761_v4 = vpack.c.bf16 %v4803_v10, %v4803_v10  ;;  %v2760_v14 = vpack.c.bf16 %v4802_v49, %v4802_v49 }
 0xd23   : > { %v2992_v40 = vunpack.c.l.b16 %v2761_v4  ;;  %v2991_v55 = vunpack.c.l.b16 %v2760_v14 }
 0xd25   : > { %v2996_v31 = vpack.c.b16 %v2992_v40, %v2991_v55 }
 0xd26   : > { %v3088_v28 = vpop.permute.xlu0 %3087  ;;  %v2940_v56 = vpop.permute.xlu2 %2939 }
 0xd27   : > { %v3104_v0 = vsel %vm1206_vm10, %v3088_v28, 0  ;;  %v2955_v23 = vsel %vm1206_vm10, %v2940_v56, 0 }
 0xd28   : > { %3115 = vmatpush.bf16.xpose.msrb.mxu3 %v3104_v0 }
 0xd2c   : > { %v3013_v21 = vpop.permute.xlu1 %3012 }
 0xd2d   : > { %v3028_v15 = vsel %vm1206_vm10, %v3013_v21, 0 }
 0xd2e   : > { %v3086_v63 = vpop.permute.xlu0 %3085  ;;  %3043 = vmatpush.bf16.xpose.msra.mxu2 %v3028_v15  ;;  %v4821_v62 = vpop.permute.xlu2 %4820 }
 0xd2f   : > { %v3101_v59 = vsel %vm1206_vm10, %v3086_v63, 0  ;;  %v4823_v27 = vunpack.i.h.bf16 %v4821_v62  ;;  %v4822_v8 = vunpack.i.l.bf16 %v4821_v62 }
 0xd30   : > { %3116 = vmatpush.bf16.xpose.msrb.mxu3 %v3101_v59 }
 0xd31   : > { %v2768_v6 = vpack.c.bf16 %v4823_v27, %v4823_v27  ;;  %v2767_v5 = vpack.c.bf16 %v4822_v8, %v4822_v8 }
 0xd33   : > { %v3067_v0 = vunpack.c.l.b16 %v2768_v6  ;;  %v3066_v4 = vunpack.c.l.b16 %v2767_v5 }
 0xd34   : > { %v4806_v36 = vpop.permute.xlu1 %4805 }
 0xd35   : > { %v4808_v57 = vunpack.i.h.bf16 %v4806_v36  ;;  %v4807_v61 = vunpack.i.l.bf16 %v4806_v36  ;;  %4508 = vmatmul.msk.bf16.vlgmr.msra.gmra.mxu2 %vm1206_vm10, %v2996_v31  ;;  %v3070_v63 = vpack.c.b16 %v3067_v0, %v3066_v4 }
 0xd36   : > { %v2942_v60 = vpop.permute.xlu0 %2941  ;;  %v2869_v30 = vpop.permute.xlu2 %2868 }
 0xd37   : > { %v2766_v41 = vpack.c.bf16 %v4808_v57, %v4808_v57  ;;  %v2765_v24 = vpack.c.bf16 %v4807_v61, %v4807_v61  ;;  %v2958_v44 = vsel %vm1206_vm10, %v2942_v60, 0  ;;  %v2885_v36 = vsel %vm1206_vm10, %v2869_v30, 0 }
 0xd38   : > { %2969 = vmatpush.bf16.xpose.msra.mxu0 %v2958_v44 }
 0xd39   : > { %v3065_v43 = vunpack.c.l.b16 %v2766_v41  ;;  %v3064_v42 = vunpack.c.l.b16 %v2765_v24 }
 0xd3b   : > { %v3069_v38 = vpack.c.b16 %v3065_v43, %v3064_v42 }
 0xd3c   : > { %v4811_v12 = vpop.permute.xlu1 %4810 }
 0xd3d   : > { %v4813_v17 = vunpack.i.h.bf16 %v4811_v12  ;;  %v4812_v32 = vunpack.i.l.bf16 %v4811_v12  ;;  %4511 = vmatmul.msk.bf16.vlgmr.msrb.gmra.mxu3 %vm1206_vm10, %v3069_v38 }
 0xd3e   : > { %v4816_v22 = vpop.permute.xlu0 %4815  ;;  %v2744_v9 = vpop.permute.xlu2 %2743 }
 0xd3f   : > { %v2756_v46 = vpack.c.bf16 %v4813_v17, %v4813_v17  ;;  %v2755_v26 = vpack.c.bf16 %v4812_v32, %v4812_v32  ;;  %v4818_v35 = vunpack.i.h.bf16 %v4816_v22  ;;  %v4817_v58 = vunpack.i.l.bf16 %v4816_v22 }
 0xd40   : > { %2970 = vmatpush.bf16.xpose.msra.mxu0 %v2955_v23  ;;  %v2769_v44 = vpack.c.bf16 %v2744_v9, %v2744_v9 }
 0xd41   : > { %v2919_v47 = vunpack.c.l.b16 %v2756_v46  ;;  %v2918_v53 = vunpack.c.l.b16 %v2755_v26  ;;  %v2763_v29 = vpack.c.bf16 %v4818_v35, %v4818_v35  ;;  %v2762_v54 = vpack.c.bf16 %v4817_v58, %v4817_v58 }
 0xd42   : > { %v3068_v17 = vunpack.c.l.b16 %v2769_v44 }
 0xd43   : > { %v2994_v37 = vunpack.c.l.b16 %v2763_v29  ;;  %v2993_v39 = vunpack.c.l.b16 %v2762_v54  ;;  %v2923_v28 = vpack.c.b16 %v2919_v47, %v2918_v53 }
 0xd44   : > { %v4826_v18 = vpop.permute.xlu1 %4825  ;;  %v3071_v30 = vpack.c.b16 %v3068_v17, %v3068_v17 }
 0xd45   : > { %v2997_v56 = vpack.c.b16 %v2994_v37, %v2993_v39  ;;  %v4828_v21 = vunpack.i.h.bf16 %v4826_v18  ;;  %v4827_v15 = vunpack.i.l.bf16 %v4826_v18 }
 0xd46   : > { %v2871_v10 = vpop.permute.xlu0 %2870  ;;  %v3442_v49 = vpop.permute.xlu2 %3441 }
 0xd47   : > { %v2888_v14 = vsel %vm1206_vm10, %v2871_v10, 0  ;;  %4505 = vmatmul.msk.bf16.vlgmr.msra.gmra.mxu0 %vm1206_vm10, %v2923_v28  ;;  %4509 = vmatmul.msk.bf16.gmra.mxu2 %vm1206_vm10, %v2997_v56  ;;  %v2758_v40 = vpack.c.bf16 %v4828_v21, %v4828_v21  ;;  %v2757_v55 = vpack.c.bf16 %v4827_v15, %v4827_v15 }
 0xd48   : > { %2895 = vmatpush.bf16.xpose.msra.mxu1 %v2888_v14 }
 0xd49   : > { %v2921_v60 = vunpack.c.l.b16 %v2758_v40  ;;  %v2920_v41 = vunpack.c.l.b16 %v2757_v55 }
 0xd4b   : > { %v2924_v42 = vpack.c.b16 %v2921_v60, %v2920_v41 }
 0xd4c   : > { %v2867_v62 = vpop.permute.xlu1 %2866 }
 0xd4d   : > { %4512 = vmatmul.msk.bf16.gmra.mxu3 %vm1206_vm10, %v3070_v63  ;;  %v2882_v32 = vsel %vm1206_vm10, %v2867_v62, 0 }
 0xd4e   : > { %v2729_v59 = vpop.permute.xlu0 %2728  ;;  %v3446_v31 = vpop.permute.xlu2 %3445 }
 0xd4f   : > { %v2764_v57 = vpack.c.bf16 %v2729_v59, %v2729_v59  ;;  %v3459_v61 = vand.u32 %v3446_v31, %v5674_v34 }
 0xd50   : > { %2896 = vmatpush.bf16.xpose.msra.mxu1 %v2885_v36 }
 0xd51   : > { %v2995_v24 = vunpack.c.l.b16 %v2764_v57  ;;  %3466 = vmatpush.bf16.msrb.mxu0 %v3459_v61 }
 0xd53   : > { %v2998_v38 = vpack.c.b16 %v2995_v24, %v2995_v24 }
 0xd54   : > { %v2714_v43 = vpop.permute.xlu1 %2713 }
 0xd55   : > { %v2759_v27 = vpack.c.bf16 %v2714_v43, %v2714_v43 }
 0xd56   : > { %v3500_v12 = vpop.permute.xlu0 %3499 }
 0xd57   : > { %4506 = vmatmul.msk.bf16.gmra.mxu0 %vm1206_vm10, %v2924_v42  ;;  %4510 = vmatmul.msk.bf16.gmra.mxu2 %vm1206_vm10, %v2998_v38  ;;  %v2922_v22 = vunpack.c.l.b16 %v2759_v27 }
 0xd58   : > { %2897 = vmatpush.bf16.xpose.msra.mxu1 %v2882_v32 }
 0xd59   : > { %v2925_v46 = vpack.c.b16 %v2922_v22, %v2922_v22 }
 0xd5c   : > { %v3556_v23 = vpop.permute.xlu1 %3555 }
 0xd5d   : > { %4513 = vmatmul.msk.bf16.gmra.mxu3 %vm1206_vm10, %v3071_v30 }
 0xd5e   : > { %v3498_v8 = vpop.permute.xlu0 %3497 }
 0xd5f   : > { %4502 = vmatmul.msk.bf16.vlgmr.msra.gmra.mxu1 %vm1206_vm10, %v2850_v51  ;;  %v2852_v51 = vpack.c.b16 %v2849_v1, %v2849_v1 }
 0xd64   : > { %v3554_v9 = vpop.permute.xlu1 %3553 }
 0xd66   : > { %v3444_v26 = vpop.permute.xlu0 %3443 }
 0xd67   : > { %4507 = vmatmul.msk.bf16.gmra.mxu0 %vm1206_vm10, %v2925_v46 }
 0xd68   : > { %3467 = vmatpush.bf16.msrb.mxu0 %v3444_v26 }
 0xd6c   : > { %3468 = vmatpush.bf16.msrb.mxu0 %v3442_v49  ;;  %v3558_v35 = vpop.permute.xlu1 %3557 }
 0xd6d   : > { %v3571_v58 = vand.u32 %v3558_v35, %v5674_v34 }
 0xd6e   : > { %v3502_v47 = vpop.permute.xlu0 %3501 }
 0xd6f   : > { %v3515_v53 = vand.u32 %v3502_v47, %v5674_v34  ;;  %4503 = vmatmul.msk.bf16.gmra.mxu1 %vm1206_vm10, %v2851_v2  ;;  %3578 = vmatpush.bf16.msra.mxu3 %v3571_v58 }
 0xd71   : > { %3522 = vmatpush.bf16.msrb.mxu2 %v3515_v53 }
 0xd73   : > { %3579 = vmatpush.bf16.msra.mxu3 %v3556_v23 }
 0xd75   : > { %3523 = vmatpush.bf16.msrb.mxu2 %v3500_v12 }
 0xd77   : > { %3580 = vmatpush.bf16.msra.mxu3 %v3554_v9 }
 0xd79   : > { %3524 = vmatpush.bf16.msrb.mxu2 %v3498_v8 }
 0xd7f   : > { %4504 = vmatmul.msk.bf16.gmra.mxu1 %vm1206_vm10, %v2852_v51 }
 0xdb8   : > { %v6304_v29 = vpop.f32.mrf.mxu2 }
 0xdb9   : > { %v3162_v15 = vsel %vm1467_vm11, %v6304_v29, -inf }
 0xdc0   : > { %v6306_v54 = vpop.f32.mrf.mxu3  ;;  %v6308_v52 = vpop.f32.mrf.mxu2 }
 0xdc1   : > { %v3165_v44 = vsel %vm1467_vm11, %v6308_v52, -inf  ;;  %v3177_v43 = vsel %vm1467_vm11, %v6306_v54, -inf }
 0xdc4   : > { %v6310_v50 = vpop.f32.mrf.mxu0 }
 0xdc5   : > { %v3147_v61 = vsel %vm1467_vm11, %v6310_v50, -inf }
 0xdc8   : > { %v6312_v2 = vpop.f32.mrf.mxu3 }
 0xdc9   : > { %v3180_v59 = vsel %vm1467_vm11, %v6312_v2, -inf }
 0xdca   : > { %v6314_v6 = vpop.f32.mrf.mxu2 }
 0xdcb   : > { %v3168_v57 = vsel %vm1467_vm11, %v6314_v6, -inf }
 0xdcc   : > { %v6316_v5 = vpop.f32.mrf.mxu0 }
 0xdcd   : > { %v3150_v12 = vsel %vm1467_vm11, %v6316_v5, -inf }
 0xdd0   : > { %v6318_v3 = vpop.f32.mrf.mxu3 }
 0xdd1   : > { %v3183_v32 = vsel %vm1467_vm11, %v6318_v3, -inf }
 0xdd2   : > { %v6320_v37 = vpop.f32.mrf.mxu2 }
 0xdd3   : > { %v3171_v17 = vsel %vm1467_vm11, %v6320_v37, -inf }
 0xdd4   : > { %v6322_v39 = vpop.f32.mrf.mxu0 }
 0xdd5   : > { %v3153_v38 = vsel %vm1467_vm11, %v6322_v39, -inf }
 0xdd8   : > { %v6324_v18 = vpop.f32.mrf.mxu3 }
 0xdd9   : > { %v3186_v24 = vsel %vm1467_vm11, %v6324_v18, -inf }
 0xdda   : > { %v6326_v28 = vpop.f32.mrf.mxu2 }
 0xddb   : > { %v3174_v27 = vsel %vm1480_vm14, %v6326_v28, -inf }
 0xddc   : > { %v6328_v56 = vpop.f32.mrf.mxu1  ;;  %v6330_v10 = vpop.f32.mrf.mxu0 }
 0xddd   : > { %v3132_v49 = vsel %vm1467_vm11, %v6328_v56, -inf  ;;  %v3156_v23 = vsel %vm1467_vm11, %v6330_v10, -inf }
 0xdde   : > { %3133 = vmax.xlane.f32.xlu0 %v3132_v49 }
 0xde0   : > { %v6334_v0 = vpop.f32.mrf.mxu3 }
 0xde1   : > { %v3189_v8 = vsel %vm1480_vm14, %v6334_v0, -inf }
 0xde2   : > { %v3057_v4 = vpop.f32.mrf.mxu2 }
 0xde4   : > { %v6336_v14 = vpop.f32.mrf.mxu1  ;;  %v6338_v21 = vpop.f32.mrf.mxu0 }
 0xde5   : > { %v3135_v63 = vsel %vm1467_vm11, %v6336_v14, -inf  ;;  %v3159_v30 = vsel %vm1480_vm14, %v6338_v21, -inf }
 0xde6   : > { %3163 = vmax.xlane.f32.xlu0 %v3162_v15  ;;  %3136 = vmax.xlane.f32.xlu2 %v3135_v63 }
 0xde8   : > { %v3130_v62 = vpop.f32.mrf.mxu3 }
 0xdec   : > { %v6344_v40 = vpop.f32.mrf.mxu1  ;;  %v2984_v55 = vpop.f32.mrf.mxu0 }
 0xded   : > { %v3138_v31 = vsel %vm1467_vm11, %v6344_v40, -inf }
 0xdee   : > { %3181 = vmax.xlane.f32.xlu0 %v3180_v59  ;;  %3139 = vmax.xlane.f32.xlu2 %v3138_v31 }
 0xdf4   : > { %v6350_v36 = vpop.f32.mrf.mxu1 }
 0xdf5   : > { %v3141_v60 = vsel %vm1467_vm11, %v6350_v36, -inf }
 0xdf6   : > { %3169 = vmax.xlane.f32.xlu0 %v3168_v57  ;;  %3148 = vmax.xlane.f32.xlu2 %v3147_v61 }
 0xdf7   : > { %3142 = vmax.xlane.f32.xlu1 %v3141_v60 }
 0xdfc   : > { %v6358_v41 = vpop.f32.mrf.mxu1 }
 0xdfe   : > { %3187 = vmax.xlane.f32.xlu0 %v3186_v24  ;;  %3166 = vmax.xlane.f32.xlu2 %v3165_v44 }
 0xdff   : > { %3178 = vmax.xlane.f32.xlu1 %v3177_v43 }
 0xe04   : > { %v2911_v42 = vpop.f32.mrf.mxu1 }
 0xe06   : > { %3154 = vmax.xlane.f32.xlu2 %v3153_v38 }
 0xe07   : > { %3151 = vmax.xlane.f32.xlu1 %v3150_v12 }
 0xe0e   : > { %3172 = vmax.xlane.f32.xlu2 %v3171_v17 }
 0xe0f   : > { %3184 = vmax.xlane.f32.xlu1 %v3183_v32 }
 0xe16   : > { %3160 = vmax.xlane.f32.xlu2 %v3159_v30 }
 0xe17   : > { %3157 = vmax.xlane.f32.xlu1 %v3156_v23 }
 0xe1e   : > { %3175 = vmax.xlane.f32.xlu2 %v3174_v27 }
 0xe26   : > { %3190 = vmax.xlane.f32.xlu2 %v3189_v8 }
 0xe51   : > { %v3134_v22 = vpop.xlane.xlu0 %3133 }
 0xe59   : > { %v3164_v9 = vpop.xlane.xlu0 %3163  ;;  %v6382_v46 = vpop.xlane.xlu2 %3136 }
 0xe5a   : > { %v3202_v26 = vsub.f32 %v6304_v29, %v3164_v9 }
 0xe5c   : > { %v3232_v35 = vmul.f32 1.442695, %v3202_v26 }
 0xe5e   : > { %5015 = vpow2.f32 %v3232_v35 }
 0xe61   : > { %v3182_v58 = vpop.xlane.xlu0 %3181  ;;  %v6385_v47 = vpop.xlane.xlu2 %3139 }
 0xe62   : > { %v3208_v53 = vsub.f32 %v6312_v2, %v3182_v58 }
 0xe64   : > { %v6388_v33 = vpop.eup %5015  ;;  %v3244_v1 = vmul.f32 1.442695, %v3208_v53 }
 0xe65   : > { %v3282_v51 = vsel %vm1467_vm11, %v6388_v33, 0.0 }
 0xe66   : > { %5017 = vpow2.f32 %v3244_v1  ;;  %3283 = vadd.xlane.f32.xlu1 %v3282_v51 }
 0xe69   : > { %v3149_v49 = vpop.xlane.xlu2 %3148  ;;  %v3170_v2 = vpop.xlane.xlu0 %3169 }
 0xe6a   : > { %v3197_v4 = vsub.f32 %v6310_v50, %v3149_v49  ;;  %v6393_v15 = vpop.xlane.xlu1 %3142  ;;  %v3204_v50 = vsub.f32 %v6314_v6, %v3170_v2 }
 0xe6c   : > { %v6395_v29 = vpop.eup %5017  ;;  %v3222_v63 = vmul.f32 1.442695, %v3197_v4  ;;  %v3236_v44 = vmul.f32 1.442695, %v3204_v50 }
 0xe6d   : > { %v3300_v62 = vsel %vm1467_vm11, %v6395_v29, 0.0 }
 0xe6e   : > { %3301 = vadd.xlane.f32.xlu1 %v3300_v62  ;;  %5019 = vpow2.f32 %v3222_v63 }
 0xe71   : > { %v3167_v55 = vpop.xlane.xlu2 %3166  ;;  %v3188_v42 = vpop.xlane.xlu0 %3187 }
 0xe72   : > { %v3179_v59 = vpop.xlane.xlu1 %3178  ;;  %v3203_v12 = vsub.f32 %v6308_v52, %v3167_v55  ;;  %v3210_v32 = vsub.f32 %v6324_v18, %v3188_v42  ;;  %v3192_v52 = vsub.f32 %v6328_v56, %v3134_v22 }
 0xe73   : > { %v3207_v31 = vsub.f32 %v6306_v54, %v3179_v59 }
 0xe74   : > { %v6400_v57 = vpop.eup %5019  ;;  %v3234_v30 = vmul.f32 1.442695, %v3203_v12  ;;  %v3248_v27 = vmul.f32 1.442695, %v3210_v32  ;;  %v3212_v1 = vmul.f32 1.442695, %v3192_v52 }
 0xe75   : > { %v3242_v61 = vmul.f32 1.442695, %v3207_v31  ;;  %v3267_v60 = vsel %vm1467_vm11, %v6400_v57, 0.0 }
 0xe76   : > { %3268 = vadd.xlane.f32.xlu2 %v3267_v60 }
 0xe77   : > { %5021 = vpow2.f32 %v3242_v61 }
 0xe78   : > { %5023 = vpow2.f32 %v3236_v44  ;;  %v3193_v44 = vsub.f32 %v6336_v14, %v6382_v46 }
 0xe79   : > { %v3155_v24 = vpop.xlane.xlu2 %3154 }
 0xe7a   : > { %v3152_v43 = vpop.xlane.xlu1 %3151  ;;  %v3199_v58 = vsub.f32 %v6322_v39, %v3155_v24  ;;  %v3214_v12 = vmul.f32 1.442695, %v3193_v44 }
 0xe7b   : > { %v3198_v38 = vsub.f32 %v6316_v5, %v3152_v43  ;;  %v3194_v43 = vsub.f32 %v6344_v40, %v6385_v47 }
 0xe7c   : > { %v3226_v51 = vmul.f32 1.442695, %v3199_v58 }
 0xe7d   : > { %v3224_v17 = vmul.f32 1.442695, %v3198_v38  ;;  %v6407_v54 = vpop.eup %5021 }
 0xe7e   : > { %v3297_v6 = vsel %vm1467_vm11, %v6407_v54, 0.0  ;;  %v6413_v5 = vpop.eup %5023 }
 0xe7f   : > { %5025 = vpow2.f32 %v3224_v17  ;;  %3298 = vadd.xlane.f32.xlu2 %v3297_v6  ;;  %v3216_v17 = vmul.f32 1.442695, %v3194_v43 }
 0xe80   : > { %5027 = vpow2.f32 %v3234_v30 }
 0xe81   : > { %v3173_v23 = vpop.xlane.xlu2 %3172  ;;  %5029 = vpow2.f32 %v3248_v27 }
 0xe82   : > { %v3185_v8 = vpop.xlane.xlu1 %3184  ;;  %v3205_v18 = vsub.f32 %v6320_v37, %v3173_v23 }
 0xe83   : > { %v3209_v9 = vsub.f32 %v6318_v3, %v3185_v8  ;;  %v3288_v3 = vsel %vm1467_vm11, %v6413_v5, 0.0 }
 0xe84   : > { %v3238_v56 = vmul.f32 1.442695, %v3205_v18 }
 0xe85   : > { %v6416_v26 = vpop.eup %5025  ;;  %v3246_v35 = vmul.f32 1.442695, %v3209_v9  ;;  %v3144_v9 = vsel %vm1480_vm14, %v6358_v41, -inf }
 0xe86   : > { %v3270_v53 = vsel %vm1467_vm11, %v6416_v26, 0.0  ;;  %v6424_v4 = vpop.eup %5027 }
 0xe87   : > { %5031 = vpow2.f32 %v3246_v35  ;;  %3271 = vadd.xlane.f32.xlu0 %v3270_v53  ;;  %3289 = vadd.xlane.f32.xlu2 %v3288_v3  ;;  %v6426_v37 = vpop.eup %5029  ;;  %v3285_v62 = vsel %vm1467_vm11, %v6424_v4, 0.0 }
 0xe88   : > { %5033 = vpow2.f32 %v3212_v1  ;;  %v3306_v55 = vsel %vm1467_vm11, %v6426_v37, 0.0 }
 0xe89   : > { %v3161_v22 = vpop.xlane.xlu2 %3160  ;;  %5035 = vpow2.f32 %v3238_v56 }
 0xe8a   : > { %v3158_v49 = vpop.xlane.xlu1 %3157  ;;  %5037 = vpow2.f32 %v3226_v51  ;;  %v3201_v47 = vsub.f32 %v6338_v21, %v3161_v22 }
 0xe8b   : > { %v3200_v63 = vsub.f32 %v6330_v10, %v3158_v49 }
 0xe8c   : > { %v3230_v6 = vmul.f32 1.442695, %v3201_v47 }
 0xe8d   : > { %v6428_v39 = vpop.eup %5031  ;;  %v3228_v59 = vmul.f32 1.442695, %v3200_v63 }
 0xe8e   : > { %v3303_v2 = vsel %vm1467_vm11, %v6428_v39, 0.0  ;;  %v6437_v61 = vpop.eup %5033 }
 0xe8f   : > { %3286 = vadd.xlane.f32.xlu0 %v3285_v62  ;;  %3304 = vadd.xlane.f32.xlu1 %v3303_v2  ;;  %v6440_v10 = vpop.eup %5035  ;;  %5039 = vpow2.f32 %v3228_v59  ;;  %v3252_v38 = vsel %vm1467_vm11, %v6437_v61, 0.0 }
 0xe90   : > { %3307 = vadd.xlane.f32.xlu2 %v3306_v55  ;;  %v6442_v60 = vpop.eup %5037  ;;  %v3291_v42 = vsel %vm1467_vm11, %v6440_v10, 0.0 }
 0xe91   : > { %v3176_v31 = vpop.xlane.xlu2 %3175 }
 0xe92   : > { %v3206_v50 = vsub.f32 %v6326_v28, %v3176_v31  ;;  %v3273_v28 = vsel %vm1467_vm11, %v6442_v60, 0.0 }
 0xe94   : > { %v3240_v24 = vmul.f32 1.442695, %v3206_v50 }
 0xe95   : > { %v6454_v14 = vpop.eup %5039 }
 0xe96   : > { %5041 = vpow2.f32 %v3240_v24  ;;  %v3276_v32 = vsel %vm1467_vm11, %v6454_v14, 0.0 }
 0xe97   : > { %3292 = vadd.xlane.f32.xlu0 %v3291_v42  ;;  %3253 = vadd.xlane.f32.xlu1 %v3252_v38  ;;  %5043 = vpow2.f32 %v3214_v12 }
 0xe98   : > { %3274 = vadd.xlane.f32.xlu2 %v3273_v28  ;;  %5045 = vpow2.f32 %v3216_v17 }
 0xe99   : > { %5047 = vpow2.f32 %v3230_v6  ;;  %v3191_v18 = vpop.xlane.xlu2 %3190 }
 0xe9a   : > { %v3211_v35 = vsub.f32 %v6334_v0, %v3191_v18 }
 0xe9c   : > { %v6456_v46 = vpop.eup %5041  ;;  %v3250_v58 = vmul.f32 1.442695, %v3211_v35 }
 0xe9d   : > { %v3294_v40 = vsel %vm1480_vm14, %v6456_v46, 0.0  ;;  %v6463_v30 = vpop.eup %5043 }
 0xe9e   : > { %v6465_v23 = vpop.eup %5045  ;;  %v3255_v27 = vsel %vm1467_vm11, %v6463_v30, 0.0  ;;  %5049 = vpow2.f32 %v3250_v58 }
 0xe9f   : > { %3277 = vadd.xlane.f32.xlu0 %v3276_v32  ;;  %v3258_v8 = vsel %vm1467_vm11, %v6465_v23, 0.0  ;;  %v6471_v21 = vpop.eup %5047 }
 0xea0   : > { %3295 = vadd.xlane.f32.xlu2 %v3294_v40  ;;  %v3279_v52 = vsel %vm1480_vm14, %v6471_v21, 0.0 }
 0xea4   : > { %v6484_v53 = vpop.eup %5049 }
 0xea5   : > { %v3309_v3 = vsel %vm1480_vm14, %v6484_v53, 0.0 }
 0xea7   : > { %3256 = vadd.xlane.f32.xlu0 %v3255_v27 }
 0xea8   : > { %3259 = vadd.xlane.f32.xlu2 %v3258_v8 }
 0xeaf   : > { %3145 = vmax.xlane.f32.xlu0 %v3144_v9 }
 0xeb0   : > { %3280 = vadd.xlane.f32.xlu2 %v3279_v52  ;;  %3389 = vrot.lane.b32.xlu1 %v6235_v48, %s5147_s30  ;;  %v3195_v48 = vsub.f32 %v6350_v36, %v6393_v15 }
 0xeb2   : > { %v3218_v56 = vmul.f32 1.442695, %v3195_v48 }
 0xeb4   : > { %5051 = vpow2.f32 %v3218_v56 }
 0xeba   : > { %v6490_v0 = vpop.eup %5051 }
 0xebb   : > { %v3261_v49 = vsel %vm1467_vm11, %v6490_v0, 0.0 }
 0xec3   : > { %3387 = vrot.lane.b32.xlu0 %v6189_v45, %s5147_s30 }
 0xecb   : > { %3385 = vrot.lane.b32.xlu0 %v6243_v16, %s5147_s30 }
 0xed9   : > { %v3284_v1 = vpop.xlane.xlu1 %3283 }
 0xeda   : > { %3310 = vadd.xlane.f32.xlu1 %v3309_v3 }
 0xee1   : > { %v3302_v22 = vpop.xlane.xlu1 %3301 }
 0xee2   : > { %5053 = vrcp.f32 %v3302_v22 }
 0xee8   : > { %v5054_v51 = vpop.eup %5053 }
 0xee9   : > { %v3269_v45 = vpop.xlane.xlu2 %3268  ;;  %v3348_v63 = vmul.f32 %v5054_v51, %v6395_v29 }
 0xeeb   : > { %v3368_v15 = vpack.c.bf16 %v3348_v63, %v3348_v63 }
 0xeed   : > { %v3546_v24 = vunpack.c.l.b16 %v3368_v15 }
 0xef2   : > { %v3299_v16 = vpop.xlane.xlu2 %3298 }
 0xef3   : > { %5055 = vrcp.f32 %v3299_v16 }
 0xef4   : > { %5057 = vrcp.f32 %v3269_v45 }
 0xef5   : > { %3262 = vadd.xlane.f32.xlu0 %v3261_v49 }
 0xef9   : > { %v5056_v62 = vpop.eup %5055 }
 0xefa   : > { %v3272_v2 = vpop.xlane.xlu0 %3271  ;;  %v5058_v36 = vpop.eup %5057  ;;  %v3347_v55 = vmul.f32 %v5056_v62, %v6407_v54 }
 0xefb   : > { %v3290_v59 = vpop.xlane.xlu2 %3289  ;;  %5059 = vrcp.f32 %v3272_v2  ;;  %v3337_v50 = vmul.f32 %v5058_v36, %v6400_v57 }
 0xefc   : > { %5061 = vrcp.f32 %v3284_v1  ;;  %v3367_v31 = vpack.c.bf16 %v3347_v55, %v3347_v55 }
 0xefd   : > { %v3357_v38 = vpack.c.bf16 %v3337_v50, %v3337_v50 }
 0xefe   : > { %v3545_v44 = vunpack.c.l.b16 %v3367_v31 }
 0xeff   : > { %v3433_v57 = vunpack.c.l.b16 %v3357_v38 }
 0xf00   : > { %v3550_v42 = vpack.c.b16 %v3546_v24, %v3545_v44 }
 0xf01   : > { %v5060_v43 = vpop.eup %5059 }
 0xf02   : > { %v3338_v28 = vmul.f32 %v5060_v43, %v6416_v26  ;;  %v3287_v29 = vpop.xlane.xlu0 %3286  ;;  %v3305_v12 = vpop.xlane.xlu1 %3304  ;;  %4523 = vmatmul.msk.bf16.vlgmr.msra.gmra.mxu3 %vm1467_vm11, %v3550_v42 }
 0xf03   : > { %v5062_v17 = vpop.eup %5061  ;;  %v3308_v40 = vpop.xlane.xlu2 %3307  ;;  %5063 = vrcp.f32 %v3287_v29 }
 0xf04   : > { %v3358_v54 = vpack.c.bf16 %v3338_v28, %v3338_v28  ;;  %5065 = vrcp.f32 %v3308_v40  ;;  %v3342_v47 = vmul.f32 %v5062_v17, %v6388_v33 }
 0xf05   : > { %5067 = vrcp.f32 %v3305_v12 }
 0xf06   : > { %v3434_v32 = vunpack.c.l.b16 %v3358_v54  ;;  %v3362_v9 = vpack.c.bf16 %v3342_v47, %v3342_v47 }
 0xf08   : > { %v3438_v6 = vpack.c.b16 %v3434_v32, %v3433_v57  ;;  %v3489_v48 = vunpack.c.l.b16 %v3362_v9 }
 0xf09   : > { %v5064_v27 = vpop.eup %5063 }
 0xf0a   : > { %v5066_v8 = vpop.eup %5065  ;;  %v3343_v26 = vmul.f32 %v5064_v27, %v6424_v4  ;;  %4517 = vmatmul.msk.bf16.vlgmr.msrb.gmra.mxu0 %vm1467_vm11, %v3438_v6  ;;  %v3293_v52 = vpop.xlane.xlu0 %3292 }
 0xf0b   : > { %v5068_v18 = vpop.eup %5067  ;;  %v3350_v35 = vmul.f32 %v5066_v8, %v6426_v37  ;;  %v3275_v58 = vpop.xlane.xlu2 %3274  ;;  %5069 = vrcp.f32 %v3293_v52 }
 0xf0c   : > { %5071 = vrcp.f32 %v3290_v59  ;;  %v3363_v3 = vpack.c.bf16 %v3343_v26, %v3343_v26  ;;  %v3349_v33 = vmul.f32 %v5068_v18, %v6428_v39  ;;  %v3254_v24 = vpop.xlane.xlu1 %3253 }
 0xf0d   : > { %v3370_v1 = vpack.c.bf16 %v3350_v35, %v3350_v35  ;;  %5073 = vrcp.f32 %v3275_v58 }
 0xf0e   : > { %v3490_v56 = vunpack.c.l.b16 %v3363_v3  ;;  %v3369_v45 = vpack.c.bf16 %v3349_v33, %v3349_v33 }
 0xf0f   : > { %v3548_v22 = vunpack.c.l.b16 %v3370_v1 }
 0xf10   : > { %v3494_v16 = vpack.c.b16 %v3490_v56, %v3489_v48  ;;  %v3547_v4 = vunpack.c.l.b16 %v3369_v45 }
 0xf11   : > { %v5070_v51 = vpop.eup %5069 }
 0xf12   : > { %v5072_v49 = vpop.eup %5071  ;;  %v3278_v63 = vpop.xlane.xlu0 %3277  ;;  %4520 = vmatmul.msk.bf16.vlgmr.msrb.gmra.mxu2 %vm1467_vm11, %v3494_v16  ;;  %v3551_v37 = vpack.c.b16 %v3548_v22, %v3547_v4  ;;  %v3345_v36 = vmul.f32 %v5070_v51, %v6440_v10 }
 0xf13   : > { %v5074_v62 = vpop.eup %5073  ;;  %v3296_v2 = vpop.xlane.xlu2 %3295  ;;  %5075 = vrcp.f32 %v3278_v63  ;;  %v3344_v39 = vmul.f32 %v5072_v49, %v6413_v5 }
 0xf14   : > { %4524 = vmatmul.msk.bf16.gmra.mxu3 %vm1467_vm11, %v3551_v37  ;;  %v3339_v15 = vmul.f32 %v5074_v62, %v6442_v60  ;;  %v3365_v55 = vpack.c.bf16 %v3345_v36, %v3345_v36  ;;  %5077 = vrcp.f32 %v3296_v2 }
 0xf15   : > { %v3364_v31 = vpack.c.bf16 %v3344_v39, %v3344_v39 }
 0xf16   : > { %v3359_v50 = vpack.c.bf16 %v3339_v15, %v3339_v15  ;;  %v3492_v38 = vunpack.c.l.b16 %v3365_v55 }
 0xf17   : > { %v3491_v29 = vunpack.c.l.b16 %v3364_v31 }
 0xf18   : > { %v3435_v10 = vunpack.c.l.b16 %v3359_v50 }
 0xf19   : > { %v5076_v59 = vpop.eup %5075  ;;  %v3495_v40 = vpack.c.b16 %v3492_v38, %v3491_v29 }
 0xf1a   : > { %v3340_v44 = vmul.f32 %v5076_v59, %v6454_v14  ;;  %v3257_v43 = vpop.xlane.xlu0 %3256  ;;  %v5078_v5 = vpop.eup %5077 }
 0xf1b   : > { %v3260_v42 = vpop.xlane.xlu2 %3259  ;;  %v3346_v32 = vmul.f32 %v5078_v5, %v6456_v46 }
 0xf1c   : > { %v3360_v28 = vpack.c.bf16 %v3340_v44, %v3340_v44 }
 0xf1d   : > { %v3366_v27 = vpack.c.bf16 %v3346_v32, %v3346_v32 }
 0xf1e   : > { %v3436_v12 = vunpack.c.l.b16 %v3360_v28 }
 0xf1f   : > { %v3493_v26 = vunpack.c.l.b16 %v3366_v27 }
 0xf20   : > { %v3439_v17 = vpack.c.b16 %v3436_v12, %v3435_v10 }
 0xf21   : > { %v3496_v35 = vpack.c.b16 %v3493_v26, %v3493_v26 }
 0xf22   : > { %4518 = vmatmul.msk.bf16.gmra.mxu0 %vm1467_vm11, %v3439_v17  ;;  %4521 = vmatmul.msk.bf16.gmra.mxu2 %vm1467_vm11, %v3495_v40  ;;  %v3390_v60 = vpop.permute.xlu1 %3389  ;;  %v3146_v54 = vpop.xlane.xlu0 %3145 }
 0xf23   : > { %v3281_v47 = vpop.xlane.xlu2 %3280  ;;  %v3403_v14 = vand.u32 %v3390_v60, %v5674_v34  ;;  %v3196_v57 = vsub.f32 %v6358_v41, %v3146_v54 }
 0xf24   : > { %5079 = vrcp.f32 %v3281_v47 }
 0xf25   : > { %v3220_v6 = vmul.f32 1.442695, %v3196_v57  ;;  %3410 = vmatpush.bf16.msrb.mxu1 %v3403_v14 }
 0xf27   : > { %5081 = vpow2.f32 %v3220_v6 }
 0xf28   : > { %5083 = vrcp.f32 %v3257_v43 }
 0xf29   : > { %5085 = vrcp.f32 %v3254_v24 }
 0xf2a   : > { %v5080_v8 = vpop.eup %5079 }
 0xf2b   : > { %v3341_v9 = vmul.f32 %v5080_v8, %v6471_v21 }
 0xf2d   : > { %v6516_v52 = vpop.eup %5081  ;;  %v3361_v18 = vpack.c.bf16 %v3341_v9, %v3341_v9 }
 0xf2e   : > { %v3264_v34 = vsel %vm1480_vm14, %v6516_v52, 0.0  ;;  %v5084_v46 = vpop.eup %5083 }
 0xf2f   : > { %3265 = vadd.xlane.f32.xlu2 %v3264_v34  ;;  %v3437_v41 = vunpack.c.l.b16 %v3361_v18  ;;  %v5086_v3 = vpop.eup %5085  ;;  %v3333_v33 = vmul.f32 %v5084_v46, %v6463_v30 }
 0xf30   : > { %v3332_v21 = vmul.f32 %v5086_v3, %v6437_v61 }
 0xf31   : > { %v3440_v58 = vpack.c.b16 %v3437_v41, %v3437_v41  ;;  %v3353_v48 = vpack.c.bf16 %v3333_v33, %v3333_v33 }
 0xf32   : > { %4522 = vmatmul.msk.bf16.gmra.mxu2 %vm1467_vm11, %v3496_v35  ;;  %v3352_v56 = vpack.c.bf16 %v3332_v21, %v3332_v21  ;;  %v4608_v35 = vld [vmem:[%s6813_s6 + $0x18] sm:$0xff] }
 0xf33   : > { %4519 = vmatmul.msk.bf16.gmra.mxu0 %vm1467_vm11, %v3440_v58  ;;  %v3378_v45 = vunpack.c.l.b16 %v3353_v48  ;;  %v4607_v58 = vld [vmem:[%s6813_s6 + $0x10] sm:$0xff] }
 0xf34   : > { %v3377_v22 = vunpack.c.l.b16 %v3352_v56 }
 0xf35   : > { %v3388_v1 = vpop.permute.xlu0 %3387 }
 0xf36   : > { %3411 = vmatpush.bf16.msrb.mxu1 %v3388_v1  ;;  %v3382_v4 = vpack.c.b16 %v3378_v45, %v3377_v22 }
 0xf3d   : > { %v3386_v16 = vpop.permute.xlu0 %3385 }
 0xf3e   : > { %3412 = vmatpush.bf16.msrb.mxu1 %v3386_v16 }
 0xf41   : > { %4514 = vmatmul.msk.bf16.vlgmr.msrb.gmra.mxu1 %vm1467_vm11, %v3382_v4 }
 0xf42   : > { %3707 = vmatpush.bf16.msra.mxu1 %v4608_v35 }
 0xf46   : > { %3708 = vmatpush.bf16.msra.mxu1 %v4607_v58 }
 0xf4d   : > { %v3311_v51 = vpop.xlane.xlu1 %3310 }
 0xf4e   : > { %5087 = vrcp.f32 %v3311_v51 }
 0xf4f   : > { %5089 = vrcp.f32 %v3260_v42 }
 0xf54   : > { %v5088_v49 = vpop.eup %5087 }
 0xf55   : > { %v3351_v30 = vmul.f32 %v5088_v49, %v6484_v53  ;;  %v5090_v2 = vpop.eup %5089 }
 0xf56   : > { %v3334_v36 = vmul.f32 %v5090_v2, %v6465_v23 }
 0xf57   : > { %v3371_v63 = vpack.c.bf16 %v3351_v30, %v3351_v30 }
 0xf58   : > { %v3354_v15 = vpack.c.bf16 %v3334_v36, %v3334_v36 }
 0xf59   : > { %v3549_v37 = vunpack.c.l.b16 %v3371_v63 }
 0xf5a   : > { %v3379_v31 = vunpack.c.l.b16 %v3354_v15 }
 0xf5b   : > { %v3552_v62 = vpack.c.b16 %v3549_v37, %v3549_v37 }
 0xf5d   : > { %4525 = vmatmul.msk.bf16.gmra.mxu3 %vm1467_vm11, %v3552_v62 }
 0xf68   : > { %v3263_v61 = vpop.xlane.xlu0 %3262 }
 0xf69   : > { %5091 = vrcp.f32 %v3263_v61 }
 0xf6f   : > { %v5092_v39 = vpop.eup %5091 }
 0xf70   : > { %v3335_v55 = vmul.f32 %v5092_v39, %v6490_v0 }
 0xf72   : > { %v3355_v59 = vpack.c.bf16 %v3335_v55, %v3335_v55 }
 0xf74   : > { %v3380_v50 = vunpack.c.l.b16 %v3355_v59 }
 0xf76   : > { %v3383_v24 = vpack.c.b16 %v3380_v50, %v3379_v31 }
 0xf78   : > { %4515 = vmatmul.msk.bf16.gmra.mxu1 %vm1467_vm11, %v3383_v24 }
 0xf85   : > { %v3582_v53 = vpop.f32.mrf.mxu3 }
 0xf87   : > { %v3470_v44 = vpop.f32.mrf.mxu0 }
 0xf8d   : > { %v3584_v43 = vpop.f32.mrf.mxu3 }
 0xf8e   : > { %v4839_v38 = vpack.i.bf16 %v3584_v43, %v3582_v53 }
 0xf8f   : > { %v3472_v42 = vpop.f32.mrf.mxu0 }
 0xf90   : > { %v4829_v28 = vpack.i.bf16 %v3472_v42, %v3470_v44  ;;  %4840 = vrot.lane.b32.xlu0 %v4839_v38, %s5155_s27 }
 0xf92   : > { %4830 = vrot.lane.b32.xlu2 %v4829_v28, %s5154_s26 }
 0xf95   : > { %v3526_v23 = vpop.f32.mrf.mxu2 }
 0xf97   : > { %v3587_v29 = vpop.f32.mrf.mxu3 }
 0xf9d   : > { %v3528_v10 = vpop.f32.mrf.mxu2 }
 0xf9e   : > { %v4834_v0 = vpack.i.bf16 %v3528_v10, %v3526_v23 }
 0xf9f   : > { %v3475_v12 = vpop.f32.mrf.mxu0  ;;  %v3589_v40 = vpop.f32.mrf.mxu3 }
 0xfa0   : > { %4835 = vrot.lane.b32.xlu1 %v4834_v0, %s5153_s25  ;;  %v4854_v60 = vpack.i.bf16 %v3589_v40, %v3587_v29 }
 0xfa2   : > { %v3266_v17 = vpop.xlane.xlu2 %3265 }
 0xfa3   : > { %5093 = vrcp.f32 %v3266_v17 }
 0xfa5   : > { %v3531_v5 = vpop.f32.mrf.mxu2 }
 0xfa7   : > { %v3477_v54 = vpop.f32.mrf.mxu0 }
 0xfa8   : > { %v4844_v47 = vpack.i.bf16 %v3477_v54, %v3475_v12  ;;  %4855 = vrot.lane.b32.xlu1 %v4854_v60, %s5155_s27 }
 0xfa9   : > { %v5094_v14 = vpop.eup %5093 }
 0xfaa   : > { %v3336_v57 = vmul.f32 %v5094_v14, %v6516_v52  ;;  %4845 = vrot.lane.b32.xlu2 %v4844_v47, %s5154_s26 }
 0xfac   : > { %v3356_v32 = vpack.c.bf16 %v3336_v57, %v3336_v57 }
 0xfad   : > { %v3533_v6 = vpop.f32.mrf.mxu2 }
 0xfae   : > { %v3381_v27 = vunpack.c.l.b16 %v3356_v32  ;;  %v4849_v8 = vpack.i.bf16 %v3533_v6, %v3531_v5  ;;  %v6568_v32 = vld [vmem:[%s6816_s9 + $0x8] sm:$0xff] }
 0xfaf   : > { %v3679_v6 = vperm.slane %v6568_v32, 1 }
 0xfb0   : > { %v3480_v9 = vpop.f32.mrf.mxu0  ;;  %v3384_v26 = vpack.c.b16 %v3381_v27, %v3381_v27 }
 0xfb2   : > { %4850 = vrot.lane.b32.xlu2 %v4849_v8, %s5153_s25  ;;  %4516 = vmatmul.msk.bf16.gmra.mxu1 %vm1467_vm11, %v3384_v26 }
 0xfb5   : > { %v3536_v18 = vpop.f32.mrf.mxu2 }
 0xfb6   : > { %3629 = vrot.lane.b32.xlu0 %v3536_v18, %s5153_s25 }
 0xfb8   : > { %v3482_v34 = vpop.f32.mrf.mxu0 }
 0xfba   : > { %3609 = vrot.lane.b32.xlu2 %v3480_v9, %s5154_s26 }
 0xfbd   : > { %v3538_v41 = vpop.f32.mrf.mxu2 }
 0xfbe   : > { %v3414_v3 = vpop.f32.mrf.mxu1 }
 0xfc6   : > { %v3416_v21 = vpop.f32.mrf.mxu1 }
 0xfe0   : > { %v3592_v52 = vpop.f32.mrf.mxu3 }
 0xfe1   : > { %3649 = vrot.lane.b32.xlu1 %v3592_v52, %s5155_s27 }
 0xfe8   : > { %v3594_v46 = vpop.f32.mrf.mxu3 }
 0xfec   : > { %v4831_v33 = vpop.permute.xlu2 %4830 }
 0xfed   : > { %v4833_v1 = vunpack.i.h.bf16 %v4831_v33  ;;  %v4832_v48 = vunpack.i.l.bf16 %v4831_v33 }
 0xfef   : > { %v3656_v51 = vsel %vm1206_vm10, %v3414_v3, %v4832_v48  ;;  %v3657_v49 = vsel %vm1206_vm10, %v3416_v21, %v4833_v1 }
 0xff5   : > { %v3419_v36 = vpop.f32.mrf.mxu1 }
 0xffd   : > { %v3421_v43 = vpop.f32.mrf.mxu1 }
0x1002   : > { %v4841_v56 = vpop.permute.xlu0 %4840 }
0x1003   : > { %v4843_v30 = vunpack.i.h.bf16 %v4841_v56  ;;  %v4842_v63 = vunpack.i.l.bf16 %v4841_v56 }
0x1004   : > { %v4846_v45 = vpop.permute.xlu2 %4845 }
0x1005   : > { %v4848_v59 = vunpack.i.h.bf16 %v4846_v45  ;;  %v4847_v31 = vunpack.i.l.bf16 %v4846_v45 }
0x1007   : > { %v3658_v38 = vsel %vm1206_vm10, %v3419_v36, %v4847_v31  ;;  %v3659_v42 = vsel %vm1206_vm10, %v3421_v43, %v4848_v59 }
0x100c   : > { %v4851_v15 = vpop.permute.xlu2 %4850 }
0x100d   : > { %v4853_v50 = vunpack.i.h.bf16 %v4851_v15  ;;  %v4852_v24 = vunpack.i.l.bf16 %v4851_v15 }
0x100f   : > { %v3663_v28 = vsel %vm2002_vm15, %v3658_v38, %v4852_v24  ;;  %v3664_v23 = vsel %vm2002_vm15, %v3659_v42, %v4853_v50 }
0x1012   : > { %v4836_v22 = vpop.permute.xlu1 %4835 }
0x1013   : > { %v4838_v16 = vunpack.i.h.bf16 %v4836_v22  ;;  %v4837_v4 = vunpack.i.l.bf16 %v4836_v22 }
0x1014   : > { %v3610_v40 = vpop.permute.xlu2 %3609 }
0x1015   : > { %v3661_v37 = vsel %vm2002_vm15, %v3656_v51, %v4837_v4  ;;  %v3662_v62 = vsel %vm2002_vm15, %v3657_v49, %v4838_v16 }
0x1016   : > { %v3666_v61 = vsel %vm2008_vm2, %v3661_v37, %v4842_v63  ;;  %v3667_v2 = vsel %vm2008_vm2, %v3662_v62, %v4843_v30 }
0x1017   : > { %v3671_v39 = vpack.c.bf16 %v3667_v2, %v3666_v61 }
0x1019   : > { %4538 = vmatmul.msk.bf16.vlgmr.msra.gmra.mxu1 %vm373_vm0, %v3671_v39 }
0x101a   : > { %v4856_v55 = vpop.permute.xlu1 %4855 }
0x101b   : > { %v4858_v53 = vunpack.i.h.bf16 %v4856_v55  ;;  %v4857_v44 = vunpack.i.l.bf16 %v4856_v55 }
0x101d   : > { %v3668_v29 = vsel %vm2008_vm2, %v3663_v28, %v4857_v44  ;;  %v3669_v10 = vsel %vm2008_vm2, %v3664_v23, %v4858_v53  ;;  %v4610_v28 = vld [vmem:[%s6814_s7 + $0x18] sm:$0xff] }
0x101e   : > { %v3672_v0 = vpack.c.bf16 %v3669_v10, %v3668_v29  ;;  %3887 = vmatpush.bf16.msra.mxu0 %v4610_v28  ;;  %v4609_v10 = vld [vmem:[%s6814_s7 + $0x10] sm:$0xff] }
0x1022   : > { %3888 = vmatpush.bf16.msra.mxu0 %v4609_v10 }
0x1028   : > { %v3630_v60 = vpop.permute.xlu0 %3629 }
0x1029   : > { %4539 = vmatmul.msk.bf16.gmra.mxu1 %vm373_vm0, %v3672_v0 }
0x102f   : > { %v3424_v12 = vpop.f32.mrf.mxu1 }
0x1030   : > { %v3660_v5 = vsel %vm1206_vm10, %v3424_v12, %v3610_v40 }
0x1031   : > { %v3665_v47 = vsel %vm2002_vm15, %v3660_v5, %v3630_v60 }
0x1037   : > { %v3426_v17 = vpop.f32.mrf.mxu1 }
0x1053   : > { %v3650_v54 = vpop.permute.xlu1 %3649 }
0x1054   : > { %v3670_v14 = vsel %vm2008_vm2, %v3665_v47, %v3650_v54 }
0x1055   : > { %v3673_v57 = vpack.c.bf16 %v3670_v14, %v3670_v14 }
0x1057   : > { %4540 = vmatmul.msk.bf16.gmra.mxu1 %vm373_vm0, %v3673_v57 }
0x1096   : > { %v3710_v27 = vpop.f32.mrf.mxu1 }
0x1097   : > { %v3711_v8 = vadd.f32 %v3710_v27, %v3679_v6 }
0x1099   : > { %v3724_v9 = vadd.f32 %v3711_v8, %v6130_v25 }
0x109b   : > { %v3729_v26 = vsel %vm373_vm0, %v3724_v9, 0.0 }
0x109c   : > { %3730 = vadd.xlane.f32.xlu2 %v3729_v26 }
0x109e   : > { %v3712_v18 = vpop.f32.mrf.mxu1 }
0x109f   : > { %v3713_v34 = vadd.f32 %v3712_v18, %v3679_v6 }
0x10a1   : > { %v3725_v41 = vadd.f32 %v3713_v34, %v6132_v20 }
0x10a3   : > { %v3732_v52 = vsel %vm373_vm0, %v3725_v41, 0.0 }
0x10a4   : > { %3733 = vadd.xlane.f32.xlu0 %v3732_v52 }
0x10a6   : > { %v3715_v46 = vpop.f32.mrf.mxu1 }
0x10a7   : > { %v3716_v35 = vadd.f32 %v3715_v46, %v3679_v6 }
0x10a9   : > { %v3726_v58 = vadd.f32 %v3716_v35, %v6143_v11 }
0x10ab   : > { %v3735_v3 = vsel %vm373_vm0, %v3726_v58, 0.0 }
0x10ac   : > { %3736 = vadd.xlane.f32.xlu1 %v3735_v3 }
0x10ae   : > { %v3717_v33 = vpop.f32.mrf.mxu1 }
0x10af   : > { %v3718_v21 = vadd.f32 %v3717_v33, %v3679_v6 }
0x10b1   : > { %v3727_v25 = vadd.f32 %v3718_v21, %v6145_v7 }
0x10b3   : > { %v3738_v1 = vsel %vm373_vm0, %v3727_v25, 0.0 }
0x10b4   : > { %3739 = vadd.xlane.f32.xlu2 %v3738_v1 }
0x10d4   : > { %v3720_v48 = vpop.f32.mrf.mxu1 }
0x10d5   : > { %v3721_v56 = vadd.f32 %v3720_v48, %v3679_v6 }
0x10d7   : > { %v3728_v20 = vadd.f32 %v3721_v56, %v6153_v13  ;;  %v3845_v56 = vperm.slane %v6568_v32, 3 }
0x10d9   : > { %v3741_v45 = vsel %vm386_vm1, %v3728_v20, 0.0 }
0x10da   : > { %3742 = vadd.xlane.f32.xlu0 %v3741_v45 }
0x10dc   : > { %v3722_v22 = vpop.f32.mrf.mxu1 }
0x110f   : > { %v3731_v16 = vpop.xlane.xlu2 %3730 }
0x1110   : > { %v3744_v11 = vmul.f32 %v3731_v16, %v5230_v19 }
0x1112   : > { %v6582_v4 = vsub.f32 %v3724_v9, %v3744_v11 }
0x1114   : > { %v3754_v51 = vmul.f32 %v6582_v4, %v6582_v4 }
0x1116   : > { %v3759_v7 = vsel %vm373_vm0, %v3754_v51, 0.0 }
0x1117   : > { %v3734_v49 = vpop.xlane.xlu0 %3733  ;;  %3760 = vadd.xlane.f32.xlu1 %v3759_v7 }
0x1118   : > { %v3745_v30 = vmul.f32 %v3734_v49, %v5230_v19 }
0x111a   : > { %v6588_v63 = vsub.f32 %v3725_v41, %v3745_v30 }
0x111c   : > { %v3755_v13 = vmul.f32 %v6588_v63, %v6588_v63 }
0x111e   : > { %v3762_v37 = vsel %vm373_vm0, %v3755_v13, 0.0 }
0x111f   : > { %v3737_v62 = vpop.xlane.xlu1 %3736  ;;  %3763 = vadd.xlane.f32.xlu2 %v3762_v37 }
0x1120   : > { %v3746_v61 = vmul.f32 %v3737_v62, %v5230_v19 }
0x1122   : > { %v6594_v2 = vsub.f32 %v3726_v58, %v3746_v61  ;;  %v3839_v58 = vperm.slane %v6568_v32, 2 }
0x1124   : > { %v3756_v36 = vmul.f32 %v6594_v2, %v6594_v2 }
0x1126   : > { %v3765_v39 = vsel %vm373_vm0, %v3756_v36, 0.0 }
0x1127   : > { %3766 = vadd.xlane.f32.xlu0 %v3765_v39  ;;  %v3740_v15 = vpop.xlane.xlu2 %3739 }
0x1128   : > { %v3747_v55 = vmul.f32 %v3740_v15, %v5230_v19 }
0x112a   : > { %v6600_v59 = vsub.f32 %v3727_v25, %v3747_v55 }
0x112c   : > { %v3757_v31 = vmul.f32 %v6600_v59, %v6600_v59 }
0x112e   : > { %v3768_v50 = vsel %vm373_vm0, %v3757_v31, 0.0 }
0x112f   : > { %3769 = vadd.xlane.f32.xlu1 %v3768_v50 }
0x114d   : > { %v3743_v24 = vpop.xlane.xlu0 %3742 }
0x114e   : > { %v3748_v53 = vmul.f32 %v3743_v24, %v5230_v19 }
0x1150   : > { %v6606_v44 = vsub.f32 %v3728_v20, %v3748_v53 }
0x1152   : > { %v3758_v43 = vmul.f32 %v6606_v44, %v6606_v44 }
0x1154   : > { %v3771_v38 = vsel %vm386_vm1, %v3758_v43, 0.0 }
0x1155   : > { %3772 = vadd.xlane.f32.xlu2 %v3771_v38 }
0x118a   : > { %v3761_v42 = vpop.xlane.xlu1 %3760 }
0x118b   : > { %v3774_v23 = vmul.f32 %v3761_v42, %v5230_v19 }
0x118d   : > { %v3779_v29 = vadd.f32 1e-05, %v3774_v23 }
0x118f   : > { %5095 = vrsqrt.f32 %v3779_v29  ;;  %vm3790_vm11 = vweird.f32 %v3779_v29 }
0x1192   : > { %v3764_v0 = vpop.xlane.xlu2 %3763 }
0x1193   : > { %v3775_v12 = vmul.f32 %v3764_v0, %v5230_v19 }
0x1195   : > { %v5096_v17 = vpop.eup %5095  ;;  %v3780_v40 = vadd.f32 1e-05, %v3775_v12 }
0x1196   : > { %v3785_v5 = vmul.f32 %v5096_v17, %v3779_v29  ;;  %vm3791_vm10 = vweird.f32 %v5096_v17 }
0x1197   : > { %5097 = vrsqrt.f32 %v3780_v40  ;;  %vm3792_vm14 = vmor %vm3790_vm11, %vm3791_vm10  ;;  %vm3800_vm2 = vweird.f32 %v3780_v40 }
0x1198   : > { %v3786_v60 = vmul.f32 %v5096_v17, %v3785_v5 }
0x119a   : > { %v3787_v54 = vmul.f32 0.5, %v3786_v60  ;;  %v3767_v47 = vpop.xlane.xlu0 %3766 }
0x119b   : > { %v3776_v14 = vmul.f32 %v3767_v47, %v5230_v19 }
0x119c   : > { %v3788_v57 = vsub.f32 1.5, %v3787_v54  ;;  %v6649_v54 = vperm.slane %v6568_v32, 4 }
0x119d   : > { %v5098_v6 = vpop.eup %5097  ;;  %v3781_v27 = vadd.f32 1e-05, %v3776_v14 }
0x119e   : > { %v3789_v8 = vmul.f32 %v5096_v17, %v3788_v57  ;;  %v3795_v9 = vmul.f32 %v5098_v6, %v3780_v40  ;;  %vm3801_vm15 = vweird.f32 %v5098_v6 }
0x119f   : > { %5099 = vrsqrt.f32 %v3781_v27  ;;  %vm3802_vm13 = vmor %vm3800_vm2, %vm3801_vm15  ;;  %vm3810_vm4 = vweird.f32 %v3781_v27 }
0x11a0   : > { %v3796_v26 = vmul.f32 %v5098_v6, %v3795_v9  ;;  %v3793_v18 = vsel %vm3792_vm14, %v5096_v17, %v3789_v8 }
0x11a1   : > { %v3834_v3 = vmul.f32 %v3793_v18, %v6582_v4 }
0x11a2   : > { %v3797_v34 = vmul.f32 0.5, %v3796_v26  ;;  %v3770_v41 = vpop.xlane.xlu1 %3769 }
0x11a3   : > { %v3777_v52 = vmul.f32 %v3770_v41, %v5230_v19  ;;  %v3840_v20 = vmul.f32 %v3839_v58, %v3834_v3 }
0x11a4   : > { %v3798_v46 = vsub.f32 1.5, %v3797_v34 }
0x11a5   : > { %v5100_v35 = vpop.eup %5099  ;;  %v3782_v33 = vadd.f32 1e-05, %v3777_v52  ;;  %v6625_v7 = vadd.f32 %v3845_v56, %v3840_v20 }
0x11a6   : > { %v3799_v21 = vmul.f32 %v5098_v6, %v3798_v46  ;;  %v3805_v25 = vmul.f32 %v5100_v35, %v3781_v27  ;;  %vm3811_vm3 = vweird.f32 %v5100_v35 }
0x11a7   : > { %5101 = vrsqrt.f32 %v3782_v33  ;;  %vm3812_vm5 = vmor %vm3810_vm4, %vm3811_vm3  ;;  %vm3820_vm7 = vweird.f32 %v3782_v33 }
0x11a8   : > { %v3803_v1 = vsel %vm3802_vm13, %v5098_v6, %v3799_v21  ;;  %v3806_v48 = vmul.f32 %v5100_v35, %v3805_v25 }
0x11a9   : > { %v3835_v45 = vmul.f32 %v3803_v1, %v6588_v63 }
0x11aa   : > { %v3807_v22 = vmul.f32 0.5, %v3806_v48 }
0x11ab   : > { %v3841_v16 = vmul.f32 %v3839_v58, %v3835_v45 }
0x11ac   : > { %v3808_v11 = vsub.f32 1.5, %v3807_v22 }
0x11ad   : > { %v5102_v51 = vpop.eup %5101  ;;  %v6627_v4 = vadd.f32 %v3845_v56, %v3841_v16 }
0x11ae   : > { %v3809_v49 = vmul.f32 %v5100_v35, %v3808_v11  ;;  %v3815_v30 = vmul.f32 %v5102_v51, %v3782_v33  ;;  %vm3821_vm6 = vweird.f32 %v5102_v51 }
0x11af   : > { %v3851_v13 = vpack.c.bf16 %v6627_v4, %v6625_v7  ;;  %vm3822_vm8 = vmor %vm3820_vm7, %vm3821_vm6 }
0x11b0   : > { %v3816_v37 = vmul.f32 %v5102_v51, %v3815_v30  ;;  %v3813_v63 = vsel %vm3812_vm5, %v5100_v35, %v3809_v49  ;;  %v4613_v49 = vld [vmem:[%s6815_s8 + $0x30] sm:$0xff] }
0x11b1   : > { %4553 = vmatmul.msk.bf16.vlgmr.msra.gmra.mxu0 %vm373_vm0, %v3851_v13  ;;  %v3836_v36 = vmul.f32 %v3813_v63, %v6594_v2 }
0x11b2   : > { %v3817_v62 = vmul.f32 0.5, %v3816_v37 }
0x11b3   : > { %v3842_v31 = vmul.f32 %v3839_v58, %v3836_v36 }
0x11b4   : > { %v3818_v61 = vsub.f32 1.5, %v3817_v62 }
0x11b5   : > { %v6634_v24 = vadd.f32 %v3845_v56, %v3842_v31 }
0x11b6   : > { %v3819_v39 = vmul.f32 %v5102_v51, %v3818_v61 }
0x11b8   : > { %v3823_v15 = vsel %vm3822_vm8, %v5102_v51, %v3819_v39 }
0x11b9   : > { %v3837_v55 = vmul.f32 %v3823_v15, %v6600_v59 }
0x11bb   : > { %v3843_v50 = vmul.f32 %v3839_v58, %v3837_v55 }
0x11bd   : > { %v6636_v53 = vadd.f32 %v3845_v56, %v3843_v50  ;;  %v4612_v50 = vld [vmem:[%s6815_s8 + $0x28] sm:$0xff] }
0x11bf   : > { %v3852_v43 = vpack.c.bf16 %v6636_v53, %v6634_v24 }
0x11c1   : > { %4554 = vmatmul.msk.bf16.gmra.mxu0 %vm373_vm0, %v3852_v43 }
0x11c8   : > { %v3773_v38 = vpop.xlane.xlu2 %3772 }
0x11c9   : > { %v3778_v2 = vmul.f32 %v3773_v38, %v5230_v19 }
0x11cb   : > { %v3783_v42 = vadd.f32 1e-05, %v3778_v2 }
0x11cd   : > { %5103 = vrsqrt.f32 %v3783_v42  ;;  %vm3830_vm10 = vweird.f32 %v3783_v42 }
0x11d3   : > { %v5104_v28 = vpop.eup %5103 }
0x11d4   : > { %v3825_v23 = vmul.f32 %v5104_v28, %v3783_v42  ;;  %vm3831_vm12 = vweird.f32 %v5104_v28 }
0x11d5   : > { %vm3832_vm11 = vmor %vm3830_vm10, %vm3831_vm12 }
0x11d6   : > { %v3826_v29 = vmul.f32 %v5104_v28, %v3825_v23 }
0x11d8   : > { %v3827_v59 = vmul.f32 0.5, %v3826_v29 }
0x11da   : > { %v3828_v10 = vsub.f32 1.5, %v3827_v59  ;;  %v4611_v59 = vld [vmem:[%s6815_s8 + $0x20] sm:$0xff] }
0x11dc   : > { %v3829_v0 = vmul.f32 %v5104_v28, %v3828_v10 }
0x11de   : > { %v3833_v12 = vsel %vm3832_vm11, %v5104_v28, %v3829_v0 }
0x11df   : > { %v3838_v17 = vmul.f32 %v3833_v12, %v6606_v44 }
0x11e1   : > { %v3844_v40 = vmul.f32 %v3839_v58, %v3838_v17 }
0x11e3   : > { %v6643_v5 = vadd.f32 %v3845_v56, %v3844_v40  ;;  %v4614_v56 = vld [vmem:[%s6815_s8 + $0x38] sm:$0xff] }
0x11e4   : > { %4154 = vmatpush.bf16.msra.mxu2 %v4614_v56 }
0x11e5   : > { %v3853_v60 = vpack.c.bf16 %v6643_v5, %v6643_v5 }
0x11e7   : > { %4555 = vmatmul.msk.bf16.gmra.mxu0 %vm373_vm0, %v3853_v60 }
0x11e8   : > { %4155 = vmatpush.bf16.msra.mxu2 %v4613_v49 }
0x11ec   : > { %4156 = vmatpush.bf16.msra.mxu2 %v4612_v50 }
0x11f0   : > { %4157 = vmatpush.bf16.msra.mxu2 %v4611_v59 }
0x122e   : > { %v3890_v47 = vpop.f32.mrf.mxu0 }
0x122f   : > { %v6652_v14 = vadd.f32 %v3890_v47, %v6649_v54 }
0x1231   : > { %v6655_v57 = vmul.f32 0.70710677, %v6652_v14 }
0x1233   : > { %v3914_v44 = vand.u32 2147483647, %v6655_v57 }
0x1235   : > { %v3919_v6 = vmul.f32 0.3275911, %v3914_v44  ;;  %v4049_v37 = vsub.f32 0.0, %v3914_v44 }
0x1236   : > { %v3892_v27 = vpop.f32.mrf.mxu0 }
0x1237   : > { %v3924_v8 = vadd.f32 1.0, %v3919_v6  ;;  %v6659_v9 = vadd.f32 %v3892_v27, %v6649_v54  ;;  %v4054_v55 = vmul.f32 %v4049_v37, %v3914_v44 }
0x1239   : > { %5105 = vrcp.f32 %v3924_v8  ;;  %v6662_v26 = vmul.f32 0.70710677, %v6659_v9  ;;  %v3940_v21 = vand.u32 2147483648, %v3924_v8  ;;  %v3938_v48 = vand.u32 2147483647, %v3924_v8 }
0x123a   : > { %vm3934_vm15 = vweird.f32 %v3924_v8  ;;  %v4059_v0 = vmul.f32 1.442695, %v4054_v55 }
0x123b   : > { %v6665_v18 = vand.u32 2147483647, %v6662_v26  ;;  %v3941_v16 = vor.u32 1.1754944e-38, %v3940_v21  ;;  %vm3939_vm13 = vcmp.eq.f32.partialorder %v3938_v48, 8.507059e+37 }
0x123d   : > { %v3920_v34 = vmul.f32 0.3275911, %v6665_v18  ;;  %v4050_v60 = vsub.f32 0.0, %v6665_v18 }
0x123e   : > { %v3895_v41 = vpop.f32.mrf.mxu0 }
0x123f   : > { %v5106_v52 = vpop.eup %5105  ;;  %v6669_v46 = vadd.f32 %v3895_v41, %v6649_v54  ;;  %v3925_v58 = vadd.f32 1.0, %v3920_v34 }
0x1240   : > { %v3930_v35 = vmul.f32 %v5106_v52, %v3924_v8  ;;  %vm3935_vm14 = vweird.f32 %v5106_v52 }
0x1241   : > { %v6672_v3 = vmul.f32 0.70710677, %v6669_v46  ;;  %5107 = vrcp.f32 %v3925_v58  ;;  %vm3936_vm2 = vmor %vm3934_vm15, %vm3935_vm14  ;;  %v3955_v31 = vand.u32 2147483648, %v3925_v58  ;;  %v3953_v38 = vand.u32 2147483647, %v3925_v58 }
0x1242   : > { %v3931_v33 = vsub.f32 1.0, %v3930_v35  ;;  %vm3949_vm4 = vweird.f32 %v3925_v58 }
0x1243   : > { %v6675_v25 = vand.u32 2147483647, %v6672_v3  ;;  %v3956_v12 = vor.u32 1.1754944e-38, %v3955_v31  ;;  %vm3954_vm6 = vcmp.eq.f32.partialorder %v3953_v38, 8.507059e+37 }
0x1244   : > { %v3932_v1 = vmul.f32 %v5106_v52, %v3931_v33  ;;  %v4055_v33 = vmul.f32 %v4050_v60, %v6665_v18 }
0x1245   : > { %v3921_v20 = vmul.f32 0.3275911, %v6675_v25 }
0x1246   : > { %v3933_v45 = vadd.f32 %v5106_v52, %v3932_v1  ;;  %v3897_v22 = vpop.f32.mrf.mxu0  ;;  %v4061_v49 = vmul.f32 1.442695, %v4055_v33 }
0x1247   : > { %v3926_v11 = vadd.f32 1.0, %v3921_v20  ;;  %v6682_v51 = vadd.f32 %v3897_v22, %v6649_v54  ;;  %v5108_v30 = vpop.eup %5107 }
0x1248   : > { %v3937_v13 = vsel %vm3936_vm2, %v5106_v52, %v3933_v45  ;;  %v3945_v62 = vmul.f32 %v5108_v30, %v3925_v58  ;;  %vm3950_vm3 = vweird.f32 %v5108_v30 }
0x1249   : > { %v3942_v63 = vsel %vm3939_vm13, %v3941_v16, %v3937_v13  ;;  %5109 = vrcp.f32 %v3926_v11  ;;  %v6688_v39 = vmul.f32 0.70710677, %v6682_v51  ;;  %vm3951_vm5 = vmor %vm3949_vm4, %vm3950_vm3  ;;  %v3970_v34 = vand.u32 2147483648, %v3926_v11 }
0x124a   : > { %v4004_v61 = vmul.f32 1.0614054, %v3942_v63  ;;  %v3946_v36 = vsub.f32 1.0, %v3945_v62  ;;  %v3968_v35 = vand.u32 2147483647, %v3926_v11  ;;  %vm3964_vm8 = vweird.f32 %v3926_v11 }
0x124b   : > { %v6694_v2 = vand.u32 2147483647, %v6688_v39  ;;  %v3971_v56 = vor.u32 1.1754944e-38, %v3970_v34  ;;  %v4051_v13 = vsub.f32 0.0, %v6675_v25  ;;  %vm4079_vm13 = vcmp.ge.f32.partialorder %v6655_v57, 0.0 }
0x124c   : > { %v4009_v15 = vadd.f32 -1.4531521, %v4004_v61  ;;  %v3947_v43 = vmul.f32 %v5108_v30, %v3946_v36  ;;  %vm3969_vm10 = vcmp.eq.f32.partialorder %v3968_v35, 8.507059e+37  ;;  %vm4080_vm3 = vcmp.ge.f32.partialorder %v6662_v26, 0.0 }
0x124d   : > { %v3922_v29 = vmul.f32 0.3275911, %v6694_v2  ;;  %v4056_v50 = vmul.f32 %v4051_v13, %v6675_v25  ;;  %v4052_v60 = vsub.f32 0.0, %v6694_v2  ;;  %vm4081_vm4 = vcmp.ge.f32.partialorder %v6672_v3, 0.0 }
0x124e   : > { %v4014_v42 = vmul.f32 %v4009_v15, %v3942_v63  ;;  %v3948_v23 = vadd.f32 %v5108_v30, %v3947_v43 }
0x124f   : > { %v5110_v28 = vpop.eup %5109  ;;  %v3927_v47 = vadd.f32 1.0, %v3922_v29 }
0x1250   : > { %v4019_v10 = vadd.f32 1.4214138, %v4014_v42  ;;  %v3960_v17 = vmul.f32 %v5110_v28, %v3926_v11  ;;  %v3952_v40 = vsel %vm3951_vm5, %v5108_v30, %v3948_v23  ;;  %vm3965_vm7 = vweird.f32 %v5110_v28 }
0x1251   : > { %v3957_v6 = vsel %vm3954_vm6, %v3956_v12, %v3952_v40  ;;  %5111 = vrcp.f32 %v3927_v47  ;;  %vm3966_vm12 = vmor %vm3964_vm8, %vm3965_vm7  ;;  %v3985_v43 = vand.u32 2147483648, %v3927_v47  ;;  %vm3979_vm14 = vweird.f32 %v3927_v47 }
0x1252   : > { %v4024_v44 = vmul.f32 %v4019_v10, %v3942_v63  ;;  %v3961_v27 = vsub.f32 1.0, %v3960_v17  ;;  %v4005_v8 = vmul.f32 1.0614054, %v3957_v6  ;;  %5113 = vpow2.f32 %v4059_v0 }
0x1253   : > { %5115 = vpow2.f32 %v4061_v49  ;;  %v4063_v0 = vmul.f32 1.442695, %v4056_v50  ;;  %v3986_v12 = vor.u32 1.1754944e-38, %v3985_v43  ;;  %vm4082_vm6 = vcmp.ge.f32.partialorder %v6688_v39, 0.0 }
0x1254   : > { %v4029_v41 = vadd.f32 -0.28449672, %v4024_v44  ;;  %v3962_v52 = vmul.f32 %v5110_v28, %v3961_v27  ;;  %v4010_v58 = vadd.f32 -1.4531521, %v4005_v8 }
0x1255   : > { %5117 = vpow2.f32 %v4063_v0 }
0x1256   : > { %v4034_v21 = vmul.f32 %v4029_v41, %v3942_v63  ;;  %v3963_v1 = vadd.f32 %v5110_v28, %v3962_v52  ;;  %v4015_v48 = vmul.f32 %v4010_v58, %v3957_v6 }
0x1257   : > { %v5112_v22 = vpop.eup %5111 }
0x1258   : > { %v4039_v20 = vadd.f32 0.2548296, %v4034_v21  ;;  %v3967_v45 = vsel %vm3966_vm12, %v5110_v28, %v3963_v1  ;;  %v4020_v16 = vadd.f32 1.4214138, %v4015_v48  ;;  %v3975_v61 = vmul.f32 %v5112_v22, %v3927_v47  ;;  %v5114_v36 = vpop.eup %5113 }
0x1259   : > { %v3972_v30 = vsel %vm3969_vm10, %v3971_v56, %v3967_v45  ;;  %vm3980_vm11 = vweird.f32 %v5112_v22  ;;  %v3983_v28 = vand.u32 2147483647, %v3927_v47  ;;  %v5116_v25 = vpop.eup %5115  ;;  %v4057_v21 = vmul.f32 %v4052_v60, %v6694_v2 }
0x125a   : > { %v4044_v37 = vmul.f32 %v4039_v20, %v3942_v63  ;;  %v4006_v62 = vmul.f32 1.0614054, %v3972_v30  ;;  %v4025_v18 = vmul.f32 %v4020_v16, %v3957_v6  ;;  %v3976_v11 = vsub.f32 1.0, %v3975_v61  ;;  %vm3981_vm15 = vmor %vm3979_vm14, %vm3980_vm11 }
0x125b   : > { %vm3984_vm2 = vcmp.eq.f32.partialorder %v3983_v28, 8.507059e+37  ;;  %v4065_v57 = vmul.f32 1.442695, %v4057_v21  ;;  %v5118_v13 = vpop.eup %5117  ;;  %v3905_v61 = vmul.f32 0.5, %v6659_v9 }
0x125c   : > { %v4069_v15 = vmul.f32 %v5114_v36, %v4044_v37  ;;  %v4011_v55 = vadd.f32 -1.4531521, %v4006_v62  ;;  %v4030_v31 = vadd.f32 -0.28449672, %v4025_v18  ;;  %v3977_v42 = vmul.f32 %v5112_v22, %v3976_v11 }
0x125d   : > { %v3904_v37 = vmul.f32 0.5, %v6652_v14  ;;  %5119 = vpow2.f32 %v4065_v57 }
0x125e   : > { %v4016_v38 = vmul.f32 %v4011_v55, %v3972_v30  ;;  %v4074_v23 = vsub.f32 1.0, %v4069_v15  ;;  %v4035_v29 = vmul.f32 %v4030_v31, %v3957_v6  ;;  %v3978_v63 = vadd.f32 %v5112_v22, %v3977_v42 }
0x1260   : > { %v4021_v59 = vadd.f32 1.4214138, %v4016_v38  ;;  %v4040_v10 = vadd.f32 0.2548296, %v4035_v29  ;;  %v3982_v40 = vsel %vm3981_vm15, %v5112_v22, %v3978_v63  ;;  %v4084_v44 = vsub.f32 0.0, %v4074_v23 }
0x1261   : > { %v3987_v8 = vsel %vm3984_vm2, %v3986_v12, %v3982_v40 }
0x1262   : > { %v4026_v17 = vmul.f32 %v4021_v59, %v3972_v30  ;;  %v4045_v27 = vmul.f32 %v4040_v10, %v3957_v6  ;;  %v4007_v41 = vmul.f32 1.0614054, %v3987_v8  ;;  %v4089_v1 = vsel %vm4079_vm13, %v4074_v23, %v4084_v44 }
0x1263   : > { %v5120_v14 = vpop.eup %5119 }
0x1264   : > { %v4031_v34 = vadd.f32 -0.28449672, %v4026_v17  ;;  %v3900_v52 = vpop.f32.mrf.mxu0  ;;  %v4070_v35 = vmul.f32 %v5116_v25, %v4045_v27  ;;  %v4012_v33 = vadd.f32 -1.4531521, %v4007_v41 }
0x1265   : > { %v6706_v47 = vadd.f32 %v3900_v52, %v6649_v54  ;;  %v4094_v54 = vadd.f32 1.0, %v4089_v1 }
0x1266   : > { %v4036_v58 = vmul.f32 %v4031_v34, %v3972_v30  ;;  %v4075_v48 = vsub.f32 1.0, %v4070_v35  ;;  %v4017_v20 = vmul.f32 %v4012_v33, %v3987_v8  ;;  %v3907_v34 = vmul.f32 0.5, %v6682_v51 }
0x1267   : > { %v6711_v56 = vmul.f32 0.70710677, %v6706_v47  ;;  %v4099_v26 = vmul.f32 %v4094_v54, %v3904_v37 }
0x1268   : > { %v4041_v6 = vadd.f32 0.2548296, %v4036_v58  ;;  %v4085_v45 = vsub.f32 0.0, %v4075_v48  ;;  %v4022_v49 = vadd.f32 1.4214138, %v4017_v20 }
0x1269   : > { %v3918_v22 = vand.u32 2147483647, %v6711_v56  ;;  %vm4083_vm10 = vcmp.ge.f32.partialorder %v6711_v56, 0.0 }
0x126a   : > { %v4046_v16 = vmul.f32 %v4041_v6, %v3972_v30  ;;  %v4090_v2 = vsel %vm4080_vm3, %v4075_v48, %v4085_v45  ;;  %v4027_v15 = vmul.f32 %v4022_v49, %v3987_v8 }
0x126b   : > { %v3923_v62 = vmul.f32 0.3275911, %v3918_v22  ;;  %v4095_v36 = vadd.f32 1.0, %v4090_v2  ;;  %v4053_v21 = vsub.f32 0.0, %v3918_v22 }
0x126c   : > { %v4071_v18 = vmul.f32 %v5118_v13, %v4046_v16  ;;  %v3902_v55 = vpop.f32.mrf.mxu0  ;;  %v4032_v50 = vadd.f32 -0.28449672, %v4027_v15 }
0x126d   : > { %v3928_v11 = vadd.f32 1.0, %v3923_v62  ;;  %v4100_v31 = vmul.f32 %v4095_v36, %v3905_v61  ;;  %v4058_v39 = vmul.f32 %v4053_v21, %v3918_v22  ;;  %v3908_v22 = vmul.f32 0.5, %v6706_v47 }
0x126e   : > { %v4076_v43 = vsub.f32 1.0, %v4071_v18  ;;  %v4037_v38 = vmul.f32 %v4032_v50, %v3987_v8  ;;  %v4116_v55 = vperm.slane %v6568_v32, 5 }
0x126f   : > { %5121 = vrcp.f32 %v3928_v11  ;;  %v4104_v30 = vpack.c.bf16 %v4100_v31, %v4099_v26  ;;  %v4000_v12 = vand.u32 2147483648, %v3928_v11  ;;  %v3998_v60 = vand.u32 2147483647, %v3928_v11 }
0x1270   : > { %v4042_v42 = vadd.f32 0.2548296, %v4037_v38  ;;  %v4086_v28 = vsub.f32 0.0, %v4076_v43  ;;  %vm3994_vm7 = vweird.f32 %v3928_v11 }
0x1271   : > { %4580 = vmatmul.msk.bf16.vlgmr.msra.gmra.mxu2 %vm667_vm9, %v4104_v30  ;;  %v4001_v3 = vor.u32 1.1754944e-38, %v4000_v12  ;;  %vm3999_vm12 = vcmp.eq.f32.partialorder %v3998_v60, 8.507059e+37 }
0x1272   : > { %v4047_v23 = vmul.f32 %v4042_v42, %v3987_v8  ;;  %v4091_v63 = vsel %vm4081_vm4, %v4076_v43, %v4086_v28  ;;  %v3906_v8 = vmul.f32 0.5, %v6669_v46  ;;  %v4067_v46 = vmul.f32 1.442695, %v4058_v39 }
0x1273   : > { %v4096_v25 = vadd.f32 1.0, %v4091_v63 }
0x1274   : > { %v4072_v29 = vmul.f32 %v5120_v14, %v4047_v23  ;;  %5123 = vpow2.f32 %v4067_v46 }
0x1275   : > { %v5122_v9 = vpop.eup %5121  ;;  %v4101_v35 = vmul.f32 %v4096_v25, %v3906_v8 }
0x1276   : > { %v3990_v59 = vmul.f32 %v5122_v9, %v3928_v11  ;;  %v4077_v10 = vsub.f32 1.0, %v4072_v29  ;;  %vm3995_vm5 = vweird.f32 %v5122_v9 }
0x1277   : > { %vm3996_vm8 = vmor %vm3994_vm7, %vm3995_vm5 }
0x1278   : > { %v3991_v0 = vsub.f32 1.0, %v3990_v59  ;;  %v4087_v17 = vsub.f32 0.0, %v4077_v10 }
0x127a   : > { %v3992_v40 = vmul.f32 %v5122_v9, %v3991_v0  ;;  %v4092_v44 = vsel %vm4082_vm6, %v4077_v10, %v4087_v17  ;;  %v5124_v13 = vpop.eup %5123 }
0x127b   : > { %v4097_v41 = vadd.f32 1.0, %v4092_v44 }
0x127c   : > { %v3993_v27 = vadd.f32 %v5122_v9, %v3992_v40 }
0x127d   : > { %v4102_v58 = vmul.f32 %v4097_v41, %v3907_v34 }
0x127e   : > { %v3997_v52 = vsel %vm3996_vm8, %v5122_v9, %v3993_v27 }
0x127f   : > { %v4002_v33 = vsel %vm3999_vm12, %v4001_v3, %v3997_v52  ;;  %v4105_v48 = vpack.c.bf16 %v4102_v58, %v4101_v35 }
0x1280   : > { %v4008_v1 = vmul.f32 1.0614054, %v4002_v33 }
0x1281   : > { %4581 = vmatmul.msk.bf16.gmra.mxu2 %vm667_vm9, %v4105_v48 }
0x1282   : > { %v4013_v6 = vadd.f32 -1.4531521, %v4008_v1 }
0x1284   : > { %v4018_v20 = vmul.f32 %v4013_v6, %v4002_v33 }
0x1286   : > { %v4023_v45 = vadd.f32 1.4214138, %v4018_v20 }
0x1288   : > { %v4028_v54 = vmul.f32 %v4023_v45, %v4002_v33 }
0x128a   : > { %v4033_v51 = vadd.f32 -0.28449672, %v4028_v54 }
0x128c   : > { %v4038_v16 = vmul.f32 %v4033_v51, %v4002_v33 }
0x128e   : > { %v4043_v49 = vadd.f32 0.2548296, %v4038_v16 }
0x1290   : > { %v4048_v57 = vmul.f32 %v4043_v49, %v4002_v33 }
0x1292   : > { %v4073_v37 = vmul.f32 %v5124_v13, %v4048_v57 }
0x1294   : > { %v4078_v2 = vsub.f32 1.0, %v4073_v37 }
0x1296   : > { %v4088_v62 = vsub.f32 0.0, %v4078_v2 }
0x1298   : > { %v4093_v61 = vsel %vm4083_vm10, %v4078_v2, %v4088_v62 }
0x1299   : > { %v4098_v36 = vadd.f32 1.0, %v4093_v61 }
0x129b   : > { %v4103_v18 = vmul.f32 %v4098_v36, %v3908_v22 }
0x129d   : > { %v4106_v15 = vpack.c.bf16 %v4103_v18, %v4103_v18 }
0x129f   : > { %4582 = vmatmul.msk.bf16.gmra.mxu2 %vm667_vm9, %v4106_v15 }
0x12f4   : > { %v4159_v11 = vpop.f32.mrf.mxu2 }
0x12f5   : > { %v4160_v26 = vadd.f32 %v4159_v11, %v4116_v55 }
0x12f7   : > { %v4173_v31 = vadd.f32 %v4160_v26, %v6625_v7  ;;  %v6767_v26 = vperm.slane %v6568_v32, 6 }
0x12f9   : > { %v4178_v50 = vsel %vm373_vm0, %v4173_v31, 0.0 }
0x12fa   : > { %4179 = vadd.xlane.f32.xlu0 %v4178_v50 }
0x12fc   : > { %v4161_v30 = vpop.f32.mrf.mxu2 }
0x12fd   : > { %v4162_v43 = vadd.f32 %v4161_v30, %v4116_v55  ;;  %v6771_v30 = vperm.slane %v6568_v32, 7 }
0x12ff   : > { %v4174_v56 = vadd.f32 %v4162_v43, %v6627_v4 }
0x1301   : > { %v4181_v47 = vsel %vm373_vm0, %v4174_v56, 0.0 }
0x1302   : > { %4182 = vadd.xlane.f32.xlu1 %v4181_v47 }
0x1304   : > { %v4164_v38 = vpop.f32.mrf.mxu2 }
0x1305   : > { %v4165_v42 = vadd.f32 %v4164_v38, %v4116_v55 }
0x1307   : > { %v4175_v14 = vadd.f32 %v4165_v42, %v6634_v24 }
0x1309   : > { %v4184_v28 = vsel %vm373_vm0, %v4175_v14, 0.0 }
0x130a   : > { %4185 = vadd.xlane.f32.xlu2 %v4184_v28 }
0x130c   : > { %v4166_v23 = vpop.f32.mrf.mxu2 }
0x130d   : > { %v4167_v9 = vadd.f32 %v4166_v23, %v4116_v55 }
0x130f   : > { %v4176_v7 = vadd.f32 %v4167_v9, %v6636_v53 }
0x1311   : > { %v4187_v29 = vsel %vm373_vm0, %v4176_v7, 0.0 }
0x1312   : > { %4188 = vadd.xlane.f32.xlu0 %v4187_v29 }
0x1322   : > { %v4169_v59 = vpop.f32.mrf.mxu2 }
0x1323   : > { %v4170_v63 = vadd.f32 %v4169_v59, %v4116_v55 }
0x1325   : > { %v4177_v4 = vadd.f32 %v4170_v63, %v6643_v5 }
0x1327   : > { %v4190_v10 = vsel %vm386_vm1, %v4177_v4, 0.0 }
0x1328   : > { %4191 = vadd.xlane.f32.xlu1 %v4190_v10 }
0x132a   : > { %v4171_v0 = vpop.f32.mrf.mxu2 }
0x136d   : > { %v4180_v12 = vpop.xlane.xlu0 %4179 }
0x136e   : > { %v4193_v24 = vmul.f32 %v4180_v12, %v5230_v19 }
0x1370   : > { %v4198_v17 = vsub.f32 %v4173_v31, %v4193_v24 }
0x1372   : > { %v4203_v40 = vmul.f32 %v4198_v17, %v4198_v17 }
0x1374   : > { %v4208_v60 = vsel %vm373_vm0, %v4203_v40, 0.0 }
0x1375   : > { %v4183_v25 = vpop.xlane.xlu1 %4182  ;;  %4209 = vadd.xlane.f32.xlu2 %v4208_v60 }
0x1376   : > { %v4194_v53 = vmul.f32 %v4183_v25, %v5230_v19 }
0x1378   : > { %v6740_v44 = vsub.f32 %v4174_v56, %v4194_v53 }
0x137a   : > { %v4204_v5 = vmul.f32 %v6740_v44, %v6740_v44 }
0x137c   : > { %v4211_v27 = vsel %vm373_vm0, %v4204_v5, 0.0 }
0x137d   : > { %4212 = vadd.xlane.f32.xlu0 %v4211_v27  ;;  %v4186_v8 = vpop.xlane.xlu2 %4185 }
0x137e   : > { %v4195_v34 = vmul.f32 %v4186_v8, %v5230_v19 }
0x1380   : > { %v6746_v41 = vsub.f32 %v4175_v14, %v4195_v34 }
0x1382   : > { %v4205_v3 = vmul.f32 %v6746_v41, %v6746_v41 }
0x1384   : > { %v4214_v52 = vsel %vm373_vm0, %v4205_v3, 0.0 }
0x1385   : > { %v4189_v35 = vpop.xlane.xlu0 %4188  ;;  %4215 = vadd.xlane.f32.xlu1 %v4214_v52 }
0x1386   : > { %v4196_v58 = vmul.f32 %v4189_v35, %v5230_v19 }
0x1388   : > { %v6752_v33 = vsub.f32 %v4176_v7, %v4196_v58 }
0x138a   : > { %v4206_v21 = vmul.f32 %v6752_v33, %v6752_v33 }
0x138c   : > { %v4217_v1 = vsel %vm373_vm0, %v4206_v21, 0.0 }
0x138d   : > { %4218 = vadd.xlane.f32.xlu2 %v4217_v1 }
0x139b   : > { %v4192_v48 = vpop.xlane.xlu1 %4191 }
0x139c   : > { %v4197_v6 = vmul.f32 %v4192_v48, %v5230_v19 }
0x139e   : > { %v6758_v39 = vsub.f32 %v4177_v4, %v4197_v6 }
0x13a0   : > { %v4207_v20 = vmul.f32 %v6758_v39, %v6758_v39 }
0x13a2   : > { %v4220_v45 = vsel %vm386_vm1, %v4207_v20, 0.0 }
0x13a3   : > { %4221 = vadd.xlane.f32.xlu0 %v4220_v45 }
0x13e8   : > { %v4210_v46 = vpop.xlane.xlu2 %4209 }
0x13e9   : > { %v4223_v54 = vmul.f32 %v4210_v46, %v5230_v19 }
0x13eb   : > { %v4228_v51 = vadd.f32 1e-05, %v4223_v54 }
0x13ed   : > { %5125 = vrsqrt.f32 %v4228_v51  ;;  %vm4239_vm11 = vweird.f32 %v4228_v51 }
0x13f0   : > { %v4213_v16 = vpop.xlane.xlu0 %4212 }
0x13f1   : > { %v4224_v49 = vmul.f32 %v4213_v16, %v5230_v19 }
0x13f3   : > { %v5126_v57 = vpop.eup %5125  ;;  %v4229_v13 = vadd.f32 1e-05, %v4224_v49 }
0x13f4   : > { %v4234_v37 = vmul.f32 %v5126_v57, %v4228_v51  ;;  %vm4240_vm9 = vweird.f32 %v5126_v57 }
0x13f5   : > { %5127 = vrsqrt.f32 %v4229_v13  ;;  %vm4241_vm14 = vmor %vm4239_vm11, %vm4240_vm9  ;;  %vm4249_vm2 = vweird.f32 %v4229_v13 }
0x13f6   : > { %v4235_v2 = vmul.f32 %v5126_v57, %v4234_v37 }
0x13f8   : > { %v4236_v62 = vmul.f32 0.5, %v4235_v2  ;;  %v4216_v61 = vpop.xlane.xlu1 %4215 }
0x13f9   : > { %v4225_v36 = vmul.f32 %v4216_v61, %v5230_v19 }
0x13fa   : > { %v4237_v22 = vsub.f32 1.5, %v4236_v62 }
0x13fb   : > { %v5128_v18 = vpop.eup %5127  ;;  %v4230_v11 = vadd.f32 1e-05, %v4225_v36 }
0x13fc   : > { %v4238_v15 = vmul.f32 %v5126_v57, %v4237_v22  ;;  %v4244_v55 = vmul.f32 %v5128_v18, %v4229_v13  ;;  %vm4250_vm15 = vweird.f32 %v5128_v18 }
0x13fd   : > { %5129 = vrsqrt.f32 %v4230_v11  ;;  %vm4251_vm13 = vmor %vm4249_vm2, %vm4250_vm15  ;;  %vm4259_vm4 = vweird.f32 %v4230_v11 }
0x13fe   : > { %v4242_v31 = vsel %vm4241_vm14, %v5126_v57, %v4238_v15  ;;  %v4245_v50 = vmul.f32 %v5128_v18, %v4244_v55 }
0x13ff   : > { %v4283_v43 = vmul.f32 %v4242_v31, %v4198_v17 }
0x1400   : > { %v4246_v56 = vmul.f32 0.5, %v4245_v50  ;;  %v4219_v38 = vpop.xlane.xlu2 %4218 }
0x1401   : > { %v4289_v47 = vmul.f32 %v6767_v26, %v4283_v43  ;;  %v4226_v14 = vmul.f32 %v4219_v38, %v5230_v19 }
0x1402   : > { %v4247_v42 = vsub.f32 1.5, %v4246_v56 }
0x1403   : > { %v4295_v28 = vadd.f32 %v6771_v30, %v4289_v47  ;;  %v5130_v23 = vpop.eup %5129  ;;  %v4231_v9 = vadd.f32 1e-05, %v4226_v14 }
0x1404   : > { %v4248_v32 = vmul.f32 %v5128_v18, %v4247_v42  ;;  %v4254_v7 = vmul.f32 %v5130_v23, %v4230_v11  ;;  %vm4260_vm3 = vweird.f32 %v5130_v23 }
0x1405   : > { %4300 = vst.msk [vmem:[%s6777_s23] sm:$0xff] %vm373_vm0, %v4295_v28  ;;  %5131 = vrsqrt.f32 %v4231_v9  ;;  %vm4261_vm5 = vmor %vm4259_vm4, %vm4260_vm3  ;;  %vm4269_vm7 = vweird.f32 %v4231_v9 }
0x1406   : > { %v4252_v29 = vsel %vm4251_vm13, %v5128_v18, %v4248_v32  ;;  %v4255_v63 = vmul.f32 %v5130_v23, %v4254_v7 }
0x1407   : > { %v4284_v59 = vmul.f32 %v4252_v29, %v6740_v44 }
0x1408   : > { %v4256_v10 = vmul.f32 0.5, %v4255_v63 }
0x1409   : > { %v4290_v4 = vmul.f32 %v6767_v26, %v4284_v59 }
0x140a   : > { %v4257_v12 = vsub.f32 1.5, %v4256_v10 }
0x140b   : > { %v4296_v0 = vadd.f32 %v6771_v30, %v4290_v4  ;;  %v5132_v24 = vpop.eup %5131 }
0x140c   : > { %v4258_v17 = vmul.f32 %v5130_v23, %v4257_v12  ;;  %v4264_v40 = vmul.f32 %v5132_v24, %v4231_v9  ;;  %vm4270_vm6 = vweird.f32 %v5132_v24 }
0x140d   : > { %4301 = vst.msk [vmem:[%s6777_s23 + $0x8] sm:$0xff] %vm373_vm0, %v4296_v0  ;;  %vm4271_vm8 = vmor %vm4269_vm7, %vm4270_vm6 }
0x140e   : > { %v4262_v60 = vsel %vm4261_vm5, %v5130_v23, %v4258_v17  ;;  %v4265_v25 = vmul.f32 %v5132_v24, %v4264_v40 }
0x140f   : > { %v4285_v53 = vmul.f32 %v4262_v60, %v6746_v41 }
0x1410   : > { %v4266_v44 = vmul.f32 0.5, %v4265_v25 }
0x1411   : > { %v4291_v5 = vmul.f32 %v6767_v26, %v4285_v53 }
0x1412   : > { %v4267_v27 = vsub.f32 1.5, %v4266_v44 }
0x1413   : > { %v4297_v8 = vadd.f32 %v6771_v30, %v4291_v5 }
0x1414   : > { %v4268_v34 = vmul.f32 %v5132_v24, %v4267_v27 }
0x1415   : > { %4302 = vst.msk [vmem:[%s6777_s23 + $0x10] sm:$0xff] %vm373_vm0, %v4297_v8 }
0x1416   : > { %v4222_v3 = vpop.xlane.xlu0 %4221  ;;  %v4272_v35 = vsel %vm4271_vm8, %v5132_v24, %v4268_v34 }
0x1417   : > { %v4227_v52 = vmul.f32 %v4222_v3, %v5230_v19  ;;  %v4286_v58 = vmul.f32 %v4272_v35, %v6752_v33 }
0x1419   : > { %v4232_v41 = vadd.f32 1e-05, %v4227_v52  ;;  %v4292_v21 = vmul.f32 %v6767_v26, %v4286_v58 }
0x141b   : > { %5133 = vrsqrt.f32 %v4232_v41  ;;  %v4298_v1 = vadd.f32 %v6771_v30, %v4292_v21  ;;  %vm4279_vm10 = vweird.f32 %v4232_v41 }
0x141d   : > { %4303 = vst.msk [vmem:[%s6777_s23 + $0x18] sm:$0xff] %vm373_vm0, %v4298_v1 }
0x1421   : > { %v5134_v48 = vpop.eup %5133 }
0x1422   : > { %v4274_v6 = vmul.f32 %v5134_v48, %v4232_v41  ;;  %vm4280_vm12 = vweird.f32 %v5134_v48 }
0x1423   : > { %vm4281_vm9 = vmor %vm4279_vm10, %vm4280_vm12 }
0x1424   : > { %v4275_v20 = vmul.f32 %v5134_v48, %v4274_v6 }
0x1426   : > { %v4276_v45 = vmul.f32 0.5, %v4275_v20 }
0x1428   : > { %v4277_v46 = vsub.f32 1.5, %v4276_v45 }
0x142a   : > { %v4278_v54 = vmul.f32 %v5134_v48, %v4277_v46 }
0x142c   : > { %v4282_v19 = vsel %vm4281_vm9, %v5134_v48, %v4278_v54 }
0x142d   : > { %v4287_v33 = vmul.f32 %v4282_v19, %v6758_v39 }
0x142f   : > { %v4293_v51 = vmul.f32 %v6767_v26, %v4287_v33 }
0x1431   : > { %v4299_v16 = vadd.f32 %v6771_v30, %v4293_v51 }
0x1433   : > { %4304 = vst.msk [vmem:[%s6777_s23 + $0x20] sm:$0x7f] %vm386_vm1, %v4299_v16 }
0x1434 PF: > { %s20_s13 = sadd.s32 1, %s5143_s13  }
0x1435   : > { %p17_p4 = scmp.ge.s32.totalorder %s20_s13, 4  }
0x1437   :  { %19 = sbr.rel (!%p17_p4) target bundleno = 1 (0x1), region = 95 }

</bundles_post_ra>
